<compile_context>
chip_gen: v6e
topology: v6e:2x2x1
jax: 0.10.0
libtpu: 0.0.40
codegen_flags: <defaults>
</compile_context>

<pallas_src>
import jax
import jax.numpy as jnp
from jax.experimental import pallas as pl
from jax.experimental.pallas import tpu as pltpu


def _round_up(x, m):
    return (x + m - 1) // m * m


# ----------------------------------------------------------------------------
# Pallas kernel: fused matmul + bias  (bf16 inputs, f32 MXU accumulation)
# ----------------------------------------------------------------------------
def _matmul_bias_kernel(a_ref, w_ref, b_ref, o_ref):
    acc = jnp.dot(a_ref[...], w_ref[...], preferred_element_type=jnp.float32)
    o_ref[...] = (acc + b_ref[...]).astype(o_ref.dtype)


def matmul_bias(a, w, b2d, out_dtype, *, tile_m=256, single_shot_max_m=1024):
    """out = a @ w + b via one Pallas TPU kernel.

    a: [M, K] bf16, w: [K, N] bf16, b2d: [1, N] f32  ->  [M, N] out_dtype.
    Weights/bias are consumed exactly as passed (pre-laid-out at init time):
    no per-call weight padding.  For M <= single_shot_max_m the whole problem
    is one full-array block (grid=(1,), legal for any M/K/N since block ==
    array dims); otherwise it tiles over M only, keeping K and N resident.
    """
    M, K = a.shape
    Kw, N = w.shape
    assert K == Kw and b2d.shape == (1, N)

    if M <= single_shot_max_m:
        tm, grid, a_in, Mp = M, (1,), a, M
    else:
        # Cap the A block at ~2 MiB so large batches stay within scoped VMEM
        # (important on v5e's 16 MiB default limit).
        bytes_per_row = K * a.dtype.itemsize
        tm = min(tile_m, max(8, ((2 << 20) // bytes_per_row) // 8 * 8))
        Mp = _round_up(M, tm)
        a_in = jnp.pad(a, ((0, Mp - M), (0, 0))) if Mp != M else a
        grid = (Mp // tm,)

    out = pl.pallas_call(
        _matmul_bias_kernel,
        out_shape=jax.ShapeDtypeStruct((Mp, N), out_dtype),
        grid=grid,
        in_specs=[
            pl.BlockSpec((tm, K), lambda i: (i, 0)),
            pl.BlockSpec((K, N), lambda i: (0, 0)),
            pl.BlockSpec((1, N), lambda i: (0, 0)),
        ],
        out_specs=pl.BlockSpec((tm, N), lambda i: (i, 0)),
        compiler_params=pltpu.CompilerParams(
            dimension_semantics=("parallel",)),
    )(a_in, w, b2d)
    return out if Mp == M else out[:M]


# ----------------------------------------------------------------------------
# NHWC im2col glue (plain JAX; column order = (kh, kw, channel))
# ----------------------------------------------------------------------------
def _im2col_nhwc(x, kh, kw, stride):
    B, H, W, C = x.shape
    oh = (H - kh) // stride + 1
    ow = (W - kw) // stride + 1
    cols = [x[:, i:i + stride * oh:stride, j:j + stride * ow:stride, :]
            for i in range(kh) for j in range(kw)]
    # [B, oh, ow, kh*kw, C] -> [B, oh, ow, kh*kw*C]
    patches = jnp.stack(cols, axis=3).reshape(B, oh, ow, kh * kw * C)
    return patches, oh, ow


def conv_gemm(x, w2d, b2d, *, kh, kw, stride):
    """NHWC conv as im2col + Pallas GEMM.  Output stays NHWC (bf16)."""
    B = x.shape[0]
    patches, oh, ow = _im2col_nhwc(x, kh, kw, stride)
    out = matmul_bias(patches.reshape(B * oh * ow, -1), w2d, b2d,
                      out_dtype=jnp.bfloat16)
    return out.reshape(B, oh, ow, w2d.shape[1])


# ----------------------------------------------------------------------------
# Parameters: PyTorch-layout init + one-time kernel-layout preparation
# ----------------------------------------------------------------------------
def init_estimator_params(key, input_features=4, output_actions=4):
    code_dim = 7 * 7 * 64
    shapes = {
        "conv1_w": (32, input_features, 8, 8),
        "conv1_b": (32,),
        "conv2_w": (64, 32, 4, 4),
        "conv2_b": (64,),
        "conv3_w": (64, 64, 3, 3),
        "conv3_b": (64,),
        "dense1_w": (512, code_dim),   # PyTorch Linear layout [out, in]
        "dense1_b": (512,),
        "dense2_w": (output_actions, 512),
        "dense2_b": (output_actions,),
    }
    params = {}
    keys = jax.random.split(key, len(shapes))
    for k, (name, shape) in zip(keys, shapes.items()):
        if name.endswith("_w"):
            fan_in = 1
            for d in shape[1:]:
                fan_in *= int(d)
        else:
            fan_in = max(int(shape[0]), 1)
        bound = 1.0 / (fan_in ** 0.5)
        params[name] = jax.random.uniform(
            k, shape, jnp.float32, minval=-bound, maxval=bound)
    return params


def prepare_params(params):
    """One-time (outside the jitted forward) layout / folding / bf16 cast."""
    def conv_w(w):  # torch [OC, IC, KH, KW] -> [KH*KW*IC, OC], (kh, kw, ic) rows
        oc, ic, kh, kw = w.shape
        return jnp.transpose(w, (2, 3, 1, 0)).reshape(kh * kw * ic, oc)

    w1 = conv_w(params["conv1_w"])
    w2 = conv_w(params["conv2_w"])

    # --- fold Dense1 o Dense2 (no activation between them) -------------------
    d1w = params["dense1_w"]                    # [512, 3136], in-idx = c*49+h*7+w
    d2w = params["dense2_w"]                    # [A, 512]
    n_act = d2w.shape[0]
    # permute Dense1's input rows from NCHW-flatten order to (h, w, c) order
    d1w_hwc = d1w.reshape(512, 64, 7, 7).transpose(0, 2, 3, 1).reshape(512, 3136)
    wf = d1w_hwc.T @ d2w.T                      # [3136, A], rows in (h, w, c)
    bf_dense = params["dense1_b"] @ d2w.T + params["dense2_b"]          # [A]
    wf_hwca = wf.reshape(7, 7, 64, n_act)

    # --- fold Conv3 into the fused dense head --------------------------------
    # head operates on the 3x3 im2col patches of the Conv2 output, flattened
    # per batch in (h, w, kh, kw, ic) order -> [B, 7*7*3*3*64] @ [28224, A].
    w3_kkio = jnp.transpose(params["conv3_w"], (2, 3, 1, 0))   # [3,3,IC,OC]
    w_head = jnp.einsum("pqio,hwoa->hwpqia", w3_kkio, wf_hwca)
    w_head = w_head.reshape(7 * 7 * 3 * 3 * 64, n_act)
    b_head = jnp.einsum("o,hwoa->a", params["conv3_b"], wf_hwca) + bf_dense

    return {
        "w1": w1.astype(jnp.bfloat16),
        "b1": params["conv1_b"].reshape(1, -1).astype(jnp.float32),
        "w2": w2.astype(jnp.bfloat16),
        "b2": params["conv2_b"].reshape(1, -1).astype(jnp.float32),
        "w_head": w_head.astype(jnp.bfloat16),
        "b_head": b_head.reshape(1, -1).astype(jnp.float32),
    }


# ----------------------------------------------------------------------------
# Forward pass
# ----------------------------------------------------------------------------
def estimator_forward(kp, observation):
    # observation: NCHW [B, 4, 84, 84] float32 (PyTorch interface).
    B = observation.shape[0]
    x = jnp.transpose(observation, (0, 2, 3, 1)).astype(jnp.bfloat16)   # NHWC
    x = conv_gemm(x, kp["w1"], kp["b1"], kh=8, kw=8, stride=4)   # [B,20,20,32]
    x = conv_gemm(x, kp["w2"], kp["b2"], kh=4, kw=4, stride=2)   # [B, 9, 9,64]
    # Conv3 + flatten + Dense1 + Dense2, all folded into one GEMM.
    patches, _, _ = _im2col_nhwc(x, 3, 3, 1)                     # [B,7,7,576]
    q = matmul_bias(patches.reshape(B, -1), kp["w_head"], kp["b_head"],
                    out_dtype=jnp.float32)                       # [B, A]
    return q


if __name__ == "__main__":
    key = jax.random.PRNGKey(0)
    pkey, xkey = jax.random.split(key)

    params = init_estimator_params(pkey, input_features=4, output_actions=4)
    kparams = prepare_params(params)   # one-time layout / fold / cast

    # Batch=2; spatial must be 84x84 because the module hard-codes 7*7*64.
    observation = jax.random.normal(xkey, (2, 4, 84, 84), jnp.float32)

    fwd = jax.jit(estimator_forward)
    q_values = jax.block_until_ready(fwd(kparams, observation))

    assert q_values.shape == (2, 4), q_values.shape
    assert q_values.dtype == jnp.float32
    assert bool(jnp.all(jnp.isfinite(q_values)))
    print("KERNEL_OK")
</pallas_src>

<mosaic_0001>
module attributes {stable_mosaic.version = 11 : i64} {
  func.func @_matmul_bias_kernel(%arg0: i32, %arg1: memref<800x256xbf16, #tpu.memory_space<vmem>>, %arg2: memref<256x32xbf16, #tpu.memory_space<vmem>>, %arg3: memref<1x32xf32, #tpu.memory_space<vmem>>, %arg4: memref<800x32xbf16, #tpu.memory_space<vmem>>) attributes {dimension_semantics = [#tpu.dimension_semantics<parallel>], iteration_bounds = array<i64: 1>, scalar_prefetch = 0 : i64, scratch_operands = 0 : i64, tpu.core_type = #tpu.core_type<tc>, window_params = [{transform_indices = @transform_0, window_bounds = array<i64: 800, 256>}, {pipeline_mode = #tpu.pipeline_mode<synchronous>, transform_indices = @transform_1, window_bounds = array<i64: 256, 32>}, {pipeline_mode = #tpu.pipeline_mode<synchronous>, transform_indices = @transform_2, window_bounds = array<i64: 1, 32>}, {transform_indices = @transform_3, window_bounds = array<i64: 800, 32>}]} {
    %c0 = arith.constant 0 : index
    %c0_0 = arith.constant 0 : index
    %0 = vector.load %arg1[%c0, %c0_0] : memref<800x256xbf16, #tpu.memory_space<vmem>>, vector<800x256xbf16>
    %c0_1 = arith.constant 0 : index
    %c0_2 = arith.constant 0 : index
    %1 = vector.load %arg2[%c0_1, %c0_2] : memref<256x32xbf16, #tpu.memory_space<vmem>>, vector<256x32xbf16>
    %cst = arith.constant dense<0.000000e+00> : vector<800x32xf32>
    %2 = tpu.matmul %0, %1, %cst {dimension_numbers = #tpu.dot_dimension_numbers<[1], [0], [0], [1], [0, 0, 1, 1], [], []>} : vector<800x256xbf16>, vector<256x32xbf16>, vector<800x32xf32> -> vector<800x32xf32>
    %c0_3 = arith.constant 0 : index
    %c0_4 = arith.constant 0 : index
    %3 = vector.load %arg3[%c0_3, %c0_4] : memref<1x32xf32, #tpu.memory_space<vmem>>, vector<1x32xf32>
    %4 = vector.broadcast %3 : vector<1x32xf32> to vector<800x32xf32>
    %5 = arith.addf %2, %4 : vector<800x32xf32>
    %6 = arith.truncf %5 : vector<800x32xf32> to vector<800x32xbf16>
    %c0_5 = arith.constant 0 : index
    %c0_6 = arith.constant 0 : index
    %7 = vector.load %arg4[%c0_5, %c0_6] : memref<800x32xbf16, #tpu.memory_space<vmem>>, vector<800x32xbf16>
    tpu.vector_store %arg4[%c0_5, %c0_6], %6 {strides = array<i32>} : memref<800x32xbf16, #tpu.memory_space<vmem>>, vector<800x32xbf16>,
    return
  }
  func.func @transform_0(%arg0: i32) -> (i32, i32) {
    %c0_i32 = arith.constant 0 : i32
    %c0_i32_0 = arith.constant 0 : i32
    return %arg0, %c0_i32 : i32, i32
  }
  func.func @transform_1(%arg0: i32) -> (i32, i32) {
    %c0_i32 = arith.constant 0 : i32
    %c0_i32_0 = arith.constant 0 : i32
    %c0_i32_1 = arith.constant 0 : i32
    return %c0_i32, %c0_i32_0 : i32, i32
  }
  func.func @transform_2(%arg0: i32) -> (i32, i32) {
    %c0_i32 = arith.constant 0 : i32
    %c0_i32_0 = arith.constant 0 : i32
    %c0_i32_1 = arith.constant 0 : i32
    return %c0_i32, %c0_i32_0 : i32, i32
  }
  func.func @transform_3(%arg0: i32) -> (i32, i32) {
    %c0_i32 = arith.constant 0 : i32
    %c0_i32_0 = arith.constant 0 : i32
    return %arg0, %c0_i32 : i32, i32
  }
}

module attributes {stable_mosaic.version = 11 : i64} {
  func.func @_matmul_bias_kernel(%arg0: i32, %arg1: memref<162x512xbf16, #tpu.memory_space<vmem>>, %arg2: memref<512x64xbf16, #tpu.memory_space<vmem>>, %arg3: memref<1x64xf32, #tpu.memory_space<vmem>>, %arg4: memref<162x64xbf16, #tpu.memory_space<vmem>>) attributes {dimension_semantics = [#tpu.dimension_semantics<parallel>], iteration_bounds = array<i64: 1>, scalar_prefetch = 0 : i64, scratch_operands = 0 : i64, tpu.core_type = #tpu.core_type<tc>, window_params = [{transform_indices = @transform_0, window_bounds = array<i64: 162, 512>}, {pipeline_mode = #tpu.pipeline_mode<synchronous>, transform_indices = @transform_1, window_bounds = array<i64: 512, 64>}, {pipeline_mode = #tpu.pipeline_mode<synchronous>, transform_indices = @transform_2, window_bounds = array<i64: 1, 64>}, {transform_indices = @transform_3, window_bounds = array<i64: 162, 64>}]} {
    %c0 = arith.constant 0 : index
    %c0_0 = arith.constant 0 : index
    %0 = vector.load %arg1[%c0, %c0_0] : memref<162x512xbf16, #tpu.memory_space<vmem>>, vector<162x512xbf16>
    %c0_1 = arith.constant 0 : index
    %c0_2 = arith.constant 0 : index
    %1 = vector.load %arg2[%c0_1, %c0_2] : memref<512x64xbf16, #tpu.memory_space<vmem>>, vector<512x64xbf16>
    %cst = arith.constant dense<0.000000e+00> : vector<162x64xf32>
    %2 = tpu.matmul %0, %1, %cst {dimension_numbers = #tpu.dot_dimension_numbers<[1], [0], [0], [1], [0, 0, 1, 1], [], []>} : vector<162x512xbf16>, vector<512x64xbf16>, vector<162x64xf32> -> vector<162x64xf32>
    %c0_3 = arith.constant 0 : index
    %c0_4 = arith.constant 0 : index
    %3 = vector.load %arg3[%c0_3, %c0_4] : memref<1x64xf32, #tpu.memory_space<vmem>>, vector<1x64xf32>
    %4 = vector.broadcast %3 : vector<1x64xf32> to vector<162x64xf32>
    %5 = arith.addf %2, %4 : vector<162x64xf32>
    %6 = arith.truncf %5 : vector<162x64xf32> to vector<162x64xbf16>
    %c0_5 = arith.constant 0 : index
    %c0_6 = arith.constant 0 : index
    %7 = vector.load %arg4[%c0_5, %c0_6] : memref<162x64xbf16, #tpu.memory_space<vmem>>, vector<162x64xbf16>
    tpu.vector_store %arg4[%c0_5, %c0_6], %6 {strides = array<i32>} : memref<162x64xbf16, #tpu.memory_space<vmem>>, vector<162x64xbf16>,
    return
  }
  func.func @transform_0(%arg0: i32) -> (i32, i32) {
    %c0_i32 = arith.constant 0 : i32
    %c0_i32_0 = arith.constant 0 : i32
    return %arg0, %c0_i32 : i32, i32
  }
  func.func @transform_1(%arg0: i32) -> (i32, i32) {
    %c0_i32 = arith.constant 0 : i32
    %c0_i32_0 = arith.constant 0 : i32
    %c0_i32_1 = arith.constant 0 : i32
    return %c0_i32, %c0_i32_0 : i32, i32
  }
  func.func @transform_2(%arg0: i32) -> (i32, i32) {
    %c0_i32 = arith.constant 0 : i32
    %c0_i32_0 = arith.constant 0 : i32
    %c0_i32_1 = arith.constant 0 : i32
    return %c0_i32, %c0_i32_0 : i32, i32
  }
  func.func @transform_3(%arg0: i32) -> (i32, i32) {
    %c0_i32 = arith.constant 0 : i32
    %c0_i32_0 = arith.constant 0 : i32
    return %arg0, %c0_i32 : i32, i32
  }
}

module attributes {stable_mosaic.version = 11 : i64} {
  func.func @_matmul_bias_kernel(%arg0: i32, %arg1: memref<2x28224xbf16, #tpu.memory_space<vmem>>, %arg2: memref<28224x4xbf16, #tpu.memory_space<vmem>>, %arg3: memref<1x4xf32, #tpu.memory_space<vmem>>, %arg4: memref<2x4xf32, #tpu.memory_space<vmem>>) attributes {dimension_semantics = [#tpu.dimension_semantics<parallel>], iteration_bounds = array<i64: 1>, scalar_prefetch = 0 : i64, scratch_operands = 0 : i64, tpu.core_type = #tpu.core_type<tc>, window_params = [{transform_indices = @transform_0, window_bounds = array<i64: 2, 28224>}, {pipeline_mode = #tpu.pipeline_mode<synchronous>, transform_indices = @transform_1, window_bounds = array<i64: 28224, 4>}, {pipeline_mode = #tpu.pipeline_mode<synchronous>, transform_indices = @transform_2, window_bounds = array<i64: 1, 4>}, {transform_indices = @transform_3, window_bounds = array<i64: 2, 4>}]} {
    %c0 = arith.constant 0 : index
    %c0_0 = arith.constant 0 : index
    %0 = vector.load %arg1[%c0, %c0_0] : memref<2x28224xbf16, #tpu.memory_space<vmem>>, vector<2x28224xbf16>
    %c0_1 = arith.constant 0 : index
    %c0_2 = arith.constant 0 : index
    %1 = vector.load %arg2[%c0_1, %c0_2] : memref<28224x4xbf16, #tpu.memory_space<vmem>>, vector<28224x4xbf16>
    %cst = arith.constant dense<0.000000e+00> : vector<2x4xf32>
    %2 = tpu.matmul %0, %1, %cst {dimension_numbers = #tpu.dot_dimension_numbers<[1], [0], [0], [1], [0, 0, 1, 1], [], []>} : vector<2x28224xbf16>, vector<28224x4xbf16>, vector<2x4xf32> -> vector<2x4xf32>
    %c0_3 = arith.constant 0 : index
    %c0_4 = arith.constant 0 : index
    %3 = vector.load %arg3[%c0_3, %c0_4] : memref<1x4xf32, #tpu.memory_space<vmem>>, vector<1x4xf32>
    %4 = vector.broadcast %3 : vector<1x4xf32> to vector<2x4xf32>
    %5 = arith.addf %2, %4 : vector<2x4xf32>
    %c0_5 = arith.constant 0 : index
    %c0_6 = arith.constant 0 : index
    %6 = vector.load %arg4[%c0_5, %c0_6] : memref<2x4xf32, #tpu.memory_space<vmem>>, vector<2x4xf32>
    tpu.vector_store %arg4[%c0_5, %c0_6], %5 {strides = array<i32>} : memref<2x4xf32, #tpu.memory_space<vmem>>, vector<2x4xf32>,
    return
  }
  func.func @transform_0(%arg0: i32) -> (i32, i32) {
    %c0_i32 = arith.constant 0 : i32
    %c0_i32_0 = arith.constant 0 : i32
    return %arg0, %c0_i32 : i32, i32
  }
  func.func @transform_1(%arg0: i32) -> (i32, i32) {
    %c0_i32 = arith.constant 0 : i32
    %c0_i32_0 = arith.constant 0 : i32
    %c0_i32_1 = arith.constant 0 : i32
    return %c0_i32, %c0_i32_0 : i32, i32
  }
  func.func @transform_2(%arg0: i32) -> (i32, i32) {
    %c0_i32 = arith.constant 0 : i32
    %c0_i32_0 = arith.constant 0 : i32
    %c0_i32_1 = arith.constant 0 : i32
    return %c0_i32, %c0_i32_0 : i32, i32
  }
  func.func @transform_3(%arg0: i32) -> (i32, i32) {
    %c0_i32 = arith.constant 0 : i32
    %c0_i32_0 = arith.constant 0 : i32
    return %arg0, %c0_i32 : i32, i32
  }
}

</mosaic_0001>

<bundles_post_ra>
// kernel: estimator_forward.3
= control target key start
LH: loop header
LB: loop body
LE: loop exit
PB: predicated region body
PF: predicated region fallthrough
CT: control target
= control target key end

     0   :  { %v2202_v0 = vmov 0   ;;  %vm1583_vm0 = vcmask 257024   ;;  %s3114_s1 = inlined_call_operand.vmem [shape: bf16[256,32], index: 1, kind: input, shape index: {}]   ;;  %s3115_s0 = inlined_call_operand.vmem [shape: bf16[800,256], index: 0, kind: input, shape index: {}]   ;;  %s3116_s2 = inlined_call_operand.vmem [shape: f32[1,32], index: 2, kind: input, shape index: {}]   ;;  %s3117_s3 = inlined_call_operand.vmem [shape: bf16[800,32], index: 3, kind: output, shape index: {}]  }
   0x1   :  { %750 = vmatprep.subr.bf16.mxu0 %v2202_v0  ;;  %2005 = vmatprep.subr.bf16.mxu1 %v2202_v0  ;;  %v2038_v1 = vld [vmem:[%s3114_s1 + $0x38] sm:$0xff]   ;;  %v2039_v2 = vld [vmem:[%s3114_s1 + $0x30] sm:$0xff]   ;;  %v2040_v3 = vld [vmem:[%s3114_s1 + $0x28] sm:$0xff]  }
   0x2   :  { %751 = vmatpush1.bf16.msra.mxu0 %v2038_v1  ;;  %2021 = vmatpush1.bf16.msra.mxu1 %v2038_v1  ;;  %v2041_v4 = vld [vmem:[%s3114_s1 + $0x20] sm:$0xff]   ;;  %v2042_v5 = vld [vmem:[%s3114_s1 + $0x18] sm:$0xff]   ;;  %v2043_v7 = vld [vmem:[%s3114_s1 + $0x10] sm:$0xff]  }
   0x3   :  { %752 = vmatprep.subr.bf16.mxu0 %v2202_v0  ;;  %2006 = vmatprep.subr.bf16.mxu1 %v2202_v0  ;;  %v2056_v6 = vld [vmem:[%s3115_s0 + $0x4] ss:$8 sps:$4 sm:$0xff]   ;;  %v2059_v8 = vld [vmem:[%s3115_s0 + $0x194] ss:$8 sps:$4 sm:$0xff]   ;;  %v2054_v19 = vld [vmem:[%s3115_s0] ss:$8 sps:$4 sm:$0xff]  }
   0x4   :  { %782 = vmatprep.mubr.bf16.mxu0 %v2056_v6  ;;  %982 = vmatprep.mubr.bf16.mxu1 %v2059_v8  ;;  %v2044_v9 = vld [vmem:[%s3114_s1 + $0x8] sm:$0xff]   ;;  %v2045_v10 = vld [vmem:[%s3114_s1] sm:$0xff]   ;;  %v2046_v11 = vld [vmem:[%s3114_s1 + $0x78] sm:$0xff]  }
   0x5   :  { %v2047_v12 = vld [vmem:[%s3114_s1 + $0x70] sm:$0xff]   ;;  %v2048_v13 = vld [vmem:[%s3114_s1 + $0x68] sm:$0xff]   ;;  %v2049_v14 = vld [vmem:[%s3114_s1 + $0x60] sm:$0xff]  }
   0x6   :  { %753 = vmatpush1.bf16.msra.mxu0 %v2039_v2  ;;  %2022 = vmatpush1.bf16.msra.mxu1 %v2039_v2  ;;  %v2050_v15 = vld [vmem:[%s3114_s1 + $0x58] sm:$0xff]   ;;  %v2051_v16 = vld [vmem:[%s3114_s1 + $0x50] sm:$0xff]   ;;  %v2052_v17 = vld [vmem:[%s3114_s1 + $0x48] sm:$0xff]  }
   0x7   :  { %754 = vmatprep.subr.bf16.mxu0 %v2202_v0  ;;  %2007 = vmatprep.subr.bf16.mxu1 %v2202_v0  ;;  %v2053_v18 = vld [vmem:[%s3114_s1 + $0x40] sm:$0xff]   ;;  %v2057_v20 = vld [vmem:[%s3115_s0 + $0x190] ss:$8 sps:$4 sm:$0xff]   ;;  %v2060_v21 = vld [vmem:[%s3115_s0 + $0x14] ss:$8 sps:$4 sm:$0xff]  }
   0x8   :  { %v2062_v22 = vld [vmem:[%s3115_s0 + $0x1a4] ss:$8 sps:$4 sm:$0xff]   ;;  %v2064_v23 = vld [vmem:[%s3115_s0 + $0x10] ss:$8 sps:$4 sm:$0xff]   ;;  %v2065_v24 = vld [vmem:[%s3115_s0 + $0x1a0] ss:$8 sps:$4 sm:$0xff]  }
   0x9   :  { %v2066_v25 = vld [vmem:[%s3115_s0 + $0x24] ss:$8 sps:$4 sm:$0xff]   ;;  %v2068_v26 = vld [vmem:[%s3115_s0 + $0x1b4] ss:$8 sps:$4 sm:$0xff]   ;;  %v2070_v27 = vld [vmem:[%s3115_s0 + $0x20] ss:$8 sps:$4 sm:$0xff]  }
   0xa   :  { %755 = vmatpush1.bf16.msra.mxu0 %v2040_v3  ;;  %2023 = vmatpush1.bf16.msra.mxu1 %v2040_v3  ;;  %v2071_v28 = vld [vmem:[%s3115_s0 + $0x1b0] ss:$8 sps:$4 sm:$0xff]   ;;  %v2072_v29 = vld [vmem:[%s3115_s0 + $0x34] ss:$8 sps:$4 sm:$0xff]   ;;  %v2074_v30 = vld [vmem:[%s3115_s0 + $0x1c4] ss:$8 sps:$4 sm:$0xff]  }
   0xb   :  { %756 = vmatprep.subr.bf16.mxu0 %v2202_v0  ;;  %2008 = vmatprep.subr.bf16.mxu1 %v2202_v0  ;;  %v2076_v31 = vld [vmem:[%s3115_s0 + $0x30] ss:$8 sps:$4 sm:$0xff]   ;;  %v2077_v32 = vld [vmem:[%s3115_s0 + $0x1c0] ss:$8 sps:$4 sm:$0xff]   ;;  %v2078_v33 = vld [vmem:[%s3115_s0 + $0x44] ss:$8 sps:$4 sm:$0xff]  }
   0xc   :  { %v2080_v34 = vld [vmem:[%s3115_s0 + $0x1d4] ss:$8 sps:$4 sm:$0xff]   ;;  %v2082_v35 = vld [vmem:[%s3115_s0 + $0x40] ss:$8 sps:$4 sm:$0xff]   ;;  %v2083_v36 = vld [vmem:[%s3115_s0 + $0x1d0] ss:$8 sps:$4 sm:$0xff]  }
   0xd   :  { %v2084_v37 = vld [vmem:[%s3115_s0 + $0x54] ss:$8 sps:$4 sm:$0xff]   ;;  %v2086_v38 = vld [vmem:[%s3115_s0 + $0x1e4] ss:$8 sps:$4 sm:$0xff]   ;;  %v2088_v39 = vld [vmem:[%s3115_s0 + $0x50] ss:$8 sps:$4 sm:$0xff]  }
   0xe   :  { %757 = vmatpush1.bf16.msra.mxu0 %v2041_v4  ;;  %2024 = vmatpush1.bf16.msra.mxu1 %v2041_v4  ;;  %v2089_v40 = vld [vmem:[%s3115_s0 + $0x1e0] ss:$8 sps:$4 sm:$0xff]   ;;  %v2090_v41 = vld [vmem:[%s3115_s0 + $0x64] ss:$8 sps:$4 sm:$0xff]   ;;  %v2092_v42 = vld [vmem:[%s3115_s0 + $0x1f4] ss:$8 sps:$4 sm:$0xff]  }
   0xf   :  { %758 = vmatprep.subr.bf16.mxu0 %v2202_v0  ;;  %2009 = vmatprep.subr.bf16.mxu1 %v2202_v0  ;;  %v2094_v43 = vld [vmem:[%s3115_s0 + $0x60] ss:$8 sps:$4 sm:$0xff]   ;;  %v2095_v44 = vld [vmem:[%s3115_s0 + $0x1f0] ss:$8 sps:$4 sm:$0xff]   ;;  %v2096_v45 = vld [vmem:[%s3115_s0 + $0x74] ss:$8 sps:$4 sm:$0xff]  }
  0x10   :  { %v2098_v46 = vld [vmem:[%s3115_s0 + $0x204] ss:$8 sps:$4 sm:$0xff]   ;;  %v2100_v47 = vld [vmem:[%s3115_s0 + $0x70] ss:$8 sps:$4 sm:$0xff]   ;;  %v2101_v48 = vld [vmem:[%s3115_s0 + $0x200] ss:$8 sps:$4 sm:$0xff]  }
  0x11   :  { %v2102_v49 = vld [vmem:[%s3115_s0 + $0x84] ss:$8 sps:$4 sm:$0xff]   ;;  %v2104_v50 = vld [vmem:[%s3115_s0 + $0x214] ss:$8 sps:$4 sm:$0xff]   ;;  %v2106_v51 = vld [vmem:[%s3115_s0 + $0x80] ss:$8 sps:$4 sm:$0xff]  }
  0x12   :  { %759 = vmatpush1.bf16.msra.mxu0 %v2042_v5  ;;  %2025 = vmatpush1.bf16.msra.mxu1 %v2042_v5  ;;  %v2107_v52 = vld [vmem:[%s3115_s0 + $0x210] ss:$8 sps:$4 sm:$0xff]   ;;  %v2108_v53 = vld [vmem:[%s3115_s0 + $0x94] ss:$8 sps:$4 sm:$0xff]   ;;  %v2110_v54 = vld [vmem:[%s3115_s0 + $0x224] ss:$8 sps:$4 sm:$0xff]  }
  0x13   :  { %760 = vmatprep.subr.bf16.mxu0 %v2202_v0  ;;  %2010 = vmatprep.subr.bf16.mxu1 %v2202_v0  ;;  %v2112_v55 = vld [vmem:[%s3115_s0 + $0x90] ss:$8 sps:$4 sm:$0xff]   ;;  %v2113_v56 = vld [vmem:[%s3115_s0 + $0x220] ss:$8 sps:$4 sm:$0xff]   ;;  %v2114_v57 = vld [vmem:[%s3115_s0 + $0xa4] ss:$8 sps:$4 sm:$0xff]  }
  0x14   :  { %v2116_v58 = vld [vmem:[%s3115_s0 + $0x234] ss:$8 sps:$4 sm:$0xff]   ;;  %v2118_v59 = vld [vmem:[%s3115_s0 + $0xa0] ss:$8 sps:$4 sm:$0xff]   ;;  %v2119_v60 = vld [vmem:[%s3115_s0 + $0x230] ss:$8 sps:$4 sm:$0xff]  }
  0x15   :  { %v2120_v61 = vld [vmem:[%s3115_s0 + $0xb4] ss:$8 sps:$4 sm:$0xff]   ;;  %v2122_v62 = vld [vmem:[%s3115_s0 + $0x244] ss:$8 sps:$4 sm:$0xff]   ;;  %v2124_v63 = vld [vmem:[%s3115_s0 + $0xb0] ss:$8 sps:$4 sm:$0xff]  }
  0x16   :  { %761 = vmatpush1.bf16.msra.mxu0 %v2043_v7  ;;  %2026 = vmatpush1.bf16.msra.mxu1 %v2043_v7  ;;  %v2126_v1 = vld [vmem:[%s3115_s0 + $0xc4] ss:$8 sps:$4 sm:$0xff]   ;;  %v2128_v2 = vld [vmem:[%s3115_s0 + $0x254] ss:$8 sps:$4 sm:$0xff]   ;;  %v2130_v3 = vld [vmem:[%s3115_s0 + $0xc0] ss:$8 sps:$4 sm:$0xff]  }
  0x17   :  { %762 = vmatprep.subr.bf16.mxu0 %v2202_v0  ;;  %2011 = vmatprep.subr.bf16.mxu1 %v2202_v0  ;;  %v2131_v4 = vld [vmem:[%s3115_s0 + $0x250] ss:$8 sps:$4 sm:$0xff]   ;;  %v2132_v5 = vld [vmem:[%s3115_s0 + $0xd4] ss:$8 sps:$4 sm:$0xff]   ;;  %v2134_v6 = vld [vmem:[%s3115_s0 + $0x264] ss:$8 sps:$4 sm:$0xff]  }
  0x18   :  { %v2136_v7 = vld [vmem:[%s3115_s0 + $0xd0] ss:$8 sps:$4 sm:$0xff]   ;;  %v2137_v8 = vld [vmem:[%s3115_s0 + $0x260] ss:$8 sps:$4 sm:$0xff]  }
  0x1a   :  { %763 = vmatpush1.bf16.msra.mxu0 %v2044_v9  ;;  %2027 = vmatpush1.bf16.msra.mxu1 %v2044_v9  ;;  %v2138_v9 = vld [vmem:[%s3115_s0 + $0xe4] ss:$8 sps:$4 sm:$0xff]  }
  0x1b   :  { %764 = vmatprep.subr.bf16.mxu0 %v2202_v0  ;;  %2012 = vmatprep.subr.bf16.mxu1 %v2202_v0 }
  0x1e   :  { %765 = vmatpush1.bf16.msra.mxu0 %v2045_v10  ;;  %2028 = vmatpush1.bf16.msra.mxu1 %v2045_v10  ;;  %v2140_v10 = vld [vmem:[%s3115_s0 + $0x274] ss:$8 sps:$4 sm:$0xff]  }
  0x1f   :  { %766 = vmatprep.subr.bf16.mxu0 %v2202_v0  ;;  %2013 = vmatprep.subr.bf16.mxu1 %v2202_v0 }
  0x22   :  { %767 = vmatpush2.bf16.msra.mxu0 %v2046_v11  ;;  %2029 = vmatpush2.bf16.msra.mxu1 %v2046_v11  ;;  %v2142_v11 = vld [vmem:[%s3115_s0 + $0xe0] ss:$8 sps:$4 sm:$0xff]  }
  0x23   :  { %768 = vmatprep.subr.bf16.mxu0 %v2202_v0  ;;  %2014 = vmatprep.subr.bf16.mxu1 %v2202_v0 }
  0x26   :  { %769 = vmatpush2.bf16.msra.mxu0 %v2047_v12  ;;  %2030 = vmatpush2.bf16.msra.mxu1 %v2047_v12  ;;  %v2143_v12 = vld [vmem:[%s3115_s0 + $0x270] ss:$8 sps:$4 sm:$0xff]  }
  0x27   :  { %770 = vmatprep.subr.bf16.mxu0 %v2202_v0  ;;  %2015 = vmatprep.subr.bf16.mxu1 %v2202_v0 }
  0x2a   :  { %771 = vmatpush2.bf16.msra.mxu0 %v2048_v13  ;;  %2031 = vmatpush2.bf16.msra.mxu1 %v2048_v13  ;;  %v2144_v13 = vld [vmem:[%s3115_s0 + $0xf4] ss:$8 sps:$4 sm:$0xff]  }
  0x2b   :  { %772 = vmatprep.subr.bf16.mxu0 %v2202_v0  ;;  %2016 = vmatprep.subr.bf16.mxu1 %v2202_v0 }
  0x2e   :  { %773 = vmatpush2.bf16.msra.mxu0 %v2049_v14  ;;  %2032 = vmatpush2.bf16.msra.mxu1 %v2049_v14  ;;  %v2146_v14 = vld [vmem:[%s3115_s0 + $0x284] ss:$8 sps:$4 sm:$0xff]  }
  0x2f   :  { %774 = vmatprep.subr.bf16.mxu0 %v2202_v0  ;;  %2017 = vmatprep.subr.bf16.mxu1 %v2202_v0 }
  0x32   :  { %775 = vmatpush2.bf16.msra.mxu0 %v2050_v15  ;;  %2033 = vmatpush2.bf16.msra.mxu1 %v2050_v15  ;;  %v2148_v15 = vld [vmem:[%s3115_s0 + $0xf0] ss:$8 sps:$4 sm:$0xff]  }
  0x33   :  { %776 = vmatprep.subr.bf16.mxu0 %v2202_v0  ;;  %2018 = vmatprep.subr.bf16.mxu1 %v2202_v0 }
  0x36   :  { %777 = vmatpush2.bf16.msra.mxu0 %v2051_v16  ;;  %2034 = vmatpush2.bf16.msra.mxu1 %v2051_v16  ;;  %v2149_v16 = vld [vmem:[%s3115_s0 + $0x280] ss:$8 sps:$4 sm:$0xff]  }
  0x37   :  { %778 = vmatprep.subr.bf16.mxu0 %v2202_v0  ;;  %2019 = vmatprep.subr.bf16.mxu1 %v2202_v0 }
  0x3a   :  { %779 = vmatpush2.bf16.msra.mxu0 %v2052_v17  ;;  %2035 = vmatpush2.bf16.msra.mxu1 %v2052_v17  ;;  %v2150_v17 = vld [vmem:[%s3115_s0 + $0x104] ss:$8 sps:$4 sm:$0xff]  }
  0x3b   :  { %780 = vmatprep.subr.bf16.mxu0 %v2202_v0  ;;  %2020 = vmatprep.subr.bf16.mxu1 %v2202_v0  ;;  %v2125_v0 = vld [vmem:[%s3115_s0 + $0x240] ss:$8 sps:$4 sm:$0xff]  }
  0x3e   :  { %781 = vmatpush2.bf16.msra.mxu0 %v2053_v18  ;;  %2036 = vmatpush2.bf16.msra.mxu1 %v2053_v18  ;;  %v2152_v18 = vld [vmem:[%s3115_s0 + $0x294] ss:$8 sps:$4 sm:$0xff]  }
  0x41   :  { %783 = vmatmul.mubr.bf16.vlgmr.msra.gmra.mxu0 %v2054_v19  ;;  %983 = vmatmul.mubr.bf16.vlgmr.msra.gmra.mxu1 %v2057_v20  ;;  %v2154_v19 = vld [vmem:[%s3115_s0 + $0x100] ss:$8 sps:$4 sm:$0xff]   ;;  %v2155_v20 = vld [vmem:[%s3115_s0 + $0x290] ss:$8 sps:$4 sm:$0xff]  }
  0x42   :  { %790 = vmatprep.mubr.bf16.mxu0 %v2060_v21  ;;  %990 = vmatprep.mubr.bf16.mxu1 %v2062_v22  ;;  %v2156_v21 = vld [vmem:[%s3115_s0 + $0x114] ss:$8 sps:$4 sm:$0xff]   ;;  %v2158_v22 = vld [vmem:[%s3115_s0 + $0x2a4] ss:$8 sps:$4 sm:$0xff]  }
  0x49   :  { %791 = vmatmul.mubr.bf16.gmra.mxu0 %v2064_v23  ;;  %991 = vmatmul.mubr.bf16.gmra.mxu1 %v2065_v24  ;;  %v2160_v23 = vld [vmem:[%s3115_s0 + $0x110] ss:$8 sps:$4 sm:$0xff]   ;;  %v2161_v24 = vld [vmem:[%s3115_s0 + $0x2a0] ss:$8 sps:$4 sm:$0xff]  }
  0x4a   :  { %798 = vmatprep.mubr.bf16.mxu0 %v2066_v25  ;;  %998 = vmatprep.mubr.bf16.mxu1 %v2068_v26  ;;  %v2162_v25 = vld [vmem:[%s3115_s0 + $0x124] ss:$8 sps:$4 sm:$0xff]   ;;  %v2164_v26 = vld [vmem:[%s3115_s0 + $0x2b4] ss:$8 sps:$4 sm:$0xff]  }
  0x51   :  { %799 = vmatmul.mubr.bf16.gmra.mxu0 %v2070_v27  ;;  %999 = vmatmul.mubr.bf16.gmra.mxu1 %v2071_v28  ;;  %v2166_v27 = vld [vmem:[%s3115_s0 + $0x120] ss:$8 sps:$4 sm:$0xff]   ;;  %v2167_v28 = vld [vmem:[%s3115_s0 + $0x2b0] ss:$8 sps:$4 sm:$0xff]  }
  0x52   :  { %806 = vmatprep.mubr.bf16.mxu0 %v2072_v29  ;;  %1006 = vmatprep.mubr.bf16.mxu1 %v2074_v30  ;;  %v2168_v29 = vld [vmem:[%s3115_s0 + $0x134] ss:$8 sps:$4 sm:$0xff]   ;;  %v2170_v30 = vld [vmem:[%s3115_s0 + $0x2c4] ss:$8 sps:$4 sm:$0xff]  }
  0x59   :  { %807 = vmatmul.mubr.bf16.gmra.mxu0 %v2076_v31  ;;  %1007 = vmatmul.mubr.bf16.gmra.mxu1 %v2077_v32  ;;  %v2172_v31 = vld [vmem:[%s3115_s0 + $0x130] ss:$8 sps:$4 sm:$0xff]   ;;  %v2173_v32 = vld [vmem:[%s3115_s0 + $0x2c0] ss:$8 sps:$4 sm:$0xff]  }
  0x5a   :  { %814 = vmatprep.mubr.bf16.mxu0 %v2078_v33  ;;  %1014 = vmatprep.mubr.bf16.mxu1 %v2080_v34  ;;  %v2174_v33 = vld [vmem:[%s3115_s0 + $0x144] ss:$8 sps:$4 sm:$0xff]   ;;  %v2176_v34 = vld [vmem:[%s3115_s0 + $0x2d4] ss:$8 sps:$4 sm:$0xff]  }
  0x61   :  { %815 = vmatmul.mubr.bf16.gmra.mxu0 %v2082_v35  ;;  %1015 = vmatmul.mubr.bf16.gmra.mxu1 %v2083_v36  ;;  %v2178_v35 = vld [vmem:[%s3115_s0 + $0x140] ss:$8 sps:$4 sm:$0xff]   ;;  %v2179_v36 = vld [vmem:[%s3115_s0 + $0x2d0] ss:$8 sps:$4 sm:$0xff]  }
  0x62   :  { %822 = vmatprep.mubr.bf16.mxu0 %v2084_v37  ;;  %1022 = vmatprep.mubr.bf16.mxu1 %v2086_v38  ;;  %v2180_v37 = vld [vmem:[%s3115_s0 + $0x154] ss:$8 sps:$4 sm:$0xff]   ;;  %v2182_v38 = vld [vmem:[%s3115_s0 + $0x2e4] ss:$8 sps:$4 sm:$0xff]  }
  0x69   :  { %823 = vmatmul.mubr.bf16.gmra.mxu0 %v2088_v39  ;;  %1023 = vmatmul.mubr.bf16.gmra.mxu1 %v2089_v40  ;;  %v2184_v39 = vld [vmem:[%s3115_s0 + $0x150] ss:$8 sps:$4 sm:$0xff]   ;;  %v2185_v40 = vld [vmem:[%s3115_s0 + $0x2e0] ss:$8 sps:$4 sm:$0xff]  }
  0x6a   :  { %830 = vmatprep.mubr.bf16.mxu0 %v2090_v41  ;;  %1030 = vmatprep.mubr.bf16.mxu1 %v2092_v42  ;;  %v2186_v41 = vld [vmem:[%s3115_s0 + $0x164] ss:$8 sps:$4 sm:$0xff]   ;;  %v2188_v42 = vld [vmem:[%s3115_s0 + $0x2f4] ss:$8 sps:$4 sm:$0xff]  }
  0x71   :  { %831 = vmatmul.mubr.bf16.gmra.mxu0 %v2094_v43  ;;  %1031 = vmatmul.mubr.bf16.gmra.mxu1 %v2095_v44  ;;  %v2190_v43 = vld [vmem:[%s3115_s0 + $0x160] ss:$8 sps:$4 sm:$0xff]   ;;  %v2191_v44 = vld [vmem:[%s3115_s0 + $0x2f0] ss:$8 sps:$4 sm:$0xff]  }
  0x72   :  { %838 = vmatprep.mubr.bf16.mxu0 %v2096_v45  ;;  %1038 = vmatprep.mubr.bf16.mxu1 %v2098_v46  ;;  %v2192_v45 = vld [vmem:[%s3115_s0 + $0x174] ss:$8 sps:$4 sm:$0xff]   ;;  %v2194_v46 = vld [vmem:[%s3115_s0 + $0x304] ss:$8 sps:$4 sm:$0xff]  }
  0x79   :  { %839 = vmatmul.mubr.bf16.gmra.mxu0 %v2100_v47  ;;  %1039 = vmatmul.mubr.bf16.gmra.mxu1 %v2101_v48  ;;  %v2196_v47 = vld [vmem:[%s3115_s0 + $0x170] ss:$8 sps:$4 sm:$0xff]   ;;  %v2197_v48 = vld [vmem:[%s3115_s0 + $0x300] ss:$8 sps:$4 sm:$0xff]  }
  0x7a   :  { %846 = vmatprep.mubr.bf16.mxu0 %v2102_v49  ;;  %1046 = vmatprep.mubr.bf16.mxu1 %v2104_v50  ;;  %v2198_v49 = vld [vmem:[%s3115_s0 + $0x184] ss:$8 sps:$4 sm:$0xff]   ;;  %v2200_v50 = vld [vmem:[%s3115_s0 + $0x314] ss:$8 sps:$4 sm:$0xff]  }
  0x81   :  { %847 = vmatmul.mubr.bf16.gmra.mxu0 %v2106_v51  ;;  %1047 = vmatmul.mubr.bf16.gmra.mxu1 %v2107_v52  ;;  %v63_v51 = vld [vmem:[%s3115_s0 + $0x180] sm:$0xff]  ;;  %v64_v52 = vld [vmem:[%s3115_s0 + $0x188] sm:$0xff] }
  0x82   :  { %854 = vmatprep.mubr.bf16.mxu0 %v2108_v53  ;;  %1054 = vmatprep.mubr.bf16.mxu1 %v2110_v54  ;;  %v113_v53 = vld [vmem:[%s3115_s0 + $0x310] sm:$0xff]  ;;  %v114_v54 = vld [vmem:[%s3115_s0 + $0x318] sm:$0xff] }
  0x89   :  { %855 = vmatmul.mubr.bf16.gmra.mxu0 %v2112_v55  ;;  %1055 = vmatmul.mubr.bf16.gmra.mxu1 %v2113_v56  ;;  %v1737_v55 = vcombine.low %v63_v51, %v64_v52  ;;  %v1787_v56 = vcombine.low %v113_v53, %v114_v54 }
  0x8a   :  { %862 = vmatprep.mubr.bf16.mxu0 %v2114_v57  ;;  %1062 = vmatprep.mubr.bf16.mxu1 %v2116_v58  ;;  %v2612_v57 = vld [vmem:[%s3116_s2] ss:$0 sm:$0xff] }
  0x91   :  { %863 = vmatmul.mubr.bf16.gmra.mxu0 %v2118_v59  ;;  %1063 = vmatmul.mubr.bf16.gmra.mxu1 %v2119_v60 }
  0x92   :  { %870 = vmatprep.mubr.bf16.mxu0 %v2120_v61  ;;  %1070 = vmatprep.mubr.bf16.mxu1 %v2122_v62 }
  0x99   :  { %871 = vmatmul.mubr.bf16.gmra.mxu0 %v2124_v63  ;;  %1071 = vmatmul.mubr.bf16.gmra.mxu1 %v2125_v0 }
  0x9a   :  { %878 = vmatprep.mubr.bf16.mxu0 %v2126_v1  ;;  %1078 = vmatprep.mubr.bf16.mxu1 %v2128_v2 }
  0xa1   :  { %879 = vmatmul.mubr.bf16.gmra.mxu0 %v2130_v3  ;;  %1079 = vmatmul.mubr.bf16.gmra.mxu1 %v2131_v4 }
  0xa2   :  { %886 = vmatprep.mubr.bf16.mxu0 %v2132_v5  ;;  %1086 = vmatprep.mubr.bf16.mxu1 %v2134_v6 }
  0xa9   :  { %887 = vmatmul.mubr.bf16.gmra.mxu0 %v2136_v7  ;;  %1087 = vmatmul.mubr.bf16.gmra.mxu1 %v2137_v8 }
  0xaa   :  { %894 = vmatprep.mubr.bf16.mxu0 %v2138_v9  ;;  %1094 = vmatprep.mubr.bf16.mxu1 %v2140_v10 }
  0xb1   :  { %895 = vmatmul.mubr.bf16.gmra.mxu0 %v2142_v11  ;;  %1095 = vmatmul.mubr.bf16.gmra.mxu1 %v2143_v12 }
  0xb2   :  { %902 = vmatprep.mubr.bf16.mxu0 %v2144_v13  ;;  %1102 = vmatprep.mubr.bf16.mxu1 %v2146_v14 }
  0xb9   :  { %903 = vmatmul.mubr.bf16.gmra.mxu0 %v2148_v15  ;;  %1103 = vmatmul.mubr.bf16.gmra.mxu1 %v2149_v16 }
  0xba   :  { %910 = vmatprep.mubr.bf16.mxu0 %v2150_v17  ;;  %1110 = vmatprep.mubr.bf16.mxu1 %v2152_v18 }
  0xc1   :  { %911 = vmatmul.mubr.bf16.gmra.mxu0 %v2154_v19  ;;  %1111 = vmatmul.mubr.bf16.gmra.mxu1 %v2155_v20 }
  0xc2   :  { %918 = vmatprep.mubr.bf16.mxu0 %v2156_v21  ;;  %1118 = vmatprep.mubr.bf16.mxu1 %v2158_v22 }
  0xc9   :  { %919 = vmatmul.mubr.bf16.gmra.mxu0 %v2160_v23  ;;  %1119 = vmatmul.mubr.bf16.gmra.mxu1 %v2161_v24 }
  0xca   :  { %926 = vmatprep.mubr.bf16.mxu0 %v2162_v25  ;;  %1126 = vmatprep.mubr.bf16.mxu1 %v2164_v26 }
  0xd1   :  { %927 = vmatmul.mubr.bf16.gmra.mxu0 %v2166_v27  ;;  %1127 = vmatmul.mubr.bf16.gmra.mxu1 %v2167_v28 }
  0xd2   :  { %934 = vmatprep.mubr.bf16.mxu0 %v2168_v29  ;;  %1134 = vmatprep.mubr.bf16.mxu1 %v2170_v30 }
  0xd9   :  { %935 = vmatmul.mubr.bf16.gmra.mxu0 %v2172_v31  ;;  %1135 = vmatmul.mubr.bf16.gmra.mxu1 %v2173_v32 }
  0xda   :  { %942 = vmatprep.mubr.bf16.mxu0 %v2174_v33  ;;  %1142 = vmatprep.mubr.bf16.mxu1 %v2176_v34 }
  0xe1   :  { %943 = vmatmul.mubr.bf16.gmra.mxu0 %v2178_v35  ;;  %1143 = vmatmul.mubr.bf16.gmra.mxu1 %v2179_v36 }
  0xe2   :  { %950 = vmatprep.mubr.bf16.mxu0 %v2180_v37  ;;  %1150 = vmatprep.mubr.bf16.mxu1 %v2182_v38 }
  0xe9   :  { %951 = vmatmul.mubr.bf16.gmra.mxu0 %v2184_v39  ;;  %1151 = vmatmul.mubr.bf16.gmra.mxu1 %v2185_v40 }
  0xea   :  { %958 = vmatprep.mubr.bf16.mxu0 %v2186_v41  ;;  %1158 = vmatprep.mubr.bf16.mxu1 %v2188_v42 }
  0xf1   :  { %959 = vmatmul.mubr.bf16.gmra.mxu0 %v2190_v43  ;;  %1159 = vmatmul.mubr.bf16.gmra.mxu1 %v2191_v44 }
  0xf2   :  { %966 = vmatprep.mubr.bf16.mxu0 %v2192_v45  ;;  %1166 = vmatprep.mubr.bf16.mxu1 %v2194_v46 }
  0xf9   :  { %967 = vmatmul.mubr.bf16.gmra.mxu0 %v2196_v47  ;;  %1167 = vmatmul.mubr.bf16.gmra.mxu1 %v2197_v48 }
  0xfa   :  { %974 = vmatprep.mubr.bf16.mxu0 %v2198_v49  ;;  %1174 = vmatprep.mubr.bf16.mxu1 %v2200_v50 }
 0x101   :  { %v784_v58 = vpop.f32.mrf.mxu0  ;;  %975 = vmatmul.mubr.bf16.gmra.mxu0 %v1737_v55  ;;  %v984_v59 = vpop.f32.mrf.mxu1  ;;  %1175 = vmatmul.mubr.bf16.gmra.mxu1 %v1787_v56 }
 0x102   :  { %v785_v60 = vadd.f32 %v2612_v57, %v784_v58  ;;  %v985_v61 = vadd.f32 %v2612_v57, %v984_v59 }
 0x103   :  { %v786_v62 = vpop.f32.mrf.mxu0  ;;  %v986_v63 = vpop.f32.mrf.mxu1 }
 0x104   :  { %v1905_v0 = vpack.c.bf16 %v785_v60, %v785_v60  ;;  %v1955_v1 = vpack.c.bf16 %v985_v61, %v985_v61 }
 0x105   :  { %v787_v2 = vpop.f32.mrf.mxu0  ;;  %v987_v3 = vpop.f32.mrf.mxu1 }
 0x106   :  { %1584 = vst.msk [vmem:[%s3117_s3] sm:$0xf] %vm1583_vm0, %v1905_v0  ;;  %1634 = vst.msk [vmem:[%s3117_s3 + $0xc8] sm:$0xf] %vm1583_vm0, %v1955_v1  ;;  %v788_v4 = vadd.f32 %v2612_v57, %v787_v2  ;;  %v988_v5 = vadd.f32 %v2612_v57, %v987_v3 }
 0x107   :  { %v789_v6 = vpop.f32.mrf.mxu0  ;;  %v989_v7 = vpop.f32.mrf.mxu1 }
 0x108   :  { %v1906_v8 = vpack.c.bf16 %v788_v4, %v788_v4  ;;  %v1956_v9 = vpack.c.bf16 %v988_v5, %v988_v5 }
 0x109   :  { %v792_v10 = vpop.f32.mrf.mxu0  ;;  %v992_v11 = vpop.f32.mrf.mxu1 }
 0x10a   :  { %1585 = vst.msk [vmem:[%s3117_s3 + $0x4] sm:$0xf] %vm1583_vm0, %v1906_v8  ;;  %1635 = vst.msk [vmem:[%s3117_s3 + $0xcc] sm:$0xf] %vm1583_vm0, %v1956_v9  ;;  %v793_v12 = vadd.f32 %v2612_v57, %v792_v10  ;;  %v993_v13 = vadd.f32 %v2612_v57, %v992_v11 }
 0x10b   :  { %v794_v14 = vpop.f32.mrf.mxu0  ;;  %v994_v15 = vpop.f32.mrf.mxu1 }
 0x10c   :  { %v1907_v16 = vpack.c.bf16 %v793_v12, %v793_v12  ;;  %v1957_v17 = vpack.c.bf16 %v993_v13, %v993_v13 }
 0x10d   :  { %v795_v18 = vpop.f32.mrf.mxu0  ;;  %v995_v19 = vpop.f32.mrf.mxu1 }
 0x10e   :  { %1586 = vst.msk [vmem:[%s3117_s3 + $0x8] sm:$0xf] %vm1583_vm0, %v1907_v16  ;;  %1636 = vst.msk [vmem:[%s3117_s3 + $0xd0] sm:$0xf] %vm1583_vm0, %v1957_v17  ;;  %v796_v20 = vadd.f32 %v2612_v57, %v795_v18  ;;  %v996_v21 = vadd.f32 %v2612_v57, %v995_v19 }
 0x10f   :  { %v797_v22 = vpop.f32.mrf.mxu0  ;;  %v997_v23 = vpop.f32.mrf.mxu1 }
 0x110   :  { %v1908_v24 = vpack.c.bf16 %v796_v20, %v796_v20  ;;  %v1958_v25 = vpack.c.bf16 %v996_v21, %v996_v21 }
 0x111   :  { %v800_v26 = vpop.f32.mrf.mxu0  ;;  %v1000_v27 = vpop.f32.mrf.mxu1 }
 0x112   :  { %1587 = vst.msk [vmem:[%s3117_s3 + $0xc] sm:$0xf] %vm1583_vm0, %v1908_v24  ;;  %1637 = vst.msk [vmem:[%s3117_s3 + $0xd4] sm:$0xf] %vm1583_vm0, %v1958_v25  ;;  %v801_v28 = vadd.f32 %v2612_v57, %v800_v26  ;;  %v1001_v29 = vadd.f32 %v2612_v57, %v1000_v27 }
 0x113   :  { %v802_v30 = vpop.f32.mrf.mxu0  ;;  %v1002_v31 = vpop.f32.mrf.mxu1 }
 0x114   :  { %v1909_v32 = vpack.c.bf16 %v801_v28, %v801_v28  ;;  %v1959_v33 = vpack.c.bf16 %v1001_v29, %v1001_v29 }
 0x115   :  { %v803_v34 = vpop.f32.mrf.mxu0  ;;  %v1003_v35 = vpop.f32.mrf.mxu1 }
 0x116   :  { %1588 = vst.msk [vmem:[%s3117_s3 + $0x10] sm:$0xf] %vm1583_vm0, %v1909_v32  ;;  %1638 = vst.msk [vmem:[%s3117_s3 + $0xd8] sm:$0xf] %vm1583_vm0, %v1959_v33  ;;  %v804_v36 = vadd.f32 %v2612_v57, %v803_v34  ;;  %v1004_v37 = vadd.f32 %v2612_v57, %v1003_v35 }
 0x117   :  { %v805_v38 = vpop.f32.mrf.mxu0  ;;  %v1005_v39 = vpop.f32.mrf.mxu1 }
 0x118   :  { %v1910_v40 = vpack.c.bf16 %v804_v36, %v804_v36  ;;  %v1960_v41 = vpack.c.bf16 %v1004_v37, %v1004_v37 }
 0x119   :  { %v808_v42 = vpop.f32.mrf.mxu0  ;;  %v1008_v43 = vpop.f32.mrf.mxu1 }
 0x11a   :  { %1589 = vst.msk [vmem:[%s3117_s3 + $0x14] sm:$0xf] %vm1583_vm0, %v1910_v40  ;;  %1639 = vst.msk [vmem:[%s3117_s3 + $0xdc] sm:$0xf] %vm1583_vm0, %v1960_v41  ;;  %v809_v44 = vadd.f32 %v2612_v57, %v808_v42  ;;  %v1009_v45 = vadd.f32 %v2612_v57, %v1008_v43 }
 0x11b   :  { %v810_v46 = vpop.f32.mrf.mxu0  ;;  %v1010_v47 = vpop.f32.mrf.mxu1 }
 0x11c   :  { %v1911_v48 = vpack.c.bf16 %v809_v44, %v809_v44  ;;  %v1961_v49 = vpack.c.bf16 %v1009_v45, %v1009_v45 }
 0x11d   :  { %v811_v50 = vpop.f32.mrf.mxu0  ;;  %v1011_v51 = vpop.f32.mrf.mxu1 }
 0x11e   :  { %1590 = vst.msk [vmem:[%s3117_s3 + $0x18] sm:$0xf] %vm1583_vm0, %v1911_v48  ;;  %1640 = vst.msk [vmem:[%s3117_s3 + $0xe0] sm:$0xf] %vm1583_vm0, %v1961_v49  ;;  %v812_v52 = vadd.f32 %v2612_v57, %v811_v50  ;;  %v1012_v53 = vadd.f32 %v2612_v57, %v1011_v51 }
 0x11f   :  { %v813_v54 = vpop.f32.mrf.mxu0  ;;  %v1013_v55 = vpop.f32.mrf.mxu1 }
 0x120   :  { %v1912_v56 = vpack.c.bf16 %v812_v52, %v812_v52  ;;  %v1962_v58 = vpack.c.bf16 %v1012_v53, %v1012_v53 }
 0x121   :  { %v816_v59 = vpop.f32.mrf.mxu0  ;;  %v1016_v60 = vpop.f32.mrf.mxu1 }
 0x122   :  { %1591 = vst.msk [vmem:[%s3117_s3 + $0x1c] sm:$0xf] %vm1583_vm0, %v1912_v56  ;;  %1641 = vst.msk [vmem:[%s3117_s3 + $0xe4] sm:$0xf] %vm1583_vm0, %v1962_v58  ;;  %v817_v61 = vadd.f32 %v2612_v57, %v816_v59  ;;  %v1017_v62 = vadd.f32 %v2612_v57, %v1016_v60 }
 0x123   :  { %v818_v63 = vpop.f32.mrf.mxu0  ;;  %v1018_v0 = vpop.f32.mrf.mxu1 }
 0x124   :  { %v1913_v1 = vpack.c.bf16 %v817_v61, %v817_v61  ;;  %v1963_v2 = vpack.c.bf16 %v1017_v62, %v1017_v62 }
 0x125   :  { %v819_v3 = vpop.f32.mrf.mxu0  ;;  %v1019_v4 = vpop.f32.mrf.mxu1 }
 0x126   :  { %1592 = vst.msk [vmem:[%s3117_s3 + $0x20] sm:$0xf] %vm1583_vm0, %v1913_v1  ;;  %1642 = vst.msk [vmem:[%s3117_s3 + $0xe8] sm:$0xf] %vm1583_vm0, %v1963_v2  ;;  %v820_v5 = vadd.f32 %v2612_v57, %v819_v3  ;;  %v1020_v6 = vadd.f32 %v2612_v57, %v1019_v4 }
 0x127   :  { %v821_v7 = vpop.f32.mrf.mxu0  ;;  %v1021_v8 = vpop.f32.mrf.mxu1 }
 0x128   :  { %v1914_v9 = vpack.c.bf16 %v820_v5, %v820_v5  ;;  %v1964_v10 = vpack.c.bf16 %v1020_v6, %v1020_v6 }
 0x129   :  { %v824_v11 = vpop.f32.mrf.mxu0  ;;  %v1024_v12 = vpop.f32.mrf.mxu1 }
 0x12a   :  { %1593 = vst.msk [vmem:[%s3117_s3 + $0x24] sm:$0xf] %vm1583_vm0, %v1914_v9  ;;  %1643 = vst.msk [vmem:[%s3117_s3 + $0xec] sm:$0xf] %vm1583_vm0, %v1964_v10  ;;  %v825_v13 = vadd.f32 %v2612_v57, %v824_v11  ;;  %v1025_v14 = vadd.f32 %v2612_v57, %v1024_v12 }
 0x12b   :  { %v826_v15 = vpop.f32.mrf.mxu0  ;;  %v1026_v16 = vpop.f32.mrf.mxu1 }
 0x12c   :  { %v1915_v17 = vpack.c.bf16 %v825_v13, %v825_v13  ;;  %v1965_v18 = vpack.c.bf16 %v1025_v14, %v1025_v14 }
 0x12d   :  { %v827_v19 = vpop.f32.mrf.mxu0  ;;  %v1027_v20 = vpop.f32.mrf.mxu1 }
 0x12e   :  { %1594 = vst.msk [vmem:[%s3117_s3 + $0x28] sm:$0xf] %vm1583_vm0, %v1915_v17  ;;  %1644 = vst.msk [vmem:[%s3117_s3 + $0xf0] sm:$0xf] %vm1583_vm0, %v1965_v18  ;;  %v828_v21 = vadd.f32 %v2612_v57, %v827_v19  ;;  %v1028_v22 = vadd.f32 %v2612_v57, %v1027_v20 }
 0x12f   :  { %v829_v23 = vpop.f32.mrf.mxu0  ;;  %v1029_v24 = vpop.f32.mrf.mxu1 }
 0x130   :  { %v1916_v25 = vpack.c.bf16 %v828_v21, %v828_v21  ;;  %v1966_v26 = vpack.c.bf16 %v1028_v22, %v1028_v22 }
 0x131   :  { %v832_v27 = vpop.f32.mrf.mxu0  ;;  %v1032_v28 = vpop.f32.mrf.mxu1 }
 0x132   :  { %1595 = vst.msk [vmem:[%s3117_s3 + $0x2c] sm:$0xf] %vm1583_vm0, %v1916_v25  ;;  %1645 = vst.msk [vmem:[%s3117_s3 + $0xf4] sm:$0xf] %vm1583_vm0, %v1966_v26  ;;  %v833_v29 = vadd.f32 %v2612_v57, %v832_v27  ;;  %v1033_v30 = vadd.f32 %v2612_v57, %v1032_v28 }
 0x133   :  { %v834_v31 = vpop.f32.mrf.mxu0  ;;  %v1034_v32 = vpop.f32.mrf.mxu1 }
 0x134   :  { %v1917_v33 = vpack.c.bf16 %v833_v29, %v833_v29  ;;  %v1967_v34 = vpack.c.bf16 %v1033_v30, %v1033_v30 }
 0x135   :  { %v835_v35 = vpop.f32.mrf.mxu0  ;;  %v1035_v36 = vpop.f32.mrf.mxu1 }
 0x136   :  { %1596 = vst.msk [vmem:[%s3117_s3 + $0x30] sm:$0xf] %vm1583_vm0, %v1917_v33  ;;  %1646 = vst.msk [vmem:[%s3117_s3 + $0xf8] sm:$0xf] %vm1583_vm0, %v1967_v34  ;;  %v836_v37 = vadd.f32 %v2612_v57, %v835_v35  ;;  %v1036_v38 = vadd.f32 %v2612_v57, %v1035_v36 }
 0x137   :  { %v837_v39 = vpop.f32.mrf.mxu0  ;;  %v1037_v40 = vpop.f32.mrf.mxu1 }
 0x138   :  { %v1918_v41 = vpack.c.bf16 %v836_v37, %v836_v37  ;;  %v1968_v42 = vpack.c.bf16 %v1036_v38, %v1036_v38 }
 0x139   :  { %v840_v43 = vpop.f32.mrf.mxu0  ;;  %v1040_v44 = vpop.f32.mrf.mxu1 }
 0x13a   :  { %1597 = vst.msk [vmem:[%s3117_s3 + $0x34] sm:$0xf] %vm1583_vm0, %v1918_v41  ;;  %1647 = vst.msk [vmem:[%s3117_s3 + $0xfc] sm:$0xf] %vm1583_vm0, %v1968_v42  ;;  %v841_v45 = vadd.f32 %v2612_v57, %v840_v43  ;;  %v1041_v46 = vadd.f32 %v2612_v57, %v1040_v44 }
 0x13b   :  { %v842_v47 = vpop.f32.mrf.mxu0  ;;  %v1042_v48 = vpop.f32.mrf.mxu1 }
 0x13c   :  { %v1919_v49 = vpack.c.bf16 %v841_v45, %v841_v45  ;;  %v1969_v50 = vpack.c.bf16 %v1041_v46, %v1041_v46 }
 0x13d   :  { %v843_v51 = vpop.f32.mrf.mxu0  ;;  %v1043_v52 = vpop.f32.mrf.mxu1 }
 0x13e   :  { %1598 = vst.msk [vmem:[%s3117_s3 + $0x38] sm:$0xf] %vm1583_vm0, %v1919_v49  ;;  %1648 = vst.msk [vmem:[%s3117_s3 + $0x100] sm:$0xf] %vm1583_vm0, %v1969_v50  ;;  %v844_v53 = vadd.f32 %v2612_v57, %v843_v51  ;;  %v1044_v54 = vadd.f32 %v2612_v57, %v1043_v52 }
 0x13f   :  { %v845_v55 = vpop.f32.mrf.mxu0  ;;  %v1045_v56 = vpop.f32.mrf.mxu1 }
 0x140   :  { %v1920_v58 = vpack.c.bf16 %v844_v53, %v844_v53  ;;  %v1970_v59 = vpack.c.bf16 %v1044_v54, %v1044_v54 }
 0x141   :  { %v848_v60 = vpop.f32.mrf.mxu0  ;;  %v1048_v61 = vpop.f32.mrf.mxu1 }
 0x142   :  { %1599 = vst.msk [vmem:[%s3117_s3 + $0x3c] sm:$0xf] %vm1583_vm0, %v1920_v58  ;;  %1649 = vst.msk [vmem:[%s3117_s3 + $0x104] sm:$0xf] %vm1583_vm0, %v1970_v59  ;;  %v849_v62 = vadd.f32 %v2612_v57, %v848_v60  ;;  %v1049_v63 = vadd.f32 %v2612_v57, %v1048_v61 }
 0x143   :  { %v850_v0 = vpop.f32.mrf.mxu0  ;;  %v1050_v1 = vpop.f32.mrf.mxu1 }
 0x144   :  { %v1921_v2 = vpack.c.bf16 %v849_v62, %v849_v62  ;;  %v1971_v3 = vpack.c.bf16 %v1049_v63, %v1049_v63 }
 0x145   :  { %v851_v4 = vpop.f32.mrf.mxu0  ;;  %v1051_v5 = vpop.f32.mrf.mxu1 }
 0x146   :  { %1600 = vst.msk [vmem:[%s3117_s3 + $0x40] sm:$0xf] %vm1583_vm0, %v1921_v2  ;;  %1650 = vst.msk [vmem:[%s3117_s3 + $0x108] sm:$0xf] %vm1583_vm0, %v1971_v3  ;;  %v852_v6 = vadd.f32 %v2612_v57, %v851_v4  ;;  %v1052_v7 = vadd.f32 %v2612_v57, %v1051_v5 }
 0x147   :  { %v853_v8 = vpop.f32.mrf.mxu0  ;;  %v1053_v9 = vpop.f32.mrf.mxu1 }
 0x148   :  { %v1922_v10 = vpack.c.bf16 %v852_v6, %v852_v6  ;;  %v1972_v11 = vpack.c.bf16 %v1052_v7, %v1052_v7 }
 0x149   :  { %v856_v12 = vpop.f32.mrf.mxu0  ;;  %v1056_v13 = vpop.f32.mrf.mxu1 }
 0x14a   :  { %1601 = vst.msk [vmem:[%s3117_s3 + $0x44] sm:$0xf] %vm1583_vm0, %v1922_v10  ;;  %1651 = vst.msk [vmem:[%s3117_s3 + $0x10c] sm:$0xf] %vm1583_vm0, %v1972_v11  ;;  %v857_v14 = vadd.f32 %v2612_v57, %v856_v12  ;;  %v1057_v15 = vadd.f32 %v2612_v57, %v1056_v13 }
 0x14b   :  { %v858_v16 = vpop.f32.mrf.mxu0  ;;  %v1058_v17 = vpop.f32.mrf.mxu1 }
 0x14c   :  { %v1923_v18 = vpack.c.bf16 %v857_v14, %v857_v14  ;;  %v1973_v19 = vpack.c.bf16 %v1057_v15, %v1057_v15 }
 0x14d   :  { %v859_v20 = vpop.f32.mrf.mxu0  ;;  %v1059_v21 = vpop.f32.mrf.mxu1 }
 0x14e   :  { %1602 = vst.msk [vmem:[%s3117_s3 + $0x48] sm:$0xf] %vm1583_vm0, %v1923_v18  ;;  %1652 = vst.msk [vmem:[%s3117_s3 + $0x110] sm:$0xf] %vm1583_vm0, %v1973_v19  ;;  %v860_v22 = vadd.f32 %v2612_v57, %v859_v20  ;;  %v1060_v23 = vadd.f32 %v2612_v57, %v1059_v21 }
 0x14f   :  { %v861_v24 = vpop.f32.mrf.mxu0  ;;  %v1061_v25 = vpop.f32.mrf.mxu1 }
 0x150   :  { %v1924_v26 = vpack.c.bf16 %v860_v22, %v860_v22  ;;  %v1974_v27 = vpack.c.bf16 %v1060_v23, %v1060_v23 }
 0x151   :  { %v864_v28 = vpop.f32.mrf.mxu0  ;;  %v1064_v29 = vpop.f32.mrf.mxu1 }
 0x152   :  { %1603 = vst.msk [vmem:[%s3117_s3 + $0x4c] sm:$0xf] %vm1583_vm0, %v1924_v26  ;;  %1653 = vst.msk [vmem:[%s3117_s3 + $0x114] sm:$0xf] %vm1583_vm0, %v1974_v27  ;;  %v865_v30 = vadd.f32 %v2612_v57, %v864_v28  ;;  %v1065_v31 = vadd.f32 %v2612_v57, %v1064_v29 }
 0x153   :  { %v866_v32 = vpop.f32.mrf.mxu0  ;;  %v1066_v33 = vpop.f32.mrf.mxu1 }
 0x154   :  { %v1925_v34 = vpack.c.bf16 %v865_v30, %v865_v30  ;;  %v1975_v35 = vpack.c.bf16 %v1065_v31, %v1065_v31 }
 0x155   :  { %v867_v36 = vpop.f32.mrf.mxu0  ;;  %v1067_v37 = vpop.f32.mrf.mxu1 }
 0x156   :  { %1604 = vst.msk [vmem:[%s3117_s3 + $0x50] sm:$0xf] %vm1583_vm0, %v1925_v34  ;;  %1654 = vst.msk [vmem:[%s3117_s3 + $0x118] sm:$0xf] %vm1583_vm0, %v1975_v35  ;;  %v868_v38 = vadd.f32 %v2612_v57, %v867_v36  ;;  %v1068_v39 = vadd.f32 %v2612_v57, %v1067_v37 }
 0x157   :  { %v869_v40 = vpop.f32.mrf.mxu0  ;;  %v1069_v41 = vpop.f32.mrf.mxu1 }
 0x158   :  { %v1926_v42 = vpack.c.bf16 %v868_v38, %v868_v38  ;;  %v1976_v43 = vpack.c.bf16 %v1068_v39, %v1068_v39 }
 0x159   :  { %v872_v44 = vpop.f32.mrf.mxu0  ;;  %v1072_v45 = vpop.f32.mrf.mxu1 }
 0x15a   :  { %1605 = vst.msk [vmem:[%s3117_s3 + $0x54] sm:$0xf] %vm1583_vm0, %v1926_v42  ;;  %1655 = vst.msk [vmem:[%s3117_s3 + $0x11c] sm:$0xf] %vm1583_vm0, %v1976_v43  ;;  %v873_v46 = vadd.f32 %v2612_v57, %v872_v44  ;;  %v1073_v47 = vadd.f32 %v2612_v57, %v1072_v45 }
 0x15b   :  { %v874_v48 = vpop.f32.mrf.mxu0  ;;  %v1074_v49 = vpop.f32.mrf.mxu1 }
 0x15c   :  { %v1927_v50 = vpack.c.bf16 %v873_v46, %v873_v46  ;;  %v1977_v51 = vpack.c.bf16 %v1073_v47, %v1073_v47 }
 0x15d   :  { %v875_v52 = vpop.f32.mrf.mxu0  ;;  %v1075_v53 = vpop.f32.mrf.mxu1 }
 0x15e   :  { %1606 = vst.msk [vmem:[%s3117_s3 + $0x58] sm:$0xf] %vm1583_vm0, %v1927_v50  ;;  %1656 = vst.msk [vmem:[%s3117_s3 + $0x120] sm:$0xf] %vm1583_vm0, %v1977_v51  ;;  %v876_v54 = vadd.f32 %v2612_v57, %v875_v52  ;;  %v1076_v55 = vadd.f32 %v2612_v57, %v1075_v53 }
 0x15f   :  { %v877_v56 = vpop.f32.mrf.mxu0  ;;  %v1077_v58 = vpop.f32.mrf.mxu1 }
 0x160   :  { %v1928_v59 = vpack.c.bf16 %v876_v54, %v876_v54  ;;  %v1978_v60 = vpack.c.bf16 %v1076_v55, %v1076_v55 }
 0x161   :  { %v880_v61 = vpop.f32.mrf.mxu0  ;;  %v1080_v62 = vpop.f32.mrf.mxu1 }
 0x162   :  { %1607 = vst.msk [vmem:[%s3117_s3 + $0x5c] sm:$0xf] %vm1583_vm0, %v1928_v59  ;;  %1657 = vst.msk [vmem:[%s3117_s3 + $0x124] sm:$0xf] %vm1583_vm0, %v1978_v60  ;;  %v881_v63 = vadd.f32 %v2612_v57, %v880_v61  ;;  %v1081_v0 = vadd.f32 %v2612_v57, %v1080_v62 }
 0x163   :  { %v882_v1 = vpop.f32.mrf.mxu0  ;;  %v1082_v2 = vpop.f32.mrf.mxu1 }
 0x164   :  { %v1929_v3 = vpack.c.bf16 %v881_v63, %v881_v63  ;;  %v1979_v4 = vpack.c.bf16 %v1081_v0, %v1081_v0 }
 0x165   :  { %v883_v5 = vpop.f32.mrf.mxu0  ;;  %v1083_v6 = vpop.f32.mrf.mxu1 }
 0x166   :  { %1608 = vst.msk [vmem:[%s3117_s3 + $0x60] sm:$0xf] %vm1583_vm0, %v1929_v3  ;;  %1658 = vst.msk [vmem:[%s3117_s3 + $0x128] sm:$0xf] %vm1583_vm0, %v1979_v4  ;;  %v884_v7 = vadd.f32 %v2612_v57, %v883_v5  ;;  %v1084_v8 = vadd.f32 %v2612_v57, %v1083_v6 }
 0x167   :  { %v885_v9 = vpop.f32.mrf.mxu0  ;;  %v1085_v10 = vpop.f32.mrf.mxu1 }
 0x168   :  { %v1930_v11 = vpack.c.bf16 %v884_v7, %v884_v7  ;;  %v1980_v12 = vpack.c.bf16 %v1084_v8, %v1084_v8 }
 0x169   :  { %v888_v13 = vpop.f32.mrf.mxu0  ;;  %v1088_v14 = vpop.f32.mrf.mxu1 }
 0x16a   :  { %1609 = vst.msk [vmem:[%s3117_s3 + $0x64] sm:$0xf] %vm1583_vm0, %v1930_v11  ;;  %1659 = vst.msk [vmem:[%s3117_s3 + $0x12c] sm:$0xf] %vm1583_vm0, %v1980_v12  ;;  %v889_v15 = vadd.f32 %v2612_v57, %v888_v13  ;;  %v1089_v16 = vadd.f32 %v2612_v57, %v1088_v14 }
 0x16b   :  { %v890_v17 = vpop.f32.mrf.mxu0  ;;  %v1090_v18 = vpop.f32.mrf.mxu1 }
 0x16c   :  { %v1931_v19 = vpack.c.bf16 %v889_v15, %v889_v15  ;;  %v1981_v20 = vpack.c.bf16 %v1089_v16, %v1089_v16 }
 0x16d   :  { %v891_v21 = vpop.f32.mrf.mxu0  ;;  %v1091_v22 = vpop.f32.mrf.mxu1 }
 0x16e   :  { %1610 = vst.msk [vmem:[%s3117_s3 + $0x68] sm:$0xf] %vm1583_vm0, %v1931_v19  ;;  %1660 = vst.msk [vmem:[%s3117_s3 + $0x130] sm:$0xf] %vm1583_vm0, %v1981_v20  ;;  %v892_v23 = vadd.f32 %v2612_v57, %v891_v21  ;;  %v1092_v24 = vadd.f32 %v2612_v57, %v1091_v22 }
 0x16f   :  { %v893_v25 = vpop.f32.mrf.mxu0  ;;  %v1093_v26 = vpop.f32.mrf.mxu1 }
 0x170   :  { %v1932_v27 = vpack.c.bf16 %v892_v23, %v892_v23  ;;  %v1982_v28 = vpack.c.bf16 %v1092_v24, %v1092_v24 }
 0x171   :  { %v896_v29 = vpop.f32.mrf.mxu0  ;;  %v1096_v30 = vpop.f32.mrf.mxu1 }
 0x172   :  { %1611 = vst.msk [vmem:[%s3117_s3 + $0x6c] sm:$0xf] %vm1583_vm0, %v1932_v27  ;;  %1661 = vst.msk [vmem:[%s3117_s3 + $0x134] sm:$0xf] %vm1583_vm0, %v1982_v28  ;;  %v897_v31 = vadd.f32 %v2612_v57, %v896_v29  ;;  %v1097_v32 = vadd.f32 %v2612_v57, %v1096_v30 }
 0x173   :  { %v898_v33 = vpop.f32.mrf.mxu0  ;;  %v1098_v34 = vpop.f32.mrf.mxu1 }
 0x174   :  { %v1933_v35 = vpack.c.bf16 %v897_v31, %v897_v31  ;;  %v1983_v36 = vpack.c.bf16 %v1097_v32, %v1097_v32 }
 0x175   :  { %v899_v37 = vpop.f32.mrf.mxu0  ;;  %v1099_v38 = vpop.f32.mrf.mxu1 }
 0x176   :  { %1612 = vst.msk [vmem:[%s3117_s3 + $0x70] sm:$0xf] %vm1583_vm0, %v1933_v35  ;;  %1662 = vst.msk [vmem:[%s3117_s3 + $0x138] sm:$0xf] %vm1583_vm0, %v1983_v36  ;;  %v900_v39 = vadd.f32 %v2612_v57, %v899_v37  ;;  %v1100_v40 = vadd.f32 %v2612_v57, %v1099_v38 }
 0x177   :  { %v901_v41 = vpop.f32.mrf.mxu0  ;;  %v1101_v42 = vpop.f32.mrf.mxu1 }
 0x178   :  { %v1934_v43 = vpack.c.bf16 %v900_v39, %v900_v39  ;;  %v1984_v44 = vpack.c.bf16 %v1100_v40, %v1100_v40 }
 0x179   :  { %v904_v45 = vpop.f32.mrf.mxu0  ;;  %v1104_v46 = vpop.f32.mrf.mxu1 }
 0x17a   :  { %1613 = vst.msk [vmem:[%s3117_s3 + $0x74] sm:$0xf] %vm1583_vm0, %v1934_v43  ;;  %1663 = vst.msk [vmem:[%s3117_s3 + $0x13c] sm:$0xf] %vm1583_vm0, %v1984_v44  ;;  %v905_v47 = vadd.f32 %v2612_v57, %v904_v45  ;;  %v1105_v48 = vadd.f32 %v2612_v57, %v1104_v46 }
 0x17b   :  { %v906_v49 = vpop.f32.mrf.mxu0  ;;  %v1106_v50 = vpop.f32.mrf.mxu1 }
 0x17c   :  { %v1935_v51 = vpack.c.bf16 %v905_v47, %v905_v47  ;;  %v1985_v52 = vpack.c.bf16 %v1105_v48, %v1105_v48 }
 0x17d   :  { %v907_v53 = vpop.f32.mrf.mxu0  ;;  %v1107_v54 = vpop.f32.mrf.mxu1 }
 0x17e   :  { %1614 = vst.msk [vmem:[%s3117_s3 + $0x78] sm:$0xf] %vm1583_vm0, %v1935_v51  ;;  %1664 = vst.msk [vmem:[%s3117_s3 + $0x140] sm:$0xf] %vm1583_vm0, %v1985_v52  ;;  %v908_v55 = vadd.f32 %v2612_v57, %v907_v53  ;;  %v1108_v56 = vadd.f32 %v2612_v57, %v1107_v54 }
 0x17f   :  { %v909_v58 = vpop.f32.mrf.mxu0  ;;  %v1109_v59 = vpop.f32.mrf.mxu1 }
 0x180   :  { %v1936_v60 = vpack.c.bf16 %v908_v55, %v908_v55  ;;  %v1986_v61 = vpack.c.bf16 %v1108_v56, %v1108_v56 }
 0x181   :  { %v912_v62 = vpop.f32.mrf.mxu0  ;;  %v1112_v63 = vpop.f32.mrf.mxu1 }
 0x182   :  { %1615 = vst.msk [vmem:[%s3117_s3 + $0x7c] sm:$0xf] %vm1583_vm0, %v1936_v60  ;;  %1665 = vst.msk [vmem:[%s3117_s3 + $0x144] sm:$0xf] %vm1583_vm0, %v1986_v61  ;;  %v913_v0 = vadd.f32 %v2612_v57, %v912_v62  ;;  %v1113_v1 = vadd.f32 %v2612_v57, %v1112_v63 }
 0x183   :  { %v914_v2 = vpop.f32.mrf.mxu0  ;;  %v1114_v3 = vpop.f32.mrf.mxu1 }
 0x184   :  { %v1937_v4 = vpack.c.bf16 %v913_v0, %v913_v0  ;;  %v1987_v5 = vpack.c.bf16 %v1113_v1, %v1113_v1 }
 0x185   :  { %v915_v6 = vpop.f32.mrf.mxu0  ;;  %v1115_v7 = vpop.f32.mrf.mxu1 }
 0x186   :  { %1616 = vst.msk [vmem:[%s3117_s3 + $0x80] sm:$0xf] %vm1583_vm0, %v1937_v4  ;;  %1666 = vst.msk [vmem:[%s3117_s3 + $0x148] sm:$0xf] %vm1583_vm0, %v1987_v5  ;;  %v916_v8 = vadd.f32 %v2612_v57, %v915_v6  ;;  %v1116_v9 = vadd.f32 %v2612_v57, %v1115_v7 }
 0x187   :  { %v917_v10 = vpop.f32.mrf.mxu0  ;;  %v1117_v11 = vpop.f32.mrf.mxu1 }
 0x188   :  { %v1938_v12 = vpack.c.bf16 %v916_v8, %v916_v8  ;;  %v1988_v13 = vpack.c.bf16 %v1116_v9, %v1116_v9 }
 0x189   :  { %v920_v14 = vpop.f32.mrf.mxu0  ;;  %v1120_v15 = vpop.f32.mrf.mxu1 }
 0x18a   :  { %1617 = vst.msk [vmem:[%s3117_s3 + $0x84] sm:$0xf] %vm1583_vm0, %v1938_v12  ;;  %1667 = vst.msk [vmem:[%s3117_s3 + $0x14c] sm:$0xf] %vm1583_vm0, %v1988_v13  ;;  %v921_v16 = vadd.f32 %v2612_v57, %v920_v14  ;;  %v1121_v17 = vadd.f32 %v2612_v57, %v1120_v15 }
 0x18b   :  { %v922_v18 = vpop.f32.mrf.mxu0  ;;  %v1122_v19 = vpop.f32.mrf.mxu1 }
 0x18c   :  { %v1939_v20 = vpack.c.bf16 %v921_v16, %v921_v16  ;;  %v1989_v21 = vpack.c.bf16 %v1121_v17, %v1121_v17 }
 0x18d   :  { %v923_v22 = vpop.f32.mrf.mxu0  ;;  %v1123_v23 = vpop.f32.mrf.mxu1 }
 0x18e   :  { %1618 = vst.msk [vmem:[%s3117_s3 + $0x88] sm:$0xf] %vm1583_vm0, %v1939_v20  ;;  %1668 = vst.msk [vmem:[%s3117_s3 + $0x150] sm:$0xf] %vm1583_vm0, %v1989_v21  ;;  %v924_v24 = vadd.f32 %v2612_v57, %v923_v22  ;;  %v1124_v25 = vadd.f32 %v2612_v57, %v1123_v23 }
 0x18f   :  { %v925_v26 = vpop.f32.mrf.mxu0  ;;  %v1125_v27 = vpop.f32.mrf.mxu1 }
 0x190   :  { %v1940_v28 = vpack.c.bf16 %v924_v24, %v924_v24  ;;  %v1990_v29 = vpack.c.bf16 %v1124_v25, %v1124_v25 }
 0x191   :  { %v928_v30 = vpop.f32.mrf.mxu0  ;;  %v1128_v31 = vpop.f32.mrf.mxu1 }
 0x192   :  { %1619 = vst.msk [vmem:[%s3117_s3 + $0x8c] sm:$0xf] %vm1583_vm0, %v1940_v28  ;;  %1669 = vst.msk [vmem:[%s3117_s3 + $0x154] sm:$0xf] %vm1583_vm0, %v1990_v29  ;;  %v929_v32 = vadd.f32 %v2612_v57, %v928_v30  ;;  %v1129_v33 = vadd.f32 %v2612_v57, %v1128_v31 }
 0x193   :  { %v930_v34 = vpop.f32.mrf.mxu0  ;;  %v1130_v35 = vpop.f32.mrf.mxu1 }
 0x194   :  { %v1941_v36 = vpack.c.bf16 %v929_v32, %v929_v32  ;;  %v1991_v37 = vpack.c.bf16 %v1129_v33, %v1129_v33 }
 0x195   :  { %v931_v38 = vpop.f32.mrf.mxu0  ;;  %v1131_v39 = vpop.f32.mrf.mxu1 }
 0x196   :  { %1620 = vst.msk [vmem:[%s3117_s3 + $0x90] sm:$0xf] %vm1583_vm0, %v1941_v36  ;;  %1670 = vst.msk [vmem:[%s3117_s3 + $0x158] sm:$0xf] %vm1583_vm0, %v1991_v37  ;;  %v932_v40 = vadd.f32 %v2612_v57, %v931_v38  ;;  %v1132_v41 = vadd.f32 %v2612_v57, %v1131_v39 }
 0x197   :  { %v933_v42 = vpop.f32.mrf.mxu0  ;;  %v1133_v43 = vpop.f32.mrf.mxu1 }
 0x198   :  { %v1942_v44 = vpack.c.bf16 %v932_v40, %v932_v40  ;;  %v1992_v45 = vpack.c.bf16 %v1132_v41, %v1132_v41 }
 0x199   :  { %v936_v46 = vpop.f32.mrf.mxu0  ;;  %v1136_v47 = vpop.f32.mrf.mxu1 }
 0x19a   :  { %1621 = vst.msk [vmem:[%s3117_s3 + $0x94] sm:$0xf] %vm1583_vm0, %v1942_v44  ;;  %1671 = vst.msk [vmem:[%s3117_s3 + $0x15c] sm:$0xf] %vm1583_vm0, %v1992_v45  ;;  %v937_v48 = vadd.f32 %v2612_v57, %v936_v46  ;;  %v1137_v49 = vadd.f32 %v2612_v57, %v1136_v47 }
 0x19b   :  { %v938_v50 = vpop.f32.mrf.mxu0  ;;  %v1138_v51 = vpop.f32.mrf.mxu1 }
 0x19c   :  { %v1943_v52 = vpack.c.bf16 %v937_v48, %v937_v48  ;;  %v1993_v53 = vpack.c.bf16 %v1137_v49, %v1137_v49 }
 0x19d   :  { %v939_v54 = vpop.f32.mrf.mxu0  ;;  %v1139_v55 = vpop.f32.mrf.mxu1 }
 0x19e   :  { %1622 = vst.msk [vmem:[%s3117_s3 + $0x98] sm:$0xf] %vm1583_vm0, %v1943_v52  ;;  %1672 = vst.msk [vmem:[%s3117_s3 + $0x160] sm:$0xf] %vm1583_vm0, %v1993_v53  ;;  %v940_v56 = vadd.f32 %v2612_v57, %v939_v54  ;;  %v1140_v58 = vadd.f32 %v2612_v57, %v1139_v55 }
 0x19f   :  { %v941_v59 = vpop.f32.mrf.mxu0  ;;  %v1141_v60 = vpop.f32.mrf.mxu1 }
 0x1a0   :  { %v1944_v61 = vpack.c.bf16 %v940_v56, %v940_v56  ;;  %v1994_v62 = vpack.c.bf16 %v1140_v58, %v1140_v58 }
 0x1a1   :  { %v944_v63 = vpop.f32.mrf.mxu0  ;;  %v1144_v0 = vpop.f32.mrf.mxu1 }
 0x1a2   :  { %1623 = vst.msk [vmem:[%s3117_s3 + $0x9c] sm:$0xf] %vm1583_vm0, %v1944_v61  ;;  %1673 = vst.msk [vmem:[%s3117_s3 + $0x164] sm:$0xf] %vm1583_vm0, %v1994_v62  ;;  %v945_v1 = vadd.f32 %v2612_v57, %v944_v63  ;;  %v1145_v2 = vadd.f32 %v2612_v57, %v1144_v0 }
 0x1a3   :  { %v946_v3 = vpop.f32.mrf.mxu0  ;;  %v1146_v4 = vpop.f32.mrf.mxu1 }
 0x1a4   :  { %v1945_v5 = vpack.c.bf16 %v945_v1, %v945_v1  ;;  %v1995_v6 = vpack.c.bf16 %v1145_v2, %v1145_v2 }
 0x1a5   :  { %v947_v7 = vpop.f32.mrf.mxu0  ;;  %v1147_v8 = vpop.f32.mrf.mxu1 }
 0x1a6   :  { %1624 = vst.msk [vmem:[%s3117_s3 + $0xa0] sm:$0xf] %vm1583_vm0, %v1945_v5  ;;  %1674 = vst.msk [vmem:[%s3117_s3 + $0x168] sm:$0xf] %vm1583_vm0, %v1995_v6  ;;  %v948_v9 = vadd.f32 %v2612_v57, %v947_v7  ;;  %v1148_v10 = vadd.f32 %v2612_v57, %v1147_v8 }
 0x1a7   :  { %v949_v11 = vpop.f32.mrf.mxu0  ;;  %v1149_v12 = vpop.f32.mrf.mxu1 }
 0x1a8   :  { %v1946_v13 = vpack.c.bf16 %v948_v9, %v948_v9  ;;  %v1996_v14 = vpack.c.bf16 %v1148_v10, %v1148_v10 }
 0x1a9   :  { %v952_v15 = vpop.f32.mrf.mxu0  ;;  %v1152_v16 = vpop.f32.mrf.mxu1 }
 0x1aa   :  { %1625 = vst.msk [vmem:[%s3117_s3 + $0xa4] sm:$0xf] %vm1583_vm0, %v1946_v13  ;;  %1675 = vst.msk [vmem:[%s3117_s3 + $0x16c] sm:$0xf] %vm1583_vm0, %v1996_v14  ;;  %v953_v17 = vadd.f32 %v2612_v57, %v952_v15  ;;  %v1153_v18 = vadd.f32 %v2612_v57, %v1152_v16 }
 0x1ab   :  { %v954_v19 = vpop.f32.mrf.mxu0  ;;  %v1154_v20 = vpop.f32.mrf.mxu1 }
 0x1ac   :  { %v1947_v21 = vpack.c.bf16 %v953_v17, %v953_v17  ;;  %v1997_v22 = vpack.c.bf16 %v1153_v18, %v1153_v18 }
 0x1ad   :  { %v955_v23 = vpop.f32.mrf.mxu0  ;;  %v1155_v24 = vpop.f32.mrf.mxu1 }
 0x1ae   :  { %1626 = vst.msk [vmem:[%s3117_s3 + $0xa8] sm:$0xf] %vm1583_vm0, %v1947_v21  ;;  %1676 = vst.msk [vmem:[%s3117_s3 + $0x170] sm:$0xf] %vm1583_vm0, %v1997_v22  ;;  %v956_v25 = vadd.f32 %v2612_v57, %v955_v23  ;;  %v1156_v26 = vadd.f32 %v2612_v57, %v1155_v24 }
 0x1af   :  { %v957_v27 = vpop.f32.mrf.mxu0  ;;  %v1157_v28 = vpop.f32.mrf.mxu1 }
 0x1b0   :  { %v1948_v29 = vpack.c.bf16 %v956_v25, %v956_v25  ;;  %v1998_v30 = vpack.c.bf16 %v1156_v26, %v1156_v26 }
 0x1b1   :  { %v960_v31 = vpop.f32.mrf.mxu0  ;;  %v1160_v32 = vpop.f32.mrf.mxu1 }
 0x1b2   :  { %1627 = vst.msk [vmem:[%s3117_s3 + $0xac] sm:$0xf] %vm1583_vm0, %v1948_v29  ;;  %1677 = vst.msk [vmem:[%s3117_s3 + $0x174] sm:$0xf] %vm1583_vm0, %v1998_v30  ;;  %v961_v33 = vadd.f32 %v2612_v57, %v960_v31  ;;  %v1161_v34 = vadd.f32 %v2612_v57, %v1160_v32 }
 0x1b3   :  { %v962_v35 = vpop.f32.mrf.mxu0  ;;  %v1162_v36 = vpop.f32.mrf.mxu1 }
 0x1b4   :  { %v1949_v37 = vpack.c.bf16 %v961_v33, %v961_v33  ;;  %v1999_v38 = vpack.c.bf16 %v1161_v34, %v1161_v34 }
 0x1b5   :  { %v963_v39 = vpop.f32.mrf.mxu0  ;;  %v1163_v40 = vpop.f32.mrf.mxu1 }
 0x1b6   :  { %1628 = vst.msk [vmem:[%s3117_s3 + $0xb0] sm:$0xf] %vm1583_vm0, %v1949_v37  ;;  %1678 = vst.msk [vmem:[%s3117_s3 + $0x178] sm:$0xf] %vm1583_vm0, %v1999_v38  ;;  %v964_v41 = vadd.f32 %v2612_v57, %v963_v39  ;;  %v1164_v42 = vadd.f32 %v2612_v57, %v1163_v40 }
 0x1b7   :  { %v965_v43 = vpop.f32.mrf.mxu0  ;;  %v1165_v44 = vpop.f32.mrf.mxu1 }
 0x1b8   :  { %v1950_v45 = vpack.c.bf16 %v964_v41, %v964_v41  ;;  %v2000_v46 = vpack.c.bf16 %v1164_v42, %v1164_v42 }
 0x1b9   :  { %v968_v47 = vpop.f32.mrf.mxu0  ;;  %v1168_v48 = vpop.f32.mrf.mxu1 }
 0x1ba   :  { %1629 = vst.msk [vmem:[%s3117_s3 + $0xb4] sm:$0xf] %vm1583_vm0, %v1950_v45  ;;  %1679 = vst.msk [vmem:[%s3117_s3 + $0x17c] sm:$0xf] %vm1583_vm0, %v2000_v46  ;;  %v969_v49 = vadd.f32 %v2612_v57, %v968_v47  ;;  %v1169_v50 = vadd.f32 %v2612_v57, %v1168_v48 }
 0x1bb   :  { %v970_v51 = vpop.f32.mrf.mxu0  ;;  %v1170_v52 = vpop.f32.mrf.mxu1 }
 0x1bc   :  { %v1951_v53 = vpack.c.bf16 %v969_v49, %v969_v49  ;;  %v2001_v54 = vpack.c.bf16 %v1169_v50, %v1169_v50 }
 0x1bd   :  { %v971_v55 = vpop.f32.mrf.mxu0  ;;  %v1171_v56 = vpop.f32.mrf.mxu1 }
 0x1be   :  { %1630 = vst.msk [vmem:[%s3117_s3 + $0xb8] sm:$0xf] %vm1583_vm0, %v1951_v53  ;;  %1680 = vst.msk [vmem:[%s3117_s3 + $0x180] sm:$0xf] %vm1583_vm0, %v2001_v54  ;;  %v972_v58 = vadd.f32 %v2612_v57, %v971_v55  ;;  %v1172_v59 = vadd.f32 %v2612_v57, %v1171_v56 }
 0x1bf   :  { %v973_v60 = vpop.f32.mrf.mxu0  ;;  %v1173_v61 = vpop.f32.mrf.mxu1 }
 0x1c0   :  { %v1952_v62 = vpack.c.bf16 %v972_v58, %v972_v58  ;;  %v2002_v63 = vpack.c.bf16 %v1172_v59, %v1172_v59 }
 0x1c1   :  { %v976_v0 = vpop.f32.mrf.mxu0  ;;  %v1176_v1 = vpop.f32.mrf.mxu1 }
 0x1c2   :  { %1631 = vst.msk [vmem:[%s3117_s3 + $0xbc] sm:$0xf] %vm1583_vm0, %v1952_v62  ;;  %1681 = vst.msk [vmem:[%s3117_s3 + $0x184] sm:$0xf] %vm1583_vm0, %v2002_v63  ;;  %v977_v2 = vadd.f32 %v2612_v57, %v976_v0  ;;  %v1177_v3 = vadd.f32 %v2612_v57, %v1176_v1 }
 0x1c3   :  { %v978_v4 = vpop.f32.mrf.mxu0  ;;  %v1178_v5 = vpop.f32.mrf.mxu1 }
 0x1c4   :  { %v1953_v6 = vpack.c.bf16 %v977_v2, %v977_v2  ;;  %v2003_v7 = vpack.c.bf16 %v1177_v3, %v1177_v3 }
 0x1c5   :  { %v979_v8 = vpop.f32.mrf.mxu0  ;;  %v1179_v9 = vpop.f32.mrf.mxu1 }
 0x1c6   :  { %1632 = vst.msk [vmem:[%s3117_s3 + $0xc0] sm:$0xf] %vm1583_vm0, %v1953_v6  ;;  %1682 = vst.msk [vmem:[%s3117_s3 + $0x188] sm:$0xf] %vm1583_vm0, %v2003_v7  ;;  %v980_v10 = vadd.f32 %v2612_v57, %v979_v8  ;;  %v1180_v11 = vadd.f32 %v2612_v57, %v1179_v9 }
 0x1c7   :  { %v981_v12 = vpop.f32.mrf.mxu0  ;;  %v1181_v13 = vpop.f32.mrf.mxu1 }
 0x1c8   :  { %v1954_v14 = vpack.c.bf16 %v980_v10, %v980_v10  ;;  %v2004_v15 = vpack.c.bf16 %v1180_v11, %v1180_v11 }
 0x1ca   :  { %1633 = vst.msk [vmem:[%s3117_s3 + $0xc4] sm:$0xf] %vm1583_vm0, %v1954_v14  ;;  %1683 = vst.msk [vmem:[%s3117_s3 + $0x18c] sm:$0xf] %vm1583_vm0, %v2004_v15 }

// kernel: estimator_forward.4
= control target key start
LH: loop header
LB: loop body
LE: loop exit
PB: predicated region body
PF: predicated region fallthrough
CT: control target
= control target key end

     0   :  { %vm859_vm0 = vcmask 519168   ;;  %vm880_vm1 = vcmask 516096   ;;  %s1616_s1 = inlined_call_operand.vmem [shape: bf16[512,64], index: 1, kind: input, shape index: {}]   ;;  %s1617_s0 = inlined_call_operand.vmem [shape: bf16[162,512], index: 0, kind: input, shape index: {}]   ;;  %s1618_s2 = inlined_call_operand.vmem [shape: f32[1,64], index: 2, kind: input, shape index: {}]   ;;  %s1619_s3 = inlined_call_operand.vmem [shape: bf16[162,64], index: 3, kind: output, shape index: {}]  }
   0x1   :  { %v1169_v0 = vld [vmem:[%s1616_s1 + $0x78] sm:$0xff]   ;;  %v1173_v4 = vld [vmem:[%s1616_s1 + $0x70] sm:$0xff]   ;;  %v1177_v8 = vld [vmem:[%s1616_s1 + $0x68] sm:$0xff]  }
   0x2   :  { %v1170_v1 = vld [vmem:[%s1616_s1 + $0xf8] sm:$0xff]   ;;  %1005 = vmatprep.subr.bf16.mxu0 %v1169_v0  ;;  %v1174_v5 = vld [vmem:[%s1616_s1 + $0xf0] sm:$0xff]   ;;  %v1178_v9 = vld [vmem:[%s1616_s1 + $0xe8] sm:$0xff]  }
   0x3   :  { %v1171_v2 = vld [vmem:[%s1616_s1 + $0x38] sm:$0xff]   ;;  %1087 = vmatprep.subr.bf16.mxu1 %v1170_v1  ;;  %v1175_v6 = vld [vmem:[%s1616_s1 + $0x30] sm:$0xff]   ;;  %v1179_v10 = vld [vmem:[%s1616_s1 + $0x28] sm:$0xff]  }
   0x4   :  { %v1172_v3 = vld [vmem:[%s1616_s1 + $0xb8] sm:$0xff]   ;;  %1006 = vmatpush3.bf16.msra.mxu0 %v1171_v2  ;;  %v1176_v7 = vld [vmem:[%s1616_s1 + $0xb0] sm:$0xff]   ;;  %v1180_v11 = vld [vmem:[%s1616_s1 + $0xa8] sm:$0xff]  }
   0x5   :  { %1088 = vmatpush3.bf16.msra.mxu1 %v1172_v3  ;;  %1007 = vmatprep.subr.bf16.mxu0 %v1173_v4  ;;  %v1181_v12 = vld [vmem:[%s1616_s1 + $0x60] sm:$0xff]   ;;  %v1185_v16 = vld [vmem:[%s1616_s1 + $0x58] sm:$0xff]   ;;  %v1189_v20 = vld [vmem:[%s1616_s1 + $0x50] sm:$0xff]  }
   0x6   :  { %1089 = vmatprep.subr.bf16.mxu1 %v1174_v5  ;;  %v1182_v13 = vld [vmem:[%s1616_s1 + $0xe0] sm:$0xff]   ;;  %v1186_v17 = vld [vmem:[%s1616_s1 + $0xd8] sm:$0xff]   ;;  %v1190_v21 = vld [vmem:[%s1616_s1 + $0xd0] sm:$0xff]  }
   0x7   :  { %v1183_v14 = vld [vmem:[%s1616_s1 + $0x20] sm:$0xff]   ;;  %v1187_v18 = vld [vmem:[%s1616_s1 + $0x18] sm:$0xff]   ;;  %v1191_v22 = vld [vmem:[%s1616_s1 + $0x10] sm:$0xff]  }
   0x8   :  { %1008 = vmatpush3.bf16.msra.mxu0 %v1175_v6  ;;  %v1184_v15 = vld [vmem:[%s1616_s1 + $0xa0] sm:$0xff]   ;;  %v1188_v19 = vld [vmem:[%s1616_s1 + $0x98] sm:$0xff]   ;;  %v1192_v23 = vld [vmem:[%s1616_s1 + $0x90] sm:$0xff]  }
   0x9   :  { %1090 = vmatpush3.bf16.msra.mxu1 %v1176_v7  ;;  %1009 = vmatprep.subr.bf16.mxu0 %v1177_v8  ;;  %v1193_v24 = vld [vmem:[%s1616_s1 + $0x48] sm:$0xff]   ;;  %v1197_v28 = vld [vmem:[%s1616_s1 + $0x40] sm:$0xff]  }
   0xa   :  { %1091 = vmatprep.subr.bf16.mxu1 %v1178_v9  ;;  %v1194_v25 = vld [vmem:[%s1616_s1 + $0xc8] sm:$0xff]   ;;  %v1198_v29 = vld [vmem:[%s1616_s1 + $0xc0] sm:$0xff]  }
   0xb   :  { %v1195_v26 = vld [vmem:[%s1616_s1 + $0x8] sm:$0xff]   ;;  %v1199_v30 = vld [vmem:[%s1616_s1] sm:$0xff]  }
   0xc   :  { %1010 = vmatpush3.bf16.msra.mxu0 %v1179_v10  ;;  %v1196_v27 = vld [vmem:[%s1616_s1 + $0x88] sm:$0xff]   ;;  %v1200_v31 = vld [vmem:[%s1616_s1 + $0x80] sm:$0xff]  }
   0xd   :  { %1092 = vmatpush3.bf16.msra.mxu1 %v1180_v11  ;;  %1011 = vmatprep.subr.bf16.mxu0 %v1181_v12  ;;  %v1201_v32 = vld [vmem:[%s1617_s0] ss:$16 sps:$4 sm:$0xff]   ;;  %v1203_v33 = vld [vmem:[%s1617_s0 + $0x4] ss:$16 sps:$4 sm:$0xff]   ;;  %v1204_v34 = vld [vmem:[%s1617_s0 + $0x8] ss:$16 sps:$4 sm:$0xff]  }
   0xe   :  { %1093 = vmatprep.subr.bf16.mxu1 %v1182_v13  ;;  %v1206_v35 = vld [vmem:[%s1617_s0 + $0xc] ss:$16 sps:$4 sm:$0xff]   ;;  %566 = vmatprep.mubr.bf16.mxu0 %v1203_v33  ;;  %v1207_v36 = vld [vmem:[%s1617_s0 + $0x24] ss:$16 sps:$4 sm:$0xff]   ;;  %v1211_v38 = vld [vmem:[%s1617_s0 + $0x20] ss:$16 sps:$4 sm:$0xff]  }
   0xf   :  { %686 = vmatprep.mubr.bf16.mxu1 %v1206_v35  ;;  %v1209_v37 = vld [vmem:[%s1617_s0 + $0x2c] ss:$16 sps:$4 sm:$0xff]   ;;  %v1212_v39 = vld [vmem:[%s1617_s0 + $0x28] ss:$16 sps:$4 sm:$0xff]   ;;  %v1213_v40 = vld [vmem:[%s1617_s0 + $0x44] ss:$16 sps:$4 sm:$0xff]  }
  0x10   :  { %1012 = vmatpush3.bf16.msra.mxu0 %v1183_v14  ;;  %v1215_v41 = vld [vmem:[%s1617_s0 + $0x4c] ss:$16 sps:$4 sm:$0xff]   ;;  %v1217_v42 = vld [vmem:[%s1617_s0 + $0x40] ss:$16 sps:$4 sm:$0xff]   ;;  %v1218_v43 = vld [vmem:[%s1617_s0 + $0x48] ss:$16 sps:$4 sm:$0xff]  }
  0x11   :  { %1094 = vmatpush3.bf16.msra.mxu1 %v1184_v15  ;;  %1013 = vmatprep.subr.bf16.mxu0 %v1185_v16  ;;  %v1219_v44 = vld [vmem:[%s1617_s0 + $0x64] ss:$16 sps:$4 sm:$0xff]   ;;  %v1221_v45 = vld [vmem:[%s1617_s0 + $0x6c] ss:$16 sps:$4 sm:$0xff]   ;;  %v1223_v46 = vld [vmem:[%s1617_s0 + $0x60] ss:$16 sps:$4 sm:$0xff]  }
  0x12   :  { %1095 = vmatprep.subr.bf16.mxu1 %v1186_v17  ;;  %v1224_v47 = vld [vmem:[%s1617_s0 + $0x68] ss:$16 sps:$4 sm:$0xff]   ;;  %v1225_v48 = vld [vmem:[%s1617_s0 + $0x84] ss:$16 sps:$4 sm:$0xff]   ;;  %v1227_v49 = vld [vmem:[%s1617_s0 + $0x8c] ss:$16 sps:$4 sm:$0xff]  }
  0x13   :  { %v1229_v50 = vld [vmem:[%s1617_s0 + $0x80] ss:$16 sps:$4 sm:$0xff]   ;;  %v1230_v51 = vld [vmem:[%s1617_s0 + $0x88] ss:$16 sps:$4 sm:$0xff]   ;;  %v1231_v52 = vld [vmem:[%s1617_s0 + $0xa4] ss:$16 sps:$4 sm:$0xff]  }
  0x14   :  { %1014 = vmatpush3.bf16.msra.mxu0 %v1187_v18  ;;  %v1233_v53 = vld [vmem:[%s1617_s0 + $0xac] ss:$16 sps:$4 sm:$0xff]   ;;  %v1235_v54 = vld [vmem:[%s1617_s0 + $0xa0] ss:$16 sps:$4 sm:$0xff]   ;;  %v1236_v55 = vld [vmem:[%s1617_s0 + $0xa8] ss:$16 sps:$4 sm:$0xff]  }
  0x15   :  { %1096 = vmatpush3.bf16.msra.mxu1 %v1188_v19  ;;  %1015 = vmatprep.subr.bf16.mxu0 %v1189_v20  ;;  %v1237_v56 = vld [vmem:[%s1617_s0 + $0xc4] ss:$16 sps:$4 sm:$0xff]   ;;  %v1239_v57 = vld [vmem:[%s1617_s0 + $0xcc] ss:$16 sps:$4 sm:$0xff]   ;;  %v1241_v58 = vld [vmem:[%s1617_s0 + $0xc0] ss:$16 sps:$4 sm:$0xff]  }
  0x16   :  { %1097 = vmatprep.subr.bf16.mxu1 %v1190_v21  ;;  %v1242_v59 = vld [vmem:[%s1617_s0 + $0xc8] ss:$16 sps:$4 sm:$0xff]   ;;  %v1243_v60 = vld [vmem:[%s1617_s0 + $0xe4] ss:$16 sps:$4 sm:$0xff]   ;;  %v1245_v61 = vld [vmem:[%s1617_s0 + $0xec] ss:$16 sps:$4 sm:$0xff]  }
  0x17   :  { %v1247_v62 = vld [vmem:[%s1617_s0 + $0xe0] ss:$16 sps:$4 sm:$0xff]   ;;  %v1248_v63 = vld [vmem:[%s1617_s0 + $0xe8] ss:$16 sps:$4 sm:$0xff]   ;;  %v1249_v0 = vld [vmem:[%s1617_s0 + $0x104] ss:$16 sps:$4 sm:$0xff]  }
  0x18   :  { %1016 = vmatpush3.bf16.msra.mxu0 %v1191_v22  ;;  %v1251_v1 = vld [vmem:[%s1617_s0 + $0x10c] ss:$16 sps:$4 sm:$0xff]   ;;  %v1253_v2 = vld [vmem:[%s1617_s0 + $0x100] ss:$16 sps:$4 sm:$0xff]   ;;  %v1254_v3 = vld [vmem:[%s1617_s0 + $0x108] ss:$16 sps:$4 sm:$0xff]  }
  0x19   :  { %1098 = vmatpush3.bf16.msra.mxu1 %v1192_v23  ;;  %1017 = vmatprep.subr.bf16.mxu0 %v1193_v24  ;;  %v1255_v4 = vld [vmem:[%s1617_s0 + $0x124] ss:$16 sps:$4 sm:$0xff]   ;;  %v1257_v5 = vld [vmem:[%s1617_s0 + $0x12c] ss:$16 sps:$4 sm:$0xff]   ;;  %v1259_v8 = vld [vmem:[%s1617_s0 + $0x120] ss:$16 sps:$4 sm:$0xff]  }
  0x1a   :  { %1099 = vmatprep.subr.bf16.mxu1 %v1194_v25  ;;  %v55_v6 = vld [vmem:[%s1617_s0 + $0x140] sm:$0x11]  ;;  %v56_v7 = vld [vmem:[%s1617_s0 + $0x148] sm:$0x11] }
  0x1b   :  { %v1260_v9 = vld [vmem:[%s1617_s0 + $0x128] ss:$16 sps:$4 sm:$0xff]   ;;  %v928_v10 = vcombine.high %v55_v6, %v55_v6  ;;  %v930_v11 = vcombine.high %v56_v7, %v56_v7  ;;  %v927_v12 = vcombine.low %v55_v6, %v55_v6  ;;  %v929_v13 = vcombine.low %v56_v7, %v56_v7  ;;  %v1510_v16 = vld [vmem:[%s1618_s2] ss:$0 sm:$0xff] }
  0x1c   :  { %1018 = vmatpush3.bf16.msra.mxu0 %v1195_v26 }
  0x1d   :  { %1100 = vmatpush3.bf16.msra.mxu1 %v1196_v27  ;;  %1019 = vmatprep.subr.bf16.mxu0 %v1197_v28 }
  0x1e   :  { %1101 = vmatprep.subr.bf16.mxu1 %v1198_v29 }
  0x20   :  { %1020 = vmatpush3.bf16.msra.mxu0 %v1199_v30 }
  0x21   :  { %1102 = vmatpush3.bf16.msra.mxu1 %v1200_v31 }
  0x23   :  { %567 = vmatmul.mubr.bf16.vlgmr.msra.gmra.mxu0 %v1201_v32 }
  0x24   :  { %687 = vmatmul.mubr.bf16.vlgmr.msra.gmra.mxu1 %v1204_v34  ;;  %574 = vmatprep.mubr.bf16.mxu0 %v1207_v36 }
  0x25   :  { %694 = vmatprep.mubr.bf16.mxu1 %v1209_v37 }
  0x2b   :  { %575 = vmatmul.mubr.bf16.gmra.mxu0 %v1211_v38 }
  0x2c   :  { %695 = vmatmul.mubr.bf16.gmra.mxu1 %v1212_v39  ;;  %582 = vmatprep.mubr.bf16.mxu0 %v1213_v40 }
  0x2d   :  { %702 = vmatprep.mubr.bf16.mxu1 %v1215_v41 }
  0x33   :  { %583 = vmatmul.mubr.bf16.gmra.mxu0 %v1217_v42 }
  0x34   :  { %703 = vmatmul.mubr.bf16.gmra.mxu1 %v1218_v43  ;;  %590 = vmatprep.mubr.bf16.mxu0 %v1219_v44 }
  0x35   :  { %710 = vmatprep.mubr.bf16.mxu1 %v1221_v45 }
  0x3b   :  { %591 = vmatmul.mubr.bf16.gmra.mxu0 %v1223_v46 }
  0x3c   :  { %711 = vmatmul.mubr.bf16.gmra.mxu1 %v1224_v47  ;;  %598 = vmatprep.mubr.bf16.mxu0 %v1225_v48 }
  0x3d   :  { %718 = vmatprep.mubr.bf16.mxu1 %v1227_v49 }
  0x43   :  { %599 = vmatmul.mubr.bf16.gmra.mxu0 %v1229_v50 }
  0x44   :  { %719 = vmatmul.mubr.bf16.gmra.mxu1 %v1230_v51  ;;  %606 = vmatprep.mubr.bf16.mxu0 %v1231_v52 }
  0x45   :  { %726 = vmatprep.mubr.bf16.mxu1 %v1233_v53 }
  0x4b   :  { %607 = vmatmul.mubr.bf16.gmra.mxu0 %v1235_v54 }
  0x4c   :  { %727 = vmatmul.mubr.bf16.gmra.mxu1 %v1236_v55  ;;  %614 = vmatprep.mubr.bf16.mxu0 %v1237_v56 }
  0x4d   :  { %734 = vmatprep.mubr.bf16.mxu1 %v1239_v57 }
  0x53   :  { %615 = vmatmul.mubr.bf16.gmra.mxu0 %v1241_v58 }
  0x54   :  { %735 = vmatmul.mubr.bf16.gmra.mxu1 %v1242_v59  ;;  %622 = vmatprep.mubr.bf16.mxu0 %v1243_v60 }
  0x55   :  { %742 = vmatprep.mubr.bf16.mxu1 %v1245_v61 }
  0x5b   :  { %623 = vmatmul.mubr.bf16.gmra.mxu0 %v1247_v62 }
  0x5c   :  { %743 = vmatmul.mubr.bf16.gmra.mxu1 %v1248_v63  ;;  %630 = vmatprep.mubr.bf16.mxu0 %v1249_v0 }
  0x5d   :  { %750 = vmatprep.mubr.bf16.mxu1 %v1251_v1 }
  0x63   :  { %631 = vmatmul.mubr.bf16.gmra.mxu0 %v1253_v2 }
  0x64   :  { %751 = vmatmul.mubr.bf16.gmra.mxu1 %v1254_v3  ;;  %638 = vmatprep.mubr.bf16.mxu0 %v1255_v4 }
  0x65   :  { %758 = vmatprep.mubr.bf16.mxu1 %v1257_v5 }
  0x6b   :  { %639 = vmatmul.mubr.bf16.gmra.mxu0 %v1259_v8 }
  0x6c   :  { %759 = vmatmul.mubr.bf16.gmra.mxu1 %v1260_v9  ;;  %646 = vmatprep.mubr.bf16.mxu0 %v928_v10 }
  0x6d   :  { %766 = vmatprep.mubr.bf16.mxu1 %v930_v11 }
  0x73   :  { %647 = vmatmul.mubr.bf16.gmra.mxu0 %v927_v12 }
  0x74   :  { %767 = vmatmul.mubr.bf16.gmra.mxu1 %v929_v13 }
  0xe3   :  { %v1021_v14 = vpop.f32.mrf.mxu0 }
  0xe4   :  { %v1103_v15 = vpop.f32.mrf.mxu1 }
  0xe5   :  { %v1022_v17 = vpop.f32.mrf.mxu0 }
  0xe6   :  { %v1023_v18 = vadd.f32 %v1022_v17, %v1021_v14  ;;  %v1104_v19 = vpop.f32.mrf.mxu1 }
  0xe7   :  { %v1024_v20 = vpop.f32.mrf.mxu0  ;;  %v1105_v22 = vadd.f32 %v1104_v19, %v1103_v15 }
  0xe8   :  { %v569_v21 = vadd.f32 %v1023_v18, %v1510_v16  ;;  %v1106_v23 = vpop.f32.mrf.mxu1 }
  0xe9   :  { %v1025_v24 = vpop.f32.mrf.mxu0 }
  0xea   :  { %v689_v25 = vadd.f32 %v1105_v22, %v569_v21  ;;  %v1026_v26 = vadd.f32 %v1025_v24, %v1024_v20  ;;  %v1107_v27 = vpop.f32.mrf.mxu1 }
  0xeb   :  { %v1027_v28 = vpop.f32.mrf.mxu0  ;;  %v1108_v31 = vadd.f32 %v1107_v27, %v1106_v23 }
  0xec   :  { %v984_v29 = vpack.c.bf16 %v689_v25, %v689_v25  ;;  %v572_v30 = vadd.f32 %v1026_v26, %v1510_v16  ;;  %v1109_v32 = vpop.f32.mrf.mxu1 }
  0xed   :  { %v1028_v33 = vpop.f32.mrf.mxu0 }
  0xee   :  { %860 = vst.msk [vmem:[%s1619_s3] sm:$0xf] %vm859_vm0, %v984_v29  ;;  %v692_v34 = vadd.f32 %v1108_v31, %v572_v30  ;;  %v1029_v35 = vadd.f32 %v1028_v33, %v1027_v28  ;;  %v1110_v36 = vpop.f32.mrf.mxu1 }
  0xef   :  { %v1030_v37 = vpop.f32.mrf.mxu0  ;;  %v1111_v40 = vadd.f32 %v1110_v36, %v1109_v32 }
  0xf0   :  { %v985_v38 = vpack.c.bf16 %v692_v34, %v692_v34  ;;  %v577_v39 = vadd.f32 %v1029_v35, %v1510_v16  ;;  %v1112_v41 = vpop.f32.mrf.mxu1 }
  0xf1   :  { %v1031_v42 = vpop.f32.mrf.mxu0 }
  0xf2   :  { %861 = vst.msk [vmem:[%s1619_s3 + $0x4] sm:$0xf] %vm859_vm0, %v985_v38  ;;  %v697_v43 = vadd.f32 %v1111_v40, %v577_v39  ;;  %v1032_v44 = vadd.f32 %v1031_v42, %v1030_v37  ;;  %v1113_v45 = vpop.f32.mrf.mxu1 }
  0xf3   :  { %v1033_v46 = vpop.f32.mrf.mxu0  ;;  %v1114_v49 = vadd.f32 %v1113_v45, %v1112_v41 }
  0xf4   :  { %v986_v47 = vpack.c.bf16 %v697_v43, %v697_v43  ;;  %v580_v48 = vadd.f32 %v1032_v44, %v1510_v16  ;;  %v1115_v50 = vpop.f32.mrf.mxu1 }
  0xf5   :  { %v1034_v51 = vpop.f32.mrf.mxu0 }
  0xf6   :  { %862 = vst.msk [vmem:[%s1619_s3 + $0x8] sm:$0xf] %vm859_vm0, %v986_v47  ;;  %v700_v52 = vadd.f32 %v1114_v49, %v580_v48  ;;  %v1035_v53 = vadd.f32 %v1034_v51, %v1033_v46  ;;  %v1116_v54 = vpop.f32.mrf.mxu1 }
  0xf7   :  { %v1036_v55 = vpop.f32.mrf.mxu0  ;;  %v1117_v58 = vadd.f32 %v1116_v54, %v1115_v50 }
  0xf8   :  { %v987_v56 = vpack.c.bf16 %v700_v52, %v700_v52  ;;  %v585_v57 = vadd.f32 %v1035_v53, %v1510_v16  ;;  %v1118_v59 = vpop.f32.mrf.mxu1 }
  0xf9   :  { %v1037_v60 = vpop.f32.mrf.mxu0 }
  0xfa   :  { %863 = vst.msk [vmem:[%s1619_s3 + $0xc] sm:$0xf] %vm859_vm0, %v987_v56  ;;  %v705_v61 = vadd.f32 %v1117_v58, %v585_v57  ;;  %v1038_v62 = vadd.f32 %v1037_v60, %v1036_v55  ;;  %v1119_v63 = vpop.f32.mrf.mxu1 }
  0xfb   :  { %v1039_v0 = vpop.f32.mrf.mxu0  ;;  %v1120_v3 = vadd.f32 %v1119_v63, %v1118_v59 }
  0xfc   :  { %v988_v1 = vpack.c.bf16 %v705_v61, %v705_v61  ;;  %v588_v2 = vadd.f32 %v1038_v62, %v1510_v16  ;;  %v1121_v4 = vpop.f32.mrf.mxu1 }
  0xfd   :  { %v1040_v5 = vpop.f32.mrf.mxu0 }
  0xfe   :  { %864 = vst.msk [vmem:[%s1619_s3 + $0x10] sm:$0xf] %vm859_vm0, %v988_v1  ;;  %v708_v6 = vadd.f32 %v1120_v3, %v588_v2  ;;  %v1041_v7 = vadd.f32 %v1040_v5, %v1039_v0  ;;  %v1122_v8 = vpop.f32.mrf.mxu1 }
  0xff   :  { %v1042_v9 = vpop.f32.mrf.mxu0  ;;  %v1123_v12 = vadd.f32 %v1122_v8, %v1121_v4 }
 0x100   :  { %v989_v10 = vpack.c.bf16 %v708_v6, %v708_v6  ;;  %v593_v11 = vadd.f32 %v1041_v7, %v1510_v16  ;;  %v1124_v13 = vpop.f32.mrf.mxu1 }
 0x101   :  { %v1043_v14 = vpop.f32.mrf.mxu0 }
 0x102   :  { %865 = vst.msk [vmem:[%s1619_s3 + $0x14] sm:$0xf] %vm859_vm0, %v989_v10  ;;  %v713_v15 = vadd.f32 %v1123_v12, %v593_v11  ;;  %v1044_v17 = vadd.f32 %v1043_v14, %v1042_v9  ;;  %v1125_v18 = vpop.f32.mrf.mxu1 }
 0x103   :  { %v1045_v19 = vpop.f32.mrf.mxu0  ;;  %v1126_v22 = vadd.f32 %v1125_v18, %v1124_v13 }
 0x104   :  { %v990_v20 = vpack.c.bf16 %v713_v15, %v713_v15  ;;  %v596_v21 = vadd.f32 %v1044_v17, %v1510_v16  ;;  %v1127_v23 = vpop.f32.mrf.mxu1 }
 0x105   :  { %v1046_v24 = vpop.f32.mrf.mxu0 }
 0x106   :  { %866 = vst.msk [vmem:[%s1619_s3 + $0x18] sm:$0xf] %vm859_vm0, %v990_v20  ;;  %v716_v25 = vadd.f32 %v1126_v22, %v596_v21  ;;  %v1047_v26 = vadd.f32 %v1046_v24, %v1045_v19  ;;  %v1128_v27 = vpop.f32.mrf.mxu1 }
 0x107   :  { %v1048_v28 = vpop.f32.mrf.mxu0  ;;  %v1129_v31 = vadd.f32 %v1128_v27, %v1127_v23 }
 0x108   :  { %v991_v29 = vpack.c.bf16 %v716_v25, %v716_v25  ;;  %v601_v30 = vadd.f32 %v1047_v26, %v1510_v16  ;;  %v1130_v32 = vpop.f32.mrf.mxu1 }
 0x109   :  { %v1049_v33 = vpop.f32.mrf.mxu0 }
 0x10a   :  { %867 = vst.msk [vmem:[%s1619_s3 + $0x1c] sm:$0xf] %vm859_vm0, %v991_v29  ;;  %v721_v34 = vadd.f32 %v1129_v31, %v601_v30  ;;  %v1050_v35 = vadd.f32 %v1049_v33, %v1048_v28  ;;  %v1131_v36 = vpop.f32.mrf.mxu1 }
 0x10b   :  { %v1051_v37 = vpop.f32.mrf.mxu0  ;;  %v1132_v40 = vadd.f32 %v1131_v36, %v1130_v32 }
 0x10c   :  { %v992_v38 = vpack.c.bf16 %v721_v34, %v721_v34  ;;  %v604_v39 = vadd.f32 %v1050_v35, %v1510_v16  ;;  %v1133_v41 = vpop.f32.mrf.mxu1 }
 0x10d   :  { %v1052_v42 = vpop.f32.mrf.mxu0 }
 0x10e   :  { %868 = vst.msk [vmem:[%s1619_s3 + $0x20] sm:$0xf] %vm859_vm0, %v992_v38  ;;  %v724_v43 = vadd.f32 %v1132_v40, %v604_v39  ;;  %v1053_v44 = vadd.f32 %v1052_v42, %v1051_v37  ;;  %v1134_v45 = vpop.f32.mrf.mxu1 }
 0x10f   :  { %v1054_v46 = vpop.f32.mrf.mxu0  ;;  %v1135_v49 = vadd.f32 %v1134_v45, %v1133_v41 }
 0x110   :  { %v993_v47 = vpack.c.bf16 %v724_v43, %v724_v43  ;;  %v609_v48 = vadd.f32 %v1053_v44, %v1510_v16  ;;  %v1136_v50 = vpop.f32.mrf.mxu1 }
 0x111   :  { %v1055_v51 = vpop.f32.mrf.mxu0 }
 0x112   :  { %869 = vst.msk [vmem:[%s1619_s3 + $0x24] sm:$0xf] %vm859_vm0, %v993_v47  ;;  %v729_v52 = vadd.f32 %v1135_v49, %v609_v48  ;;  %v1056_v53 = vadd.f32 %v1055_v51, %v1054_v46  ;;  %v1137_v54 = vpop.f32.mrf.mxu1 }
 0x113   :  { %v1057_v55 = vpop.f32.mrf.mxu0  ;;  %v1138_v58 = vadd.f32 %v1137_v54, %v1136_v50 }
 0x114   :  { %v994_v56 = vpack.c.bf16 %v729_v52, %v729_v52  ;;  %v612_v57 = vadd.f32 %v1056_v53, %v1510_v16  ;;  %v1139_v59 = vpop.f32.mrf.mxu1 }
 0x115   :  { %v1058_v60 = vpop.f32.mrf.mxu0 }
 0x116   :  { %870 = vst.msk [vmem:[%s1619_s3 + $0x28] sm:$0xf] %vm859_vm0, %v994_v56  ;;  %v732_v61 = vadd.f32 %v1138_v58, %v612_v57  ;;  %v1059_v62 = vadd.f32 %v1058_v60, %v1057_v55  ;;  %v1140_v63 = vpop.f32.mrf.mxu1 }
 0x117   :  { %v1060_v0 = vpop.f32.mrf.mxu0  ;;  %v1141_v3 = vadd.f32 %v1140_v63, %v1139_v59 }
 0x118   :  { %v995_v1 = vpack.c.bf16 %v732_v61, %v732_v61  ;;  %v617_v2 = vadd.f32 %v1059_v62, %v1510_v16  ;;  %v1142_v4 = vpop.f32.mrf.mxu1 }
 0x119   :  { %v1061_v5 = vpop.f32.mrf.mxu0 }
 0x11a   :  { %871 = vst.msk [vmem:[%s1619_s3 + $0x2c] sm:$0xf] %vm859_vm0, %v995_v1  ;;  %v737_v6 = vadd.f32 %v1141_v3, %v617_v2  ;;  %v1062_v7 = vadd.f32 %v1061_v5, %v1060_v0  ;;  %v1143_v8 = vpop.f32.mrf.mxu1 }
 0x11b   :  { %v1063_v9 = vpop.f32.mrf.mxu0  ;;  %v1144_v12 = vadd.f32 %v1143_v8, %v1142_v4 }
 0x11c   :  { %v996_v10 = vpack.c.bf16 %v737_v6, %v737_v6  ;;  %v620_v11 = vadd.f32 %v1062_v7, %v1510_v16  ;;  %v1145_v13 = vpop.f32.mrf.mxu1 }
 0x11d   :  { %v1064_v14 = vpop.f32.mrf.mxu0 }
 0x11e   :  { %872 = vst.msk [vmem:[%s1619_s3 + $0x30] sm:$0xf] %vm859_vm0, %v996_v10  ;;  %v740_v15 = vadd.f32 %v1144_v12, %v620_v11  ;;  %v1065_v17 = vadd.f32 %v1064_v14, %v1063_v9  ;;  %v1146_v18 = vpop.f32.mrf.mxu1 }
 0x11f   :  { %v1066_v19 = vpop.f32.mrf.mxu0  ;;  %v1147_v22 = vadd.f32 %v1146_v18, %v1145_v13 }
 0x120   :  { %v997_v20 = vpack.c.bf16 %v740_v15, %v740_v15  ;;  %v625_v21 = vadd.f32 %v1065_v17, %v1510_v16  ;;  %v1148_v23 = vpop.f32.mrf.mxu1 }
 0x121   :  { %v1067_v24 = vpop.f32.mrf.mxu0 }
 0x122   :  { %873 = vst.msk [vmem:[%s1619_s3 + $0x34] sm:$0xf] %vm859_vm0, %v997_v20  ;;  %v745_v25 = vadd.f32 %v1147_v22, %v625_v21  ;;  %v1068_v26 = vadd.f32 %v1067_v24, %v1066_v19  ;;  %v1149_v27 = vpop.f32.mrf.mxu1 }
 0x123   :  { %v1069_v28 = vpop.f32.mrf.mxu0  ;;  %v1150_v31 = vadd.f32 %v1149_v27, %v1148_v23 }
 0x124   :  { %v998_v29 = vpack.c.bf16 %v745_v25, %v745_v25  ;;  %v628_v30 = vadd.f32 %v1068_v26, %v1510_v16  ;;  %v1151_v32 = vpop.f32.mrf.mxu1 }
 0x125   :  { %v1070_v33 = vpop.f32.mrf.mxu0 }
 0x126   :  { %874 = vst.msk [vmem:[%s1619_s3 + $0x38] sm:$0xf] %vm859_vm0, %v998_v29  ;;  %v748_v34 = vadd.f32 %v1150_v31, %v628_v30  ;;  %v1071_v35 = vadd.f32 %v1070_v33, %v1069_v28  ;;  %v1152_v36 = vpop.f32.mrf.mxu1 }
 0x127   :  { %v1072_v37 = vpop.f32.mrf.mxu0  ;;  %v1153_v40 = vadd.f32 %v1152_v36, %v1151_v32 }
 0x128   :  { %v999_v38 = vpack.c.bf16 %v748_v34, %v748_v34  ;;  %v633_v39 = vadd.f32 %v1071_v35, %v1510_v16  ;;  %v1154_v41 = vpop.f32.mrf.mxu1 }
 0x129   :  { %v1073_v42 = vpop.f32.mrf.mxu0 }
 0x12a   :  { %875 = vst.msk [vmem:[%s1619_s3 + $0x3c] sm:$0xf] %vm859_vm0, %v999_v38  ;;  %v753_v43 = vadd.f32 %v1153_v40, %v633_v39  ;;  %v1074_v44 = vadd.f32 %v1073_v42, %v1072_v37  ;;  %v1155_v45 = vpop.f32.mrf.mxu1 }
 0x12b   :  { %v1075_v46 = vpop.f32.mrf.mxu0  ;;  %v1156_v49 = vadd.f32 %v1155_v45, %v1154_v41 }
 0x12c   :  { %v1000_v47 = vpack.c.bf16 %v753_v43, %v753_v43  ;;  %v636_v48 = vadd.f32 %v1074_v44, %v1510_v16  ;;  %v1157_v50 = vpop.f32.mrf.mxu1 }
 0x12d   :  { %v1076_v51 = vpop.f32.mrf.mxu0 }
 0x12e   :  { %876 = vst.msk [vmem:[%s1619_s3 + $0x40] sm:$0xf] %vm859_vm0, %v1000_v47  ;;  %v756_v52 = vadd.f32 %v1156_v49, %v636_v48  ;;  %v1077_v53 = vadd.f32 %v1076_v51, %v1075_v46  ;;  %v1158_v54 = vpop.f32.mrf.mxu1 }
 0x12f   :  { %v1078_v55 = vpop.f32.mrf.mxu0  ;;  %v1159_v58 = vadd.f32 %v1158_v54, %v1157_v50 }
 0x130   :  { %v1001_v56 = vpack.c.bf16 %v756_v52, %v756_v52  ;;  %v641_v57 = vadd.f32 %v1077_v53, %v1510_v16  ;;  %v1160_v59 = vpop.f32.mrf.mxu1 }
 0x131   :  { %v1079_v60 = vpop.f32.mrf.mxu0 }
 0x132   :  { %877 = vst.msk [vmem:[%s1619_s3 + $0x44] sm:$0xf] %vm859_vm0, %v1001_v56  ;;  %v761_v61 = vadd.f32 %v1159_v58, %v641_v57  ;;  %v1080_v62 = vadd.f32 %v1079_v60, %v1078_v55  ;;  %v1161_v63 = vpop.f32.mrf.mxu1 }
 0x133   :  { %v1081_v0 = vpop.f32.mrf.mxu0  ;;  %v1162_v3 = vadd.f32 %v1161_v63, %v1160_v59 }
 0x134   :  { %v1002_v1 = vpack.c.bf16 %v761_v61, %v761_v61  ;;  %v644_v2 = vadd.f32 %v1080_v62, %v1510_v16  ;;  %v1163_v4 = vpop.f32.mrf.mxu1 }
 0x135   :  { %v1082_v5 = vpop.f32.mrf.mxu0 }
 0x136   :  { %878 = vst.msk [vmem:[%s1619_s3 + $0x48] sm:$0xf] %vm859_vm0, %v1002_v1  ;;  %v764_v6 = vadd.f32 %v1162_v3, %v644_v2  ;;  %v1083_v7 = vadd.f32 %v1082_v5, %v1081_v0  ;;  %v1164_v8 = vpop.f32.mrf.mxu1 }
 0x137   :  { %v1084_v9 = vpop.f32.mrf.mxu0  ;;  %v1165_v12 = vadd.f32 %v1164_v8, %v1163_v4 }
 0x138   :  { %v1003_v10 = vpack.c.bf16 %v764_v6, %v764_v6  ;;  %v649_v11 = vadd.f32 %v1083_v7, %v1510_v16  ;;  %v1166_v13 = vpop.f32.mrf.mxu1 }
 0x139   :  { %v1085_v14 = vpop.f32.mrf.mxu0 }
 0x13a   :  { %879 = vst.msk [vmem:[%s1619_s3 + $0x4c] sm:$0xf] %vm859_vm0, %v1003_v10  ;;  %v769_v15 = vadd.f32 %v1165_v12, %v649_v11  ;;  %v1167_v17 = vpop.f32.mrf.mxu1 }
 0x13c   :  { %v1004_v18 = vpack.c.bf16 %v769_v15, %v769_v15 }
 0x13e   :  { %881 = vst.msk [vmem:[%s1619_s3 + $0x50] sm:$0x1] %vm880_vm1, %v1004_v18 }

// kernel: estimator_forward.5
= control target key start
LH: loop header
LB: loop body
LE: loop exit
PB: predicated region body
PF: predicated region fallthrough
CT: control target
= control target key end

     0   :  { %v3611_v27 = vlaneseq  ;;  %v26254_v35 = vmov 1966171168   ;;  %s32108_s0 = inlined_call_operand.vmem [shape: bf16[2,28224], index: 0, kind: input, shape index: {}]   ;;  %s32109_s1 = inlined_call_operand.vmem [shape: bf16[28224,4], index: 1, kind: input, shape index: {}]   ;;  %s32110_s2 = inlined_call_operand.vmem [shape: f32[1,4], index: 2, kind: input, shape index: {}]   ;;  %s32111_s3 = inlined_call_operand.hbm [shape: f32[2,4], index: 3, kind: output, shape index: {}]  }
   0x1   :  { %v24440_v0 = vld [vmem:[%s32109_s1 + $0x78] sm:$0xff]   ;;  %v24444_v4 = vld [vmem:[%s32109_s1 + $0x70] sm:$0xff]   ;;  %v24448_v8 = vld [vmem:[%s32109_s1 + $0x68] sm:$0xff]   ;;  %v3609_v36 = vunpack.c.l.s4 %v26254_v35 }
   0x2   :  { %v24441_v1 = vld [vmem:[%s32109_s1 + $0x38] sm:$0xff]   ;;  %21999 = vmatprep.subr.bf16.mxu0 %v24440_v0  ;;  %v24445_v5 = vld [vmem:[%s32109_s1 + $0x30] sm:$0xff]   ;;  %v24449_v9 = vld [vmem:[%s32109_s1 + $0x28] sm:$0xff]   ;;  %v3612_v32 = vshrl.u32 %v3611_v27, 7 }
   0x3   :  { %v24442_v2 = vld [vmem:[%s32109_s1 + $0xf8] sm:$0xff]   ;;  %22000 = vmatpush3.bf16.msra.mxu0 %v24441_v1  ;;  %v24446_v6 = vld [vmem:[%s32109_s1 + $0xf0] sm:$0xff]   ;;  %v24450_v10 = vld [vmem:[%s32109_s1 + $0xe8] sm:$0xff]   ;;  %v3610_v39 = vunpack.c.0.s8 %v3609_v36 }
   0x4   :  { %v24443_v3 = vld [vmem:[%s32109_s1 + $0xb8] sm:$0xff]   ;;  %22021 = vmatprep.subr.bf16.mxu1 %v24442_v2  ;;  %22001 = vmatprep.subr.bf16.mxu0 %v24444_v4  ;;  %v24447_v7 = vld [vmem:[%s32109_s1 + $0xb0] sm:$0xff]   ;;  %v24451_v11 = vld [vmem:[%s32109_s1 + $0xa8] sm:$0xff]  }
   0x5   :  { %22022 = vmatpush3.bf16.msra.mxu1 %v24443_v3  ;;  %v24452_v12 = vld [vmem:[%s32109_s1 + $0x60] sm:$0xff]   ;;  %v24456_v16 = vld [vmem:[%s32109_s1 + $0x58] sm:$0xff]   ;;  %v24460_v20 = vld [vmem:[%s32109_s1 + $0x50] sm:$0xff]   ;;  %v26383_v41 = vsub.s32 %v3610_v39, %v3612_v32 }
   0x6   :  { %22023 = vmatprep.subr.bf16.mxu1 %v24446_v6  ;;  %v24453_v13 = vld [vmem:[%s32109_s1 + $0x20] sm:$0xff]   ;;  %v24457_v17 = vld [vmem:[%s32109_s1 + $0x18] sm:$0xff]   ;;  %v24461_v21 = vld [vmem:[%s32109_s1 + $0x10] sm:$0xff]  }
   0x7   :  { %22002 = vmatpush3.bf16.msra.mxu0 %v24445_v5  ;;  %v24454_v14 = vld [vmem:[%s32109_s1 + $0xe0] sm:$0xff]   ;;  %v24458_v18 = vld [vmem:[%s32109_s1 + $0xd8] sm:$0xff]   ;;  %v24462_v22 = vld [vmem:[%s32109_s1 + $0xd0] sm:$0xff]  }
   0x8   :  { %22003 = vmatprep.subr.bf16.mxu0 %v24448_v8  ;;  %v24455_v15 = vld [vmem:[%s32109_s1 + $0xa0] sm:$0xff]   ;;  %v24459_v19 = vld [vmem:[%s32109_s1 + $0x98] sm:$0xff]   ;;  %v24463_v23 = vld [vmem:[%s32109_s1 + $0x90] sm:$0xff]  }
   0x9   :  { %22024 = vmatpush3.bf16.msra.mxu1 %v24447_v7  ;;  %v24464_v24 = vld [vmem:[%s32109_s1 + $0x48] sm:$0xff]   ;;  %v24468_v29 = vld [vmem:[%s32109_s1 + $0x40] sm:$0xff]   ;;  %v24473_v37 = vld [vmem:[%s32109_s1 + $0x178] sm:$0xff]  }
   0xa   :  { %22025 = vmatprep.subr.bf16.mxu1 %v24450_v10  ;;  %v24465_v25 = vld [vmem:[%s32109_s1 + $0x8] sm:$0xff]   ;;  %v24469_v30 = vld [vmem:[%s32109_s1] sm:$0xff]   ;;  %v24475_v40 = vld [vmem:[%s32109_s1 + $0x1f8] sm:$0xff]  }
   0xb   :  { %22004 = vmatpush3.bf16.msra.mxu0 %v24449_v9  ;;  %v24466_v26 = vld [vmem:[%s32109_s1 + $0xc8] sm:$0xff]   ;;  %v24470_v31 = vld [vmem:[%s32109_s1 + $0xc0] sm:$0xff]   ;;  %v24474_v47 = vld [vmem:[%s32109_s1 + $0x138] sm:$0xff]  }
   0xc   :  { %22005 = vmatprep.subr.bf16.mxu0 %v24452_v12  ;;  %v24467_v28 = vld [vmem:[%s32109_s1 + $0x88] sm:$0xff]   ;;  %v16_v33 = vld [vmem:[%s32108_s0] sm:$0xff]  ;;  %v24476_v49 = vld [vmem:[%s32109_s1 + $0x1b8] sm:$0xff]  }
   0xd   :  { %22026 = vmatpush3.bf16.msra.mxu1 %v24451_v11  ;;  %v24472_v34 = vld [vmem:[%s32109_s1 + $0x80] sm:$0xff]   ;;  %v3607_v38 = vcombine.high %v16_v33, %v16_v33  ;;  %v3614_v42 = vrot.slane %v16_v33, %v26383_v41  ;;  %v24477_v52 = vld [vmem:[%s32109_s1 + $0x170] sm:$0xff]   ;;  %v24481_v58 = vld [vmem:[%s32109_s1 + $0x168] sm:$0xff]  }
   0xe   :  { %22027 = vmatprep.subr.bf16.mxu1 %v24454_v14  ;;  %v24478_v54 = vld [vmem:[%s32109_s1 + $0x130] sm:$0xff]   ;;  %v24482_v59 = vld [vmem:[%s32109_s1 + $0x128] sm:$0xff]   ;;  %v24485_v62 = vld [vmem:[%s32109_s1 + $0x160] sm:$0xff]  }
   0xf   :  { %22006 = vmatpush3.bf16.msra.mxu0 %v24453_v13  ;;  %v26387_v43 = vrot.slane %v3607_v38, %v26383_v41  ;;  %v3622_v44 = vcombine.high %v3614_v42, %v3614_v42  ;;  %v3630_v45 = vrot.slane %v3614_v42, %v26383_v41  ;;  %v24479_v55 = vld [vmem:[%s32109_s1 + $0x1f0] sm:$0xff]   ;;  %v24483_v60 = vld [vmem:[%s32109_s1 + $0x1e8] sm:$0xff]   ;;  %v24486_v63 = vld [vmem:[%s32109_s1 + $0x120] sm:$0xff]  }
  0x10   :  { %22007 = vmatprep.subr.bf16.mxu0 %v24456_v16  ;;  %v24480_v57 = vld [vmem:[%s32109_s1 + $0x1b0] sm:$0xff]   ;;  %v24484_v61 = vld [vmem:[%s32109_s1 + $0x1a8] sm:$0xff]   ;;  %v24487_v0 = vld [vmem:[%s32109_s1 + $0x1e0] sm:$0xff]  }
  0x11   :  { %22028 = vmatpush3.bf16.msra.mxu1 %v24455_v15  ;;  %v3623_v46 = vcombine.high %v26387_v43, %v26387_v43  ;;  %v3644_v48 = vrot.slane %v3622_v44, %v26383_v41  ;;  %v3652_v51 = vcombine.high %v3630_v45, %v3630_v45  ;;  %v24488_v1 = vld [vmem:[%s32109_s1 + $0x1a0] sm:$0xff]   ;;  %v24489_v2 = vld [vmem:[%s32109_s1 + $0x158] sm:$0xff]   ;;  %v24493_v6 = vld [vmem:[%s32109_s1 + $0x150] sm:$0xff]  }
  0x12   :  { %22029 = vmatprep.subr.bf16.mxu1 %v24458_v18  ;;  %v24490_v3 = vld [vmem:[%s32109_s1 + $0x118] sm:$0xff]   ;;  %v24494_v7 = vld [vmem:[%s32109_s1 + $0x110] sm:$0xff]   ;;  %v24497_v10 = vld [vmem:[%s32109_s1 + $0x148] sm:$0xff]   ;;  %v3637_v18 = vrot.slane %v26387_v43, %v26383_v41 }
  0x13   :  { %22008 = vmatpush3.bf16.msra.mxu0 %v24457_v17  ;;  %v3651_v50 = vrot.slane %v3623_v46, %v26383_v41  ;;  %15809 = vmatprep.mubr.bf16.mxu0 %v3644_v48  ;;  %v3654_v53 = vcombine.high %v3644_v48, %v3644_v48  ;;  %v24491_v4 = vld [vmem:[%s32109_s1 + $0x1d8] sm:$0xff]   ;;  %v24495_v8 = vld [vmem:[%s32109_s1 + $0x1d0] sm:$0xff]   ;;  %v24498_v11 = vld [vmem:[%s32109_s1 + $0x108] sm:$0xff]  }
  0x14   :  { %22009 = vmatprep.subr.bf16.mxu0 %v24460_v20  ;;  %v24492_v5 = vld [vmem:[%s32109_s1 + $0x198] sm:$0xff]   ;;  %v24496_v9 = vld [vmem:[%s32109_s1 + $0x190] sm:$0xff]   ;;  %v24499_v12 = vld [vmem:[%s32109_s1 + $0x1c8] sm:$0xff]  }
  0x15   :  { %22030 = vmatpush3.bf16.msra.mxu1 %v24459_v19  ;;  %v3655_v56 = vcombine.high %v3651_v50, %v3651_v50  ;;  %15849 = vmatprep.mubr.bf16.mxu1 %v3654_v53  ;;  %v24500_v13 = vld [vmem:[%s32109_s1 + $0x188] sm:$0xff]   ;;  %v24501_v14 = vld [vmem:[%s32109_s1 + $0x140] sm:$0xff]   ;;  %v24505_v19 = vld [vmem:[%s32109_s1 + $0x278] sm:$0xff]  }
  0x16   :  { %22031 = vmatprep.subr.bf16.mxu1 %v24462_v22  ;;  %v24502_v15 = vld [vmem:[%s32109_s1 + $0x100] sm:$0xff]   ;;  %v24506_v20 = vld [vmem:[%s32109_s1 + $0x238] sm:$0xff]   ;;  %v24512_v27 = vld [vmem:[%s32109_s1 + $0x2b0] sm:$0xff]  }
  0x17   :  { %22010 = vmatpush3.bf16.msra.mxu0 %v24461_v21  ;;  %v24503_v16 = vld [vmem:[%s32109_s1 + $0x1c0] sm:$0xff]   ;;  %v24507_v21 = vld [vmem:[%s32109_s1 + $0x2f8] sm:$0xff]   ;;  %v24526_v42 = vld [vmem:[%s32109_s1 + $0x210] sm:$0xff]  }
  0x18   :  { %22011 = vmatprep.subr.bf16.mxu0 %v24464_v24  ;;  %v24504_v17 = vld [vmem:[%s32109_s1 + $0x180] sm:$0xff]   ;;  %v24508_v22 = vld [vmem:[%s32109_s1 + $0x2b8] sm:$0xff]   ;;  %v24509_v24 = vld [vmem:[%s32109_s1 + $0x270] sm:$0xff]  }
  0x19   :  { %22032 = vmatpush3.bf16.msra.mxu1 %v24463_v23  ;;  %v3653_v23 = vcombine.high %v3637_v18, %v3637_v18  ;;  %v24517_v32 = vld [vmem:[%s32109_s1 + $0x260] sm:$0xff]   ;;  %v24521_v36 = vld [vmem:[%s32109_s1 + $0x258] sm:$0xff]   ;;  %v24527_v43 = vld [vmem:[%s32109_s1 + $0x2d0] sm:$0xff]  }
  0x1a   :  { %22033 = vmatprep.subr.bf16.mxu1 %v24466_v26  ;;  %v24511_v26 = vld [vmem:[%s32109_s1 + $0x2f0] sm:$0xff]   ;;  %v24518_v33 = vld [vmem:[%s32109_s1 + $0x220] sm:$0xff]   ;;  %v24523_v38 = vld [vmem:[%s32109_s1 + $0x2d8] sm:$0xff]  }
  0x1b   :  { %22012 = vmatpush3.bf16.msra.mxu0 %v24465_v25  ;;  %v24510_v25 = vld [vmem:[%s32109_s1 + $0x230] sm:$0xff]   ;;  %v24520_v35 = vld [vmem:[%s32109_s1 + $0x2a0] sm:$0xff]   ;;  %v24524_v39 = vld [vmem:[%s32109_s1 + $0x298] sm:$0xff]  }
  0x1c   :  { %22013 = vmatprep.subr.bf16.mxu0 %v24468_v29  ;;  %v24514_v29 = vld [vmem:[%s32109_s1 + $0x228] sm:$0xff]   ;;  %v24528_v44 = vld [vmem:[%s32109_s1 + $0x290] sm:$0xff]  }
  0x1d   :  { %22034 = vmatpush3.bf16.msra.mxu1 %v24467_v28  ;;  %v24513_v28 = vld [vmem:[%s32109_s1 + $0x268] sm:$0xff]  }
  0x1e   :  { %22035 = vmatprep.subr.bf16.mxu1 %v24470_v31  ;;  %v24516_v31 = vld [vmem:[%s32109_s1 + $0x2a8] sm:$0xff]  }
  0x1f   :  { %22014 = vmatpush3.bf16.msra.mxu0 %v24469_v30  ;;  %v24515_v30 = vld [vmem:[%s32109_s1 + $0x2e8] sm:$0xff]  }
  0x20   :  { %22043 = vmatprep.subr.bf16.mxu0 %v24473_v37  ;;  %v24522_v37 = vld [vmem:[%s32109_s1 + $0x218] sm:$0xff]   ;;  %v17_v46 = vld [vmem:[%s32108_s0 + $0x8] sm:$0xff] }
  0x21   :  { %22036 = vmatpush3.bf16.msra.mxu1 %v24472_v34  ;;  %v24519_v34 = vld [vmem:[%s32109_s1 + $0x2e0] sm:$0xff]   ;;  %v3663_v48 = vrot.slane %v17_v46, %v26383_v41 }
  0x22   :  { %22065 = vmatprep.subr.bf16.mxu1 %v24475_v40  ;;  %15810 = vmatmul.mubr.bf16.vlgmr.msra.gmra.mxu0 %v3630_v45  ;;  %v24525_v40 = vld [vmem:[%s32109_s1 + $0x250] sm:$0xff]   ;;  %v24529_v45 = vld [vmem:[%s32109_s1 + $0x248] sm:$0xff]  }
  0x23   :  { %22044 = vmatpush3.bf16.msra.mxu0 %v24474_v47  ;;  %15889 = vmatprep.mubr.bf16.mxu0 %v3651_v50  ;;  %v24530_v47 = vld [vmem:[%s32109_s1 + $0x208] sm:$0xff]  }
  0x24   :  { %15850 = vmatmul.mubr.bf16.vlgmr.msra.gmra.mxu1 %v3652_v51  ;;  %22045 = vmatprep.subr.bf16.mxu0 %v24477_v52  ;;  %v24531_v50 = vld [vmem:[%s32109_s1 + $0x2c8] sm:$0xff]   ;;  %v3671_v52 = vcombine.high %v3663_v48, %v3663_v48 }
  0x25   :  { %22066 = vmatpush3.bf16.msra.mxu1 %v24476_v49  ;;  %15929 = vmatprep.mubr.bf16.mxu1 %v3655_v56  ;;  %v3656_v49 = vcombine.high %v17_v46, %v17_v46  ;;  %v24532_v51 = vld [vmem:[%s32109_s1 + $0x288] sm:$0xff]  }
  0x26   :  { %22067 = vmatprep.subr.bf16.mxu1 %v24479_v55  ;;  %v24534_v55 = vld [vmem:[%s32109_s1 + $0x200] sm:$0xff]   ;;  %v3693_v56 = vrot.slane %v3671_v52, %v26383_v41  ;;  %v24580_v46 = vld [vmem:[%s32109_s1 + $0x4e8] sm:$0xff]   ;;  %v24586_v52 = vld [vmem:[%s32109_s1 + $0x458] sm:$0xff]  }
  0x27   :  { %22046 = vmatpush3.bf16.msra.mxu0 %v24478_v54  ;;  %v26575_v53 = vrot.slane %v3656_v49, %v26383_v41  ;;  %v24533_v54 = vld [vmem:[%s32109_s1 + $0x240] sm:$0xff]  }
  0x28   :  { %22047 = vmatprep.subr.bf16.mxu0 %v24481_v58  ;;  %v24535_v58 = vld [vmem:[%s32109_s1 + $0x2c0] sm:$0xff]  }
  0x29   :  { %22068 = vmatpush3.bf16.msra.mxu1 %v24480_v57  ;;  %v3672_v57 = vcombine.high %v26575_v53, %v26575_v53  ;;  %v24583_v49 = vld [vmem:[%s32109_s1 + $0x420] sm:$0xff]  }
  0x2a   :  { %22069 = vmatprep.subr.bf16.mxu1 %v24483_v60  ;;  %v3703_v60 = vcombine.high %v3693_v56, %v3693_v56 }
  0x2b   :  { %22048 = vmatpush3.bf16.msra.mxu0 %v24482_v59  ;;  %v24536_v59 = vld [vmem:[%s32109_s1 + $0x280] sm:$0xff]  }
  0x2c   :  { %22049 = vmatprep.subr.bf16.mxu0 %v24485_v62  ;;  %v24537_v62 = vld [vmem:[%s32109_s1 + $0x378] sm:$0xff]  }
  0x2d   :  { %22070 = vmatpush3.bf16.msra.mxu1 %v24484_v61  ;;  %v3679_v61 = vrot.slane %v3663_v48, %v26383_v41  ;;  %v24582_v48 = vld [vmem:[%s32109_s1 + $0x460] sm:$0xff]  }
  0x2e   :  { %22071 = vmatprep.subr.bf16.mxu1 %v24487_v0  ;;  %v3700_v0 = vrot.slane %v3672_v57, %v26383_v41  ;;  %v24591_v57 = vld [vmem:[%s32109_s1 + $0x410] sm:$0xff]  }
  0x2f   :  { %22050 = vmatpush3.bf16.msra.mxu0 %v24486_v63  ;;  %v24538_v63 = vld [vmem:[%s32109_s1 + $0x338] sm:$0xff]  }
  0x30   :  { %22051 = vmatprep.subr.bf16.mxu0 %v24489_v2  ;;  %v24540_v2 = vld [vmem:[%s32109_s1 + $0x3b8] sm:$0xff]  }
  0x31   :  { %22072 = vmatpush3.bf16.msra.mxu1 %v24488_v1  ;;  %v24539_v1 = vld [vmem:[%s32109_s1 + $0x3f8] sm:$0xff]  }
  0x32   :  { %22073 = vmatprep.subr.bf16.mxu1 %v24491_v4  ;;  %v24541_v4 = vld [vmem:[%s32109_s1 + $0x370] sm:$0xff]  }
  0x33   :  { %22052 = vmatpush3.bf16.msra.mxu0 %v24490_v3  ;;  %v3701_v3 = vcombine.high %v3679_v61, %v3679_v61 }
  0x34   :  { %22053 = vmatprep.subr.bf16.mxu0 %v24493_v6  ;;  %v3704_v6 = vcombine.high %v3700_v0, %v3700_v0 }
  0x35   :  { %22074 = vmatpush3.bf16.msra.mxu1 %v24492_v5  ;;  %v24542_v5 = vld [vmem:[%s32109_s1 + $0x330] sm:$0xff]  }
  0x36   :  { %22075 = vmatprep.subr.bf16.mxu1 %v24495_v8  ;;  %v24544_v8 = vld [vmem:[%s32109_s1 + $0x3b0] sm:$0xff]  }
  0x37   :  { %22054 = vmatpush3.bf16.msra.mxu0 %v24494_v7  ;;  %v24543_v7 = vld [vmem:[%s32109_s1 + $0x3f0] sm:$0xff]  }
  0x38   :  { %22055 = vmatprep.subr.bf16.mxu0 %v24497_v10  ;;  %v24546_v10 = vld [vmem:[%s32109_s1 + $0x328] sm:$0xff]  }
  0x39   :  { %22076 = vmatpush3.bf16.msra.mxu1 %v24496_v9  ;;  %v24545_v9 = vld [vmem:[%s32109_s1 + $0x368] sm:$0xff]  }
  0x3a   :  { %22077 = vmatprep.subr.bf16.mxu1 %v24499_v12  ;;  %v24548_v12 = vld [vmem:[%s32109_s1 + $0x3a8] sm:$0xff]  }
  0x3b   :  { %22056 = vmatpush3.bf16.msra.mxu0 %v24498_v11  ;;  %v24547_v11 = vld [vmem:[%s32109_s1 + $0x3e8] sm:$0xff]  }
  0x3c   :  { %22057 = vmatprep.subr.bf16.mxu0 %v24501_v14  ;;  %v24550_v14 = vld [vmem:[%s32109_s1 + $0x320] sm:$0xff]  }
  0x3d   :  { %22078 = vmatpush3.bf16.msra.mxu1 %v24500_v13  ;;  %v24549_v13 = vld [vmem:[%s32109_s1 + $0x360] sm:$0xff]  }
  0x3e   :  { %22079 = vmatprep.subr.bf16.mxu1 %v24503_v16  ;;  %v24552_v16 = vld [vmem:[%s32109_s1 + $0x3a0] sm:$0xff]  }
  0x3f   :  { %22058 = vmatpush3.bf16.msra.mxu0 %v24502_v15  ;;  %v24551_v15 = vld [vmem:[%s32109_s1 + $0x3e0] sm:$0xff]  }
  0x40   :  { %22087 = vmatprep.subr.bf16.mxu0 %v24505_v19  ;;  %v24555_v19 = vld [vmem:[%s32109_s1 + $0x3d8] sm:$0xff]  }
  0x41   :  { %22080 = vmatpush3.bf16.msra.mxu1 %v24504_v17  ;;  %v24553_v17 = vld [vmem:[%s32109_s1 + $0x358] sm:$0xff]  }
  0x42   :  { %15890 = vmatmul.mubr.bf16.vlgmr.msra.gmra.mxu0 %v3637_v18  ;;  %22109 = vmatprep.subr.bf16.mxu1 %v24507_v21  ;;  %v24554_v18 = vld [vmem:[%s32109_s1 + $0x318] sm:$0xff]   ;;  %v24557_v21 = vld [vmem:[%s32109_s1 + $0x350] sm:$0xff]  }
  0x43   :  { %22088 = vmatpush3.bf16.msra.mxu0 %v24506_v20  ;;  %15969 = vmatprep.mubr.bf16.mxu0 %v3693_v56  ;;  %v24556_v20 = vld [vmem:[%s32109_s1 + $0x398] sm:$0xff]   ;;  %v24590_v56 = vld [vmem:[%s32109_s1 + $0x450] sm:$0xff]  }
  0x44   :  { %15930 = vmatmul.mubr.bf16.vlgmr.msra.gmra.mxu1 %v3653_v23  ;;  %22089 = vmatprep.subr.bf16.mxu0 %v24509_v24  ;;  %v24559_v23 = vld [vmem:[%s32109_s1 + $0x3d0] sm:$0xff]  }
  0x45   :  { %22110 = vmatpush3.bf16.msra.mxu1 %v24508_v22  ;;  %16009 = vmatprep.mubr.bf16.mxu1 %v3703_v60  ;;  %v24558_v22 = vld [vmem:[%s32109_s1 + $0x310] sm:$0xff]   ;;  %v24594_v60 = vld [vmem:[%s32109_s1 + $0x448] sm:$0xff]  }
  0x46   :  { %22111 = vmatprep.subr.bf16.mxu1 %v24511_v26  ;;  %v24560_v24 = vld [vmem:[%s32109_s1 + $0x390] sm:$0xff]   ;;  %v24562_v26 = vld [vmem:[%s32109_s1 + $0x308] sm:$0xff]  }
  0x47   :  { %22090 = vmatpush3.bf16.msra.mxu0 %v24510_v25  ;;  %v24561_v25 = vld [vmem:[%s32109_s1 + $0x348] sm:$0xff]  }
  0x48   :  { %22091 = vmatprep.subr.bf16.mxu0 %v24513_v28  ;;  %v24564_v28 = vld [vmem:[%s32109_s1 + $0x388] sm:$0xff]  }
  0x49   :  { %22112 = vmatpush3.bf16.msra.mxu1 %v24512_v27  ;;  %v24563_v27 = vld [vmem:[%s32109_s1 + $0x3c8] sm:$0xff]  }
  0x4a   :  { %22113 = vmatprep.subr.bf16.mxu1 %v24515_v30  ;;  %v24566_v30 = vld [vmem:[%s32109_s1 + $0x300] sm:$0xff]  }
  0x4b   :  { %22092 = vmatpush3.bf16.msra.mxu0 %v24514_v29  ;;  %v24565_v29 = vld [vmem:[%s32109_s1 + $0x340] sm:$0xff]  }
  0x4c   :  { %22093 = vmatprep.subr.bf16.mxu0 %v24517_v32  ;;  %v24569_v32 = vld [vmem:[%s32109_s1 + $0x380] sm:$0xff]  }
  0x4d   :  { %22114 = vmatpush3.bf16.msra.mxu1 %v24516_v31  ;;  %v24567_v31 = vld [vmem:[%s32109_s1 + $0x3c0] sm:$0xff]  }
  0x4e   :  { %22115 = vmatprep.subr.bf16.mxu1 %v24519_v34  ;;  %v24570_v34 = vld [vmem:[%s32109_s1 + $0x478] sm:$0xff]  }
  0x4f   :  { %22094 = vmatpush3.bf16.msra.mxu0 %v24518_v33  ;;  %v3686_v33 = vrot.slane %v26575_v53, %v26383_v41  ;;  %v24587_v53 = vld [vmem:[%s32109_s1 + $0x418] sm:$0xff]  }
  0x50   :  { %22095 = vmatprep.subr.bf16.mxu0 %v24521_v36  ;;  %v24572_v36 = vld [vmem:[%s32109_s1 + $0x4f8] sm:$0xff]  }
  0x51   :  { %22116 = vmatpush3.bf16.msra.mxu1 %v24520_v35  ;;  %v24571_v35 = vld [vmem:[%s32109_s1 + $0x438] sm:$0xff]  }
  0x52   :  { %22117 = vmatprep.subr.bf16.mxu1 %v24523_v38  ;;  %v3702_v38 = vcombine.high %v3686_v33, %v3686_v33 }
  0x53   :  { %22096 = vmatpush3.bf16.msra.mxu0 %v24522_v37  ;;  %v24573_v37 = vld [vmem:[%s32109_s1 + $0x4b8] sm:$0xff]  }
  0x54   :  { %22097 = vmatprep.subr.bf16.mxu0 %v24525_v40  ;;  %v24575_v40 = vld [vmem:[%s32109_s1 + $0x430] sm:$0xff]  }
  0x55   :  { %22118 = vmatpush3.bf16.msra.mxu1 %v24524_v39  ;;  %v24574_v39 = vld [vmem:[%s32109_s1 + $0x470] sm:$0xff]  }
  0x56   :  { %22119 = vmatprep.subr.bf16.mxu1 %v24527_v43  ;;  %v24577_v43 = vld [vmem:[%s32109_s1 + $0x4b0] sm:$0xff]  }
  0x57   :  { %22098 = vmatpush3.bf16.msra.mxu0 %v24526_v42  ;;  %v24576_v42 = vld [vmem:[%s32109_s1 + $0x4f0] sm:$0xff]  }
  0x58   :  { %22099 = vmatprep.subr.bf16.mxu0 %v24529_v45  ;;  %v24579_v45 = vld [vmem:[%s32109_s1 + $0x428] sm:$0xff]  }
  0x59   :  { %22120 = vmatpush3.bf16.msra.mxu1 %v24528_v44  ;;  %v24578_v44 = vld [vmem:[%s32109_s1 + $0x468] sm:$0xff]  }
  0x5a   :  { %22121 = vmatprep.subr.bf16.mxu1 %v24531_v50  ;;  %v24584_v50 = vld [vmem:[%s32109_s1 + $0x4e0] sm:$0xff]  }
  0x5b   :  { %22100 = vmatpush3.bf16.msra.mxu0 %v24530_v47  ;;  %v24581_v47 = vld [vmem:[%s32109_s1 + $0x4a8] sm:$0xff]  }
  0x5c   :  { %22101 = vmatprep.subr.bf16.mxu0 %v24533_v54  ;;  %v24588_v54 = vld [vmem:[%s32109_s1 + $0x4d8] sm:$0xff]  }
  0x5d   :  { %22122 = vmatpush3.bf16.msra.mxu1 %v24532_v51  ;;  %v24585_v51 = vld [vmem:[%s32109_s1 + $0x4a0] sm:$0xff]  }
  0x5e   :  { %22123 = vmatprep.subr.bf16.mxu1 %v24535_v58  ;;  %v24592_v58 = vld [vmem:[%s32109_s1 + $0x4d0] sm:$0xff]  }
  0x5f   :  { %22102 = vmatpush3.bf16.msra.mxu0 %v24534_v55  ;;  %v24589_v55 = vld [vmem:[%s32109_s1 + $0x498] sm:$0xff]  }
  0x60   :  { %22131 = vmatprep.subr.bf16.mxu0 %v24537_v62  ;;  %v24595_v62 = vld [vmem:[%s32109_s1 + $0x408] sm:$0xff]  }
  0x61   :  { %22124 = vmatpush3.bf16.msra.mxu1 %v24536_v59  ;;  %v24593_v59 = vld [vmem:[%s32109_s1 + $0x490] sm:$0xff]  }
  0x62   :  { %15970 = vmatmul.mubr.bf16.vlgmr.msra.gmra.mxu0 %v3679_v61  ;;  %22153 = vmatprep.subr.bf16.mxu1 %v24539_v1  ;;  %v18_v61 = vld [vmem:[%s32108_s0 + $0x10] sm:$0xff]  ;;  %v24596_v1 = vld [vmem:[%s32109_s1 + $0x4c8] sm:$0xff]  }
  0x63   :  { %22132 = vmatpush3.bf16.msra.mxu0 %v24538_v63  ;;  %16049 = vmatprep.mubr.bf16.mxu0 %v3700_v0  ;;  %v3712_v63 = vrot.slane %v18_v61, %v26383_v41  ;;  %v3705_v0 = vcombine.high %v18_v61, %v18_v61  ;;  %v24645_v61 = vld [vmem:[%s32109_s1 + $0x6e8] sm:$0xff]  }
  0x64   :  { %16010 = vmatmul.mubr.bf16.vlgmr.msra.gmra.mxu1 %v3701_v3  ;;  %22133 = vmatprep.subr.bf16.mxu0 %v24541_v4 }
  0x65   :  { %22154 = vmatpush3.bf16.msra.mxu1 %v24540_v2  ;;  %16089 = vmatprep.mubr.bf16.mxu1 %v3704_v6  ;;  %v24597_v2 = vld [vmem:[%s32109_s1 + $0x488] sm:$0xff]   ;;  %v3720_v3 = vcombine.high %v3712_v63, %v3712_v63  ;;  %v26781_v4 = vrot.slane %v3705_v0, %v26383_v41  ;;  %v24599_v6 = vld [vmem:[%s32109_s1 + $0x400] sm:$0xff]  }
  0x66   :  { %22155 = vmatprep.subr.bf16.mxu1 %v24543_v7  ;;  %v24648_v0 = vld [vmem:[%s32109_s1 + $0x620] sm:$0xff]  }
  0x67   :  { %22134 = vmatpush3.bf16.msra.mxu0 %v24542_v5  ;;  %v24598_v5 = vld [vmem:[%s32109_s1 + $0x440] sm:$0xff]   ;;  %v3742_v7 = vrot.slane %v3720_v3, %v26383_v41  ;;  %v24651_v3 = vld [vmem:[%s32109_s1 + $0x658] sm:$0xff]  }
  0x68   :  { %22135 = vmatprep.subr.bf16.mxu0 %v24545_v9  ;;  %v24600_v9 = vld [vmem:[%s32109_s1 + $0x4c0] sm:$0xff]  }
  0x69   :  { %22156 = vmatpush3.bf16.msra.mxu1 %v24544_v8  ;;  %v3721_v8 = vcombine.high %v26781_v4, %v26781_v4 }
  0x6a   :  { %22157 = vmatprep.subr.bf16.mxu1 %v24547_v11  ;;  %v3752_v11 = vcombine.high %v3742_v7, %v3742_v7 }
  0x6b   :  { %22136 = vmatpush3.bf16.msra.mxu0 %v24546_v10  ;;  %v24601_v10 = vld [vmem:[%s32109_s1 + $0x480] sm:$0xff]  }
  0x6c   :  { %22137 = vmatprep.subr.bf16.mxu0 %v24549_v13  ;;  %v24602_v13 = vld [vmem:[%s32109_s1 + $0x578] sm:$0xff]  }
  0x6d   :  { %22158 = vmatpush3.bf16.msra.mxu1 %v24548_v12  ;;  %v3728_v12 = vrot.slane %v3712_v63, %v26383_v41  ;;  %v24647_v63 = vld [vmem:[%s32109_s1 + $0x660] sm:$0xff]  }
  0x6e   :  { %22159 = vmatprep.subr.bf16.mxu1 %v24551_v15  ;;  %v3749_v15 = vrot.slane %v3721_v8, %v26383_v41  ;;  %v24656_v8 = vld [vmem:[%s32109_s1 + $0x610] sm:$0xff]  }
  0x6f   :  { %22138 = vmatpush3.bf16.msra.mxu0 %v24550_v14  ;;  %v24603_v14 = vld [vmem:[%s32109_s1 + $0x538] sm:$0xff]  }
  0x70   :  { %22139 = vmatprep.subr.bf16.mxu0 %v24553_v17  ;;  %v24605_v17 = vld [vmem:[%s32109_s1 + $0x5b8] sm:$0xff]  }
  0x71   :  { %22160 = vmatpush3.bf16.msra.mxu1 %v24552_v16  ;;  %v24604_v16 = vld [vmem:[%s32109_s1 + $0x5f8] sm:$0xff]  }
  0x72   :  { %22161 = vmatprep.subr.bf16.mxu1 %v24555_v19  ;;  %v24606_v19 = vld [vmem:[%s32109_s1 + $0x570] sm:$0xff]  }
  0x73   :  { %22140 = vmatpush3.bf16.msra.mxu0 %v24554_v18  ;;  %v3750_v18 = vcombine.high %v3728_v12, %v3728_v12 }
  0x74   :  { %22141 = vmatprep.subr.bf16.mxu0 %v24557_v21  ;;  %v3753_v21 = vcombine.high %v3749_v15, %v3749_v15 }
  0x75   :  { %22162 = vmatpush3.bf16.msra.mxu1 %v24556_v20  ;;  %v24607_v20 = vld [vmem:[%s32109_s1 + $0x530] sm:$0xff]  }
  0x76   :  { %22163 = vmatprep.subr.bf16.mxu1 %v24559_v23  ;;  %v24609_v23 = vld [vmem:[%s32109_s1 + $0x5b0] sm:$0xff]  }
  0x77   :  { %22142 = vmatpush3.bf16.msra.mxu0 %v24558_v22  ;;  %v24608_v22 = vld [vmem:[%s32109_s1 + $0x5f0] sm:$0xff]  }
  0x78   :  { %22143 = vmatprep.subr.bf16.mxu0 %v24561_v25  ;;  %v24611_v25 = vld [vmem:[%s32109_s1 + $0x528] sm:$0xff]  }
  0x79   :  { %22164 = vmatpush3.bf16.msra.mxu1 %v24560_v24  ;;  %v24610_v24 = vld [vmem:[%s32109_s1 + $0x568] sm:$0xff]  }
  0x7a   :  { %22165 = vmatprep.subr.bf16.mxu1 %v24563_v27  ;;  %v24613_v27 = vld [vmem:[%s32109_s1 + $0x5a8] sm:$0xff]  }
  0x7b   :  { %22144 = vmatpush3.bf16.msra.mxu0 %v24562_v26  ;;  %v24612_v26 = vld [vmem:[%s32109_s1 + $0x5e8] sm:$0xff]  }
  0x7c   :  { %22145 = vmatprep.subr.bf16.mxu0 %v24565_v29  ;;  %v24615_v29 = vld [vmem:[%s32109_s1 + $0x520] sm:$0xff]  }
  0x7d   :  { %22166 = vmatpush3.bf16.msra.mxu1 %v24564_v28  ;;  %v24614_v28 = vld [vmem:[%s32109_s1 + $0x560] sm:$0xff]  }
  0x7e   :  { %22167 = vmatprep.subr.bf16.mxu1 %v24567_v31  ;;  %v24617_v31 = vld [vmem:[%s32109_s1 + $0x5a0] sm:$0xff]  }
  0x7f   :  { %22146 = vmatpush3.bf16.msra.mxu0 %v24566_v30  ;;  %v24616_v30 = vld [vmem:[%s32109_s1 + $0x5e0] sm:$0xff]  }
  0x80   :  { %22175 = vmatprep.subr.bf16.mxu0 %v24570_v34  ;;  %v24620_v34 = vld [vmem:[%s32109_s1 + $0x5d8] sm:$0xff]  }
  0x81   :  { %22168 = vmatpush3.bf16.msra.mxu1 %v24569_v32  ;;  %v24618_v32 = vld [vmem:[%s32109_s1 + $0x558] sm:$0xff]  }
  0x82   :  { %16050 = vmatmul.mubr.bf16.vlgmr.msra.gmra.mxu0 %v3686_v33  ;;  %22197 = vmatprep.subr.bf16.mxu1 %v24572_v36  ;;  %v24619_v33 = vld [vmem:[%s32109_s1 + $0x518] sm:$0xff]   ;;  %v24622_v36 = vld [vmem:[%s32109_s1 + $0x550] sm:$0xff]  }
  0x83   :  { %22176 = vmatpush3.bf16.msra.mxu0 %v24571_v35  ;;  %16129 = vmatprep.mubr.bf16.mxu0 %v3742_v7  ;;  %v24621_v35 = vld [vmem:[%s32109_s1 + $0x598] sm:$0xff]   ;;  %v24655_v7 = vld [vmem:[%s32109_s1 + $0x650] sm:$0xff]  }
  0x84   :  { %16090 = vmatmul.mubr.bf16.vlgmr.msra.gmra.mxu1 %v3702_v38  ;;  %22177 = vmatprep.subr.bf16.mxu0 %v24574_v39  ;;  %v24624_v38 = vld [vmem:[%s32109_s1 + $0x5d0] sm:$0xff]  }
  0x85   :  { %22198 = vmatpush3.bf16.msra.mxu1 %v24573_v37  ;;  %16169 = vmatprep.mubr.bf16.mxu1 %v3752_v11  ;;  %v24623_v37 = vld [vmem:[%s32109_s1 + $0x510] sm:$0xff]   ;;  %v24659_v11 = vld [vmem:[%s32109_s1 + $0x648] sm:$0xff]  }
  0x86   :  { %22199 = vmatprep.subr.bf16.mxu1 %v24576_v42  ;;  %v24625_v39 = vld [vmem:[%s32109_s1 + $0x590] sm:$0xff]   ;;  %v24627_v42 = vld [vmem:[%s32109_s1 + $0x508] sm:$0xff]  }
  0x87   :  { %22178 = vmatpush3.bf16.msra.mxu0 %v24575_v40  ;;  %v24626_v40 = vld [vmem:[%s32109_s1 + $0x548] sm:$0xff]  }
  0x88   :  { %22179 = vmatprep.subr.bf16.mxu0 %v24578_v44  ;;  %v24629_v44 = vld [vmem:[%s32109_s1 + $0x588] sm:$0xff]  }
  0x89   :  { %22200 = vmatpush3.bf16.msra.mxu1 %v24577_v43  ;;  %v24628_v43 = vld [vmem:[%s32109_s1 + $0x5c8] sm:$0xff]  }
  0x8a   :  { %22201 = vmatprep.subr.bf16.mxu1 %v24580_v46  ;;  %v24631_v46 = vld [vmem:[%s32109_s1 + $0x500] sm:$0xff]  }
  0x8b   :  { %22180 = vmatpush3.bf16.msra.mxu0 %v24579_v45  ;;  %v24630_v45 = vld [vmem:[%s32109_s1 + $0x540] sm:$0xff]  }
  0x8c   :  { %22181 = vmatprep.subr.bf16.mxu0 %v24582_v48  ;;  %v24634_v48 = vld [vmem:[%s32109_s1 + $0x580] sm:$0xff]  }
  0x8d   :  { %22202 = vmatpush3.bf16.msra.mxu1 %v24581_v47  ;;  %v24632_v47 = vld [vmem:[%s32109_s1 + $0x5c0] sm:$0xff]  }
  0x8e   :  { %22203 = vmatprep.subr.bf16.mxu1 %v24584_v50  ;;  %v24635_v50 = vld [vmem:[%s32109_s1 + $0x678] sm:$0xff]  }
  0x8f   :  { %22182 = vmatpush3.bf16.msra.mxu0 %v24583_v49  ;;  %v3735_v49 = vrot.slane %v26781_v4, %v26383_v41  ;;  %v24652_v4 = vld [vmem:[%s32109_s1 + $0x618] sm:$0xff]  }
  0x90   :  { %22183 = vmatprep.subr.bf16.mxu0 %v24586_v52  ;;  %v24637_v52 = vld [vmem:[%s32109_s1 + $0x6f8] sm:$0xff]  }
  0x91   :  { %22204 = vmatpush3.bf16.msra.mxu1 %v24585_v51  ;;  %v24636_v51 = vld [vmem:[%s32109_s1 + $0x638] sm:$0xff]  }
  0x92   :  { %22205 = vmatprep.subr.bf16.mxu1 %v24588_v54  ;;  %v3751_v54 = vcombine.high %v3735_v49, %v3735_v49 }
  0x93   :  { %22184 = vmatpush3.bf16.msra.mxu0 %v24587_v53  ;;  %v24638_v53 = vld [vmem:[%s32109_s1 + $0x6b8] sm:$0xff]  }
  0x94   :  { %22185 = vmatprep.subr.bf16.mxu0 %v24590_v56  ;;  %v24640_v56 = vld [vmem:[%s32109_s1 + $0x630] sm:$0xff]  }
  0x95   :  { %22206 = vmatpush3.bf16.msra.mxu1 %v24589_v55  ;;  %v24639_v55 = vld [vmem:[%s32109_s1 + $0x670] sm:$0xff]  }
  0x96   :  { %22207 = vmatprep.subr.bf16.mxu1 %v24592_v58  ;;  %v24642_v58 = vld [vmem:[%s32109_s1 + $0x6b0] sm:$0xff]  }
  0x97   :  { %22186 = vmatpush3.bf16.msra.mxu0 %v24591_v57  ;;  %v24641_v57 = vld [vmem:[%s32109_s1 + $0x6f0] sm:$0xff]  }
  0x98   :  { %22187 = vmatprep.subr.bf16.mxu0 %v24594_v60  ;;  %v24644_v60 = vld [vmem:[%s32109_s1 + $0x628] sm:$0xff]  }
  0x99   :  { %22208 = vmatpush3.bf16.msra.mxu1 %v24593_v59  ;;  %v24643_v59 = vld [vmem:[%s32109_s1 + $0x668] sm:$0xff]  }
  0x9a   :  { %22209 = vmatprep.subr.bf16.mxu1 %v24596_v1  ;;  %v24649_v1 = vld [vmem:[%s32109_s1 + $0x6e0] sm:$0xff]  }
  0x9b   :  { %22188 = vmatpush3.bf16.msra.mxu0 %v24595_v62  ;;  %v24646_v62 = vld [vmem:[%s32109_s1 + $0x6a8] sm:$0xff]  }
  0x9c   :  { %22189 = vmatprep.subr.bf16.mxu0 %v24598_v5  ;;  %v24653_v5 = vld [vmem:[%s32109_s1 + $0x6d8] sm:$0xff]  }
  0x9d   :  { %22210 = vmatpush3.bf16.msra.mxu1 %v24597_v2  ;;  %v24650_v2 = vld [vmem:[%s32109_s1 + $0x6a0] sm:$0xff]  }
  0x9e   :  { %22211 = vmatprep.subr.bf16.mxu1 %v24600_v9  ;;  %v24657_v9 = vld [vmem:[%s32109_s1 + $0x6d0] sm:$0xff]  }
  0x9f   :  { %22190 = vmatpush3.bf16.msra.mxu0 %v24599_v6  ;;  %v24654_v6 = vld [vmem:[%s32109_s1 + $0x698] sm:$0xff]  }
  0xa0   :  { %22219 = vmatprep.subr.bf16.mxu0 %v24602_v13  ;;  %v24661_v13 = vld [vmem:[%s32109_s1 + $0x6c8] sm:$0xff]  }
  0xa1   :  { %22212 = vmatpush3.bf16.msra.mxu1 %v24601_v10  ;;  %v24658_v10 = vld [vmem:[%s32109_s1 + $0x690] sm:$0xff]  }
  0xa2   :  { %16130 = vmatmul.mubr.bf16.vlgmr.msra.gmra.mxu0 %v3728_v12  ;;  %22241 = vmatprep.subr.bf16.mxu1 %v24604_v16  ;;  %v19_v12 = vld [vmem:[%s32108_s0 + $0x18] sm:$0xff]  ;;  %v24660_v16 = vld [vmem:[%s32109_s1 + $0x608] sm:$0xff]  }
  0xa3   :  { %22220 = vmatpush3.bf16.msra.mxu0 %v24603_v14  ;;  %16209 = vmatprep.mubr.bf16.mxu0 %v3749_v15  ;;  %v3761_v14 = vrot.slane %v19_v12, %v26383_v41  ;;  %v3754_v15 = vcombine.high %v19_v12, %v19_v12  ;;  %v24699_v12 = vld [vmem:[%s32109_s1 + $0x780] sm:$0xff]  }
  0xa4   :  { %16170 = vmatmul.mubr.bf16.vlgmr.msra.gmra.mxu1 %v3750_v18  ;;  %22221 = vmatprep.subr.bf16.mxu0 %v24606_v19  ;;  %v24663_v18 = vld [vmem:[%s32109_s1 + $0x640] sm:$0xff]  }
  0xa5   :  { %22242 = vmatpush3.bf16.msra.mxu1 %v24605_v17  ;;  %16249 = vmatprep.mubr.bf16.mxu1 %v3753_v21  ;;  %v24662_v17 = vld [vmem:[%s32109_s1 + $0x688] sm:$0xff]   ;;  %v3769_v19 = vcombine.high %v3761_v14, %v3761_v14  ;;  %v24664_v21 = vld [vmem:[%s32109_s1 + $0x600] sm:$0xff]  }
  0xa6   :  { %22243 = vmatprep.subr.bf16.mxu1 %v24608_v22  ;;  %v24665_v22 = vld [vmem:[%s32109_s1 + $0x6c0] sm:$0xff]  }
  0xa7   :  { %22222 = vmatpush3.bf16.msra.mxu0 %v24607_v20  ;;  %v26990_v20 = vrot.slane %v3754_v15, %v26383_v41  ;;  %v24701_v15 = vld [vmem:[%s32109_s1 + $0x838] sm:$0xff]  }
  0xa8   :  { %22223 = vmatprep.subr.bf16.mxu0 %v24610_v24 }
  0xa9   :  { %22244 = vmatpush3.bf16.msra.mxu1 %v24609_v23  ;;  %v3791_v23 = vrot.slane %v3769_v19, %v26383_v41  ;;  %v3770_v24 = vcombine.high %v26990_v20, %v26990_v20  ;;  %v24704_v19 = vld [vmem:[%s32109_s1 + $0x870] sm:$0xff]  }
  0xaa   :  { %22245 = vmatprep.subr.bf16.mxu1 %v24612_v26  ;;  %v3777_v26 = vrot.slane %v3761_v14, %v26383_v41  ;;  %v24700_v14 = vld [vmem:[%s32109_s1 + $0x878] sm:$0xff]  }
  0xab   :  { %22224 = vmatpush3.bf16.msra.mxu0 %v24611_v25  ;;  %v24666_v25 = vld [vmem:[%s32109_s1 + $0x680] sm:$0xff]  }
  0xac   :  { %22225 = vmatprep.subr.bf16.mxu0 %v24614_v28  ;;  %v3801_v28 = vcombine.high %v3791_v23, %v3791_v23 }
  0xad   :  { %22246 = vmatpush3.bf16.msra.mxu1 %v24613_v27  ;;  %v24667_v27 = vld [vmem:[%s32109_s1 + $0x778] sm:$0xff]  }
  0xae   :  { %22247 = vmatprep.subr.bf16.mxu1 %v24616_v30  ;;  %v3798_v30 = vrot.slane %v3770_v24, %v26383_v41 }
  0xaf   :  { %22226 = vmatpush3.bf16.msra.mxu0 %v24615_v29  ;;  %v24668_v29 = vld [vmem:[%s32109_s1 + $0x738] sm:$0xff]  }
  0xb0   :  { %22227 = vmatprep.subr.bf16.mxu0 %v24618_v32  ;;  %v24670_v32 = vld [vmem:[%s32109_s1 + $0x7b8] sm:$0xff]  }
  0xb1   :  { %22248 = vmatpush3.bf16.msra.mxu1 %v24617_v31  ;;  %v24669_v31 = vld [vmem:[%s32109_s1 + $0x7f8] sm:$0xff]  }
  0xb2   :  { %22249 = vmatprep.subr.bf16.mxu1 %v24620_v34  ;;  %v24671_v34 = vld [vmem:[%s32109_s1 + $0x770] sm:$0xff]  }
  0xb3   :  { %22228 = vmatpush3.bf16.msra.mxu0 %v24619_v33  ;;  %v3799_v33 = vcombine.high %v3777_v26, %v3777_v26 }
  0xb4   :  { %22229 = vmatprep.subr.bf16.mxu0 %v24622_v36  ;;  %v3802_v36 = vcombine.high %v3798_v30, %v3798_v30 }
  0xb5   :  { %22250 = vmatpush3.bf16.msra.mxu1 %v24621_v35  ;;  %v24672_v35 = vld [vmem:[%s32109_s1 + $0x730] sm:$0xff]  }
  0xb6   :  { %22251 = vmatprep.subr.bf16.mxu1 %v24624_v38  ;;  %v20233_v38 = vld [vmem:[%s32110_s2] ss:$0 sm:$0xff] }
  0xb7   :  { %22230 = vmatpush3.bf16.msra.mxu0 %v24623_v37 }
  0xb8   :  { %22231 = vmatprep.subr.bf16.mxu0 %v24626_v40  ;;  %v24674_v40 = vld [vmem:[%s32109_s1 + $0x7b0] sm:$0xff]  }
  0xb9   :  { %22252 = vmatpush3.bf16.msra.mxu1 %v24625_v39  ;;  %v24673_v39 = vld [vmem:[%s32109_s1 + $0x7f0] sm:$0xff]  }
  0xba   :  { %22253 = vmatprep.subr.bf16.mxu1 %v24628_v43 }
  0xbb   :  { %22232 = vmatpush3.bf16.msra.mxu0 %v24627_v42 }
  0xbc   :  { %22233 = vmatprep.subr.bf16.mxu0 %v24630_v45 }
  0xbd   :  { %22254 = vmatpush3.bf16.msra.mxu1 %v24629_v44  ;;  %v24675_v44 = vld [vmem:[%s32109_s1 + $0x768] sm:$0xff]  }
  0xbe   :  { %22255 = vmatprep.subr.bf16.mxu1 %v24632_v47 }
  0xbf   :  { %22234 = vmatpush3.bf16.msra.mxu0 %v24631_v46  ;;  %v24676_v46 = vld [vmem:[%s32109_s1 + $0x728] sm:$0xff]  }
  0xc0   :  { %22263 = vmatprep.subr.bf16.mxu0 %v24635_v50 }
  0xc1   :  { %22256 = vmatpush3.bf16.msra.mxu1 %v24634_v48 }
  0xc2   :  { %16210 = vmatmul.mubr.bf16.vlgmr.msra.gmra.mxu0 %v3735_v49  ;;  %22285 = vmatprep.subr.bf16.mxu1 %v24637_v52  ;;  %v24677_v49 = vld [vmem:[%s32109_s1 + $0x7e8] sm:$0xff]  }
  0xc3   :  { %22264 = vmatpush3.bf16.msra.mxu0 %v24636_v51  ;;  %16289 = vmatprep.mubr.bf16.mxu0 %v3791_v23  ;;  %v24678_v52 = vld [vmem:[%s32109_s1 + $0x7a8] sm:$0xff]   ;;  %v24707_v23 = vld [vmem:[%s32109_s1 + $0x8b0] sm:$0xff]  }
  0xc4   :  { %16250 = vmatmul.mubr.bf16.vlgmr.msra.gmra.mxu1 %v3751_v54  ;;  %22265 = vmatprep.subr.bf16.mxu0 %v24639_v55  ;;  %v24679_v55 = vld [vmem:[%s32109_s1 + $0x760] sm:$0xff]  }
  0xc5   :  { %22286 = vmatpush3.bf16.msra.mxu1 %v24638_v53  ;;  %16329 = vmatprep.mubr.bf16.mxu1 %v3801_v28  ;;  %v24709_v28 = vld [vmem:[%s32109_s1 + $0x828] sm:$0xff]  }
  0xc6   :  { %22287 = vmatprep.subr.bf16.mxu1 %v24641_v57  ;;  %v24680_v57 = vld [vmem:[%s32109_s1 + $0x720] sm:$0xff]  }
  0xc7   :  { %22266 = vmatpush3.bf16.msra.mxu0 %v24640_v56 }
  0xc8   :  { %22267 = vmatprep.subr.bf16.mxu0 %v24643_v59  ;;  %v24681_v59 = vld [vmem:[%s32109_s1 + $0x7e0] sm:$0xff]  }
  0xc9   :  { %22288 = vmatpush3.bf16.msra.mxu1 %v24642_v58 }
  0xca   :  { %22289 = vmatprep.subr.bf16.mxu1 %v24645_v61  ;;  %v24683_v61 = vld [vmem:[%s32109_s1 + $0x758] sm:$0xff]  }
  0xcb   :  { %22268 = vmatpush3.bf16.msra.mxu0 %v24644_v60  ;;  %v24682_v60 = vld [vmem:[%s32109_s1 + $0x7a0] sm:$0xff]  }
  0xcc   :  { %22269 = vmatprep.subr.bf16.mxu0 %v24647_v63  ;;  %v24685_v63 = vld [vmem:[%s32109_s1 + $0x7d8] sm:$0xff]  }
  0xcd   :  { %22290 = vmatpush3.bf16.msra.mxu1 %v24646_v62  ;;  %v24684_v62 = vld [vmem:[%s32109_s1 + $0x718] sm:$0xff]  }
  0xce   :  { %22291 = vmatprep.subr.bf16.mxu1 %v24649_v1  ;;  %v24687_v1 = vld [vmem:[%s32109_s1 + $0x750] sm:$0xff]  }
  0xcf   :  { %22270 = vmatpush3.bf16.msra.mxu0 %v24648_v0  ;;  %v24686_v0 = vld [vmem:[%s32109_s1 + $0x798] sm:$0xff]  }
  0xd0   :  { %22271 = vmatprep.subr.bf16.mxu0 %v24651_v3  ;;  %v24689_v3 = vld [vmem:[%s32109_s1 + $0x7d0] sm:$0xff]  }
  0xd1   :  { %22292 = vmatpush3.bf16.msra.mxu1 %v24650_v2  ;;  %v24688_v2 = vld [vmem:[%s32109_s1 + $0x710] sm:$0xff]  }
  0xd2   :  { %22293 = vmatprep.subr.bf16.mxu1 %v24653_v5  ;;  %v24691_v5 = vld [vmem:[%s32109_s1 + $0x748] sm:$0xff]  }
  0xd3   :  { %22272 = vmatpush3.bf16.msra.mxu0 %v24652_v4  ;;  %v24690_v4 = vld [vmem:[%s32109_s1 + $0x790] sm:$0xff]  }
  0xd4   :  { %22273 = vmatprep.subr.bf16.mxu0 %v24655_v7  ;;  %v24693_v7 = vld [vmem:[%s32109_s1 + $0x7c8] sm:$0xff]  }
  0xd5   :  { %22294 = vmatpush3.bf16.msra.mxu1 %v24654_v6  ;;  %v24692_v6 = vld [vmem:[%s32109_s1 + $0x708] sm:$0xff]  }
  0xd6   :  { %22295 = vmatprep.subr.bf16.mxu1 %v24657_v9  ;;  %v24695_v9 = vld [vmem:[%s32109_s1 + $0x740] sm:$0xff]  }
  0xd7   :  { %22274 = vmatpush3.bf16.msra.mxu0 %v24656_v8  ;;  %v24694_v8 = vld [vmem:[%s32109_s1 + $0x788] sm:$0xff]  }
  0xd8   :  { %22275 = vmatprep.subr.bf16.mxu0 %v24659_v11  ;;  %v24697_v11 = vld [vmem:[%s32109_s1 + $0x7c0] sm:$0xff]  }
  0xd9   :  { %22296 = vmatpush3.bf16.msra.mxu1 %v24658_v10  ;;  %v24696_v10 = vld [vmem:[%s32109_s1 + $0x700] sm:$0xff]  }
  0xda   :  { %22297 = vmatprep.subr.bf16.mxu1 %v24661_v13  ;;  %v3784_v13 = vrot.slane %v26990_v20, %v26383_v41  ;;  %v24705_v20 = vld [vmem:[%s32109_s1 + $0x830] sm:$0xff]  }
  0xdb   :  { %22276 = vmatpush3.bf16.msra.mxu0 %v24660_v16  ;;  %v24702_v16 = vld [vmem:[%s32109_s1 + $0x8f8] sm:$0xff]  }
  0xdc   :  { %22277 = vmatprep.subr.bf16.mxu0 %v24663_v18  ;;  %v3800_v18 = vcombine.high %v3784_v13, %v3784_v13 }
  0xdd   :  { %22298 = vmatpush3.bf16.msra.mxu1 %v24662_v17  ;;  %v24703_v17 = vld [vmem:[%s32109_s1 + $0x8b8] sm:$0xff]  }
  0xde   :  { %22299 = vmatprep.subr.bf16.mxu1 %v24665_v22  ;;  %v24706_v22 = vld [vmem:[%s32109_s1 + $0x8f0] sm:$0xff]  }
  0xdf   :  { %22278 = vmatpush3.bf16.msra.mxu0 %v24664_v21 }
  0xe0   :  { %22307 = vmatprep.subr.bf16.mxu0 %v24667_v27 }
  0xe1   :  { %22300 = vmatpush3.bf16.msra.mxu1 %v24666_v25 }
  0xe2   :  { %v22015_v37 = vpop.f32.mrf.mxu0  ;;  %16290 = vmatmul.mubr.bf16.vlgmr.msra.gmra.mxu0 %v3777_v26  ;;  %22329 = vmatprep.subr.bf16.mxu1 %v24669_v31  ;;  %v24708_v26 = vld [vmem:[%s32109_s1 + $0x868] sm:$0xff]  }
  0xe3   :  { %22308 = vmatpush3.bf16.msra.mxu0 %v24668_v29  ;;  %16369 = vmatprep.mubr.bf16.mxu0 %v3798_v30  ;;  %v24710_v31 = vld [vmem:[%s32109_s1 + $0x8e8] sm:$0xff]  }
  0xe4   :  { %v22016_v42 = vpop.f32.mrf.mxu0  ;;  %v22037_v43 = vpop.f32.mrf.mxu1  ;;  %16330 = vmatmul.mubr.bf16.vlgmr.msra.gmra.mxu1 %v3799_v33  ;;  %22309 = vmatprep.subr.bf16.mxu0 %v24671_v34  ;;  %v24711_v34 = vld [vmem:[%s32109_s1 + $0x8a8] sm:$0xff]  }
  0xe5   :  { %v22017_v45 = vadd.f32 %v22016_v42, %v22015_v37  ;;  %22330 = vmatpush3.bf16.msra.mxu1 %v24670_v32  ;;  %16409 = vmatprep.mubr.bf16.mxu1 %v3802_v36  ;;  %v24712_v37 = vld [vmem:[%s32109_s1 + $0x860] sm:$0xff]  }
  0xe6   :  { %v22018_v47 = vpop.f32.mrf.mxu0  ;;  %v22038_v48 = vpop.f32.mrf.mxu1  ;;  %22331 = vmatprep.subr.bf16.mxu1 %v24673_v39  ;;  %v24713_v39 = vld [vmem:[%s32109_s1 + $0x820] sm:$0xff]  }
  0xe7   :  { %v15812_v50 = vadd.f32 %v22017_v45, %v20233_v38  ;;  %v22039_v51 = vadd.f32 %v22038_v48, %v22037_v43  ;;  %22310 = vmatpush3.bf16.msra.mxu0 %v24672_v35  ;;  %v24714_v42 = vld [vmem:[%s32109_s1 + $0x8e0] sm:$0xff]   ;;  %v24717_v45 = vld [vmem:[%s32109_s1 + $0x818] sm:$0xff]   ;;  %v24720_v48 = vld [vmem:[%s32109_s1 + $0x850] sm:$0xff]  }
  0xe8   :  { %v22019_v53 = vpop.f32.mrf.mxu0  ;;  %22311 = vmatprep.subr.bf16.mxu0 %v24675_v44  ;;  %v22040_v54 = vpop.f32.mrf.mxu1  ;;  %v24715_v43 = vld [vmem:[%s32109_s1 + $0x8a0] sm:$0xff]   ;;  %v24716_v44 = vld [vmem:[%s32109_s1 + $0x858] sm:$0xff]  }
  0xe9   :  { %v27048_v56 = vadd.f32 %v22039_v51, %v15812_v50  ;;  %22332 = vmatpush3.bf16.msra.mxu1 %v24674_v40  ;;  %v24719_v47 = vld [vmem:[%s32109_s1 + $0x898] sm:$0xff]   ;;  %v24722_v50 = vld [vmem:[%s32109_s1 + $0x8d0] sm:$0xff]   ;;  %v24725_v53 = vld [vmem:[%s32109_s1 + $0x808] sm:$0xff]  }
  0xea   :  { %22333 = vmatprep.subr.bf16.mxu1 %v24677_v49  ;;  %v22041_v58 = vpop.f32.mrf.mxu1  ;;  %v24721_v49 = vld [vmem:[%s32109_s1 + $0x810] sm:$0xff]   ;;  %v20_v54 = vld [vmem:[%s32108_s0 + $0x20] sm:$0xff] }
  0xeb   :  { %22312 = vmatpush3.bf16.msra.mxu0 %v24676_v46  ;;  %v24718_v46 = vld [vmem:[%s32109_s1 + $0x8d8] sm:$0xff]   ;;  %v24723_v51 = vld [vmem:[%s32109_s1 + $0x890] sm:$0xff]   ;;  %v24727_v58 = vld [vmem:[%s32109_s1 + $0x888] sm:$0xff]  }
  0xec   :  { %22313 = vmatprep.subr.bf16.mxu0 %v24679_v55  ;;  %v24726_v55 = vld [vmem:[%s32109_s1 + $0x8c8] sm:$0xff]  }
  0xed   :  { %22334 = vmatpush3.bf16.msra.mxu1 %v24678_v52  ;;  %v24724_v52 = vld [vmem:[%s32109_s1 + $0x848] sm:$0xff]  }
  0xee   :  { %22335 = vmatprep.subr.bf16.mxu1 %v24681_v59  ;;  %v24728_v59 = vld [vmem:[%s32109_s1 + $0x840] sm:$0xff]  }
  0xef   :  { %22314 = vmatpush3.bf16.msra.mxu0 %v24680_v57  ;;  %v3803_v57 = vcombine.high %v20_v54, %v20_v54 }
  0xf0   :  { %22315 = vmatprep.subr.bf16.mxu0 %v24683_v61 }
  0xf1   :  { %22336 = vmatpush3.bf16.msra.mxu1 %v24682_v60  ;;  %v27204_v61 = vrot.slane %v3803_v57, %v26383_v41  ;;  %v24768_v57 = vld [vmem:[%s32109_s1 + $0xab8] sm:$0xff]  }
  0xf2   :  { %22337 = vmatprep.subr.bf16.mxu1 %v24685_v63  ;;  %v24730_v63 = vld [vmem:[%s32109_s1 + $0x8c0] sm:$0xff]  }
  0xf3   :  { %22316 = vmatpush3.bf16.msra.mxu0 %v24684_v62  ;;  %v24729_v62 = vld [vmem:[%s32109_s1 + $0x800] sm:$0xff]  }
  0xf4   :  { %22317 = vmatprep.subr.bf16.mxu0 %v24687_v1  ;;  %v3819_v1 = vcombine.high %v27204_v61, %v27204_v61 }
  0xf5   :  { %22338 = vmatpush3.bf16.msra.mxu1 %v24686_v0 }
  0xf6   :  { %22339 = vmatprep.subr.bf16.mxu1 %v24689_v3 }
  0xf7   :  { %22318 = vmatpush3.bf16.msra.mxu0 %v24688_v2  ;;  %v24731_v2 = vld [vmem:[%s32109_s1 + $0x880] sm:$0xff]  }
  0xf8   :  { %22319 = vmatprep.subr.bf16.mxu0 %v24691_v5 }
  0xf9   :  { %22340 = vmatpush3.bf16.msra.mxu1 %v24690_v4  ;;  %v24732_v4 = vld [vmem:[%s32109_s1 + $0x978] sm:$0xff]  }
  0xfa   :  { %22341 = vmatprep.subr.bf16.mxu1 %v24693_v7  ;;  %v3847_v7 = vrot.slane %v3819_v1, %v26383_v41 }
  0xfb   :  { %22320 = vmatpush3.bf16.msra.mxu0 %v24692_v6  ;;  %v24733_v6 = vld [vmem:[%s32109_s1 + $0x938] sm:$0xff]  }
  0xfc   :  { %22321 = vmatprep.subr.bf16.mxu0 %v24695_v9  ;;  %v24735_v9 = vld [vmem:[%s32109_s1 + $0x9b8] sm:$0xff]  }
  0xfd   :  { %22342 = vmatpush3.bf16.msra.mxu1 %v24694_v8  ;;  %v24734_v8 = vld [vmem:[%s32109_s1 + $0x9f8] sm:$0xff]  }
  0xfe   :  { %22343 = vmatprep.subr.bf16.mxu1 %v24697_v11  ;;  %v24736_v11 = vld [vmem:[%s32109_s1 + $0x970] sm:$0xff]  }
  0xff   :  { %22322 = vmatpush3.bf16.msra.mxu0 %v24696_v10 }
 0x100   :  { %22351 = vmatprep.subr.bf16.mxu0 %v24700_v14 }
 0x101   :  { %22344 = vmatpush3.bf16.msra.mxu1 %v24699_v12  ;;  %v24737_v12 = vld [vmem:[%s32109_s1 + $0x930] sm:$0xff]  }
 0x102   :  { %v22059_v21 = vpop.f32.mrf.mxu0  ;;  %16370 = vmatmul.mubr.bf16.vlgmr.msra.gmra.mxu0 %v3784_v13  ;;  %22373 = vmatprep.subr.bf16.mxu1 %v24702_v16  ;;  %v3851_v13 = vcombine.high %v3847_v7, %v3847_v7  ;;  %v24739_v16 = vld [vmem:[%s32109_s1 + $0x9b0] sm:$0xff]  }
 0x103   :  { %22352 = vmatpush3.bf16.msra.mxu0 %v24701_v15  ;;  %v24738_v15 = vld [vmem:[%s32109_s1 + $0x9f0] sm:$0xff]  }
 0x104   :  { %v22060_v24 = vpop.f32.mrf.mxu0  ;;  %v22081_v25 = vpop.f32.mrf.mxu1  ;;  %16410 = vmatmul.mubr.bf16.vlgmr.msra.gmra.mxu1 %v3800_v18  ;;  %22353 = vmatprep.subr.bf16.mxu0 %v24704_v19  ;;  %v24740_v19 = vld [vmem:[%s32109_s1 + $0x968] sm:$0xff]  }
 0x105   :  { %v22061_v27 = vadd.f32 %v22060_v24, %v22059_v21  ;;  %22374 = vmatpush3.bf16.msra.mxu1 %v24703_v17  ;;  %v24741_v21 = vld [vmem:[%s32109_s1 + $0x928] sm:$0xff]  }
 0x106   :  { %v22062_v29 = vpop.f32.mrf.mxu0  ;;  %v22082_v30 = vpop.f32.mrf.mxu1  ;;  %22375 = vmatprep.subr.bf16.mxu1 %v24706_v22  ;;  %v24742_v24 = vld [vmem:[%s32109_s1 + $0x9e8] sm:$0xff]  }
 0x107   :  { %v15892_v32 = vadd.f32 %v22061_v27, %v27048_v56  ;;  %v22083_v33 = vadd.f32 %v22082_v30, %v22081_v25  ;;  %22354 = vmatpush3.bf16.msra.mxu0 %v24705_v20  ;;  %v3810_v56 = vrot.slane %v20_v54, %v26383_v41  ;;  %v24743_v27 = vld [vmem:[%s32109_s1 + $0x9a8] sm:$0xff]   ;;  %v24744_v30 = vld [vmem:[%s32109_s1 + $0x960] sm:$0xff]   ;;  %v24765_v54 = vld [vmem:[%s32109_s1 + $0xa78] sm:$0xff]  }
 0x108   :  { %v22063_v35 = vpop.f32.mrf.mxu0  ;;  %22355 = vmatprep.subr.bf16.mxu0 %v24708_v26  ;;  %v22084_v36 = vpop.f32.mrf.mxu1 }
 0x109   :  { %v27149_v38 = vadd.f32 %v22083_v33, %v15892_v32  ;;  %22376 = vmatpush3.bf16.msra.mxu1 %v24707_v23  ;;  %v3818_v60 = vcombine.high %v3810_v56, %v3810_v56  ;;  %v3826_v3 = vrot.slane %v3810_v56, %v26383_v41  ;;  %v24745_v32 = vld [vmem:[%s32109_s1 + $0x920] sm:$0xff]   ;;  %v24748_v36 = vld [vmem:[%s32109_s1 + $0x958] sm:$0xff]  }
 0x10a   :  { %22377 = vmatprep.subr.bf16.mxu1 %v24710_v31  ;;  %v22085_v40 = vpop.f32.mrf.mxu1  ;;  %v24747_v35 = vld [vmem:[%s32109_s1 + $0x9a0] sm:$0xff]   ;;  %v24767_v56 = vld [vmem:[%s32109_s1 + $0xaf8] sm:$0xff]  }
 0x10b   :  { %22356 = vmatpush3.bf16.msra.mxu0 %v24709_v28  ;;  %v3840_v0 = vrot.slane %v3818_v60, %v26383_v41  ;;  %v3848_v10 = vcombine.high %v3826_v3, %v3826_v3  ;;  %v24752_v40 = vld [vmem:[%s32109_s1 + $0x950] sm:$0xff]  }
 0x10c   :  { %22357 = vmatprep.subr.bf16.mxu0 %v24712_v37  ;;  %v24749_v37 = vld [vmem:[%s32109_s1 + $0x918] sm:$0xff]   ;;  %v24770_v60 = vld [vmem:[%s32109_s1 + $0xa30] sm:$0xff]  }
 0x10d   :  { %22378 = vmatpush3.bf16.msra.mxu1 %v24711_v34  ;;  %16449 = vmatprep.mubr.bf16.mxu0 %v3840_v0  ;;  %v3850_v5 = vcombine.high %v3840_v0, %v3840_v0  ;;  %v24746_v34 = vld [vmem:[%s32109_s1 + $0x9e0] sm:$0xff]  }
 0x10e   :  { %22379 = vmatprep.subr.bf16.mxu1 %v24714_v42  ;;  %v24753_v42 = vld [vmem:[%s32109_s1 + $0x910] sm:$0xff]  }
 0x10f   :  { %22358 = vmatpush3.bf16.msra.mxu0 %v24713_v39  ;;  %16489 = vmatprep.mubr.bf16.mxu1 %v3850_v5  ;;  %v24751_v39 = vld [vmem:[%s32109_s1 + $0x998] sm:$0xff]  }
 0x110   :  { %22359 = vmatprep.subr.bf16.mxu0 %v24716_v44  ;;  %v24755_v44 = vld [vmem:[%s32109_s1 + $0x990] sm:$0xff]  }
 0x111   :  { %22380 = vmatpush3.bf16.msra.mxu1 %v24715_v43  ;;  %v24754_v43 = vld [vmem:[%s32109_s1 + $0x9d0] sm:$0xff]  }
 0x112   :  { %22381 = vmatprep.subr.bf16.mxu1 %v24718_v46  ;;  %v24757_v46 = vld [vmem:[%s32109_s1 + $0x908] sm:$0xff]  }
 0x113   :  { %22360 = vmatpush3.bf16.msra.mxu0 %v24717_v45  ;;  %v24756_v45 = vld [vmem:[%s32109_s1 + $0x948] sm:$0xff]  }
 0x114   :  { %22361 = vmatprep.subr.bf16.mxu0 %v24720_v48  ;;  %v24759_v48 = vld [vmem:[%s32109_s1 + $0x988] sm:$0xff]  }
 0x115   :  { %22382 = vmatpush3.bf16.msra.mxu1 %v24719_v47  ;;  %v24758_v47 = vld [vmem:[%s32109_s1 + $0x9c8] sm:$0xff]  }
 0x116   :  { %22383 = vmatprep.subr.bf16.mxu1 %v24722_v50  ;;  %v24761_v50 = vld [vmem:[%s32109_s1 + $0x900] sm:$0xff]  }
 0x117   :  { %22362 = vmatpush3.bf16.msra.mxu0 %v24721_v49  ;;  %v24760_v49 = vld [vmem:[%s32109_s1 + $0x940] sm:$0xff]  }
 0x118   :  { %22363 = vmatprep.subr.bf16.mxu0 %v24724_v52  ;;  %v24764_v52 = vld [vmem:[%s32109_s1 + $0x980] sm:$0xff]  }
 0x119   :  { %22384 = vmatpush3.bf16.msra.mxu1 %v24723_v51  ;;  %v24762_v51 = vld [vmem:[%s32109_s1 + $0x9c0] sm:$0xff]  }
 0x11a   :  { %22385 = vmatprep.subr.bf16.mxu1 %v24726_v55  ;;  %v24766_v55 = vld [vmem:[%s32109_s1 + $0xa38] sm:$0xff]  }
 0x11b   :  { %22364 = vmatpush3.bf16.msra.mxu0 %v24725_v53  ;;  %v3833_v53 = vrot.slane %v27204_v61, %v26383_v41 }
 0x11c   :  { %22365 = vmatprep.subr.bf16.mxu0 %v24728_v59  ;;  %v24769_v59 = vld [vmem:[%s32109_s1 + $0xa70] sm:$0xff]  }
 0x11d   :  { %22386 = vmatpush3.bf16.msra.mxu1 %v24727_v58  ;;  %v3849_v58 = vcombine.high %v3833_v53, %v3833_v53 }
 0x11e   :  { %22387 = vmatprep.subr.bf16.mxu1 %v24730_v63  ;;  %v24772_v63 = vld [vmem:[%s32109_s1 + $0xab0] sm:$0xff]  }
 0x11f   :  { %22366 = vmatpush3.bf16.msra.mxu0 %v24729_v62  ;;  %v24771_v62 = vld [vmem:[%s32109_s1 + $0xaf0] sm:$0xff]  }
 0x120   :  { %22395 = vmatprep.subr.bf16.mxu0 %v24732_v4  ;;  %v24774_v4 = vld [vmem:[%s32109_s1 + $0xa28] sm:$0xff]  }
 0x121   :  { %22388 = vmatpush3.bf16.msra.mxu1 %v24731_v2  ;;  %v24773_v2 = vld [vmem:[%s32109_s1 + $0xa68] sm:$0xff]  }
 0x122   :  { %v22103_v14 = vpop.f32.mrf.mxu0  ;;  %16450 = vmatmul.mubr.bf16.vlgmr.msra.gmra.mxu0 %v3826_v3  ;;  %22417 = vmatprep.subr.bf16.mxu1 %v24734_v8 }
 0x123   :  { %22396 = vmatpush3.bf16.msra.mxu0 %v24733_v6  ;;  %16529 = vmatprep.mubr.bf16.mxu0 %v3847_v7  ;;  %v24775_v7 = vld [vmem:[%s32109_s1 + $0xae8] sm:$0xff]  }
 0x124   :  { %v22104_v17 = vpop.f32.mrf.mxu0  ;;  %v22125_v18 = vpop.f32.mrf.mxu1  ;;  %16490 = vmatmul.mubr.bf16.vlgmr.msra.gmra.mxu1 %v3848_v10  ;;  %22397 = vmatprep.subr.bf16.mxu0 %v24736_v11  ;;  %v24776_v10 = vld [vmem:[%s32109_s1 + $0xaa8] sm:$0xff]  }
 0x125   :  { %v22105_v20 = vadd.f32 %v22104_v17, %v22103_v14  ;;  %22418 = vmatpush3.bf16.msra.mxu1 %v24735_v9  ;;  %16569 = vmatprep.mubr.bf16.mxu1 %v3851_v13  ;;  %v24777_v13 = vld [vmem:[%s32109_s1 + $0xa60] sm:$0xff]  }
 0x126   :  { %v22106_v22 = vpop.f32.mrf.mxu0  ;;  %v22126_v23 = vpop.f32.mrf.mxu1  ;;  %22419 = vmatprep.subr.bf16.mxu1 %v24738_v15  ;;  %v24778_v15 = vld [vmem:[%s32109_s1 + $0xa20] sm:$0xff]  }
 0x127   :  { %v15972_v25 = vadd.f32 %v22105_v20, %v27149_v38  ;;  %v22127_v26 = vadd.f32 %v22126_v23, %v22125_v18  ;;  %22398 = vmatpush3.bf16.msra.mxu0 %v24737_v12  ;;  %v24750_v38 = vld [vmem:[%s32109_s1 + $0x9d8] sm:$0xff]   ;;  %v24779_v17 = vld [vmem:[%s32109_s1 + $0xae0] sm:$0xff]   ;;  %v24785_v23 = vld [vmem:[%s32109_s1 + $0xa50] sm:$0xff]  }
 0x128   :  { %v22107_v28 = vpop.f32.mrf.mxu0  ;;  %22399 = vmatprep.subr.bf16.mxu0 %v24740_v19  ;;  %v22128_v29 = vpop.f32.mrf.mxu1  ;;  %v24780_v18 = vld [vmem:[%s32109_s1 + $0xaa0] sm:$0xff]   ;;  %v24781_v19 = vld [vmem:[%s32109_s1 + $0xa58] sm:$0xff]  }
 0x129   :  { %v27260_v31 = vadd.f32 %v22127_v26, %v15972_v25  ;;  %22420 = vmatpush3.bf16.msra.mxu1 %v24739_v16  ;;  %v24782_v20 = vld [vmem:[%s32109_s1 + $0xa18] sm:$0xff]   ;;  %v24787_v25 = vld [vmem:[%s32109_s1 + $0xad0] sm:$0xff]   ;;  %v24790_v28 = vld [vmem:[%s32109_s1 + $0xa08] sm:$0xff]  }
 0x12a   :  { %22421 = vmatprep.subr.bf16.mxu1 %v24742_v24  ;;  %v22129_v33 = vpop.f32.mrf.mxu1  ;;  %v24784_v22 = vld [vmem:[%s32109_s1 + $0xa98] sm:$0xff]   ;;  %v24786_v24 = vld [vmem:[%s32109_s1 + $0xa10] sm:$0xff]   ;;  %v24791_v29 = vld [vmem:[%s32109_s1 + $0xac8] sm:$0xff]  }
 0x12b   :  { %22400 = vmatpush3.bf16.msra.mxu0 %v24741_v21  ;;  %v24783_v21 = vld [vmem:[%s32109_s1 + $0xad8] sm:$0xff]   ;;  %v24788_v26 = vld [vmem:[%s32109_s1 + $0xa90] sm:$0xff]  }
 0x12c   :  { %22401 = vmatprep.subr.bf16.mxu0 %v24744_v30  ;;  %v21_v30 = vld [vmem:[%s32108_s0 + $0x28] sm:$0xff] }
 0x12d   :  { %22422 = vmatpush3.bf16.msra.mxu1 %v24743_v27  ;;  %v24789_v27 = vld [vmem:[%s32109_s1 + $0xa48] sm:$0xff]   ;;  %v3852_v33 = vcombine.high %v21_v30, %v21_v30 }
 0x12e   :  { %22423 = vmatprep.subr.bf16.mxu1 %v24746_v34  ;;  %v24793_v34 = vld [vmem:[%s32109_s1 + $0xa40] sm:$0xff]  }
 0x12f   :  { %22402 = vmatpush3.bf16.msra.mxu0 %v24745_v32  ;;  %v3859_v32 = vrot.slane %v21_v30, %v26383_v41  ;;  %v24831_v30 = vld [vmem:[%s32109_s1 + $0xc38] sm:$0xff]  }
 0x130   :  { %22403 = vmatprep.subr.bf16.mxu0 %v24748_v36 }
 0x131   :  { %22424 = vmatpush3.bf16.msra.mxu1 %v24747_v35  ;;  %v24794_v35 = vld [vmem:[%s32109_s1 + $0xa00] sm:$0xff]   ;;  %v3867_v36 = vcombine.high %v3859_v32, %v3859_v32 }
 0x132   :  { %22425 = vmatprep.subr.bf16.mxu1 %v24750_v38  ;;  %v24795_v38 = vld [vmem:[%s32109_s1 + $0xac0] sm:$0xff]  }
 0x133   :  { %22404 = vmatpush3.bf16.msra.mxu0 %v24749_v37  ;;  %v27419_v37 = vrot.slane %v3852_v33, %v26383_v41 }
 0x134   :  { %22405 = vmatprep.subr.bf16.mxu0 %v24752_v40  ;;  %v24796_v40 = vld [vmem:[%s32109_s1 + $0xa80] sm:$0xff]  }
 0x135   :  { %22426 = vmatpush3.bf16.msra.mxu1 %v24751_v39  ;;  %v3889_v39 = vrot.slane %v3867_v36, %v26383_v41 }
 0x136   :  { %22427 = vmatprep.subr.bf16.mxu1 %v24754_v43  ;;  %v3875_v43 = vrot.slane %v3859_v32, %v26383_v41  ;;  %v24833_v32 = vld [vmem:[%s32109_s1 + $0xcb8] sm:$0xff]  }
 0x137   :  { %22406 = vmatpush3.bf16.msra.mxu0 %v24753_v42  ;;  %v3868_v42 = vcombine.high %v27419_v37, %v27419_v37 }
 0x138   :  { %22407 = vmatprep.subr.bf16.mxu0 %v24756_v45  ;;  %v3899_v45 = vcombine.high %v3889_v39, %v3889_v39 }
 0x139   :  { %22428 = vmatpush3.bf16.msra.mxu1 %v24755_v44  ;;  %v24797_v44 = vld [vmem:[%s32109_s1 + $0xb78] sm:$0xff]  }
 0x13a   :  { %22429 = vmatprep.subr.bf16.mxu1 %v24758_v47  ;;  %v3896_v47 = vrot.slane %v3868_v42, %v26383_v41  ;;  %v24838_v42 = vld [vmem:[%s32109_s1 + $0xc68] sm:$0xff]  }
 0x13b   :  { %22408 = vmatpush3.bf16.msra.mxu0 %v24757_v46  ;;  %v24798_v46 = vld [vmem:[%s32109_s1 + $0xb38] sm:$0xff]  }
 0x13c   :  { %22409 = vmatprep.subr.bf16.mxu0 %v24760_v49  ;;  %v24800_v49 = vld [vmem:[%s32109_s1 + $0xbb8] sm:$0xff]  }
 0x13d   :  { %22430 = vmatpush3.bf16.msra.mxu1 %v24759_v48  ;;  %v24799_v48 = vld [vmem:[%s32109_s1 + $0xbf8] sm:$0xff]  }
 0x13e   :  { %22431 = vmatprep.subr.bf16.mxu1 %v24762_v51  ;;  %v24801_v51 = vld [vmem:[%s32109_s1 + $0xb70] sm:$0xff]  }
 0x13f   :  { %22410 = vmatpush3.bf16.msra.mxu0 %v24761_v50  ;;  %v3897_v50 = vcombine.high %v3875_v43, %v3875_v43 }
 0x140   :  { %22439 = vmatprep.subr.bf16.mxu0 %v24765_v54 }
 0x141   :  { %22432 = vmatpush3.bf16.msra.mxu1 %v24764_v52  ;;  %v24802_v52 = vld [vmem:[%s32109_s1 + $0xb30] sm:$0xff]  }
 0x142   :  { %v22147_v61 = vpop.f32.mrf.mxu0  ;;  %16530 = vmatmul.mubr.bf16.vlgmr.msra.gmra.mxu0 %v3833_v53  ;;  %22461 = vmatprep.subr.bf16.mxu1 %v24767_v56  ;;  %v3900_v53 = vcombine.high %v3896_v47, %v3896_v47  ;;  %v24804_v56 = vld [vmem:[%s32109_s1 + $0xbb0] sm:$0xff]  }
 0x143   :  { %22440 = vmatpush3.bf16.msra.mxu0 %v24766_v55  ;;  %16609 = vmatprep.mubr.bf16.mxu0 %v3889_v39  ;;  %v24803_v55 = vld [vmem:[%s32109_s1 + $0xbf0] sm:$0xff]  }
 0x144   :  { %v22148_v0 = vpop.f32.mrf.mxu0  ;;  %v22169_v1 = vpop.f32.mrf.mxu1  ;;  %16570 = vmatmul.mubr.bf16.vlgmr.msra.gmra.mxu1 %v3849_v58  ;;  %22441 = vmatprep.subr.bf16.mxu0 %v24769_v59  ;;  %v24805_v59 = vld [vmem:[%s32109_s1 + $0xb68] sm:$0xff]  }
 0x145   :  { %v22149_v3 = vadd.f32 %v22148_v0, %v22147_v61  ;;  %22462 = vmatpush3.bf16.msra.mxu1 %v24768_v57  ;;  %16649 = vmatprep.mubr.bf16.mxu1 %v3899_v45  ;;  %v24806_v61 = vld [vmem:[%s32109_s1 + $0xb28] sm:$0xff]  }
 0x146   :  { %v22150_v5 = vpop.f32.mrf.mxu0  ;;  %v22170_v6 = vpop.f32.mrf.mxu1  ;;  %22463 = vmatprep.subr.bf16.mxu1 %v24771_v62  ;;  %v24807_v0 = vld [vmem:[%s32109_s1 + $0xbe8] sm:$0xff]  }
 0x147   :  { %v16052_v8 = vadd.f32 %v22149_v3, %v27260_v31  ;;  %v22171_v9 = vadd.f32 %v22170_v6, %v22169_v1  ;;  %22442 = vmatpush3.bf16.msra.mxu0 %v24770_v60  ;;  %v24792_v31 = vld [vmem:[%s32109_s1 + $0xa88] sm:$0xff]   ;;  %v24809_v6 = vld [vmem:[%s32109_s1 + $0xb60] sm:$0xff]  }
 0x148   :  { %v22151_v11 = vpop.f32.mrf.mxu0  ;;  %22443 = vmatprep.subr.bf16.mxu0 %v24773_v2  ;;  %v22172_v12 = vpop.f32.mrf.mxu1  ;;  %v24808_v3 = vld [vmem:[%s32109_s1 + $0xba8] sm:$0xff]  }
 0x149   :  { %v27361_v14 = vadd.f32 %v22171_v9, %v16052_v8  ;;  %22464 = vmatpush3.bf16.msra.mxu1 %v24772_v63  ;;  %v24810_v8 = vld [vmem:[%s32109_s1 + $0xb20] sm:$0xff]   ;;  %v24813_v12 = vld [vmem:[%s32109_s1 + $0xb58] sm:$0xff]  }
 0x14a   :  { %22465 = vmatprep.subr.bf16.mxu1 %v24775_v7  ;;  %v22173_v16 = vpop.f32.mrf.mxu1  ;;  %v24812_v11 = vld [vmem:[%s32109_s1 + $0xba0] sm:$0xff]  }
 0x14b   :  { %22444 = vmatpush3.bf16.msra.mxu0 %v24774_v4  ;;  %v24817_v16 = vld [vmem:[%s32109_s1 + $0xb50] sm:$0xff]  }
 0x14c   :  { %22445 = vmatprep.subr.bf16.mxu0 %v24777_v13  ;;  %v24814_v13 = vld [vmem:[%s32109_s1 + $0xb18] sm:$0xff]  }
 0x14d   :  { %22466 = vmatpush3.bf16.msra.mxu1 %v24776_v10  ;;  %v24811_v10 = vld [vmem:[%s32109_s1 + $0xbe0] sm:$0xff]  }
 0x14e   :  { %22467 = vmatprep.subr.bf16.mxu1 %v24779_v17  ;;  %v24818_v17 = vld [vmem:[%s32109_s1 + $0xb10] sm:$0xff]  }
 0x14f   :  { %22446 = vmatpush3.bf16.msra.mxu0 %v24778_v15  ;;  %v24816_v15 = vld [vmem:[%s32109_s1 + $0xb98] sm:$0xff]  }
 0x150   :  { %22447 = vmatprep.subr.bf16.mxu0 %v24781_v19  ;;  %v24820_v19 = vld [vmem:[%s32109_s1 + $0xb90] sm:$0xff]  }
 0x151   :  { %22468 = vmatpush3.bf16.msra.mxu1 %v24780_v18  ;;  %v24819_v18 = vld [vmem:[%s32109_s1 + $0xbd0] sm:$0xff]  }
 0x152   :  { %22469 = vmatprep.subr.bf16.mxu1 %v24783_v21  ;;  %v24822_v21 = vld [vmem:[%s32109_s1 + $0xb08] sm:$0xff]  }
 0x153   :  { %22448 = vmatpush3.bf16.msra.mxu0 %v24782_v20  ;;  %v24821_v20 = vld [vmem:[%s32109_s1 + $0xb48] sm:$0xff]  }
 0x154   :  { %22449 = vmatprep.subr.bf16.mxu0 %v24785_v23  ;;  %v24824_v23 = vld [vmem:[%s32109_s1 + $0xb88] sm:$0xff]  }
 0x155   :  { %22470 = vmatpush3.bf16.msra.mxu1 %v24784_v22  ;;  %v24823_v22 = vld [vmem:[%s32109_s1 + $0xbc8] sm:$0xff]  }
 0x156   :  { %22471 = vmatprep.subr.bf16.mxu1 %v24787_v25  ;;  %v24826_v25 = vld [vmem:[%s32109_s1 + $0xb00] sm:$0xff]  }
 0x157   :  { %22450 = vmatpush3.bf16.msra.mxu0 %v24786_v24  ;;  %v24825_v24 = vld [vmem:[%s32109_s1 + $0xb40] sm:$0xff]  }
 0x158   :  { %22451 = vmatprep.subr.bf16.mxu0 %v24789_v27  ;;  %v24829_v27 = vld [vmem:[%s32109_s1 + $0xb80] sm:$0xff]  }
 0x159   :  { %22472 = vmatpush3.bf16.msra.mxu1 %v24788_v26  ;;  %v24827_v26 = vld [vmem:[%s32109_s1 + $0xbc0] sm:$0xff]  }
 0x15a   :  { %22473 = vmatprep.subr.bf16.mxu1 %v24791_v29  ;;  %v24830_v29 = vld [vmem:[%s32109_s1 + $0xc78] sm:$0xff]  }
 0x15b   :  { %22452 = vmatpush3.bf16.msra.mxu0 %v24790_v28  ;;  %v3882_v28 = vrot.slane %v27419_v37, %v26383_v41  ;;  %v24836_v37 = vld [vmem:[%s32109_s1 + $0xcf0] sm:$0xff]  }
 0x15c   :  { %22453 = vmatprep.subr.bf16.mxu0 %v24793_v34  ;;  %v24834_v34 = vld [vmem:[%s32109_s1 + $0xc70] sm:$0xff]  }
 0x15d   :  { %22474 = vmatpush3.bf16.msra.mxu1 %v24792_v31  ;;  %v24832_v31 = vld [vmem:[%s32109_s1 + $0xcf8] sm:$0xff]   ;;  %v3898_v33 = vcombine.high %v3882_v28, %v3882_v28 }
 0x15e   :  { %22475 = vmatprep.subr.bf16.mxu1 %v24795_v38  ;;  %v24837_v38 = vld [vmem:[%s32109_s1 + $0xcb0] sm:$0xff]  }
 0x15f   :  { %22454 = vmatpush3.bf16.msra.mxu0 %v24794_v35  ;;  %v24835_v35 = vld [vmem:[%s32109_s1 + $0xc30] sm:$0xff]  }
 0x160   :  { %22483 = vmatprep.subr.bf16.mxu0 %v24797_v44  ;;  %v24839_v44 = vld [vmem:[%s32109_s1 + $0xc28] sm:$0xff]  }
 0x161   :  { %22476 = vmatpush3.bf16.msra.mxu1 %v24796_v40 }
 0x162   :  { %v22191_v54 = vpop.f32.mrf.mxu0  ;;  %16610 = vmatmul.mubr.bf16.vlgmr.msra.gmra.mxu0 %v3875_v43  ;;  %22505 = vmatprep.subr.bf16.mxu1 %v24799_v48 }
 0x163   :  { %22484 = vmatpush3.bf16.msra.mxu0 %v24798_v46  ;;  %16689 = vmatprep.mubr.bf16.mxu0 %v3896_v47  ;;  %v24840_v47 = vld [vmem:[%s32109_s1 + $0xce8] sm:$0xff]  }
 0x164   :  { %v22192_v57 = vpop.f32.mrf.mxu0  ;;  %v22213_v58 = vpop.f32.mrf.mxu1  ;;  %16650 = vmatmul.mubr.bf16.vlgmr.msra.gmra.mxu1 %v3897_v50  ;;  %22485 = vmatprep.subr.bf16.mxu0 %v24801_v51  ;;  %v24841_v50 = vld [vmem:[%s32109_s1 + $0xca8] sm:$0xff]  }
 0x165   :  { %v22193_v60 = vadd.f32 %v22192_v57, %v22191_v54  ;;  %22506 = vmatpush3.bf16.msra.mxu1 %v24800_v49  ;;  %16729 = vmatprep.mubr.bf16.mxu1 %v3900_v53  ;;  %v24842_v53 = vld [vmem:[%s32109_s1 + $0xc60] sm:$0xff]  }
 0x166   :  { %v22194_v62 = vpop.f32.mrf.mxu0  ;;  %v22214_v63 = vpop.f32.mrf.mxu1  ;;  %22507 = vmatprep.subr.bf16.mxu1 %v24803_v55  ;;  %v24843_v55 = vld [vmem:[%s32109_s1 + $0xc20] sm:$0xff]  }
 0x167   :  { %v16132_v1 = vadd.f32 %v22193_v60, %v27361_v14  ;;  %v22215_v2 = vadd.f32 %v22214_v63, %v22213_v58  ;;  %22486 = vmatpush3.bf16.msra.mxu0 %v24802_v52  ;;  %v24815_v14 = vld [vmem:[%s32109_s1 + $0xbd8] sm:$0xff]   ;;  %v24844_v57 = vld [vmem:[%s32109_s1 + $0xce0] sm:$0xff]   ;;  %v24850_v63 = vld [vmem:[%s32109_s1 + $0xc50] sm:$0xff]  }
 0x168   :  { %v22195_v4 = vpop.f32.mrf.mxu0  ;;  %22487 = vmatprep.subr.bf16.mxu0 %v24805_v59  ;;  %v22216_v5 = vpop.f32.mrf.mxu1  ;;  %v24845_v58 = vld [vmem:[%s32109_s1 + $0xca0] sm:$0xff]   ;;  %v24846_v59 = vld [vmem:[%s32109_s1 + $0xc58] sm:$0xff]  }
 0x169   :  { %v27472_v7 = vadd.f32 %v22215_v2, %v16132_v1  ;;  %22508 = vmatpush3.bf16.msra.mxu1 %v24804_v56  ;;  %v24847_v60 = vld [vmem:[%s32109_s1 + $0xc18] sm:$0xff]   ;;  %v24852_v1 = vld [vmem:[%s32109_s1 + $0xcd0] sm:$0xff]   ;;  %v24855_v4 = vld [vmem:[%s32109_s1 + $0xc08] sm:$0xff]  }
 0x16a   :  { %22509 = vmatprep.subr.bf16.mxu1 %v24807_v0  ;;  %v22217_v9 = vpop.f32.mrf.mxu1  ;;  %v24849_v62 = vld [vmem:[%s32109_s1 + $0xc98] sm:$0xff]   ;;  %v24851_v0 = vld [vmem:[%s32109_s1 + $0xc10] sm:$0xff]   ;;  %v24856_v5 = vld [vmem:[%s32109_s1 + $0xcc8] sm:$0xff]  }
 0x16b   :  { %22488 = vmatpush3.bf16.msra.mxu0 %v24806_v61  ;;  %v24848_v61 = vld [vmem:[%s32109_s1 + $0xcd8] sm:$0xff]   ;;  %v24853_v2 = vld [vmem:[%s32109_s1 + $0xc90] sm:$0xff]  }
 0x16c   :  { %22489 = vmatprep.subr.bf16.mxu0 %v24809_v6  ;;  %v22_v6 = vld [vmem:[%s32108_s0 + $0x30] sm:$0xff] }
 0x16d   :  { %22510 = vmatpush3.bf16.msra.mxu1 %v24808_v3  ;;  %v24854_v3 = vld [vmem:[%s32109_s1 + $0xc48] sm:$0xff]   ;;  %v3901_v9 = vcombine.high %v22_v6, %v22_v6 }
 0x16e   :  { %22511 = vmatprep.subr.bf16.mxu1 %v24811_v10  ;;  %v24858_v10 = vld [vmem:[%s32109_s1 + $0xc40] sm:$0xff]  }
 0x16f   :  { %22490 = vmatpush3.bf16.msra.mxu0 %v24810_v8  ;;  %v3908_v8 = vrot.slane %v22_v6, %v26383_v41  ;;  %v24896_v6 = vld [vmem:[%s32109_s1 + $0xe38] sm:$0xff]  }
 0x170   :  { %22491 = vmatprep.subr.bf16.mxu0 %v24813_v12 }
 0x171   :  { %22512 = vmatpush3.bf16.msra.mxu1 %v24812_v11  ;;  %v24859_v11 = vld [vmem:[%s32109_s1 + $0xc00] sm:$0xff]   ;;  %v3916_v12 = vcombine.high %v3908_v8, %v3908_v8 }
 0x172   :  { %22513 = vmatprep.subr.bf16.mxu1 %v24815_v14  ;;  %v24860_v14 = vld [vmem:[%s32109_s1 + $0xcc0] sm:$0xff]  }
 0x173   :  { %22492 = vmatpush3.bf16.msra.mxu0 %v24814_v13  ;;  %v27631_v13 = vrot.slane %v3901_v9, %v26383_v41 }
 0x174   :  { %22493 = vmatprep.subr.bf16.mxu0 %v24817_v16  ;;  %v24861_v16 = vld [vmem:[%s32109_s1 + $0xc80] sm:$0xff]  }
 0x175   :  { %22514 = vmatpush3.bf16.msra.mxu1 %v24816_v15  ;;  %v3938_v15 = vrot.slane %v3916_v12, %v26383_v41 }
 0x176   :  { %22515 = vmatprep.subr.bf16.mxu1 %v24819_v18  ;;  %v3924_v18 = vrot.slane %v3908_v8, %v26383_v41  ;;  %v24898_v8 = vld [vmem:[%s32109_s1 + $0xeb8] sm:$0xff]  }
 0x177   :  { %22494 = vmatpush3.bf16.msra.mxu0 %v24818_v17  ;;  %v3917_v17 = vcombine.high %v27631_v13, %v27631_v13 }
 0x178   :  { %22495 = vmatprep.subr.bf16.mxu0 %v24821_v20  ;;  %v3948_v20 = vcombine.high %v3938_v15, %v3938_v15 }
 0x179   :  { %22516 = vmatpush3.bf16.msra.mxu1 %v24820_v19  ;;  %v24862_v19 = vld [vmem:[%s32109_s1 + $0xd78] sm:$0xff]  }
 0x17a   :  { %22517 = vmatprep.subr.bf16.mxu1 %v24823_v22  ;;  %v3945_v22 = vrot.slane %v3917_v17, %v26383_v41  ;;  %v24903_v17 = vld [vmem:[%s32109_s1 + $0xe68] sm:$0xff]  }
 0x17b   :  { %22496 = vmatpush3.bf16.msra.mxu0 %v24822_v21  ;;  %v24863_v21 = vld [vmem:[%s32109_s1 + $0xd38] sm:$0xff]  }
 0x17c   :  { %22497 = vmatprep.subr.bf16.mxu0 %v24825_v24  ;;  %v24865_v24 = vld [vmem:[%s32109_s1 + $0xdb8] sm:$0xff]  }
 0x17d   :  { %22518 = vmatpush3.bf16.msra.mxu1 %v24824_v23  ;;  %v24864_v23 = vld [vmem:[%s32109_s1 + $0xdf8] sm:$0xff]  }
 0x17e   :  { %22519 = vmatprep.subr.bf16.mxu1 %v24827_v26  ;;  %v24866_v26 = vld [vmem:[%s32109_s1 + $0xd70] sm:$0xff]  }
 0x17f   :  { %22498 = vmatpush3.bf16.msra.mxu0 %v24826_v25  ;;  %v3946_v25 = vcombine.high %v3924_v18, %v3924_v18 }
 0x180   :  { %22527 = vmatprep.subr.bf16.mxu0 %v24830_v29 }
 0x181   :  { %22520 = vmatpush3.bf16.msra.mxu1 %v24829_v27  ;;  %v24867_v27 = vld [vmem:[%s32109_s1 + $0xd30] sm:$0xff]  }
 0x182   :  { %v22235_v36 = vpop.f32.mrf.mxu0  ;;  %16690 = vmatmul.mubr.bf16.vlgmr.msra.gmra.mxu0 %v3882_v28  ;;  %22549 = vmatprep.subr.bf16.mxu1 %v24832_v31  ;;  %v3949_v28 = vcombine.high %v3945_v22, %v3945_v22  ;;  %v24869_v31 = vld [vmem:[%s32109_s1 + $0xdb0] sm:$0xff]  }
 0x183   :  { %22528 = vmatpush3.bf16.msra.mxu0 %v24831_v30  ;;  %16769 = vmatprep.mubr.bf16.mxu0 %v3938_v15  ;;  %v24868_v30 = vld [vmem:[%s32109_s1 + $0xdf0] sm:$0xff]  }
 0x184   :  { %v22236_v39 = vpop.f32.mrf.mxu0  ;;  %v22257_v40 = vpop.f32.mrf.mxu1  ;;  %16730 = vmatmul.mubr.bf16.vlgmr.msra.gmra.mxu1 %v3898_v33  ;;  %22529 = vmatprep.subr.bf16.mxu0 %v24834_v34  ;;  %v24870_v34 = vld [vmem:[%s32109_s1 + $0xd68] sm:$0xff]  }
 0x185   :  { %v22237_v43 = vadd.f32 %v22236_v39, %v22235_v36  ;;  %22550 = vmatpush3.bf16.msra.mxu1 %v24833_v32  ;;  %16809 = vmatprep.mubr.bf16.mxu1 %v3948_v20  ;;  %v24871_v36 = vld [vmem:[%s32109_s1 + $0xd28] sm:$0xff]  }
 0x186   :  { %v22238_v45 = vpop.f32.mrf.mxu0  ;;  %v22258_v46 = vpop.f32.mrf.mxu1  ;;  %22551 = vmatprep.subr.bf16.mxu1 %v24836_v37  ;;  %v24872_v39 = vld [vmem:[%s32109_s1 + $0xde8] sm:$0xff]  }
 0x187   :  { %v16212_v48 = vadd.f32 %v22237_v43, %v27472_v7  ;;  %v22259_v49 = vadd.f32 %v22258_v46, %v22257_v40  ;;  %22530 = vmatpush3.bf16.msra.mxu0 %v24835_v35  ;;  %v24857_v7 = vld [vmem:[%s32109_s1 + $0xc88] sm:$0xff]   ;;  %v24874_v46 = vld [vmem:[%s32109_s1 + $0xd60] sm:$0xff]  }
 0x188   :  { %v22239_v51 = vpop.f32.mrf.mxu0  ;;  %22531 = vmatprep.subr.bf16.mxu0 %v24838_v42  ;;  %v22260_v52 = vpop.f32.mrf.mxu1  ;;  %v24873_v43 = vld [vmem:[%s32109_s1 + $0xda8] sm:$0xff]  }
 0x189   :  { %v27573_v54 = vadd.f32 %v22259_v49, %v16212_v48  ;;  %22552 = vmatpush3.bf16.msra.mxu1 %v24837_v38  ;;  %v24875_v48 = vld [vmem:[%s32109_s1 + $0xd20] sm:$0xff]   ;;  %v24878_v52 = vld [vmem:[%s32109_s1 + $0xd58] sm:$0xff]  }
 0x18a   :  { %22553 = vmatprep.subr.bf16.mxu1 %v24840_v47  ;;  %v22261_v56 = vpop.f32.mrf.mxu1  ;;  %v24877_v51 = vld [vmem:[%s32109_s1 + $0xda0] sm:$0xff]  }
 0x18b   :  { %22532 = vmatpush3.bf16.msra.mxu0 %v24839_v44  ;;  %v24882_v56 = vld [vmem:[%s32109_s1 + $0xd50] sm:$0xff]  }
 0x18c   :  { %22533 = vmatprep.subr.bf16.mxu0 %v24842_v53  ;;  %v24879_v53 = vld [vmem:[%s32109_s1 + $0xd18] sm:$0xff]  }
 0x18d   :  { %22554 = vmatpush3.bf16.msra.mxu1 %v24841_v50  ;;  %v24876_v50 = vld [vmem:[%s32109_s1 + $0xde0] sm:$0xff]  }
 0x18e   :  { %22555 = vmatprep.subr.bf16.mxu1 %v24844_v57  ;;  %v24883_v57 = vld [vmem:[%s32109_s1 + $0xd10] sm:$0xff]  }
 0x18f   :  { %22534 = vmatpush3.bf16.msra.mxu0 %v24843_v55  ;;  %v24881_v55 = vld [vmem:[%s32109_s1 + $0xd98] sm:$0xff]  }
 0x190   :  { %22535 = vmatprep.subr.bf16.mxu0 %v24846_v59  ;;  %v24885_v59 = vld [vmem:[%s32109_s1 + $0xd90] sm:$0xff]  }
 0x191   :  { %22556 = vmatpush3.bf16.msra.mxu1 %v24845_v58  ;;  %v24884_v58 = vld [vmem:[%s32109_s1 + $0xdd0] sm:$0xff]  }
 0x192   :  { %22557 = vmatprep.subr.bf16.mxu1 %v24848_v61  ;;  %v24887_v61 = vld [vmem:[%s32109_s1 + $0xd08] sm:$0xff]  }
 0x193   :  { %22536 = vmatpush3.bf16.msra.mxu0 %v24847_v60  ;;  %v24886_v60 = vld [vmem:[%s32109_s1 + $0xd48] sm:$0xff]  }
 0x194   :  { %22537 = vmatprep.subr.bf16.mxu0 %v24850_v63  ;;  %v24889_v63 = vld [vmem:[%s32109_s1 + $0xd88] sm:$0xff]  }
 0x195   :  { %22558 = vmatpush3.bf16.msra.mxu1 %v24849_v62  ;;  %v24888_v62 = vld [vmem:[%s32109_s1 + $0xdc8] sm:$0xff]  }
 0x196   :  { %22559 = vmatprep.subr.bf16.mxu1 %v24852_v1  ;;  %v24891_v1 = vld [vmem:[%s32109_s1 + $0xd00] sm:$0xff]  }
 0x197   :  { %22538 = vmatpush3.bf16.msra.mxu0 %v24851_v0  ;;  %v24890_v0 = vld [vmem:[%s32109_s1 + $0xd40] sm:$0xff]  }
 0x198   :  { %22539 = vmatprep.subr.bf16.mxu0 %v24854_v3  ;;  %v24894_v3 = vld [vmem:[%s32109_s1 + $0xd80] sm:$0xff]  }
 0x199   :  { %22560 = vmatpush3.bf16.msra.mxu1 %v24853_v2  ;;  %v24892_v2 = vld [vmem:[%s32109_s1 + $0xdc0] sm:$0xff]  }
 0x19a   :  { %22561 = vmatprep.subr.bf16.mxu1 %v24856_v5  ;;  %v24895_v5 = vld [vmem:[%s32109_s1 + $0xe78] sm:$0xff]  }
 0x19b   :  { %22540 = vmatpush3.bf16.msra.mxu0 %v24855_v4  ;;  %v3931_v4 = vrot.slane %v27631_v13, %v26383_v41  ;;  %v24901_v13 = vld [vmem:[%s32109_s1 + $0xef0] sm:$0xff]  }
 0x19c   :  { %22541 = vmatprep.subr.bf16.mxu0 %v24858_v10  ;;  %v24899_v10 = vld [vmem:[%s32109_s1 + $0xe70] sm:$0xff]  }
 0x19d   :  { %22562 = vmatpush3.bf16.msra.mxu1 %v24857_v7  ;;  %v24897_v7 = vld [vmem:[%s32109_s1 + $0xef8] sm:$0xff]   ;;  %v3947_v9 = vcombine.high %v3931_v4, %v3931_v4 }
 0x19e   :  { %22563 = vmatprep.subr.bf16.mxu1 %v24860_v14  ;;  %v24902_v14 = vld [vmem:[%s32109_s1 + $0xeb0] sm:$0xff]  }
 0x19f   :  { %22542 = vmatpush3.bf16.msra.mxu0 %v24859_v11  ;;  %v24900_v11 = vld [vmem:[%s32109_s1 + $0xe30] sm:$0xff]  }
 0x1a0   :  { %22571 = vmatprep.subr.bf16.mxu0 %v24862_v19  ;;  %v24904_v19 = vld [vmem:[%s32109_s1 + $0xe28] sm:$0xff]  }
 0x1a1   :  { %22564 = vmatpush3.bf16.msra.mxu1 %v24861_v16 }
 0x1a2   :  { %v22279_v29 = vpop.f32.mrf.mxu0  ;;  %16770 = vmatmul.mubr.bf16.vlgmr.msra.gmra.mxu0 %v3924_v18  ;;  %22593 = vmatprep.subr.bf16.mxu1 %v24864_v23 }
 0x1a3   :  { %22572 = vmatpush3.bf16.msra.mxu0 %v24863_v21  ;;  %16849 = vmatprep.mubr.bf16.mxu0 %v3945_v22  ;;  %v24905_v22 = vld [vmem:[%s32109_s1 + $0xee8] sm:$0xff]  }
 0x1a4   :  { %v22280_v32 = vpop.f32.mrf.mxu0  ;;  %v22301_v33 = vpop.f32.mrf.mxu1  ;;  %16810 = vmatmul.mubr.bf16.vlgmr.msra.gmra.mxu1 %v3946_v25  ;;  %22573 = vmatprep.subr.bf16.mxu0 %v24866_v26  ;;  %v24906_v25 = vld [vmem:[%s32109_s1 + $0xea8] sm:$0xff]  }
 0x1a5   :  { %v22281_v35 = vadd.f32 %v22280_v32, %v22279_v29  ;;  %22594 = vmatpush3.bf16.msra.mxu1 %v24865_v24  ;;  %16889 = vmatprep.mubr.bf16.mxu1 %v3949_v28  ;;  %v24907_v28 = vld [vmem:[%s32109_s1 + $0xe60] sm:$0xff]  }
 0x1a6   :  { %v22282_v37 = vpop.f32.mrf.mxu0  ;;  %v22302_v38 = vpop.f32.mrf.mxu1  ;;  %22595 = vmatprep.subr.bf16.mxu1 %v24868_v30  ;;  %v24908_v30 = vld [vmem:[%s32109_s1 + $0xe20] sm:$0xff]  }
 0x1a7   :  { %v16292_v40 = vadd.f32 %v22281_v35, %v27573_v54  ;;  %v22303_v42 = vadd.f32 %v22302_v38, %v22301_v33  ;;  %22574 = vmatpush3.bf16.msra.mxu0 %v24867_v27  ;;  %v24880_v54 = vld [vmem:[%s32109_s1 + $0xdd8] sm:$0xff]   ;;  %v24909_v32 = vld [vmem:[%s32109_s1 + $0xee0] sm:$0xff]   ;;  %v24915_v38 = vld [vmem:[%s32109_s1 + $0xe50] sm:$0xff]  }
 0x1a8   :  { %v22283_v44 = vpop.f32.mrf.mxu0  ;;  %22575 = vmatprep.subr.bf16.mxu0 %v24870_v34  ;;  %v22304_v45 = vpop.f32.mrf.mxu1  ;;  %v24910_v33 = vld [vmem:[%s32109_s1 + $0xea0] sm:$0xff]   ;;  %v24911_v34 = vld [vmem:[%s32109_s1 + $0xe58] sm:$0xff]  }
 0x1a9   :  { %v27684_v47 = vadd.f32 %v22303_v42, %v16292_v40  ;;  %22596 = vmatpush3.bf16.msra.mxu1 %v24869_v31  ;;  %v24912_v35 = vld [vmem:[%s32109_s1 + $0xe18] sm:$0xff]   ;;  %v24917_v40 = vld [vmem:[%s32109_s1 + $0xed0] sm:$0xff]   ;;  %v24920_v44 = vld [vmem:[%s32109_s1 + $0xe08] sm:$0xff]  }
 0x1aa   :  { %22597 = vmatprep.subr.bf16.mxu1 %v24872_v39  ;;  %v22305_v49 = vpop.f32.mrf.mxu1  ;;  %v24914_v37 = vld [vmem:[%s32109_s1 + $0xe98] sm:$0xff]   ;;  %v24916_v39 = vld [vmem:[%s32109_s1 + $0xe10] sm:$0xff]   ;;  %v24921_v45 = vld [vmem:[%s32109_s1 + $0xec8] sm:$0xff]  }
 0x1ab   :  { %22576 = vmatpush3.bf16.msra.mxu0 %v24871_v36  ;;  %v24913_v36 = vld [vmem:[%s32109_s1 + $0xed8] sm:$0xff]   ;;  %v24918_v42 = vld [vmem:[%s32109_s1 + $0xe90] sm:$0xff]  }
 0x1ac   :  { %22577 = vmatprep.subr.bf16.mxu0 %v24874_v46  ;;  %v23_v46 = vld [vmem:[%s32108_s0 + $0x38] sm:$0xff] }
 0x1ad   :  { %22598 = vmatpush3.bf16.msra.mxu1 %v24873_v43  ;;  %v24919_v43 = vld [vmem:[%s32109_s1 + $0xe48] sm:$0xff]   ;;  %v3950_v49 = vcombine.high %v23_v46, %v23_v46 }
 0x1ae   :  { %22599 = vmatprep.subr.bf16.mxu1 %v24876_v50  ;;  %v24923_v50 = vld [vmem:[%s32109_s1 + $0xe40] sm:$0xff]  }
 0x1af   :  { %22578 = vmatpush3.bf16.msra.mxu0 %v24875_v48  ;;  %v3957_v48 = vrot.slane %v23_v46, %v26383_v41  ;;  %v24961_v46 = vld [vmem:[%s32109_s1 + $0x1038] sm:$0xff]  }
 0x1b0   :  { %22579 = vmatprep.subr.bf16.mxu0 %v24878_v52 }
 0x1b1   :  { %22600 = vmatpush3.bf16.msra.mxu1 %v24877_v51  ;;  %v24924_v51 = vld [vmem:[%s32109_s1 + $0xe00] sm:$0xff]   ;;  %v3965_v52 = vcombine.high %v3957_v48, %v3957_v48 }
 0x1b2   :  { %22601 = vmatprep.subr.bf16.mxu1 %v24880_v54  ;;  %v24925_v54 = vld [vmem:[%s32109_s1 + $0xec0] sm:$0xff]  }
 0x1b3   :  { %22580 = vmatpush3.bf16.msra.mxu0 %v24879_v53  ;;  %v27843_v53 = vrot.slane %v3950_v49, %v26383_v41 }
 0x1b4   :  { %22581 = vmatprep.subr.bf16.mxu0 %v24882_v56  ;;  %v24926_v56 = vld [vmem:[%s32109_s1 + $0xe80] sm:$0xff]  }
 0x1b5   :  { %22602 = vmatpush3.bf16.msra.mxu1 %v24881_v55  ;;  %v3987_v55 = vrot.slane %v3965_v52, %v26383_v41 }
 0x1b6   :  { %22603 = vmatprep.subr.bf16.mxu1 %v24884_v58  ;;  %v3973_v58 = vrot.slane %v3957_v48, %v26383_v41  ;;  %v24963_v48 = vld [vmem:[%s32109_s1 + $0x10b8] sm:$0xff]  }
 0x1b7   :  { %22582 = vmatpush3.bf16.msra.mxu0 %v24883_v57  ;;  %v3966_v57 = vcombine.high %v27843_v53, %v27843_v53 }
 0x1b8   :  { %22583 = vmatprep.subr.bf16.mxu0 %v24886_v60  ;;  %v3997_v60 = vcombine.high %v3987_v55, %v3987_v55 }
 0x1b9   :  { %22604 = vmatpush3.bf16.msra.mxu1 %v24885_v59  ;;  %v24927_v59 = vld [vmem:[%s32109_s1 + $0xf78] sm:$0xff]  }
 0x1ba   :  { %22605 = vmatprep.subr.bf16.mxu1 %v24888_v62  ;;  %v3994_v62 = vrot.slane %v3966_v57, %v26383_v41  ;;  %v24968_v57 = vld [vmem:[%s32109_s1 + $0x1068] sm:$0xff]  }
 0x1bb   :  { %22584 = vmatpush3.bf16.msra.mxu0 %v24887_v61  ;;  %v24928_v61 = vld [vmem:[%s32109_s1 + $0xf38] sm:$0xff]  }
 0x1bc   :  { %22585 = vmatprep.subr.bf16.mxu0 %v24890_v0  ;;  %v24930_v0 = vld [vmem:[%s32109_s1 + $0xfb8] sm:$0xff]  }
 0x1bd   :  { %22606 = vmatpush3.bf16.msra.mxu1 %v24889_v63  ;;  %v24929_v63 = vld [vmem:[%s32109_s1 + $0xff8] sm:$0xff]  }
 0x1be   :  { %22607 = vmatprep.subr.bf16.mxu1 %v24892_v2  ;;  %v24931_v2 = vld [vmem:[%s32109_s1 + $0xf70] sm:$0xff]  }
 0x1bf   :  { %22586 = vmatpush3.bf16.msra.mxu0 %v24891_v1  ;;  %v3995_v1 = vcombine.high %v3973_v58, %v3973_v58 }
 0x1c0   :  { %22615 = vmatprep.subr.bf16.mxu0 %v24895_v5 }
 0x1c1   :  { %22608 = vmatpush3.bf16.msra.mxu1 %v24894_v3  ;;  %v24932_v3 = vld [vmem:[%s32109_s1 + $0xf30] sm:$0xff]  }
 0x1c2   :  { %v22323_v12 = vpop.f32.mrf.mxu0  ;;  %16850 = vmatmul.mubr.bf16.vlgmr.msra.gmra.mxu0 %v3931_v4  ;;  %22637 = vmatprep.subr.bf16.mxu1 %v24897_v7  ;;  %v3998_v4 = vcombine.high %v3994_v62, %v3994_v62  ;;  %v24934_v7 = vld [vmem:[%s32109_s1 + $0xfb0] sm:$0xff]  }
 0x1c3   :  { %22616 = vmatpush3.bf16.msra.mxu0 %v24896_v6  ;;  %16929 = vmatprep.mubr.bf16.mxu0 %v3987_v55  ;;  %v24933_v6 = vld [vmem:[%s32109_s1 + $0xff0] sm:$0xff]  }
 0x1c4   :  { %v22324_v15 = vpop.f32.mrf.mxu0  ;;  %v22345_v16 = vpop.f32.mrf.mxu1  ;;  %16890 = vmatmul.mubr.bf16.vlgmr.msra.gmra.mxu1 %v3947_v9  ;;  %22617 = vmatprep.subr.bf16.mxu0 %v24899_v10  ;;  %v24935_v10 = vld [vmem:[%s32109_s1 + $0xf68] sm:$0xff]  }
 0x1c5   :  { %v22325_v18 = vadd.f32 %v22324_v15, %v22323_v12  ;;  %22638 = vmatpush3.bf16.msra.mxu1 %v24898_v8  ;;  %16969 = vmatprep.mubr.bf16.mxu1 %v3997_v60  ;;  %v24936_v12 = vld [vmem:[%s32109_s1 + $0xf28] sm:$0xff]  }
 0x1c6   :  { %v22326_v20 = vpop.f32.mrf.mxu0  ;;  %v22346_v21 = vpop.f32.mrf.mxu1  ;;  %22639 = vmatprep.subr.bf16.mxu1 %v24901_v13  ;;  %v24937_v15 = vld [vmem:[%s32109_s1 + $0xfe8] sm:$0xff]  }
 0x1c7   :  { %v16372_v23 = vadd.f32 %v22325_v18, %v27684_v47  ;;  %v22347_v24 = vadd.f32 %v22346_v21, %v22345_v16  ;;  %22618 = vmatpush3.bf16.msra.mxu0 %v24900_v11  ;;  %v24922_v47 = vld [vmem:[%s32109_s1 + $0xe88] sm:$0xff]   ;;  %v24939_v21 = vld [vmem:[%s32109_s1 + $0xf60] sm:$0xff]  }
 0x1c8   :  { %v22327_v26 = vpop.f32.mrf.mxu0  ;;  %22619 = vmatprep.subr.bf16.mxu0 %v24903_v17  ;;  %v22348_v27 = vpop.f32.mrf.mxu1  ;;  %v24938_v18 = vld [vmem:[%s32109_s1 + $0xfa8] sm:$0xff]  }
 0x1c9   :  { %v27785_v29 = vadd.f32 %v22347_v24, %v16372_v23  ;;  %22640 = vmatpush3.bf16.msra.mxu1 %v24902_v14  ;;  %v24940_v23 = vld [vmem:[%s32109_s1 + $0xf20] sm:$0xff]   ;;  %v24943_v27 = vld [vmem:[%s32109_s1 + $0xf58] sm:$0xff]  }
 0x1ca   :  { %22641 = vmatprep.subr.bf16.mxu1 %v24905_v22  ;;  %v22349_v31 = vpop.f32.mrf.mxu1  ;;  %v24942_v26 = vld [vmem:[%s32109_s1 + $0xfa0] sm:$0xff]  }
 0x1cb   :  { %22620 = vmatpush3.bf16.msra.mxu0 %v24904_v19  ;;  %v24947_v31 = vld [vmem:[%s32109_s1 + $0xf50] sm:$0xff]  }
 0x1cc   :  { %22621 = vmatprep.subr.bf16.mxu0 %v24907_v28  ;;  %v24944_v28 = vld [vmem:[%s32109_s1 + $0xf18] sm:$0xff]  }
 0x1cd   :  { %22642 = vmatpush3.bf16.msra.mxu1 %v24906_v25  ;;  %v24941_v25 = vld [vmem:[%s32109_s1 + $0xfe0] sm:$0xff]  }
 0x1ce   :  { %22643 = vmatprep.subr.bf16.mxu1 %v24909_v32  ;;  %v24948_v32 = vld [vmem:[%s32109_s1 + $0xf10] sm:$0xff]  }
 0x1cf   :  { %22622 = vmatpush3.bf16.msra.mxu0 %v24908_v30  ;;  %v24946_v30 = vld [vmem:[%s32109_s1 + $0xf98] sm:$0xff]  }
 0x1d0   :  { %22623 = vmatprep.subr.bf16.mxu0 %v24911_v34  ;;  %v24950_v34 = vld [vmem:[%s32109_s1 + $0xf90] sm:$0xff]  }
 0x1d1   :  { %22644 = vmatpush3.bf16.msra.mxu1 %v24910_v33  ;;  %v24949_v33 = vld [vmem:[%s32109_s1 + $0xfd0] sm:$0xff]  }
 0x1d2   :  { %22645 = vmatprep.subr.bf16.mxu1 %v24913_v36  ;;  %v24952_v36 = vld [vmem:[%s32109_s1 + $0xf08] sm:$0xff]  }
 0x1d3   :  { %22624 = vmatpush3.bf16.msra.mxu0 %v24912_v35  ;;  %v24951_v35 = vld [vmem:[%s32109_s1 + $0xf48] sm:$0xff]  }
 0x1d4   :  { %22625 = vmatprep.subr.bf16.mxu0 %v24915_v38  ;;  %v24954_v38 = vld [vmem:[%s32109_s1 + $0xf88] sm:$0xff]  }
 0x1d5   :  { %22646 = vmatpush3.bf16.msra.mxu1 %v24914_v37  ;;  %v24953_v37 = vld [vmem:[%s32109_s1 + $0xfc8] sm:$0xff]  }
 0x1d6   :  { %22647 = vmatprep.subr.bf16.mxu1 %v24917_v40  ;;  %v24956_v40 = vld [vmem:[%s32109_s1 + $0xf00] sm:$0xff]  }
 0x1d7   :  { %22626 = vmatpush3.bf16.msra.mxu0 %v24916_v39  ;;  %v24955_v39 = vld [vmem:[%s32109_s1 + $0xf40] sm:$0xff]  }
 0x1d8   :  { %22627 = vmatprep.subr.bf16.mxu0 %v24919_v43  ;;  %v24959_v43 = vld [vmem:[%s32109_s1 + $0xf80] sm:$0xff]  }
 0x1d9   :  { %22648 = vmatpush3.bf16.msra.mxu1 %v24918_v42  ;;  %v24957_v42 = vld [vmem:[%s32109_s1 + $0xfc0] sm:$0xff]  }
 0x1da   :  { %22649 = vmatprep.subr.bf16.mxu1 %v24921_v45  ;;  %v24960_v45 = vld [vmem:[%s32109_s1 + $0x1078] sm:$0xff]  }
 0x1db   :  { %22628 = vmatpush3.bf16.msra.mxu0 %v24920_v44  ;;  %v3980_v44 = vrot.slane %v27843_v53, %v26383_v41  ;;  %v24966_v53 = vld [vmem:[%s32109_s1 + $0x10f0] sm:$0xff]  }
 0x1dc   :  { %22629 = vmatprep.subr.bf16.mxu0 %v24923_v50  ;;  %v24964_v50 = vld [vmem:[%s32109_s1 + $0x1070] sm:$0xff]  }
 0x1dd   :  { %22650 = vmatpush3.bf16.msra.mxu1 %v24922_v47  ;;  %v24962_v47 = vld [vmem:[%s32109_s1 + $0x10f8] sm:$0xff]   ;;  %v3996_v49 = vcombine.high %v3980_v44, %v3980_v44 }
 0x1de   :  { %22651 = vmatprep.subr.bf16.mxu1 %v24925_v54  ;;  %v24967_v54 = vld [vmem:[%s32109_s1 + $0x10b0] sm:$0xff]  }
 0x1df   :  { %22630 = vmatpush3.bf16.msra.mxu0 %v24924_v51  ;;  %v24965_v51 = vld [vmem:[%s32109_s1 + $0x1030] sm:$0xff]  }
 0x1e0   :  { %22659 = vmatprep.subr.bf16.mxu0 %v24927_v59  ;;  %v24969_v59 = vld [vmem:[%s32109_s1 + $0x1028] sm:$0xff]  }
 0x1e1   :  { %22652 = vmatpush3.bf16.msra.mxu1 %v24926_v56 }
 0x1e2   :  { %v22367_v5 = vpop.f32.mrf.mxu0  ;;  %16930 = vmatmul.mubr.bf16.vlgmr.msra.gmra.mxu0 %v3973_v58  ;;  %22681 = vmatprep.subr.bf16.mxu1 %v24929_v63 }
 0x1e3   :  { %22660 = vmatpush3.bf16.msra.mxu0 %v24928_v61  ;;  %17009 = vmatprep.mubr.bf16.mxu0 %v3994_v62  ;;  %v24970_v62 = vld [vmem:[%s32109_s1 + $0x10e8] sm:$0xff]  }
 0x1e4   :  { %v22368_v8 = vpop.f32.mrf.mxu0  ;;  %v22389_v9 = vpop.f32.mrf.mxu1  ;;  %16970 = vmatmul.mubr.bf16.vlgmr.msra.gmra.mxu1 %v3995_v1  ;;  %22661 = vmatprep.subr.bf16.mxu0 %v24931_v2  ;;  %v24971_v1 = vld [vmem:[%s32109_s1 + $0x10a8] sm:$0xff]  }
 0x1e5   :  { %v22369_v11 = vadd.f32 %v22368_v8, %v22367_v5  ;;  %22682 = vmatpush3.bf16.msra.mxu1 %v24930_v0  ;;  %17049 = vmatprep.mubr.bf16.mxu1 %v3998_v4  ;;  %v24972_v4 = vld [vmem:[%s32109_s1 + $0x1060] sm:$0xff]  }
 0x1e6   :  { %v22370_v13 = vpop.f32.mrf.mxu0  ;;  %v22390_v14 = vpop.f32.mrf.mxu1  ;;  %22683 = vmatprep.subr.bf16.mxu1 %v24933_v6  ;;  %v24973_v6 = vld [vmem:[%s32109_s1 + $0x1020] sm:$0xff]  }
 0x1e7   :  { %v16452_v16 = vadd.f32 %v22369_v11, %v27785_v29  ;;  %v22391_v17 = vadd.f32 %v22390_v14, %v22389_v9  ;;  %22662 = vmatpush3.bf16.msra.mxu0 %v24932_v3  ;;  %v24945_v29 = vld [vmem:[%s32109_s1 + $0xfd8] sm:$0xff]   ;;  %v24974_v8 = vld [vmem:[%s32109_s1 + $0x10e0] sm:$0xff]   ;;  %v24980_v14 = vld [vmem:[%s32109_s1 + $0x1050] sm:$0xff]  }
 0x1e8   :  { %v22371_v19 = vpop.f32.mrf.mxu0  ;;  %22663 = vmatprep.subr.bf16.mxu0 %v24935_v10  ;;  %v22392_v20 = vpop.f32.mrf.mxu1  ;;  %v24975_v9 = vld [vmem:[%s32109_s1 + $0x10a0] sm:$0xff]   ;;  %v24976_v10 = vld [vmem:[%s32109_s1 + $0x1058] sm:$0xff]  }
 0x1e9   :  { %v27896_v22 = vadd.f32 %v22391_v17, %v16452_v16  ;;  %22684 = vmatpush3.bf16.msra.mxu1 %v24934_v7  ;;  %v24977_v11 = vld [vmem:[%s32109_s1 + $0x1018] sm:$0xff]   ;;  %v24982_v16 = vld [vmem:[%s32109_s1 + $0x10d0] sm:$0xff]   ;;  %v24985_v19 = vld [vmem:[%s32109_s1 + $0x1008] sm:$0xff]  }
 0x1ea   :  { %22685 = vmatprep.subr.bf16.mxu1 %v24937_v15  ;;  %v22393_v24 = vpop.f32.mrf.mxu1  ;;  %v24979_v13 = vld [vmem:[%s32109_s1 + $0x1098] sm:$0xff]   ;;  %v24981_v15 = vld [vmem:[%s32109_s1 + $0x1010] sm:$0xff]   ;;  %v24986_v20 = vld [vmem:[%s32109_s1 + $0x10c8] sm:$0xff]  }
 0x1eb   :  { %22664 = vmatpush3.bf16.msra.mxu0 %v24936_v12  ;;  %v24978_v12 = vld [vmem:[%s32109_s1 + $0x10d8] sm:$0xff]   ;;  %v24983_v17 = vld [vmem:[%s32109_s1 + $0x1090] sm:$0xff]  }
 0x1ec   :  { %22665 = vmatprep.subr.bf16.mxu0 %v24939_v21  ;;  %v24987_v21 = vld [vmem:[%s32109_s1 + $0x1088] sm:$0xff]  }
 0x1ed   :  { %22686 = vmatpush3.bf16.msra.mxu1 %v24938_v18  ;;  %v24984_v18 = vld [vmem:[%s32109_s1 + $0x1048] sm:$0xff]  }
 0x1ee   :  { %22687 = vmatprep.subr.bf16.mxu1 %v24941_v25 }
 0x1ef   :  { %22666 = vmatpush3.bf16.msra.mxu0 %v24940_v23  ;;  %v24988_v23 = vld [vmem:[%s32109_s1 + $0x1040] sm:$0xff]  }
 0x1f0   :  { %22667 = vmatprep.subr.bf16.mxu0 %v24943_v27  ;;  %v24990_v27 = vld [vmem:[%s32109_s1 + $0x10c0] sm:$0xff]  }
 0x1f1   :  { %22688 = vmatpush3.bf16.msra.mxu1 %v24942_v26  ;;  %v24989_v26 = vld [vmem:[%s32109_s1 + $0x1000] sm:$0xff]  }
 0x1f2   :  { %22689 = vmatprep.subr.bf16.mxu1 %v24945_v29 }
 0x1f3   :  { %22668 = vmatpush3.bf16.msra.mxu0 %v24944_v28 }
 0x1f4   :  { %22669 = vmatprep.subr.bf16.mxu0 %v24947_v31 }
 0x1f5   :  { %22690 = vmatpush3.bf16.msra.mxu1 %v24946_v30  ;;  %v24991_v30 = vld [vmem:[%s32109_s1 + $0x1080] sm:$0xff]  }
 0x1f6   :  { %22691 = vmatprep.subr.bf16.mxu1 %v24949_v33  ;;  %v24992_v33 = vld [vmem:[%s32109_s1 + $0x1178] sm:$0xff]  }
 0x1f7   :  { %22670 = vmatpush3.bf16.msra.mxu0 %v24948_v32 }
 0x1f8   :  { %22671 = vmatprep.subr.bf16.mxu0 %v24951_v35  ;;  %v24993_v35 = vld [vmem:[%s32109_s1 + $0x1138] sm:$0xff]  }
 0x1f9   :  { %22692 = vmatpush3.bf16.msra.mxu1 %v24950_v34 }
 0x1fa   :  { %22693 = vmatprep.subr.bf16.mxu1 %v24953_v37  ;;  %v24994_v37 = vld [vmem:[%s32109_s1 + $0x11f8] sm:$0xff]  }
 0x1fb   :  { %22672 = vmatpush3.bf16.msra.mxu0 %v24952_v36 }
 0x1fc   :  { %22673 = vmatprep.subr.bf16.mxu0 %v24955_v39  ;;  %v24995_v39 = vld [vmem:[%s32109_s1 + $0x11b8] sm:$0xff]  }
 0x1fd   :  { %22694 = vmatpush3.bf16.msra.mxu1 %v24954_v38 }
 0x1fe   :  { %22695 = vmatprep.subr.bf16.mxu1 %v24957_v42  ;;  %v24996_v42 = vld [vmem:[%s32109_s1 + $0x1170] sm:$0xff]  }
 0x1ff   :  { %22674 = vmatpush3.bf16.msra.mxu0 %v24956_v40 }
 0x200   :  { %22703 = vmatprep.subr.bf16.mxu0 %v24960_v45 }
 0x201   :  { %22696 = vmatpush3.bf16.msra.mxu1 %v24959_v43  ;;  %v24997_v43 = vld [vmem:[%s32109_s1 + $0x1130] sm:$0xff]  }
 0x202   :  { %v22411_v52 = vpop.f32.mrf.mxu0  ;;  %17010 = vmatmul.mubr.bf16.vlgmr.msra.gmra.mxu0 %v3980_v44  ;;  %22725 = vmatprep.subr.bf16.mxu1 %v24962_v47  ;;  %v24999_v47 = vld [vmem:[%s32109_s1 + $0x11b0] sm:$0xff]  }
 0x203   :  { %22704 = vmatpush3.bf16.msra.mxu0 %v24961_v46  ;;  %v24998_v46 = vld [vmem:[%s32109_s1 + $0x11f0] sm:$0xff]  }
 0x204   :  { %v22412_v55 = vpop.f32.mrf.mxu0  ;;  %v22433_v56 = vpop.f32.mrf.mxu1  ;;  %17050 = vmatmul.mubr.bf16.vlgmr.msra.gmra.mxu1 %v3996_v49  ;;  %22705 = vmatprep.subr.bf16.mxu0 %v24964_v50  ;;  %v25000_v50 = vld [vmem:[%s32109_s1 + $0x1168] sm:$0xff]  }
 0x205   :  { %v22413_v58 = vadd.f32 %v22412_v55, %v22411_v52  ;;  %22726 = vmatpush3.bf16.msra.mxu1 %v24963_v48  ;;  %v25001_v52 = vld [vmem:[%s32109_s1 + $0x1128] sm:$0xff]  }
 0x206   :  { %v22414_v60 = vpop.f32.mrf.mxu0  ;;  %v22434_v61 = vpop.f32.mrf.mxu1  ;;  %22727 = vmatprep.subr.bf16.mxu1 %v24966_v53  ;;  %v25002_v55 = vld [vmem:[%s32109_s1 + $0x11e8] sm:$0xff]  }
 0x207   :  { %v16532_v63 = vadd.f32 %v22413_v58, %v27896_v22  ;;  %v22435_v0 = vadd.f32 %v22434_v61, %v22433_v56  ;;  %22706 = vmatpush3.bf16.msra.mxu0 %v24965_v51  ;;  %v24_v22 = vld [vmem:[%s32108_s0 + $0x40] sm:$0xff]  ;;  %v25003_v58 = vld [vmem:[%s32109_s1 + $0x11a8] sm:$0xff]  }
 0x208   :  { %v22415_v2 = vpop.f32.mrf.mxu0  ;;  %22707 = vmatprep.subr.bf16.mxu0 %v24968_v57  ;;  %v22436_v3 = vpop.f32.mrf.mxu1  ;;  %v4006_v24 = vrot.slane %v24_v22, %v26383_v41  ;;  %v3999_v25 = vcombine.high %v24_v22, %v24_v22  ;;  %v25004_v61 = vld [vmem:[%s32109_s1 + $0x1160] sm:$0xff]   ;;  %v25027_v22 = vld [vmem:[%s32109_s1 + $0x12f8] sm:$0xff]  }
 0x209   :  { %v27997_v5 = vadd.f32 %v22435_v0, %v16532_v63  ;;  %22728 = vmatpush3.bf16.msra.mxu1 %v24967_v54  ;;  %v25005_v63 = vld [vmem:[%s32109_s1 + $0x1120] sm:$0xff]   ;;  %v25008_v3 = vld [vmem:[%s32109_s1 + $0x1158] sm:$0xff]  }
 0x20a   :  { %22729 = vmatprep.subr.bf16.mxu1 %v24970_v62  ;;  %v22437_v7 = vpop.f32.mrf.mxu1  ;;  %v4014_v28 = vcombine.high %v4006_v24, %v4006_v24  ;;  %v28058_v29 = vrot.slane %v3999_v25, %v26383_v41  ;;  %v4022_v32 = vrot.slane %v4006_v24, %v26383_v41  ;;  %v25007_v2 = vld [vmem:[%s32109_s1 + $0x11a0] sm:$0xff]   ;;  %v25029_v25 = vld [vmem:[%s32109_s1 + $0x1270] sm:$0xff]  }
 0x20b   :  { %22708 = vmatpush3.bf16.msra.mxu0 %v24969_v59  ;;  %v25012_v7 = vld [vmem:[%s32109_s1 + $0x1150] sm:$0xff]  }
 0x20c   :  { %22709 = vmatprep.subr.bf16.mxu0 %v24972_v4  ;;  %v4036_v31 = vrot.slane %v4014_v28, %v26383_v41  ;;  %v4015_v34 = vcombine.high %v28058_v29, %v28058_v29  ;;  %v4044_v40 = vcombine.high %v4022_v32, %v4022_v32  ;;  %v25009_v4 = vld [vmem:[%s32109_s1 + $0x1118] sm:$0xff]   ;;  %v25031_v28 = vld [vmem:[%s32109_s1 + $0x12f0] sm:$0xff]  }
 0x20d   :  { %22730 = vmatpush3.bf16.msra.mxu1 %v24971_v1  ;;  %v25006_v1 = vld [vmem:[%s32109_s1 + $0x11e0] sm:$0xff]  }
 0x20e   :  { %22731 = vmatprep.subr.bf16.mxu1 %v24974_v8  ;;  %17089 = vmatprep.mubr.bf16.mxu0 %v4036_v31  ;;  %v4046_v36 = vcombine.high %v4036_v31, %v4036_v31  ;;  %v4043_v38 = vrot.slane %v4015_v34, %v26383_v41  ;;  %v25013_v8 = vld [vmem:[%s32109_s1 + $0x1110] sm:$0xff]   ;;  %v25034_v34 = vld [vmem:[%s32109_s1 + $0x1228] sm:$0xff]  }
 0x20f   :  { %22710 = vmatpush3.bf16.msra.mxu0 %v24973_v6  ;;  %v25011_v6 = vld [vmem:[%s32109_s1 + $0x1198] sm:$0xff]  }
 0x210   :  { %22711 = vmatprep.subr.bf16.mxu0 %v24976_v10  ;;  %17129 = vmatprep.mubr.bf16.mxu1 %v4046_v36  ;;  %v4047_v44 = vcombine.high %v4043_v38, %v4043_v38  ;;  %v25015_v10 = vld [vmem:[%s32109_s1 + $0x1190] sm:$0xff]  }
 0x211   :  { %22732 = vmatpush3.bf16.msra.mxu1 %v24975_v9  ;;  %v25014_v9 = vld [vmem:[%s32109_s1 + $0x11d0] sm:$0xff]  }
 0x212   :  { %22733 = vmatprep.subr.bf16.mxu1 %v24978_v12  ;;  %v25017_v12 = vld [vmem:[%s32109_s1 + $0x1108] sm:$0xff]  }
 0x213   :  { %22712 = vmatpush3.bf16.msra.mxu0 %v24977_v11  ;;  %v25016_v11 = vld [vmem:[%s32109_s1 + $0x1148] sm:$0xff]  }
 0x214   :  { %22713 = vmatprep.subr.bf16.mxu0 %v24980_v14  ;;  %v25019_v14 = vld [vmem:[%s32109_s1 + $0x1188] sm:$0xff]  }
 0x215   :  { %22734 = vmatpush3.bf16.msra.mxu1 %v24979_v13  ;;  %v25018_v13 = vld [vmem:[%s32109_s1 + $0x11c8] sm:$0xff]  }
 0x216   :  { %22735 = vmatprep.subr.bf16.mxu1 %v24982_v16  ;;  %v25021_v16 = vld [vmem:[%s32109_s1 + $0x1100] sm:$0xff]  }
 0x217   :  { %22714 = vmatpush3.bf16.msra.mxu0 %v24981_v15  ;;  %v25020_v15 = vld [vmem:[%s32109_s1 + $0x1140] sm:$0xff]  }
 0x218   :  { %22715 = vmatprep.subr.bf16.mxu0 %v24984_v18  ;;  %v25024_v18 = vld [vmem:[%s32109_s1 + $0x1180] sm:$0xff]  }
 0x219   :  { %22736 = vmatpush3.bf16.msra.mxu1 %v24983_v17  ;;  %v25022_v17 = vld [vmem:[%s32109_s1 + $0x11c0] sm:$0xff]  }
 0x21a   :  { %22737 = vmatprep.subr.bf16.mxu1 %v24986_v20  ;;  %v25025_v20 = vld [vmem:[%s32109_s1 + $0x1278] sm:$0xff]  }
 0x21b   :  { %22716 = vmatpush3.bf16.msra.mxu0 %v24985_v19  ;;  %v4029_v19 = vrot.slane %v28058_v29, %v26383_v41  ;;  %v25032_v29 = vld [vmem:[%s32109_s1 + $0x12b0] sm:$0xff]  }
 0x21c   :  { %22717 = vmatprep.subr.bf16.mxu0 %v24988_v23  ;;  %v25028_v23 = vld [vmem:[%s32109_s1 + $0x12b8] sm:$0xff]  }
 0x21d   :  { %22738 = vmatpush3.bf16.msra.mxu1 %v24987_v21  ;;  %v25026_v21 = vld [vmem:[%s32109_s1 + $0x1238] sm:$0xff]   ;;  %v4045_v24 = vcombine.high %v4029_v19, %v4029_v19 }
 0x21e   :  { %22739 = vmatprep.subr.bf16.mxu1 %v24990_v27 }
 0x21f   :  { %22718 = vmatpush3.bf16.msra.mxu0 %v24989_v26  ;;  %v25030_v26 = vld [vmem:[%s32109_s1 + $0x1230] sm:$0xff]  }
 0x220   :  { %22747 = vmatprep.subr.bf16.mxu0 %v24992_v33 }
 0x221   :  { %22740 = vmatpush3.bf16.msra.mxu1 %v24991_v30 }
 0x222   :  { %v22455_v45 = vpop.f32.mrf.mxu0  ;;  %17090 = vmatmul.mubr.bf16.vlgmr.msra.gmra.mxu0 %v4022_v32  ;;  %22769 = vmatprep.subr.bf16.mxu1 %v24994_v37  ;;  %v25033_v32 = vld [vmem:[%s32109_s1 + $0x1268] sm:$0xff]  }
 0x223   :  { %22748 = vmatpush3.bf16.msra.mxu0 %v24993_v35  ;;  %17169 = vmatprep.mubr.bf16.mxu0 %v4043_v38  ;;  %v25035_v37 = vld [vmem:[%s32109_s1 + $0x12e8] sm:$0xff]  }
 0x224   :  { %v22456_v48 = vpop.f32.mrf.mxu0  ;;  %v22477_v49 = vpop.f32.mrf.mxu1  ;;  %17130 = vmatmul.mubr.bf16.vlgmr.msra.gmra.mxu1 %v4044_v40  ;;  %22749 = vmatprep.subr.bf16.mxu0 %v24996_v42  ;;  %v25036_v40 = vld [vmem:[%s32109_s1 + $0x12a8] sm:$0xff]  }
 0x225   :  { %v22457_v51 = vadd.f32 %v22456_v48, %v22455_v45  ;;  %22770 = vmatpush3.bf16.msra.mxu1 %v24995_v39  ;;  %17209 = vmatprep.mubr.bf16.mxu1 %v4047_v44  ;;  %v25037_v44 = vld [vmem:[%s32109_s1 + $0x1260] sm:$0xff]  }
 0x226   :  { %v22458_v53 = vpop.f32.mrf.mxu0  ;;  %v22478_v54 = vpop.f32.mrf.mxu1  ;;  %22771 = vmatprep.subr.bf16.mxu1 %v24998_v46  ;;  %v25038_v46 = vld [vmem:[%s32109_s1 + $0x1220] sm:$0xff]  }
 0x227   :  { %v16612_v56 = vadd.f32 %v22457_v51, %v27997_v5  ;;  %v22479_v57 = vadd.f32 %v22478_v54, %v22477_v49  ;;  %22750 = vmatpush3.bf16.msra.mxu0 %v24997_v43  ;;  %v25010_v5 = vld [vmem:[%s32109_s1 + $0x11d8] sm:$0xff]   ;;  %v25039_v48 = vld [vmem:[%s32109_s1 + $0x12e0] sm:$0xff]   ;;  %v25045_v54 = vld [vmem:[%s32109_s1 + $0x1250] sm:$0xff]  }
 0x228   :  { %v22459_v59 = vpop.f32.mrf.mxu0  ;;  %22751 = vmatprep.subr.bf16.mxu0 %v25000_v50  ;;  %v22480_v60 = vpop.f32.mrf.mxu1  ;;  %v25040_v49 = vld [vmem:[%s32109_s1 + $0x12a0] sm:$0xff]   ;;  %v25041_v50 = vld [vmem:[%s32109_s1 + $0x1258] sm:$0xff]  }
 0x229   :  { %v28108_v62 = vadd.f32 %v22479_v57, %v16612_v56  ;;  %22772 = vmatpush3.bf16.msra.mxu1 %v24999_v47  ;;  %v25042_v51 = vld [vmem:[%s32109_s1 + $0x1218] sm:$0xff]   ;;  %v25047_v56 = vld [vmem:[%s32109_s1 + $0x12d0] sm:$0xff]   ;;  %v25050_v59 = vld [vmem:[%s32109_s1 + $0x1208] sm:$0xff]  }
 0x22a   :  { %22773 = vmatprep.subr.bf16.mxu1 %v25002_v55  ;;  %v22481_v0 = vpop.f32.mrf.mxu1  ;;  %v25044_v53 = vld [vmem:[%s32109_s1 + $0x1298] sm:$0xff]   ;;  %v25046_v55 = vld [vmem:[%s32109_s1 + $0x1210] sm:$0xff]   ;;  %v25051_v60 = vld [vmem:[%s32109_s1 + $0x12c8] sm:$0xff]  }
 0x22b   :  { %22752 = vmatpush3.bf16.msra.mxu0 %v25001_v52  ;;  %v25043_v52 = vld [vmem:[%s32109_s1 + $0x12d8] sm:$0xff]   ;;  %v25048_v57 = vld [vmem:[%s32109_s1 + $0x1290] sm:$0xff]  }
 0x22c   :  { %22753 = vmatprep.subr.bf16.mxu0 %v25004_v61  ;;  %v25052_v61 = vld [vmem:[%s32109_s1 + $0x1288] sm:$0xff]  }
 0x22d   :  { %22774 = vmatpush3.bf16.msra.mxu1 %v25003_v58  ;;  %v25049_v58 = vld [vmem:[%s32109_s1 + $0x1248] sm:$0xff]  }
 0x22e   :  { %22775 = vmatprep.subr.bf16.mxu1 %v25006_v1 }
 0x22f   :  { %22754 = vmatpush3.bf16.msra.mxu0 %v25005_v63  ;;  %v25053_v63 = vld [vmem:[%s32109_s1 + $0x1240] sm:$0xff]  }
 0x230   :  { %22755 = vmatprep.subr.bf16.mxu0 %v25008_v3  ;;  %v25055_v3 = vld [vmem:[%s32109_s1 + $0x12c0] sm:$0xff]  }
 0x231   :  { %22776 = vmatpush3.bf16.msra.mxu1 %v25007_v2  ;;  %v25054_v2 = vld [vmem:[%s32109_s1 + $0x1200] sm:$0xff]  }
 0x232   :  { %22777 = vmatprep.subr.bf16.mxu1 %v25010_v5 }
 0x233   :  { %22756 = vmatpush3.bf16.msra.mxu0 %v25009_v4 }
 0x234   :  { %22757 = vmatprep.subr.bf16.mxu0 %v25012_v7 }
 0x235   :  { %22778 = vmatpush3.bf16.msra.mxu1 %v25011_v6  ;;  %v25056_v6 = vld [vmem:[%s32109_s1 + $0x1280] sm:$0xff]  }
 0x236   :  { %22779 = vmatprep.subr.bf16.mxu1 %v25014_v9  ;;  %v25057_v9 = vld [vmem:[%s32109_s1 + $0x1378] sm:$0xff]  }
 0x237   :  { %22758 = vmatpush3.bf16.msra.mxu0 %v25013_v8 }
 0x238   :  { %22759 = vmatprep.subr.bf16.mxu0 %v25016_v11  ;;  %v25058_v11 = vld [vmem:[%s32109_s1 + $0x1338] sm:$0xff]  }
 0x239   :  { %22780 = vmatpush3.bf16.msra.mxu1 %v25015_v10 }
 0x23a   :  { %22781 = vmatprep.subr.bf16.mxu1 %v25018_v13  ;;  %v25059_v13 = vld [vmem:[%s32109_s1 + $0x13f8] sm:$0xff]  }
 0x23b   :  { %22760 = vmatpush3.bf16.msra.mxu0 %v25017_v12 }
 0x23c   :  { %22761 = vmatprep.subr.bf16.mxu0 %v25020_v15  ;;  %v25060_v15 = vld [vmem:[%s32109_s1 + $0x13b8] sm:$0xff]  }
 0x23d   :  { %22782 = vmatpush3.bf16.msra.mxu1 %v25019_v14 }
 0x23e   :  { %22783 = vmatprep.subr.bf16.mxu1 %v25022_v17  ;;  %v25061_v17 = vld [vmem:[%s32109_s1 + $0x1370] sm:$0xff]  }
 0x23f   :  { %22762 = vmatpush3.bf16.msra.mxu0 %v25021_v16 }
 0x240   :  { %22791 = vmatprep.subr.bf16.mxu0 %v25025_v20 }
 0x241   :  { %22784 = vmatpush3.bf16.msra.mxu1 %v25024_v18  ;;  %v25062_v18 = vld [vmem:[%s32109_s1 + $0x1330] sm:$0xff]  }
 0x242   :  { %v22499_v27 = vpop.f32.mrf.mxu0  ;;  %17170 = vmatmul.mubr.bf16.vlgmr.msra.gmra.mxu0 %v4029_v19  ;;  %22813 = vmatprep.subr.bf16.mxu1 %v25027_v22  ;;  %v25064_v22 = vld [vmem:[%s32109_s1 + $0x13b0] sm:$0xff]  }
 0x243   :  { %22792 = vmatpush3.bf16.msra.mxu0 %v25026_v21  ;;  %v25063_v21 = vld [vmem:[%s32109_s1 + $0x13f0] sm:$0xff]  }
 0x244   :  { %v22500_v30 = vpop.f32.mrf.mxu0  ;;  %v22521_v31 = vpop.f32.mrf.mxu1  ;;  %17210 = vmatmul.mubr.bf16.vlgmr.msra.gmra.mxu1 %v4045_v24  ;;  %22793 = vmatprep.subr.bf16.mxu0 %v25029_v25  ;;  %v25065_v25 = vld [vmem:[%s32109_s1 + $0x1368] sm:$0xff]  }
 0x245   :  { %v22501_v33 = vadd.f32 %v22500_v30, %v22499_v27  ;;  %22814 = vmatpush3.bf16.msra.mxu1 %v25028_v23  ;;  %v25066_v27 = vld [vmem:[%s32109_s1 + $0x1328] sm:$0xff]  }
 0x246   :  { %v22502_v35 = vpop.f32.mrf.mxu0  ;;  %v22522_v36 = vpop.f32.mrf.mxu1  ;;  %22815 = vmatprep.subr.bf16.mxu1 %v25031_v28  ;;  %v25067_v30 = vld [vmem:[%s32109_s1 + $0x13e8] sm:$0xff]  }
 0x247   :  { %v16692_v38 = vadd.f32 %v22501_v33, %v28108_v62  ;;  %v22523_v39 = vadd.f32 %v22522_v36, %v22521_v31  ;;  %22794 = vmatpush3.bf16.msra.mxu0 %v25030_v26  ;;  %v25_v62 = vld [vmem:[%s32108_s0 + $0x48] sm:$0xff]  ;;  %v25069_v36 = vld [vmem:[%s32109_s1 + $0x1360] sm:$0xff]  }
 0x248   :  { %v22503_v42 = vpop.f32.mrf.mxu0  ;;  %22795 = vmatprep.subr.bf16.mxu0 %v25033_v32  ;;  %v22524_v43 = vpop.f32.mrf.mxu1  ;;  %v4055_v0 = vrot.slane %v25_v62, %v26383_v41  ;;  %v4048_v1 = vcombine.high %v25_v62, %v25_v62  ;;  %v25068_v33 = vld [vmem:[%s32109_s1 + $0x13a8] sm:$0xff]   ;;  %v25092_v62 = vld [vmem:[%s32109_s1 + $0x14f8] sm:$0xff]  }
 0x249   :  { %v28209_v45 = vadd.f32 %v22523_v39, %v16692_v38  ;;  %22816 = vmatpush3.bf16.msra.mxu1 %v25032_v29  ;;  %v25070_v38 = vld [vmem:[%s32109_s1 + $0x1320] sm:$0xff]   ;;  %v25073_v43 = vld [vmem:[%s32109_s1 + $0x1358] sm:$0xff]  }
 0x24a   :  { %22817 = vmatprep.subr.bf16.mxu1 %v25035_v37  ;;  %v22525_v47 = vpop.f32.mrf.mxu1  ;;  %v4063_v4 = vcombine.high %v4055_v0, %v4055_v0  ;;  %v28270_v5 = vrot.slane %v4048_v1, %v26383_v41  ;;  %v4071_v8 = vrot.slane %v4055_v0, %v26383_v41  ;;  %v25072_v42 = vld [vmem:[%s32109_s1 + $0x13a0] sm:$0xff]   ;;  %v25094_v1 = vld [vmem:[%s32109_s1 + $0x1470] sm:$0xff]  }
 0x24b   :  { %22796 = vmatpush3.bf16.msra.mxu0 %v25034_v34  ;;  %v25077_v47 = vld [vmem:[%s32109_s1 + $0x1350] sm:$0xff]  }
 0x24c   :  { %22797 = vmatprep.subr.bf16.mxu0 %v25037_v44  ;;  %v4085_v7 = vrot.slane %v4063_v4, %v26383_v41  ;;  %v4064_v10 = vcombine.high %v28270_v5, %v28270_v5  ;;  %v4093_v16 = vcombine.high %v4071_v8, %v4071_v8  ;;  %v25074_v44 = vld [vmem:[%s32109_s1 + $0x1318] sm:$0xff]   ;;  %v25096_v4 = vld [vmem:[%s32109_s1 + $0x14f0] sm:$0xff]  }
 0x24d   :  { %22818 = vmatpush3.bf16.msra.mxu1 %v25036_v40  ;;  %v25071_v40 = vld [vmem:[%s32109_s1 + $0x13e0] sm:$0xff]  }
 0x24e   :  { %22819 = vmatprep.subr.bf16.mxu1 %v25039_v48  ;;  %17249 = vmatprep.mubr.bf16.mxu0 %v4085_v7  ;;  %v4095_v12 = vcombine.high %v4085_v7, %v4085_v7  ;;  %v4092_v14 = vrot.slane %v4064_v10, %v26383_v41  ;;  %v25078_v48 = vld [vmem:[%s32109_s1 + $0x1310] sm:$0xff]   ;;  %v25099_v10 = vld [vmem:[%s32109_s1 + $0x1428] sm:$0xff]  }
 0x24f   :  { %22798 = vmatpush3.bf16.msra.mxu0 %v25038_v46  ;;  %v25076_v46 = vld [vmem:[%s32109_s1 + $0x1398] sm:$0xff]  }
 0x250   :  { %22799 = vmatprep.subr.bf16.mxu0 %v25041_v50  ;;  %17289 = vmatprep.mubr.bf16.mxu1 %v4095_v12  ;;  %v4096_v19 = vcombine.high %v4092_v14, %v4092_v14  ;;  %v25080_v50 = vld [vmem:[%s32109_s1 + $0x1390] sm:$0xff]  }
 0x251   :  { %22820 = vmatpush3.bf16.msra.mxu1 %v25040_v49  ;;  %v25079_v49 = vld [vmem:[%s32109_s1 + $0x13d0] sm:$0xff]  }
 0x252   :  { %22821 = vmatprep.subr.bf16.mxu1 %v25043_v52  ;;  %v25082_v52 = vld [vmem:[%s32109_s1 + $0x1308] sm:$0xff]  }
 0x253   :  { %22800 = vmatpush3.bf16.msra.mxu0 %v25042_v51  ;;  %v25081_v51 = vld [vmem:[%s32109_s1 + $0x1348] sm:$0xff]  }
 0x254   :  { %22801 = vmatprep.subr.bf16.mxu0 %v25045_v54  ;;  %v25084_v54 = vld [vmem:[%s32109_s1 + $0x1388] sm:$0xff]  }
 0x255   :  { %22822 = vmatpush3.bf16.msra.mxu1 %v25044_v53  ;;  %v25083_v53 = vld [vmem:[%s32109_s1 + $0x13c8] sm:$0xff]  }
 0x256   :  { %22823 = vmatprep.subr.bf16.mxu1 %v25047_v56  ;;  %v25086_v56 = vld [vmem:[%s32109_s1 + $0x1300] sm:$0xff]  }
 0x257   :  { %22802 = vmatpush3.bf16.msra.mxu0 %v25046_v55  ;;  %v25085_v55 = vld [vmem:[%s32109_s1 + $0x1340] sm:$0xff]  }
 0x258   :  { %22803 = vmatprep.subr.bf16.mxu0 %v25049_v58  ;;  %v25089_v58 = vld [vmem:[%s32109_s1 + $0x1380] sm:$0xff]  }
 0x259   :  { %22824 = vmatpush3.bf16.msra.mxu1 %v25048_v57  ;;  %v25087_v57 = vld [vmem:[%s32109_s1 + $0x13c0] sm:$0xff]  }
 0x25a   :  { %22825 = vmatprep.subr.bf16.mxu1 %v25051_v60  ;;  %v25090_v60 = vld [vmem:[%s32109_s1 + $0x1478] sm:$0xff]  }
 0x25b   :  { %22804 = vmatpush3.bf16.msra.mxu0 %v25050_v59  ;;  %v4078_v59 = vrot.slane %v28270_v5, %v26383_v41  ;;  %v25097_v5 = vld [vmem:[%s32109_s1 + $0x14b0] sm:$0xff]  }
 0x25c   :  { %22805 = vmatprep.subr.bf16.mxu0 %v25053_v63  ;;  %v25093_v63 = vld [vmem:[%s32109_s1 + $0x14b8] sm:$0xff]  }
 0x25d   :  { %22826 = vmatpush3.bf16.msra.mxu1 %v25052_v61  ;;  %v25091_v61 = vld [vmem:[%s32109_s1 + $0x1438] sm:$0xff]   ;;  %v4094_v0 = vcombine.high %v4078_v59, %v4078_v59 }
 0x25e   :  { %22827 = vmatprep.subr.bf16.mxu1 %v25055_v3 }
 0x25f   :  { %22806 = vmatpush3.bf16.msra.mxu0 %v25054_v2  ;;  %v25095_v2 = vld [vmem:[%s32109_s1 + $0x1430] sm:$0xff]  }
 0x260   :  { %22835 = vmatprep.subr.bf16.mxu0 %v25057_v9 }
 0x261   :  { %22828 = vmatpush3.bf16.msra.mxu1 %v25056_v6 }
 0x262   :  { %v22543_v20 = vpop.f32.mrf.mxu0  ;;  %17250 = vmatmul.mubr.bf16.vlgmr.msra.gmra.mxu0 %v4071_v8  ;;  %22857 = vmatprep.subr.bf16.mxu1 %v25059_v13  ;;  %v25098_v8 = vld [vmem:[%s32109_s1 + $0x1468] sm:$0xff]  }
 0x263   :  { %22836 = vmatpush3.bf16.msra.mxu0 %v25058_v11  ;;  %17329 = vmatprep.mubr.bf16.mxu0 %v4092_v14  ;;  %v25100_v13 = vld [vmem:[%s32109_s1 + $0x14e8] sm:$0xff]  }
 0x264   :  { %v22544_v23 = vpop.f32.mrf.mxu0  ;;  %v22565_v24 = vpop.f32.mrf.mxu1  ;;  %17290 = vmatmul.mubr.bf16.vlgmr.msra.gmra.mxu1 %v4093_v16  ;;  %22837 = vmatprep.subr.bf16.mxu0 %v25061_v17  ;;  %v25101_v16 = vld [vmem:[%s32109_s1 + $0x14a8] sm:$0xff]  }
 0x265   :  { %v22545_v26 = vadd.f32 %v22544_v23, %v22543_v20  ;;  %22858 = vmatpush3.bf16.msra.mxu1 %v25060_v15  ;;  %17369 = vmatprep.mubr.bf16.mxu1 %v4096_v19  ;;  %v25102_v19 = vld [vmem:[%s32109_s1 + $0x1460] sm:$0xff]  }
 0x266   :  { %v22546_v28 = vpop.f32.mrf.mxu0  ;;  %v22566_v29 = vpop.f32.mrf.mxu1  ;;  %22859 = vmatprep.subr.bf16.mxu1 %v25063_v21  ;;  %v25103_v21 = vld [vmem:[%s32109_s1 + $0x1420] sm:$0xff]  }
 0x267   :  { %v16772_v31 = vadd.f32 %v22545_v26, %v28209_v45  ;;  %v22567_v32 = vadd.f32 %v22566_v29, %v22565_v24  ;;  %22838 = vmatpush3.bf16.msra.mxu0 %v25062_v18  ;;  %v25075_v45 = vld [vmem:[%s32109_s1 + $0x13d8] sm:$0xff]   ;;  %v25104_v23 = vld [vmem:[%s32109_s1 + $0x14e0] sm:$0xff]   ;;  %v25110_v29 = vld [vmem:[%s32109_s1 + $0x1450] sm:$0xff]  }
 0x268   :  { %v22547_v34 = vpop.f32.mrf.mxu0  ;;  %22839 = vmatprep.subr.bf16.mxu0 %v25065_v25  ;;  %v22568_v35 = vpop.f32.mrf.mxu1  ;;  %v25105_v24 = vld [vmem:[%s32109_s1 + $0x14a0] sm:$0xff]   ;;  %v25106_v25 = vld [vmem:[%s32109_s1 + $0x1458] sm:$0xff]  }
 0x269   :  { %v28320_v37 = vadd.f32 %v22567_v32, %v16772_v31  ;;  %22860 = vmatpush3.bf16.msra.mxu1 %v25064_v22  ;;  %v25107_v26 = vld [vmem:[%s32109_s1 + $0x1418] sm:$0xff]   ;;  %v25112_v31 = vld [vmem:[%s32109_s1 + $0x14d0] sm:$0xff]   ;;  %v25115_v34 = vld [vmem:[%s32109_s1 + $0x1408] sm:$0xff]  }
 0x26a   :  { %22861 = vmatprep.subr.bf16.mxu1 %v25067_v30  ;;  %v22569_v39 = vpop.f32.mrf.mxu1  ;;  %v25109_v28 = vld [vmem:[%s32109_s1 + $0x1498] sm:$0xff]   ;;  %v25111_v30 = vld [vmem:[%s32109_s1 + $0x1410] sm:$0xff]   ;;  %v25116_v35 = vld [vmem:[%s32109_s1 + $0x14c8] sm:$0xff]  }
 0x26b   :  { %22840 = vmatpush3.bf16.msra.mxu0 %v25066_v27  ;;  %v25108_v27 = vld [vmem:[%s32109_s1 + $0x14d8] sm:$0xff]   ;;  %v25113_v32 = vld [vmem:[%s32109_s1 + $0x1490] sm:$0xff]  }
 0x26c   :  { %22841 = vmatprep.subr.bf16.mxu0 %v25069_v36  ;;  %v25117_v36 = vld [vmem:[%s32109_s1 + $0x1488] sm:$0xff]  }
 0x26d   :  { %22862 = vmatpush3.bf16.msra.mxu1 %v25068_v33  ;;  %v25114_v33 = vld [vmem:[%s32109_s1 + $0x1448] sm:$0xff]  }
 0x26e   :  { %22863 = vmatprep.subr.bf16.mxu1 %v25071_v40 }
 0x26f   :  { %22842 = vmatpush3.bf16.msra.mxu0 %v25070_v38  ;;  %v25118_v38 = vld [vmem:[%s32109_s1 + $0x1440] sm:$0xff]  }
 0x270   :  { %22843 = vmatprep.subr.bf16.mxu0 %v25073_v43  ;;  %v25120_v43 = vld [vmem:[%s32109_s1 + $0x14c0] sm:$0xff]  }
 0x271   :  { %22864 = vmatpush3.bf16.msra.mxu1 %v25072_v42  ;;  %v25119_v42 = vld [vmem:[%s32109_s1 + $0x1400] sm:$0xff]  }
 0x272   :  { %22865 = vmatprep.subr.bf16.mxu1 %v25075_v45 }
 0x273   :  { %22844 = vmatpush3.bf16.msra.mxu0 %v25074_v44 }
 0x274   :  { %22845 = vmatprep.subr.bf16.mxu0 %v25077_v47 }
 0x275   :  { %22866 = vmatpush3.bf16.msra.mxu1 %v25076_v46  ;;  %v25121_v46 = vld [vmem:[%s32109_s1 + $0x1480] sm:$0xff]  }
 0x276   :  { %22867 = vmatprep.subr.bf16.mxu1 %v25079_v49  ;;  %v25122_v49 = vld [vmem:[%s32109_s1 + $0x1578] sm:$0xff]  }
 0x277   :  { %22846 = vmatpush3.bf16.msra.mxu0 %v25078_v48 }
 0x278   :  { %22847 = vmatprep.subr.bf16.mxu0 %v25081_v51  ;;  %v25123_v51 = vld [vmem:[%s32109_s1 + $0x1538] sm:$0xff]  }
 0x279   :  { %22868 = vmatpush3.bf16.msra.mxu1 %v25080_v50 }
 0x27a   :  { %22869 = vmatprep.subr.bf16.mxu1 %v25083_v53  ;;  %v25124_v53 = vld [vmem:[%s32109_s1 + $0x15f8] sm:$0xff]  }
 0x27b   :  { %22848 = vmatpush3.bf16.msra.mxu0 %v25082_v52 }
 0x27c   :  { %22849 = vmatprep.subr.bf16.mxu0 %v25085_v55  ;;  %v25125_v55 = vld [vmem:[%s32109_s1 + $0x15b8] sm:$0xff]  }
 0x27d   :  { %22870 = vmatpush3.bf16.msra.mxu1 %v25084_v54 }
 0x27e   :  { %22871 = vmatprep.subr.bf16.mxu1 %v25087_v57  ;;  %v25126_v57 = vld [vmem:[%s32109_s1 + $0x1570] sm:$0xff]  }
 0x27f   :  { %22850 = vmatpush3.bf16.msra.mxu0 %v25086_v56 }
 0x280   :  { %22879 = vmatprep.subr.bf16.mxu0 %v25090_v60 }
 0x281   :  { %22872 = vmatpush3.bf16.msra.mxu1 %v25089_v58  ;;  %v25127_v58 = vld [vmem:[%s32109_s1 + $0x1530] sm:$0xff]  }
 0x282   :  { %v22587_v3 = vpop.f32.mrf.mxu0  ;;  %17330 = vmatmul.mubr.bf16.vlgmr.msra.gmra.mxu0 %v4078_v59  ;;  %22901 = vmatprep.subr.bf16.mxu1 %v25092_v62  ;;  %v25129_v62 = vld [vmem:[%s32109_s1 + $0x15b0] sm:$0xff]  }
 0x283   :  { %22880 = vmatpush3.bf16.msra.mxu0 %v25091_v61  ;;  %v25128_v61 = vld [vmem:[%s32109_s1 + $0x15f0] sm:$0xff]  }
 0x284   :  { %v22588_v6 = vpop.f32.mrf.mxu0  ;;  %v22609_v7 = vpop.f32.mrf.mxu1  ;;  %17370 = vmatmul.mubr.bf16.vlgmr.msra.gmra.mxu1 %v4094_v0  ;;  %22881 = vmatprep.subr.bf16.mxu0 %v25094_v1  ;;  %v25130_v1 = vld [vmem:[%s32109_s1 + $0x1568] sm:$0xff]  }
 0x285   :  { %v22589_v9 = vadd.f32 %v22588_v6, %v22587_v3  ;;  %22902 = vmatpush3.bf16.msra.mxu1 %v25093_v63  ;;  %v25131_v3 = vld [vmem:[%s32109_s1 + $0x1528] sm:$0xff]  }
 0x286   :  { %v22590_v11 = vpop.f32.mrf.mxu0  ;;  %v22610_v12 = vpop.f32.mrf.mxu1  ;;  %22903 = vmatprep.subr.bf16.mxu1 %v25096_v4  ;;  %v25132_v6 = vld [vmem:[%s32109_s1 + $0x15e8] sm:$0xff]  }
 0x287   :  { %v16852_v14 = vadd.f32 %v22589_v9, %v28320_v37  ;;  %v22611_v15 = vadd.f32 %v22610_v12, %v22609_v7  ;;  %22882 = vmatpush3.bf16.msra.mxu0 %v25095_v2  ;;  %v26_v37 = vld [vmem:[%s32108_s0 + $0x50] sm:$0xff]  ;;  %v25133_v9 = vld [vmem:[%s32109_s1 + $0x15a8] sm:$0xff]   ;;  %v25134_v12 = vld [vmem:[%s32109_s1 + $0x1560] sm:$0xff]  }
 0x288   :  { %v22591_v17 = vpop.f32.mrf.mxu0  ;;  %22883 = vmatprep.subr.bf16.mxu0 %v25098_v8  ;;  %v22612_v18 = vpop.f32.mrf.mxu1  ;;  %v4104_v39 = vrot.slane %v26_v37, %v26383_v41  ;;  %v4097_v40 = vcombine.high %v26_v37, %v26_v37  ;;  %v25157_v37 = vld [vmem:[%s32109_s1 + $0x16f8] sm:$0xff]  }
 0x289   :  { %v28421_v20 = vadd.f32 %v22611_v15, %v16852_v14  ;;  %22904 = vmatpush3.bf16.msra.mxu1 %v25097_v5  ;;  %v25135_v14 = vld [vmem:[%s32109_s1 + $0x1520] sm:$0xff]   ;;  %v25138_v18 = vld [vmem:[%s32109_s1 + $0x1558] sm:$0xff]  }
 0x28a   :  { %22905 = vmatprep.subr.bf16.mxu1 %v25100_v13  ;;  %v22613_v22 = vpop.f32.mrf.mxu1  ;;  %v4112_v44 = vcombine.high %v4104_v39, %v4104_v39  ;;  %v28482_v45 = vrot.slane %v4097_v40, %v26383_v41  ;;  %v4120_v48 = vrot.slane %v4104_v39, %v26383_v41  ;;  %v25137_v17 = vld [vmem:[%s32109_s1 + $0x15a0] sm:$0xff]   ;;  %v25159_v40 = vld [vmem:[%s32109_s1 + $0x1670] sm:$0xff]  }
 0x28b   :  { %22884 = vmatpush3.bf16.msra.mxu0 %v25099_v10  ;;  %v25142_v22 = vld [vmem:[%s32109_s1 + $0x1550] sm:$0xff]  }
 0x28c   :  { %22885 = vmatprep.subr.bf16.mxu0 %v25102_v19  ;;  %v4134_v47 = vrot.slane %v4112_v44, %v26383_v41  ;;  %v4113_v50 = vcombine.high %v28482_v45, %v28482_v45  ;;  %v4142_v56 = vcombine.high %v4120_v48, %v4120_v48  ;;  %v25139_v19 = vld [vmem:[%s32109_s1 + $0x1518] sm:$0xff]   ;;  %v25161_v44 = vld [vmem:[%s32109_s1 + $0x16f0] sm:$0xff]  }
 0x28d   :  { %22906 = vmatpush3.bf16.msra.mxu1 %v25101_v16  ;;  %v25136_v16 = vld [vmem:[%s32109_s1 + $0x15e0] sm:$0xff]  }
 0x28e   :  { %22907 = vmatprep.subr.bf16.mxu1 %v25104_v23  ;;  %17409 = vmatprep.mubr.bf16.mxu0 %v4134_v47  ;;  %v4144_v52 = vcombine.high %v4134_v47, %v4134_v47  ;;  %v4141_v54 = vrot.slane %v4113_v50, %v26383_v41  ;;  %v25143_v23 = vld [vmem:[%s32109_s1 + $0x1510] sm:$0xff]   ;;  %v25164_v50 = vld [vmem:[%s32109_s1 + $0x1628] sm:$0xff]  }
 0x28f   :  { %22886 = vmatpush3.bf16.msra.mxu0 %v25103_v21  ;;  %v25141_v21 = vld [vmem:[%s32109_s1 + $0x1598] sm:$0xff]  }
 0x290   :  { %22887 = vmatprep.subr.bf16.mxu0 %v25106_v25  ;;  %17449 = vmatprep.mubr.bf16.mxu1 %v4144_v52  ;;  %v4145_v59 = vcombine.high %v4141_v54, %v4141_v54  ;;  %v25145_v25 = vld [vmem:[%s32109_s1 + $0x1590] sm:$0xff]  }
 0x291   :  { %22908 = vmatpush3.bf16.msra.mxu1 %v25105_v24  ;;  %v25144_v24 = vld [vmem:[%s32109_s1 + $0x15d0] sm:$0xff]  }
 0x292   :  { %22909 = vmatprep.subr.bf16.mxu1 %v25108_v27  ;;  %v25147_v27 = vld [vmem:[%s32109_s1 + $0x1508] sm:$0xff]  }
 0x293   :  { %22888 = vmatpush3.bf16.msra.mxu0 %v25107_v26  ;;  %v25146_v26 = vld [vmem:[%s32109_s1 + $0x1548] sm:$0xff]  }
 0x294   :  { %22889 = vmatprep.subr.bf16.mxu0 %v25110_v29  ;;  %v25149_v29 = vld [vmem:[%s32109_s1 + $0x1588] sm:$0xff]  }
 0x295   :  { %22910 = vmatpush3.bf16.msra.mxu1 %v25109_v28  ;;  %v25148_v28 = vld [vmem:[%s32109_s1 + $0x15c8] sm:$0xff]  }
 0x296   :  { %22911 = vmatprep.subr.bf16.mxu1 %v25112_v31  ;;  %v25151_v31 = vld [vmem:[%s32109_s1 + $0x1500] sm:$0xff]  }
 0x297   :  { %22890 = vmatpush3.bf16.msra.mxu0 %v25111_v30  ;;  %v25150_v30 = vld [vmem:[%s32109_s1 + $0x1540] sm:$0xff]  }
 0x298   :  { %22891 = vmatprep.subr.bf16.mxu0 %v25114_v33  ;;  %v25154_v33 = vld [vmem:[%s32109_s1 + $0x1580] sm:$0xff]  }
 0x299   :  { %22912 = vmatpush3.bf16.msra.mxu1 %v25113_v32  ;;  %v25152_v32 = vld [vmem:[%s32109_s1 + $0x15c0] sm:$0xff]  }
 0x29a   :  { %22913 = vmatprep.subr.bf16.mxu1 %v25116_v35  ;;  %v25155_v35 = vld [vmem:[%s32109_s1 + $0x1678] sm:$0xff]  }
 0x29b   :  { %22892 = vmatpush3.bf16.msra.mxu0 %v25115_v34  ;;  %v4127_v34 = vrot.slane %v28482_v45, %v26383_v41  ;;  %v25162_v45 = vld [vmem:[%s32109_s1 + $0x16b0] sm:$0xff]  }
 0x29c   :  { %22893 = vmatprep.subr.bf16.mxu0 %v25118_v38  ;;  %v25158_v38 = vld [vmem:[%s32109_s1 + $0x16b8] sm:$0xff]  }
 0x29d   :  { %22914 = vmatpush3.bf16.msra.mxu1 %v25117_v36  ;;  %v25156_v36 = vld [vmem:[%s32109_s1 + $0x1638] sm:$0xff]   ;;  %v4143_v39 = vcombine.high %v4127_v34, %v4127_v34 }
 0x29e   :  { %22915 = vmatprep.subr.bf16.mxu1 %v25120_v43 }
 0x29f   :  { %22894 = vmatpush3.bf16.msra.mxu0 %v25119_v42  ;;  %v25160_v42 = vld [vmem:[%s32109_s1 + $0x1630] sm:$0xff]  }
 0x2a0   :  { %22923 = vmatprep.subr.bf16.mxu0 %v25122_v49 }
 0x2a1   :  { %22916 = vmatpush3.bf16.msra.mxu1 %v25121_v46 }
 0x2a2   :  { %v22631_v60 = vpop.f32.mrf.mxu0  ;;  %17410 = vmatmul.mubr.bf16.vlgmr.msra.gmra.mxu0 %v4120_v48  ;;  %22945 = vmatprep.subr.bf16.mxu1 %v25124_v53  ;;  %v25163_v48 = vld [vmem:[%s32109_s1 + $0x1668] sm:$0xff]  }
 0x2a3   :  { %22924 = vmatpush3.bf16.msra.mxu0 %v25123_v51  ;;  %17489 = vmatprep.mubr.bf16.mxu0 %v4141_v54  ;;  %v25165_v53 = vld [vmem:[%s32109_s1 + $0x16e8] sm:$0xff]  }
 0x2a4   :  { %v22632_v63 = vpop.f32.mrf.mxu0  ;;  %v22653_v0 = vpop.f32.mrf.mxu1  ;;  %17450 = vmatmul.mubr.bf16.vlgmr.msra.gmra.mxu1 %v4142_v56  ;;  %22925 = vmatprep.subr.bf16.mxu0 %v25126_v57  ;;  %v25166_v56 = vld [vmem:[%s32109_s1 + $0x16a8] sm:$0xff]  }
 0x2a5   :  { %v22633_v2 = vadd.f32 %v22632_v63, %v22631_v60  ;;  %22946 = vmatpush3.bf16.msra.mxu1 %v25125_v55  ;;  %17529 = vmatprep.mubr.bf16.mxu1 %v4145_v59  ;;  %v25167_v59 = vld [vmem:[%s32109_s1 + $0x1660] sm:$0xff]  }
 0x2a6   :  { %v22634_v4 = vpop.f32.mrf.mxu0  ;;  %v22654_v5 = vpop.f32.mrf.mxu1  ;;  %22947 = vmatprep.subr.bf16.mxu1 %v25128_v61  ;;  %v25168_v61 = vld [vmem:[%s32109_s1 + $0x1620] sm:$0xff]  }
 0x2a7   :  { %v16932_v7 = vadd.f32 %v22633_v2, %v28421_v20  ;;  %v22655_v8 = vadd.f32 %v22654_v5, %v22653_v0  ;;  %22926 = vmatpush3.bf16.msra.mxu0 %v25127_v58  ;;  %v25140_v20 = vld [vmem:[%s32109_s1 + $0x15d8] sm:$0xff]   ;;  %v25169_v63 = vld [vmem:[%s32109_s1 + $0x16e0] sm:$0xff]   ;;  %v25175_v5 = vld [vmem:[%s32109_s1 + $0x1650] sm:$0xff]  }
 0x2a8   :  { %v22635_v10 = vpop.f32.mrf.mxu0  ;;  %22927 = vmatprep.subr.bf16.mxu0 %v25130_v1  ;;  %v22656_v11 = vpop.f32.mrf.mxu1  ;;  %v25170_v0 = vld [vmem:[%s32109_s1 + $0x16a0] sm:$0xff]   ;;  %v25171_v1 = vld [vmem:[%s32109_s1 + $0x1658] sm:$0xff]  }
 0x2a9   :  { %v28532_v13 = vadd.f32 %v22655_v8, %v16932_v7  ;;  %22948 = vmatpush3.bf16.msra.mxu1 %v25129_v62  ;;  %v25172_v2 = vld [vmem:[%s32109_s1 + $0x1618] sm:$0xff]   ;;  %v25177_v7 = vld [vmem:[%s32109_s1 + $0x16d0] sm:$0xff]   ;;  %v25180_v10 = vld [vmem:[%s32109_s1 + $0x1608] sm:$0xff]  }
 0x2aa   :  { %22949 = vmatprep.subr.bf16.mxu1 %v25132_v6  ;;  %v22657_v15 = vpop.f32.mrf.mxu1  ;;  %v25174_v4 = vld [vmem:[%s32109_s1 + $0x1698] sm:$0xff]   ;;  %v25176_v6 = vld [vmem:[%s32109_s1 + $0x1610] sm:$0xff]   ;;  %v25181_v11 = vld [vmem:[%s32109_s1 + $0x16c8] sm:$0xff]  }
 0x2ab   :  { %22928 = vmatpush3.bf16.msra.mxu0 %v25131_v3  ;;  %v25173_v3 = vld [vmem:[%s32109_s1 + $0x16d8] sm:$0xff]   ;;  %v25178_v8 = vld [vmem:[%s32109_s1 + $0x1690] sm:$0xff]   ;;  %v25184_v15 = vld [vmem:[%s32109_s1 + $0x1600] sm:$0xff]  }
 0x2ac   :  { %22929 = vmatprep.subr.bf16.mxu0 %v25134_v12  ;;  %v25182_v12 = vld [vmem:[%s32109_s1 + $0x1688] sm:$0xff]  }
 0x2ad   :  { %22950 = vmatpush3.bf16.msra.mxu1 %v25133_v9  ;;  %v25179_v9 = vld [vmem:[%s32109_s1 + $0x1648] sm:$0xff]  }
 0x2ae   :  { %22951 = vmatprep.subr.bf16.mxu1 %v25136_v16 }
 0x2af   :  { %22930 = vmatpush3.bf16.msra.mxu0 %v25135_v14  ;;  %v27_v14 = vld [vmem:[%s32108_s0 + $0x58] sm:$0xff] }
 0x2b0   :  { %22931 = vmatprep.subr.bf16.mxu0 %v25138_v18  ;;  %v4153_v16 = vrot.slane %v27_v14, %v26383_v41  ;;  %v25185_v18 = vld [vmem:[%s32109_s1 + $0x16c0] sm:$0xff]  }
 0x2b1   :  { %22952 = vmatpush3.bf16.msra.mxu1 %v25137_v17  ;;  %v4146_v17 = vcombine.high %v27_v14, %v27_v14  ;;  %v25223_v14 = vld [vmem:[%s32109_s1 + $0x18b8] sm:$0xff]  }
 0x2b2   :  { %22953 = vmatprep.subr.bf16.mxu1 %v25140_v20  ;;  %v25186_v20 = vld [vmem:[%s32109_s1 + $0x1680] sm:$0xff]  }
 0x2b3   :  { %22932 = vmatpush3.bf16.msra.mxu0 %v25139_v19  ;;  %v4161_v19 = vcombine.high %v4153_v16, %v4153_v16 }
 0x2b4   :  { %22933 = vmatprep.subr.bf16.mxu0 %v25142_v22  ;;  %v4169_v22 = vrot.slane %v4153_v16, %v26383_v41  ;;  %v25224_v16 = vld [vmem:[%s32109_s1 + $0x1870] sm:$0xff]  }
 0x2b5   :  { %22954 = vmatpush3.bf16.msra.mxu1 %v25141_v21  ;;  %v28697_v21 = vrot.slane %v4146_v17, %v26383_v41  ;;  %v25225_v17 = vld [vmem:[%s32109_s1 + $0x1830] sm:$0xff]  }
 0x2b6   :  { %22955 = vmatprep.subr.bf16.mxu1 %v25144_v24  ;;  %v4183_v24 = vrot.slane %v4161_v19, %v26383_v41  ;;  %v25226_v19 = vld [vmem:[%s32109_s1 + $0x18f0] sm:$0xff]  }
 0x2b7   :  { %22934 = vmatpush3.bf16.msra.mxu0 %v25143_v23  ;;  %v25187_v23 = vld [vmem:[%s32109_s1 + $0x1778] sm:$0xff]  }
 0x2b8   :  { %22935 = vmatprep.subr.bf16.mxu0 %v25146_v26  ;;  %v4162_v26 = vcombine.high %v28697_v21, %v28697_v21 }
 0x2b9   :  { %22956 = vmatpush3.bf16.msra.mxu1 %v25145_v25  ;;  %v25188_v25 = vld [vmem:[%s32109_s1 + $0x1738] sm:$0xff]  }
 0x2ba   :  { %22957 = vmatprep.subr.bf16.mxu1 %v25148_v28  ;;  %v4193_v28 = vcombine.high %v4183_v24, %v4183_v24 }
 0x2bb   :  { %22936 = vmatpush3.bf16.msra.mxu0 %v25147_v27  ;;  %v25189_v27 = vld [vmem:[%s32109_s1 + $0x17f8] sm:$0xff]  }
 0x2bc   :  { %22937 = vmatprep.subr.bf16.mxu0 %v25150_v30  ;;  %v4190_v30 = vrot.slane %v4162_v26, %v26383_v41 }
 0x2bd   :  { %22958 = vmatpush3.bf16.msra.mxu1 %v25149_v29  ;;  %v25190_v29 = vld [vmem:[%s32109_s1 + $0x17b8] sm:$0xff]  }
 0x2be   :  { %22959 = vmatprep.subr.bf16.mxu1 %v25152_v32  ;;  %v25191_v32 = vld [vmem:[%s32109_s1 + $0x1770] sm:$0xff]  }
 0x2bf   :  { %22938 = vmatpush3.bf16.msra.mxu0 %v25151_v31  ;;  %v4191_v31 = vcombine.high %v4169_v22, %v4169_v22 }
 0x2c0   :  { %22967 = vmatprep.subr.bf16.mxu0 %v25155_v35 }
 0x2c1   :  { %22960 = vmatpush3.bf16.msra.mxu1 %v25154_v33  ;;  %v25192_v33 = vld [vmem:[%s32109_s1 + $0x1730] sm:$0xff]  }
 0x2c2   :  { %v22675_v43 = vpop.f32.mrf.mxu0  ;;  %17490 = vmatmul.mubr.bf16.vlgmr.msra.gmra.mxu0 %v4127_v34  ;;  %22989 = vmatprep.subr.bf16.mxu1 %v25157_v37  ;;  %v4194_v34 = vcombine.high %v4190_v30, %v4190_v30  ;;  %v25194_v37 = vld [vmem:[%s32109_s1 + $0x17b0] sm:$0xff]  }
 0x2c3   :  { %22968 = vmatpush3.bf16.msra.mxu0 %v25156_v36  ;;  %17569 = vmatprep.mubr.bf16.mxu0 %v4183_v24  ;;  %v25193_v36 = vld [vmem:[%s32109_s1 + $0x17f0] sm:$0xff]  }
 0x2c4   :  { %v22676_v46 = vpop.f32.mrf.mxu0  ;;  %v22697_v47 = vpop.f32.mrf.mxu1  ;;  %17530 = vmatmul.mubr.bf16.vlgmr.msra.gmra.mxu1 %v4143_v39  ;;  %22969 = vmatprep.subr.bf16.mxu0 %v25159_v40  ;;  %v25195_v40 = vld [vmem:[%s32109_s1 + $0x1768] sm:$0xff]  }
 0x2c5   :  { %v22677_v49 = vadd.f32 %v22676_v46, %v22675_v43  ;;  %22990 = vmatpush3.bf16.msra.mxu1 %v25158_v38  ;;  %17609 = vmatprep.mubr.bf16.mxu1 %v4193_v28  ;;  %v25196_v43 = vld [vmem:[%s32109_s1 + $0x1728] sm:$0xff]  }
 0x2c6   :  { %v22678_v51 = vpop.f32.mrf.mxu0  ;;  %v22698_v52 = vpop.f32.mrf.mxu1  ;;  %22991 = vmatprep.subr.bf16.mxu1 %v25161_v44  ;;  %v25197_v46 = vld [vmem:[%s32109_s1 + $0x17e8] sm:$0xff]  }
 0x2c7   :  { %v17012_v54 = vadd.f32 %v22677_v49, %v28532_v13  ;;  %v22699_v55 = vadd.f32 %v22698_v52, %v22697_v47  ;;  %22970 = vmatpush3.bf16.msra.mxu0 %v25160_v42  ;;  %v25183_v13 = vld [vmem:[%s32109_s1 + $0x1640] sm:$0xff]   ;;  %v25198_v49 = vld [vmem:[%s32109_s1 + $0x17a8] sm:$0xff]  }
 0x2c8   :  { %v22679_v57 = vpop.f32.mrf.mxu0  ;;  %22971 = vmatprep.subr.bf16.mxu0 %v25163_v48  ;;  %v22700_v58 = vpop.f32.mrf.mxu1  ;;  %v25199_v52 = vld [vmem:[%s32109_s1 + $0x1760] sm:$0xff]   ;;  %v25230_v28 = vld [vmem:[%s32109_s1 + $0x18e8] sm:$0xff]  }
 0x2c9   :  { %v28633_v60 = vadd.f32 %v22699_v55, %v17012_v54  ;;  %22992 = vmatpush3.bf16.msra.mxu1 %v25162_v45  ;;  %v25200_v54 = vld [vmem:[%s32109_s1 + $0x1720] sm:$0xff]   ;;  %v25203_v58 = vld [vmem:[%s32109_s1 + $0x1758] sm:$0xff]  }
 0x2ca   :  { %22993 = vmatprep.subr.bf16.mxu1 %v25165_v53  ;;  %v22701_v62 = vpop.f32.mrf.mxu1  ;;  %v25202_v57 = vld [vmem:[%s32109_s1 + $0x17a0] sm:$0xff]  }
 0x2cb   :  { %22972 = vmatpush3.bf16.msra.mxu0 %v25164_v50  ;;  %v25207_v62 = vld [vmem:[%s32109_s1 + $0x1750] sm:$0xff]  }
 0x2cc   :  { %22973 = vmatprep.subr.bf16.mxu0 %v25167_v59  ;;  %v25204_v59 = vld [vmem:[%s32109_s1 + $0x1718] sm:$0xff]  }
 0x2cd   :  { %22994 = vmatpush3.bf16.msra.mxu1 %v25166_v56  ;;  %v25201_v56 = vld [vmem:[%s32109_s1 + $0x17e0] sm:$0xff]  }
 0x2ce   :  { %22995 = vmatprep.subr.bf16.mxu1 %v25169_v63  ;;  %v25208_v63 = vld [vmem:[%s32109_s1 + $0x1710] sm:$0xff]  }
 0x2cf   :  { %22974 = vmatpush3.bf16.msra.mxu0 %v25168_v61  ;;  %v25206_v61 = vld [vmem:[%s32109_s1 + $0x1798] sm:$0xff]  }
 0x2d0   :  { %22975 = vmatprep.subr.bf16.mxu0 %v25171_v1  ;;  %v25210_v1 = vld [vmem:[%s32109_s1 + $0x1790] sm:$0xff]  }
 0x2d1   :  { %22996 = vmatpush3.bf16.msra.mxu1 %v25170_v0  ;;  %v25209_v0 = vld [vmem:[%s32109_s1 + $0x17d0] sm:$0xff]  }
 0x2d2   :  { %22997 = vmatprep.subr.bf16.mxu1 %v25173_v3  ;;  %v25212_v3 = vld [vmem:[%s32109_s1 + $0x1708] sm:$0xff]  }
 0x2d3   :  { %22976 = vmatpush3.bf16.msra.mxu0 %v25172_v2  ;;  %v25211_v2 = vld [vmem:[%s32109_s1 + $0x1748] sm:$0xff]  }
 0x2d4   :  { %22977 = vmatprep.subr.bf16.mxu0 %v25175_v5  ;;  %v25214_v5 = vld [vmem:[%s32109_s1 + $0x1788] sm:$0xff]  }
 0x2d5   :  { %22998 = vmatpush3.bf16.msra.mxu1 %v25174_v4  ;;  %v25213_v4 = vld [vmem:[%s32109_s1 + $0x17c8] sm:$0xff]  }
 0x2d6   :  { %22999 = vmatprep.subr.bf16.mxu1 %v25177_v7  ;;  %v25216_v7 = vld [vmem:[%s32109_s1 + $0x1700] sm:$0xff]  }
 0x2d7   :  { %22978 = vmatpush3.bf16.msra.mxu0 %v25176_v6  ;;  %v25215_v6 = vld [vmem:[%s32109_s1 + $0x1740] sm:$0xff]  }
 0x2d8   :  { %22979 = vmatprep.subr.bf16.mxu0 %v25179_v9  ;;  %v25219_v9 = vld [vmem:[%s32109_s1 + $0x1780] sm:$0xff]  }
 0x2d9   :  { %23000 = vmatpush3.bf16.msra.mxu1 %v25178_v8  ;;  %v25217_v8 = vld [vmem:[%s32109_s1 + $0x17c0] sm:$0xff]  }
 0x2da   :  { %23001 = vmatprep.subr.bf16.mxu1 %v25181_v11  ;;  %v25220_v11 = vld [vmem:[%s32109_s1 + $0x1878] sm:$0xff]  }
 0x2db   :  { %22980 = vmatpush3.bf16.msra.mxu0 %v25180_v10  ;;  %v4176_v10 = vrot.slane %v28697_v21, %v26383_v41 }
 0x2dc   :  { %22981 = vmatprep.subr.bf16.mxu0 %v25183_v13  ;;  %v25222_v13 = vld [vmem:[%s32109_s1 + $0x18f8] sm:$0xff]  }
 0x2dd   :  { %23002 = vmatpush3.bf16.msra.mxu1 %v25182_v12  ;;  %v25221_v12 = vld [vmem:[%s32109_s1 + $0x1838] sm:$0xff]  }
 0x2de   :  { %23003 = vmatprep.subr.bf16.mxu1 %v25185_v18 }
 0x2df   :  { %22982 = vmatpush3.bf16.msra.mxu0 %v25184_v15  ;;  %v4192_v15 = vcombine.high %v4176_v10, %v4176_v10 }
 0x2e0   :  { %23011 = vmatprep.subr.bf16.mxu0 %v25187_v23  ;;  %v25228_v23 = vld [vmem:[%s32109_s1 + $0x1868] sm:$0xff]  }
 0x2e1   :  { %23004 = vmatpush3.bf16.msra.mxu1 %v25186_v20  ;;  %v25227_v20 = vld [vmem:[%s32109_s1 + $0x18b0] sm:$0xff]  }
 0x2e2   :  { %v22719_v35 = vpop.f32.mrf.mxu0  ;;  %17570 = vmatmul.mubr.bf16.vlgmr.msra.gmra.mxu0 %v4169_v22  ;;  %23033 = vmatprep.subr.bf16.mxu1 %v25189_v27 }
 0x2e3   :  { %23012 = vmatpush3.bf16.msra.mxu0 %v25188_v25  ;;  %17649 = vmatprep.mubr.bf16.mxu0 %v4190_v30  ;;  %v25229_v25 = vld [vmem:[%s32109_s1 + $0x1828] sm:$0xff]  }
 0x2e4   :  { %v22720_v38 = vpop.f32.mrf.mxu0  ;;  %v22741_v39 = vpop.f32.mrf.mxu1  ;;  %17610 = vmatmul.mubr.bf16.vlgmr.msra.gmra.mxu1 %v4191_v31  ;;  %23013 = vmatprep.subr.bf16.mxu0 %v25191_v32  ;;  %v25231_v31 = vld [vmem:[%s32109_s1 + $0x18a8] sm:$0xff]  }
 0x2e5   :  { %v22721_v42 = vadd.f32 %v22720_v38, %v22719_v35  ;;  %23034 = vmatpush3.bf16.msra.mxu1 %v25190_v29  ;;  %17689 = vmatprep.mubr.bf16.mxu1 %v4194_v34  ;;  %v25232_v34 = vld [vmem:[%s32109_s1 + $0x1860] sm:$0xff]  }
 0x2e6   :  { %v22722_v44 = vpop.f32.mrf.mxu0  ;;  %v22742_v45 = vpop.f32.mrf.mxu1  ;;  %23035 = vmatprep.subr.bf16.mxu1 %v25193_v36  ;;  %v25233_v36 = vld [vmem:[%s32109_s1 + $0x1820] sm:$0xff]  }
 0x2e7   :  { %v17092_v47 = vadd.f32 %v22721_v42, %v28633_v60  ;;  %v22743_v48 = vadd.f32 %v22742_v45, %v22741_v39  ;;  %23014 = vmatpush3.bf16.msra.mxu0 %v25192_v33  ;;  %v25205_v60 = vld [vmem:[%s32109_s1 + $0x17d8] sm:$0xff]   ;;  %v25234_v38 = vld [vmem:[%s32109_s1 + $0x18e0] sm:$0xff]   ;;  %v25240_v45 = vld [vmem:[%s32109_s1 + $0x1850] sm:$0xff]  }
 0x2e8   :  { %v22723_v50 = vpop.f32.mrf.mxu0  ;;  %23015 = vmatprep.subr.bf16.mxu0 %v25195_v40  ;;  %v22744_v51 = vpop.f32.mrf.mxu1  ;;  %v25235_v39 = vld [vmem:[%s32109_s1 + $0x18a0] sm:$0xff]   ;;  %v25236_v40 = vld [vmem:[%s32109_s1 + $0x1858] sm:$0xff]  }
 0x2e9   :  { %v28744_v53 = vadd.f32 %v22743_v48, %v17092_v47  ;;  %23036 = vmatpush3.bf16.msra.mxu1 %v25194_v37  ;;  %v25237_v42 = vld [vmem:[%s32109_s1 + $0x1818] sm:$0xff]   ;;  %v25242_v47 = vld [vmem:[%s32109_s1 + $0x18d0] sm:$0xff]   ;;  %v25245_v50 = vld [vmem:[%s32109_s1 + $0x1808] sm:$0xff]  }
 0x2ea   :  { %23037 = vmatprep.subr.bf16.mxu1 %v25197_v46  ;;  %v22745_v55 = vpop.f32.mrf.mxu1  ;;  %v25239_v44 = vld [vmem:[%s32109_s1 + $0x1898] sm:$0xff]   ;;  %v25241_v46 = vld [vmem:[%s32109_s1 + $0x1810] sm:$0xff]   ;;  %v25246_v51 = vld [vmem:[%s32109_s1 + $0x18c8] sm:$0xff]  }
 0x2eb   :  { %23016 = vmatpush3.bf16.msra.mxu0 %v25196_v43  ;;  %v25238_v43 = vld [vmem:[%s32109_s1 + $0x18d8] sm:$0xff]   ;;  %v25243_v48 = vld [vmem:[%s32109_s1 + $0x1890] sm:$0xff]   ;;  %v25249_v55 = vld [vmem:[%s32109_s1 + $0x1800] sm:$0xff]  }
 0x2ec   :  { %23017 = vmatprep.subr.bf16.mxu0 %v25199_v52  ;;  %v25247_v52 = vld [vmem:[%s32109_s1 + $0x1888] sm:$0xff]  }
 0x2ed   :  { %23038 = vmatpush3.bf16.msra.mxu1 %v25198_v49  ;;  %v25244_v49 = vld [vmem:[%s32109_s1 + $0x1848] sm:$0xff]  }
 0x2ee   :  { %23039 = vmatprep.subr.bf16.mxu1 %v25201_v56 }
 0x2ef   :  { %23018 = vmatpush3.bf16.msra.mxu0 %v25200_v54  ;;  %v28_v54 = vld [vmem:[%s32108_s0 + $0x60] sm:$0xff] }
 0x2f0   :  { %23019 = vmatprep.subr.bf16.mxu0 %v25203_v58  ;;  %v4202_v56 = vrot.slane %v28_v54, %v26383_v41  ;;  %v25250_v58 = vld [vmem:[%s32109_s1 + $0x18c0] sm:$0xff]  }
 0x2f1   :  { %23040 = vmatpush3.bf16.msra.mxu1 %v25202_v57  ;;  %v4195_v57 = vcombine.high %v28_v54, %v28_v54  ;;  %v25288_v54 = vld [vmem:[%s32109_s1 + $0x1ab8] sm:$0xff]  }
 0x2f2   :  { %23041 = vmatprep.subr.bf16.mxu1 %v25205_v60  ;;  %v25251_v60 = vld [vmem:[%s32109_s1 + $0x1880] sm:$0xff]  }
 0x2f3   :  { %23020 = vmatpush3.bf16.msra.mxu0 %v25204_v59  ;;  %v4210_v59 = vcombine.high %v4202_v56, %v4202_v56 }
 0x2f4   :  { %23021 = vmatprep.subr.bf16.mxu0 %v25207_v62  ;;  %v4218_v62 = vrot.slane %v4202_v56, %v26383_v41  ;;  %v25289_v56 = vld [vmem:[%s32109_s1 + $0x1a70] sm:$0xff]  }
 0x2f5   :  { %23042 = vmatpush3.bf16.msra.mxu1 %v25206_v61  ;;  %v28909_v61 = vrot.slane %v4195_v57, %v26383_v41  ;;  %v25290_v57 = vld [vmem:[%s32109_s1 + $0x1a30] sm:$0xff]  }
 0x2f6   :  { %23043 = vmatprep.subr.bf16.mxu1 %v25209_v0  ;;  %v4232_v0 = vrot.slane %v4210_v59, %v26383_v41  ;;  %v25291_v59 = vld [vmem:[%s32109_s1 + $0x1af0] sm:$0xff]  }
 0x2f7   :  { %23022 = vmatpush3.bf16.msra.mxu0 %v25208_v63  ;;  %v25252_v63 = vld [vmem:[%s32109_s1 + $0x1978] sm:$0xff]  }
 0x2f8   :  { %23023 = vmatprep.subr.bf16.mxu0 %v25211_v2  ;;  %v4211_v2 = vcombine.high %v28909_v61, %v28909_v61 }
 0x2f9   :  { %23044 = vmatpush3.bf16.msra.mxu1 %v25210_v1  ;;  %v25253_v1 = vld [vmem:[%s32109_s1 + $0x1938] sm:$0xff]  }
 0x2fa   :  { %23045 = vmatprep.subr.bf16.mxu1 %v25213_v4  ;;  %v4242_v4 = vcombine.high %v4232_v0, %v4232_v0 }
 0x2fb   :  { %23024 = vmatpush3.bf16.msra.mxu0 %v25212_v3  ;;  %v25254_v3 = vld [vmem:[%s32109_s1 + $0x19f8] sm:$0xff]  }
 0x2fc   :  { %23025 = vmatprep.subr.bf16.mxu0 %v25215_v6  ;;  %v4239_v6 = vrot.slane %v4211_v2, %v26383_v41 }
 0x2fd   :  { %23046 = vmatpush3.bf16.msra.mxu1 %v25214_v5  ;;  %v25255_v5 = vld [vmem:[%s32109_s1 + $0x19b8] sm:$0xff]  }
 0x2fe   :  { %23047 = vmatprep.subr.bf16.mxu1 %v25217_v8  ;;  %v25256_v8 = vld [vmem:[%s32109_s1 + $0x1970] sm:$0xff]  }
 0x2ff   :  { %23026 = vmatpush3.bf16.msra.mxu0 %v25216_v7  ;;  %v4240_v7 = vcombine.high %v4218_v62, %v4218_v62 }
 0x300   :  { %23055 = vmatprep.subr.bf16.mxu0 %v25220_v11 }
 0x301   :  { %23048 = vmatpush3.bf16.msra.mxu1 %v25219_v9  ;;  %v25257_v9 = vld [vmem:[%s32109_s1 + $0x1930] sm:$0xff]  }
 0x302   :  { %v22763_v18 = vpop.f32.mrf.mxu0  ;;  %17650 = vmatmul.mubr.bf16.vlgmr.msra.gmra.mxu0 %v4176_v10  ;;  %23077 = vmatprep.subr.bf16.mxu1 %v25222_v13  ;;  %v4243_v10 = vcombine.high %v4239_v6, %v4239_v6  ;;  %v25259_v13 = vld [vmem:[%s32109_s1 + $0x19b0] sm:$0xff]  }
 0x303   :  { %23056 = vmatpush3.bf16.msra.mxu0 %v25221_v12  ;;  %17729 = vmatprep.mubr.bf16.mxu0 %v4232_v0  ;;  %v25258_v12 = vld [vmem:[%s32109_s1 + $0x19f0] sm:$0xff]  }
 0x304   :  { %v22764_v21 = vpop.f32.mrf.mxu0  ;;  %v22785_v22 = vpop.f32.mrf.mxu1  ;;  %17690 = vmatmul.mubr.bf16.vlgmr.msra.gmra.mxu1 %v4192_v15  ;;  %23057 = vmatprep.subr.bf16.mxu0 %v25224_v16  ;;  %v25260_v16 = vld [vmem:[%s32109_s1 + $0x1968] sm:$0xff]  }
 0x305   :  { %v22765_v24 = vadd.f32 %v22764_v21, %v22763_v18  ;;  %23078 = vmatpush3.bf16.msra.mxu1 %v25223_v14  ;;  %17769 = vmatprep.mubr.bf16.mxu1 %v4242_v4  ;;  %v25261_v18 = vld [vmem:[%s32109_s1 + $0x1928] sm:$0xff]  }
 0x306   :  { %v22766_v26 = vpop.f32.mrf.mxu0  ;;  %v22786_v27 = vpop.f32.mrf.mxu1  ;;  %23079 = vmatprep.subr.bf16.mxu1 %v25226_v19  ;;  %v25262_v21 = vld [vmem:[%s32109_s1 + $0x19e8] sm:$0xff]  }
 0x307   :  { %v17172_v29 = vadd.f32 %v22765_v24, %v28744_v53  ;;  %v22787_v30 = vadd.f32 %v22786_v27, %v22785_v22  ;;  %23058 = vmatpush3.bf16.msra.mxu0 %v25225_v17  ;;  %v25248_v53 = vld [vmem:[%s32109_s1 + $0x1840] sm:$0xff]   ;;  %v25263_v24 = vld [vmem:[%s32109_s1 + $0x19a8] sm:$0xff]  }
 0x308   :  { %v22767_v32 = vpop.f32.mrf.mxu0  ;;  %23059 = vmatprep.subr.bf16.mxu0 %v25228_v23  ;;  %v22788_v33 = vpop.f32.mrf.mxu1  ;;  %v25264_v27 = vld [vmem:[%s32109_s1 + $0x1960] sm:$0xff]   ;;  %v25295_v4 = vld [vmem:[%s32109_s1 + $0x1ae8] sm:$0xff]  }
 0x309   :  { %v28845_v35 = vadd.f32 %v22787_v30, %v17172_v29  ;;  %23080 = vmatpush3.bf16.msra.mxu1 %v25227_v20  ;;  %v25265_v29 = vld [vmem:[%s32109_s1 + $0x1920] sm:$0xff]   ;;  %v25268_v33 = vld [vmem:[%s32109_s1 + $0x1958] sm:$0xff]  }
 0x30a   :  { %23081 = vmatprep.subr.bf16.mxu1 %v25230_v28  ;;  %v22789_v37 = vpop.f32.mrf.mxu1  ;;  %v25267_v32 = vld [vmem:[%s32109_s1 + $0x19a0] sm:$0xff]  }
 0x30b   :  { %23060 = vmatpush3.bf16.msra.mxu0 %v25229_v25  ;;  %v25272_v37 = vld [vmem:[%s32109_s1 + $0x1950] sm:$0xff]  }
 0x30c   :  { %23061 = vmatprep.subr.bf16.mxu0 %v25232_v34  ;;  %v25269_v34 = vld [vmem:[%s32109_s1 + $0x1918] sm:$0xff]  }
 0x30d   :  { %23082 = vmatpush3.bf16.msra.mxu1 %v25231_v31  ;;  %v25266_v31 = vld [vmem:[%s32109_s1 + $0x19e0] sm:$0xff]  }
 0x30e   :  { %23083 = vmatprep.subr.bf16.mxu1 %v25234_v38  ;;  %v25273_v38 = vld [vmem:[%s32109_s1 + $0x1910] sm:$0xff]  }
 0x30f   :  { %23062 = vmatpush3.bf16.msra.mxu0 %v25233_v36  ;;  %v25271_v36 = vld [vmem:[%s32109_s1 + $0x1998] sm:$0xff]  }
 0x310   :  { %23063 = vmatprep.subr.bf16.mxu0 %v25236_v40  ;;  %v25275_v40 = vld [vmem:[%s32109_s1 + $0x1990] sm:$0xff]  }
 0x311   :  { %23084 = vmatpush3.bf16.msra.mxu1 %v25235_v39  ;;  %v25274_v39 = vld [vmem:[%s32109_s1 + $0x19d0] sm:$0xff]  }
 0x312   :  { %23085 = vmatprep.subr.bf16.mxu1 %v25238_v43  ;;  %v25277_v43 = vld [vmem:[%s32109_s1 + $0x1908] sm:$0xff]  }
 0x313   :  { %23064 = vmatpush3.bf16.msra.mxu0 %v25237_v42  ;;  %v25276_v42 = vld [vmem:[%s32109_s1 + $0x1948] sm:$0xff]  }
 0x314   :  { %23065 = vmatprep.subr.bf16.mxu0 %v25240_v45  ;;  %v25279_v45 = vld [vmem:[%s32109_s1 + $0x1988] sm:$0xff]  }
 0x315   :  { %23086 = vmatpush3.bf16.msra.mxu1 %v25239_v44  ;;  %v25278_v44 = vld [vmem:[%s32109_s1 + $0x19c8] sm:$0xff]  }
 0x316   :  { %23087 = vmatprep.subr.bf16.mxu1 %v25242_v47  ;;  %v25281_v47 = vld [vmem:[%s32109_s1 + $0x1900] sm:$0xff]  }
 0x317   :  { %23066 = vmatpush3.bf16.msra.mxu0 %v25241_v46  ;;  %v25280_v46 = vld [vmem:[%s32109_s1 + $0x1940] sm:$0xff]  }
 0x318   :  { %23067 = vmatprep.subr.bf16.mxu0 %v25244_v49  ;;  %v25284_v49 = vld [vmem:[%s32109_s1 + $0x1980] sm:$0xff]  }
 0x319   :  { %23088 = vmatpush3.bf16.msra.mxu1 %v25243_v48  ;;  %v25282_v48 = vld [vmem:[%s32109_s1 + $0x19c0] sm:$0xff]  }
 0x31a   :  { %23089 = vmatprep.subr.bf16.mxu1 %v25246_v51  ;;  %v25285_v51 = vld [vmem:[%s32109_s1 + $0x1a78] sm:$0xff]  }
 0x31b   :  { %23068 = vmatpush3.bf16.msra.mxu0 %v25245_v50  ;;  %v4225_v50 = vrot.slane %v28909_v61, %v26383_v41 }
 0x31c   :  { %23069 = vmatprep.subr.bf16.mxu0 %v25248_v53  ;;  %v25287_v53 = vld [vmem:[%s32109_s1 + $0x1af8] sm:$0xff]  }
 0x31d   :  { %23090 = vmatpush3.bf16.msra.mxu1 %v25247_v52  ;;  %v25286_v52 = vld [vmem:[%s32109_s1 + $0x1a38] sm:$0xff]  }
 0x31e   :  { %23091 = vmatprep.subr.bf16.mxu1 %v25250_v58 }
 0x31f   :  { %23070 = vmatpush3.bf16.msra.mxu0 %v25249_v55  ;;  %v4241_v55 = vcombine.high %v4225_v50, %v4225_v50 }
 0x320   :  { %23099 = vmatprep.subr.bf16.mxu0 %v25252_v63  ;;  %v25293_v63 = vld [vmem:[%s32109_s1 + $0x1a68] sm:$0xff]  }
 0x321   :  { %23092 = vmatpush3.bf16.msra.mxu1 %v25251_v60  ;;  %v25292_v60 = vld [vmem:[%s32109_s1 + $0x1ab0] sm:$0xff]  }
 0x322   :  { %v22807_v11 = vpop.f32.mrf.mxu0  ;;  %17730 = vmatmul.mubr.bf16.vlgmr.msra.gmra.mxu0 %v4218_v62  ;;  %23121 = vmatprep.subr.bf16.mxu1 %v25254_v3 }
 0x323   :  { %23100 = vmatpush3.bf16.msra.mxu0 %v25253_v1  ;;  %17809 = vmatprep.mubr.bf16.mxu0 %v4239_v6  ;;  %v25294_v1 = vld [vmem:[%s32109_s1 + $0x1a28] sm:$0xff]  }
 0x324   :  { %v22808_v14 = vpop.f32.mrf.mxu0  ;;  %v22829_v15 = vpop.f32.mrf.mxu1  ;;  %17770 = vmatmul.mubr.bf16.vlgmr.msra.gmra.mxu1 %v4240_v7  ;;  %23101 = vmatprep.subr.bf16.mxu0 %v25256_v8  ;;  %v25296_v7 = vld [vmem:[%s32109_s1 + $0x1aa8] sm:$0xff]  }
 0x325   :  { %v22809_v17 = vadd.f32 %v22808_v14, %v22807_v11  ;;  %23122 = vmatpush3.bf16.msra.mxu1 %v25255_v5  ;;  %17849 = vmatprep.mubr.bf16.mxu1 %v4243_v10  ;;  %v25297_v10 = vld [vmem:[%s32109_s1 + $0x1a60] sm:$0xff]  }
 0x326   :  { %v22810_v19 = vpop.f32.mrf.mxu0  ;;  %v22830_v20 = vpop.f32.mrf.mxu1  ;;  %23123 = vmatprep.subr.bf16.mxu1 %v25258_v12  ;;  %v25298_v12 = vld [vmem:[%s32109_s1 + $0x1a20] sm:$0xff]  }
 0x327   :  { %v17252_v22 = vadd.f32 %v22809_v17, %v28845_v35  ;;  %v22831_v23 = vadd.f32 %v22830_v20, %v22829_v15  ;;  %23102 = vmatpush3.bf16.msra.mxu0 %v25257_v9  ;;  %v25270_v35 = vld [vmem:[%s32109_s1 + $0x19d8] sm:$0xff]   ;;  %v25299_v14 = vld [vmem:[%s32109_s1 + $0x1ae0] sm:$0xff]   ;;  %v25305_v20 = vld [vmem:[%s32109_s1 + $0x1a50] sm:$0xff]  }
 0x328   :  { %v22811_v25 = vpop.f32.mrf.mxu0  ;;  %23103 = vmatprep.subr.bf16.mxu0 %v25260_v16  ;;  %v22832_v26 = vpop.f32.mrf.mxu1  ;;  %v25300_v15 = vld [vmem:[%s32109_s1 + $0x1aa0] sm:$0xff]   ;;  %v25301_v16 = vld [vmem:[%s32109_s1 + $0x1a58] sm:$0xff]  }
 0x329   :  { %v28956_v28 = vadd.f32 %v22831_v23, %v17252_v22  ;;  %23124 = vmatpush3.bf16.msra.mxu1 %v25259_v13  ;;  %v25302_v17 = vld [vmem:[%s32109_s1 + $0x1a18] sm:$0xff]   ;;  %v25307_v22 = vld [vmem:[%s32109_s1 + $0x1ad0] sm:$0xff]   ;;  %v25310_v25 = vld [vmem:[%s32109_s1 + $0x1a08] sm:$0xff]  }
 0x32a   :  { %23125 = vmatprep.subr.bf16.mxu1 %v25262_v21  ;;  %v22833_v30 = vpop.f32.mrf.mxu1  ;;  %v25304_v19 = vld [vmem:[%s32109_s1 + $0x1a98] sm:$0xff]   ;;  %v25306_v21 = vld [vmem:[%s32109_s1 + $0x1a10] sm:$0xff]   ;;  %v25311_v26 = vld [vmem:[%s32109_s1 + $0x1ac8] sm:$0xff]  }
 0x32b   :  { %23104 = vmatpush3.bf16.msra.mxu0 %v25261_v18  ;;  %v25303_v18 = vld [vmem:[%s32109_s1 + $0x1ad8] sm:$0xff]   ;;  %v25308_v23 = vld [vmem:[%s32109_s1 + $0x1a90] sm:$0xff]   ;;  %v25314_v30 = vld [vmem:[%s32109_s1 + $0x1a00] sm:$0xff]  }
 0x32c   :  { %23105 = vmatprep.subr.bf16.mxu0 %v25264_v27  ;;  %v25312_v27 = vld [vmem:[%s32109_s1 + $0x1a88] sm:$0xff]  }
 0x32d   :  { %23126 = vmatpush3.bf16.msra.mxu1 %v25263_v24  ;;  %v25309_v24 = vld [vmem:[%s32109_s1 + $0x1a48] sm:$0xff]  }
 0x32e   :  { %23127 = vmatprep.subr.bf16.mxu1 %v25266_v31 }
 0x32f   :  { %23106 = vmatpush3.bf16.msra.mxu0 %v25265_v29  ;;  %v29_v29 = vld [vmem:[%s32108_s0 + $0x68] sm:$0xff] }
 0x330   :  { %23107 = vmatprep.subr.bf16.mxu0 %v25268_v33  ;;  %v4251_v31 = vrot.slane %v29_v29, %v26383_v41  ;;  %v25315_v33 = vld [vmem:[%s32109_s1 + $0x1ac0] sm:$0xff]  }
 0x331   :  { %23128 = vmatpush3.bf16.msra.mxu1 %v25267_v32  ;;  %v4244_v32 = vcombine.high %v29_v29, %v29_v29  ;;  %v25353_v29 = vld [vmem:[%s32109_s1 + $0x1cb8] sm:$0xff]  }
 0x332   :  { %23129 = vmatprep.subr.bf16.mxu1 %v25270_v35  ;;  %v25316_v35 = vld [vmem:[%s32109_s1 + $0x1a80] sm:$0xff]  }
 0x333   :  { %23108 = vmatpush3.bf16.msra.mxu0 %v25269_v34  ;;  %v4259_v34 = vcombine.high %v4251_v31, %v4251_v31 }
 0x334   :  { %23109 = vmatprep.subr.bf16.mxu0 %v25272_v37  ;;  %v4267_v37 = vrot.slane %v4251_v31, %v26383_v41  ;;  %v25354_v31 = vld [vmem:[%s32109_s1 + $0x1c70] sm:$0xff]  }
 0x335   :  { %23130 = vmatpush3.bf16.msra.mxu1 %v25271_v36  ;;  %v29121_v36 = vrot.slane %v4244_v32, %v26383_v41  ;;  %v25355_v32 = vld [vmem:[%s32109_s1 + $0x1c30] sm:$0xff]  }
 0x336   :  { %23131 = vmatprep.subr.bf16.mxu1 %v25274_v39  ;;  %v4281_v39 = vrot.slane %v4259_v34, %v26383_v41  ;;  %v25356_v34 = vld [vmem:[%s32109_s1 + $0x1cf0] sm:$0xff]  }
 0x337   :  { %23110 = vmatpush3.bf16.msra.mxu0 %v25273_v38  ;;  %v25317_v38 = vld [vmem:[%s32109_s1 + $0x1b78] sm:$0xff]  }
 0x338   :  { %23111 = vmatprep.subr.bf16.mxu0 %v25276_v42  ;;  %v4260_v42 = vcombine.high %v29121_v36, %v29121_v36 }
 0x339   :  { %23132 = vmatpush3.bf16.msra.mxu1 %v25275_v40  ;;  %v25318_v40 = vld [vmem:[%s32109_s1 + $0x1b38] sm:$0xff]  }
 0x33a   :  { %23133 = vmatprep.subr.bf16.mxu1 %v25278_v44  ;;  %v4291_v44 = vcombine.high %v4281_v39, %v4281_v39 }
 0x33b   :  { %23112 = vmatpush3.bf16.msra.mxu0 %v25277_v43  ;;  %v25319_v43 = vld [vmem:[%s32109_s1 + $0x1bf8] sm:$0xff]  }
 0x33c   :  { %23113 = vmatprep.subr.bf16.mxu0 %v25280_v46  ;;  %v4288_v46 = vrot.slane %v4260_v42, %v26383_v41 }
 0x33d   :  { %23134 = vmatpush3.bf16.msra.mxu1 %v25279_v45  ;;  %v25320_v45 = vld [vmem:[%s32109_s1 + $0x1bb8] sm:$0xff]  }
 0x33e   :  { %23135 = vmatprep.subr.bf16.mxu1 %v25282_v48  ;;  %v25321_v48 = vld [vmem:[%s32109_s1 + $0x1b70] sm:$0xff]  }
 0x33f   :  { %23114 = vmatpush3.bf16.msra.mxu0 %v25281_v47  ;;  %v4289_v47 = vcombine.high %v4267_v37, %v4267_v37 }
 0x340   :  { %23143 = vmatprep.subr.bf16.mxu0 %v25285_v51 }
 0x341   :  { %23136 = vmatpush3.bf16.msra.mxu1 %v25284_v49  ;;  %v25322_v49 = vld [vmem:[%s32109_s1 + $0x1b30] sm:$0xff]  }
 0x342   :  { %v22851_v58 = vpop.f32.mrf.mxu0  ;;  %17810 = vmatmul.mubr.bf16.vlgmr.msra.gmra.mxu0 %v4225_v50  ;;  %23165 = vmatprep.subr.bf16.mxu1 %v25287_v53  ;;  %v4292_v50 = vcombine.high %v4288_v46, %v4288_v46  ;;  %v25324_v53 = vld [vmem:[%s32109_s1 + $0x1bb0] sm:$0xff]  }
 0x343   :  { %23144 = vmatpush3.bf16.msra.mxu0 %v25286_v52  ;;  %17889 = vmatprep.mubr.bf16.mxu0 %v4281_v39  ;;  %v25323_v52 = vld [vmem:[%s32109_s1 + $0x1bf0] sm:$0xff]  }
 0x344   :  { %v22852_v61 = vpop.f32.mrf.mxu0  ;;  %v22873_v62 = vpop.f32.mrf.mxu1  ;;  %17850 = vmatmul.mubr.bf16.vlgmr.msra.gmra.mxu1 %v4241_v55  ;;  %23145 = vmatprep.subr.bf16.mxu0 %v25289_v56  ;;  %v25325_v56 = vld [vmem:[%s32109_s1 + $0x1b68] sm:$0xff]  }
 0x345   :  { %v22853_v0 = vadd.f32 %v22852_v61, %v22851_v58  ;;  %23166 = vmatpush3.bf16.msra.mxu1 %v25288_v54  ;;  %17929 = vmatprep.mubr.bf16.mxu1 %v4291_v44  ;;  %v25326_v58 = vld [vmem:[%s32109_s1 + $0x1b28] sm:$0xff]  }
 0x346   :  { %v22854_v2 = vpop.f32.mrf.mxu0  ;;  %v22874_v3 = vpop.f32.mrf.mxu1  ;;  %23167 = vmatprep.subr.bf16.mxu1 %v25291_v59  ;;  %v25327_v61 = vld [vmem:[%s32109_s1 + $0x1be8] sm:$0xff]  }
 0x347   :  { %v17332_v5 = vadd.f32 %v22853_v0, %v28956_v28  ;;  %v22875_v6 = vadd.f32 %v22874_v3, %v22873_v62  ;;  %23146 = vmatpush3.bf16.msra.mxu0 %v25290_v57  ;;  %v25313_v28 = vld [vmem:[%s32109_s1 + $0x1a40] sm:$0xff]   ;;  %v25328_v0 = vld [vmem:[%s32109_s1 + $0x1ba8] sm:$0xff]  }
 0x348   :  { %v22855_v8 = vpop.f32.mrf.mxu0  ;;  %23147 = vmatprep.subr.bf16.mxu0 %v25293_v63  ;;  %v22876_v9 = vpop.f32.mrf.mxu1  ;;  %v25329_v3 = vld [vmem:[%s32109_s1 + $0x1b60] sm:$0xff]   ;;  %v25360_v44 = vld [vmem:[%s32109_s1 + $0x1ce8] sm:$0xff]  }
 0x349   :  { %v29057_v11 = vadd.f32 %v22875_v6, %v17332_v5  ;;  %23168 = vmatpush3.bf16.msra.mxu1 %v25292_v60  ;;  %v25330_v5 = vld [vmem:[%s32109_s1 + $0x1b20] sm:$0xff]   ;;  %v25333_v9 = vld [vmem:[%s32109_s1 + $0x1b58] sm:$0xff]  }
 0x34a   :  { %23169 = vmatprep.subr.bf16.mxu1 %v25295_v4  ;;  %v22877_v13 = vpop.f32.mrf.mxu1  ;;  %v25332_v8 = vld [vmem:[%s32109_s1 + $0x1ba0] sm:$0xff]  }
 0x34b   :  { %23148 = vmatpush3.bf16.msra.mxu0 %v25294_v1  ;;  %v25337_v13 = vld [vmem:[%s32109_s1 + $0x1b50] sm:$0xff]  }
 0x34c   :  { %23149 = vmatprep.subr.bf16.mxu0 %v25297_v10  ;;  %v25334_v10 = vld [vmem:[%s32109_s1 + $0x1b18] sm:$0xff]  }
 0x34d   :  { %23170 = vmatpush3.bf16.msra.mxu1 %v25296_v7  ;;  %v25331_v7 = vld [vmem:[%s32109_s1 + $0x1be0] sm:$0xff]  }
 0x34e   :  { %23171 = vmatprep.subr.bf16.mxu1 %v25299_v14  ;;  %v25338_v14 = vld [vmem:[%s32109_s1 + $0x1b10] sm:$0xff]  }
 0x34f   :  { %23150 = vmatpush3.bf16.msra.mxu0 %v25298_v12  ;;  %v25336_v12 = vld [vmem:[%s32109_s1 + $0x1b98] sm:$0xff]  }
 0x350   :  { %23151 = vmatprep.subr.bf16.mxu0 %v25301_v16  ;;  %v25340_v16 = vld [vmem:[%s32109_s1 + $0x1b90] sm:$0xff]  }
 0x351   :  { %23172 = vmatpush3.bf16.msra.mxu1 %v25300_v15  ;;  %v25339_v15 = vld [vmem:[%s32109_s1 + $0x1bd0] sm:$0xff]  }
 0x352   :  { %23173 = vmatprep.subr.bf16.mxu1 %v25303_v18  ;;  %v25342_v18 = vld [vmem:[%s32109_s1 + $0x1b08] sm:$0xff]  }
 0x353   :  { %23152 = vmatpush3.bf16.msra.mxu0 %v25302_v17  ;;  %v25341_v17 = vld [vmem:[%s32109_s1 + $0x1b48] sm:$0xff]  }
 0x354   :  { %23153 = vmatprep.subr.bf16.mxu0 %v25305_v20  ;;  %v25344_v20 = vld [vmem:[%s32109_s1 + $0x1b88] sm:$0xff]  }
 0x355   :  { %23174 = vmatpush3.bf16.msra.mxu1 %v25304_v19  ;;  %v25343_v19 = vld [vmem:[%s32109_s1 + $0x1bc8] sm:$0xff]  }
 0x356   :  { %23175 = vmatprep.subr.bf16.mxu1 %v25307_v22  ;;  %v25346_v22 = vld [vmem:[%s32109_s1 + $0x1b00] sm:$0xff]  }
 0x357   :  { %23154 = vmatpush3.bf16.msra.mxu0 %v25306_v21  ;;  %v25345_v21 = vld [vmem:[%s32109_s1 + $0x1b40] sm:$0xff]  }
 0x358   :  { %23155 = vmatprep.subr.bf16.mxu0 %v25309_v24  ;;  %v25349_v24 = vld [vmem:[%s32109_s1 + $0x1b80] sm:$0xff]  }
 0x359   :  { %23176 = vmatpush3.bf16.msra.mxu1 %v25308_v23  ;;  %v25347_v23 = vld [vmem:[%s32109_s1 + $0x1bc0] sm:$0xff]  }
 0x35a   :  { %23177 = vmatprep.subr.bf16.mxu1 %v25311_v26  ;;  %v25350_v26 = vld [vmem:[%s32109_s1 + $0x1c78] sm:$0xff]  }
 0x35b   :  { %23156 = vmatpush3.bf16.msra.mxu0 %v25310_v25  ;;  %v4274_v25 = vrot.slane %v29121_v36, %v26383_v41 }
 0x35c   :  { %23157 = vmatprep.subr.bf16.mxu0 %v25313_v28  ;;  %v25352_v28 = vld [vmem:[%s32109_s1 + $0x1cf8] sm:$0xff]  }
 0x35d   :  { %23178 = vmatpush3.bf16.msra.mxu1 %v25312_v27  ;;  %v25351_v27 = vld [vmem:[%s32109_s1 + $0x1c38] sm:$0xff]  }
 0x35e   :  { %23179 = vmatprep.subr.bf16.mxu1 %v25315_v33 }
 0x35f   :  { %23158 = vmatpush3.bf16.msra.mxu0 %v25314_v30  ;;  %v4290_v30 = vcombine.high %v4274_v25, %v4274_v25 }
 0x360   :  { %23187 = vmatprep.subr.bf16.mxu0 %v25317_v38  ;;  %v25358_v38 = vld [vmem:[%s32109_s1 + $0x1c68] sm:$0xff]  }
 0x361   :  { %23180 = vmatpush3.bf16.msra.mxu1 %v25316_v35  ;;  %v25357_v35 = vld [vmem:[%s32109_s1 + $0x1cb0] sm:$0xff]  }
 0x362   :  { %v22895_v51 = vpop.f32.mrf.mxu0  ;;  %17890 = vmatmul.mubr.bf16.vlgmr.msra.gmra.mxu0 %v4267_v37  ;;  %23209 = vmatprep.subr.bf16.mxu1 %v25319_v43 }
 0x363   :  { %23188 = vmatpush3.bf16.msra.mxu0 %v25318_v40  ;;  %17969 = vmatprep.mubr.bf16.mxu0 %v4288_v46  ;;  %v25359_v40 = vld [vmem:[%s32109_s1 + $0x1c28] sm:$0xff]  }
 0x364   :  { %v22896_v54 = vpop.f32.mrf.mxu0  ;;  %v22917_v55 = vpop.f32.mrf.mxu1  ;;  %17930 = vmatmul.mubr.bf16.vlgmr.msra.gmra.mxu1 %v4289_v47  ;;  %23189 = vmatprep.subr.bf16.mxu0 %v25321_v48  ;;  %v25361_v47 = vld [vmem:[%s32109_s1 + $0x1ca8] sm:$0xff]  }
 0x365   :  { %v22897_v57 = vadd.f32 %v22896_v54, %v22895_v51  ;;  %23210 = vmatpush3.bf16.msra.mxu1 %v25320_v45  ;;  %18009 = vmatprep.mubr.bf16.mxu1 %v4292_v50  ;;  %v25362_v50 = vld [vmem:[%s32109_s1 + $0x1c60] sm:$0xff]  }
 0x366   :  { %v22898_v59 = vpop.f32.mrf.mxu0  ;;  %v22918_v60 = vpop.f32.mrf.mxu1  ;;  %23211 = vmatprep.subr.bf16.mxu1 %v25323_v52  ;;  %v25363_v52 = vld [vmem:[%s32109_s1 + $0x1c20] sm:$0xff]  }
 0x367   :  { %v17412_v62 = vadd.f32 %v22897_v57, %v29057_v11  ;;  %v22919_v63 = vadd.f32 %v22918_v60, %v22917_v55  ;;  %23190 = vmatpush3.bf16.msra.mxu0 %v25322_v49  ;;  %v25335_v11 = vld [vmem:[%s32109_s1 + $0x1bd8] sm:$0xff]   ;;  %v25364_v54 = vld [vmem:[%s32109_s1 + $0x1ce0] sm:$0xff]   ;;  %v25370_v60 = vld [vmem:[%s32109_s1 + $0x1c50] sm:$0xff]  }
 0x368   :  { %v22899_v1 = vpop.f32.mrf.mxu0  ;;  %23191 = vmatprep.subr.bf16.mxu0 %v25325_v56  ;;  %v22920_v2 = vpop.f32.mrf.mxu1  ;;  %v25365_v55 = vld [vmem:[%s32109_s1 + $0x1ca0] sm:$0xff]   ;;  %v25366_v56 = vld [vmem:[%s32109_s1 + $0x1c58] sm:$0xff]  }
 0x369   :  { %v29168_v4 = vadd.f32 %v22919_v63, %v17412_v62  ;;  %23212 = vmatpush3.bf16.msra.mxu1 %v25324_v53  ;;  %v25367_v57 = vld [vmem:[%s32109_s1 + $0x1c18] sm:$0xff]   ;;  %v25372_v62 = vld [vmem:[%s32109_s1 + $0x1cd0] sm:$0xff]   ;;  %v25375_v1 = vld [vmem:[%s32109_s1 + $0x1c08] sm:$0xff]  }
 0x36a   :  { %23213 = vmatprep.subr.bf16.mxu1 %v25327_v61  ;;  %v22921_v6 = vpop.f32.mrf.mxu1  ;;  %v25369_v59 = vld [vmem:[%s32109_s1 + $0x1c98] sm:$0xff]   ;;  %v25371_v61 = vld [vmem:[%s32109_s1 + $0x1c10] sm:$0xff]   ;;  %v25376_v2 = vld [vmem:[%s32109_s1 + $0x1cc8] sm:$0xff]  }
 0x36b   :  { %23192 = vmatpush3.bf16.msra.mxu0 %v25326_v58  ;;  %v25368_v58 = vld [vmem:[%s32109_s1 + $0x1cd8] sm:$0xff]   ;;  %v25373_v63 = vld [vmem:[%s32109_s1 + $0x1c90] sm:$0xff]  }
 0x36c   :  { %23193 = vmatprep.subr.bf16.mxu0 %v25329_v3  ;;  %v25377_v3 = vld [vmem:[%s32109_s1 + $0x1c88] sm:$0xff]   ;;  %v30_v6 = vld [vmem:[%s32108_s0 + $0x70] sm:$0xff] }
 0x36d   :  { %23214 = vmatpush3.bf16.msra.mxu1 %v25328_v0  ;;  %v25374_v0 = vld [vmem:[%s32109_s1 + $0x1c48] sm:$0xff]  }
 0x36e   :  { %23215 = vmatprep.subr.bf16.mxu1 %v25331_v7  ;;  %v25380_v7 = vld [vmem:[%s32109_s1 + $0x1cc0] sm:$0xff]  }
 0x36f   :  { %23194 = vmatpush3.bf16.msra.mxu0 %v25330_v5  ;;  %v25379_v5 = vld [vmem:[%s32109_s1 + $0x1c00] sm:$0xff]  }
 0x370   :  { %23195 = vmatprep.subr.bf16.mxu0 %v25333_v9  ;;  %v4293_v9 = vcombine.high %v30_v6, %v30_v6 }
 0x371   :  { %23216 = vmatpush3.bf16.msra.mxu1 %v25332_v8  ;;  %v4300_v8 = vrot.slane %v30_v6, %v26383_v41 }
 0x372   :  { %23217 = vmatprep.subr.bf16.mxu1 %v25335_v11 }
 0x373   :  { %23196 = vmatpush3.bf16.msra.mxu0 %v25334_v10  ;;  %v25381_v10 = vld [vmem:[%s32109_s1 + $0x1c80] sm:$0xff]   ;;  %v4308_v11 = vcombine.high %v4300_v8, %v4300_v8 }
 0x374   :  { %23197 = vmatprep.subr.bf16.mxu0 %v25337_v13  ;;  %v25382_v13 = vld [vmem:[%s32109_s1 + $0x1d78] sm:$0xff]  }
 0x375   :  { %23218 = vmatpush3.bf16.msra.mxu1 %v25336_v12  ;;  %v4316_v12 = vrot.slane %v4300_v8, %v26383_v41  ;;  %v25420_v8 = vld [vmem:[%s32109_s1 + $0x1e30] sm:$0xff]  }
 0x376   :  { %23219 = vmatprep.subr.bf16.mxu1 %v25339_v15  ;;  %v25383_v15 = vld [vmem:[%s32109_s1 + $0x1d38] sm:$0xff]  }
 0x377   :  { %23198 = vmatpush3.bf16.msra.mxu0 %v25338_v14  ;;  %v29337_v14 = vrot.slane %v4293_v9, %v26383_v41 }
 0x378   :  { %23199 = vmatprep.subr.bf16.mxu0 %v25341_v17  ;;  %v25384_v17 = vld [vmem:[%s32109_s1 + $0x1df8] sm:$0xff]  }
 0x379   :  { %23220 = vmatpush3.bf16.msra.mxu1 %v25340_v16  ;;  %v4330_v16 = vrot.slane %v4308_v11, %v26383_v41  ;;  %v25422_v11 = vld [vmem:[%s32109_s1 + $0x1eb0] sm:$0xff]  }
 0x37a   :  { %23221 = vmatprep.subr.bf16.mxu1 %v25343_v19  ;;  %v25385_v19 = vld [vmem:[%s32109_s1 + $0x1db8] sm:$0xff]  }
 0x37b   :  { %23200 = vmatpush3.bf16.msra.mxu0 %v25342_v18  ;;  %v4309_v18 = vcombine.high %v29337_v14, %v29337_v14 }
 0x37c   :  { %23201 = vmatprep.subr.bf16.mxu0 %v25345_v21  ;;  %v4338_v21 = vcombine.high %v4316_v12, %v4316_v12 }
 0x37d   :  { %23222 = vmatpush3.bf16.msra.mxu1 %v25344_v20  ;;  %v4340_v20 = vcombine.high %v4330_v16, %v4330_v16 }
 0x37e   :  { %23223 = vmatprep.subr.bf16.mxu1 %v25347_v23  ;;  %v4337_v23 = vrot.slane %v4309_v18, %v26383_v41 }
 0x37f   :  { %23202 = vmatpush3.bf16.msra.mxu0 %v25346_v22  ;;  %v25386_v22 = vld [vmem:[%s32109_s1 + $0x1d70] sm:$0xff]  }
 0x380   :  { %23231 = vmatprep.subr.bf16.mxu0 %v25350_v26  ;;  %v25388_v26 = vld [vmem:[%s32109_s1 + $0x1df0] sm:$0xff]  }
 0x381   :  { %23224 = vmatpush3.bf16.msra.mxu1 %v25349_v24  ;;  %v25387_v24 = vld [vmem:[%s32109_s1 + $0x1d30] sm:$0xff]  }
 0x382   :  { %v22939_v33 = vpop.f32.mrf.mxu0  ;;  %17970 = vmatmul.mubr.bf16.vlgmr.msra.gmra.mxu0 %v4274_v25  ;;  %23253 = vmatprep.subr.bf16.mxu1 %v25352_v28  ;;  %v25389_v28 = vld [vmem:[%s32109_s1 + $0x1db0] sm:$0xff]  }
 0x383   :  { %23232 = vmatpush3.bf16.msra.mxu0 %v25351_v27  ;;  %18049 = vmatprep.mubr.bf16.mxu0 %v4330_v16  ;;  %v4341_v27 = vcombine.high %v4337_v23, %v4337_v23  ;;  %v25424_v16 = vld [vmem:[%s32109_s1 + $0x1e28] sm:$0xff]  }
 0x384   :  { %v22940_v36 = vpop.f32.mrf.mxu0  ;;  %v22961_v37 = vpop.f32.mrf.mxu1  ;;  %18010 = vmatmul.mubr.bf16.vlgmr.msra.gmra.mxu1 %v4290_v30  ;;  %23233 = vmatprep.subr.bf16.mxu0 %v25354_v31  ;;  %v25390_v31 = vld [vmem:[%s32109_s1 + $0x1d68] sm:$0xff]  }
 0x385   :  { %v22941_v39 = vadd.f32 %v22940_v36, %v22939_v33  ;;  %23254 = vmatpush3.bf16.msra.mxu1 %v25353_v29  ;;  %18089 = vmatprep.mubr.bf16.mxu1 %v4340_v20  ;;  %v25391_v33 = vld [vmem:[%s32109_s1 + $0x1d28] sm:$0xff]  }
 0x386   :  { %v22942_v42 = vpop.f32.mrf.mxu0  ;;  %v22962_v43 = vpop.f32.mrf.mxu1  ;;  %23255 = vmatprep.subr.bf16.mxu1 %v25356_v34  ;;  %v25392_v36 = vld [vmem:[%s32109_s1 + $0x1de8] sm:$0xff]  }
 0x387   :  { %v17492_v45 = vadd.f32 %v22941_v39, %v29168_v4  ;;  %v22963_v46 = vadd.f32 %v22962_v43, %v22961_v37  ;;  %23234 = vmatpush3.bf16.msra.mxu0 %v25355_v32  ;;  %v25378_v4 = vld [vmem:[%s32109_s1 + $0x1c40] sm:$0xff]   ;;  %v25393_v39 = vld [vmem:[%s32109_s1 + $0x1da8] sm:$0xff]  }
 0x388   :  { %v22943_v48 = vpop.f32.mrf.mxu0  ;;  %23235 = vmatprep.subr.bf16.mxu0 %v25358_v38  ;;  %v22964_v49 = vpop.f32.mrf.mxu1  ;;  %v25394_v43 = vld [vmem:[%s32109_s1 + $0x1d60] sm:$0xff]  }
 0x389   :  { %v29269_v51 = vadd.f32 %v22963_v46, %v17492_v45  ;;  %23256 = vmatpush3.bf16.msra.mxu1 %v25357_v35  ;;  %v25395_v45 = vld [vmem:[%s32109_s1 + $0x1d20] sm:$0xff]   ;;  %v25398_v49 = vld [vmem:[%s32109_s1 + $0x1d58] sm:$0xff]  }
 0x38a   :  { %23257 = vmatprep.subr.bf16.mxu1 %v25360_v44  ;;  %v22965_v53 = vpop.f32.mrf.mxu1  ;;  %v25397_v48 = vld [vmem:[%s32109_s1 + $0x1da0] sm:$0xff]  }
 0x38b   :  { %23236 = vmatpush3.bf16.msra.mxu0 %v25359_v40  ;;  %v25402_v53 = vld [vmem:[%s32109_s1 + $0x1d50] sm:$0xff]  }
 0x38c   :  { %23237 = vmatprep.subr.bf16.mxu0 %v25362_v50  ;;  %v25399_v50 = vld [vmem:[%s32109_s1 + $0x1d18] sm:$0xff]  }
 0x38d   :  { %23258 = vmatpush3.bf16.msra.mxu1 %v25361_v47  ;;  %v25396_v47 = vld [vmem:[%s32109_s1 + $0x1de0] sm:$0xff]  }
 0x38e   :  { %23259 = vmatprep.subr.bf16.mxu1 %v25364_v54  ;;  %v25403_v54 = vld [vmem:[%s32109_s1 + $0x1d10] sm:$0xff]  }
 0x38f   :  { %23238 = vmatpush3.bf16.msra.mxu0 %v25363_v52  ;;  %v25401_v52 = vld [vmem:[%s32109_s1 + $0x1d98] sm:$0xff]  }
 0x390   :  { %23239 = vmatprep.subr.bf16.mxu0 %v25366_v56  ;;  %v25405_v56 = vld [vmem:[%s32109_s1 + $0x1d90] sm:$0xff]  }
 0x391   :  { %23260 = vmatpush3.bf16.msra.mxu1 %v25365_v55  ;;  %v25404_v55 = vld [vmem:[%s32109_s1 + $0x1dd0] sm:$0xff]  }
 0x392   :  { %23261 = vmatprep.subr.bf16.mxu1 %v25368_v58  ;;  %v25407_v58 = vld [vmem:[%s32109_s1 + $0x1d08] sm:$0xff]  }
 0x393   :  { %23240 = vmatpush3.bf16.msra.mxu0 %v25367_v57  ;;  %v25406_v57 = vld [vmem:[%s32109_s1 + $0x1d48] sm:$0xff]  }
 0x394   :  { %23241 = vmatprep.subr.bf16.mxu0 %v25370_v60  ;;  %v25409_v60 = vld [vmem:[%s32109_s1 + $0x1d88] sm:$0xff]  }
 0x395   :  { %23262 = vmatpush3.bf16.msra.mxu1 %v25369_v59  ;;  %v25408_v59 = vld [vmem:[%s32109_s1 + $0x1dc8] sm:$0xff]  }
 0x396   :  { %23263 = vmatprep.subr.bf16.mxu1 %v25372_v62  ;;  %v25411_v62 = vld [vmem:[%s32109_s1 + $0x1d00] sm:$0xff]  }
 0x397   :  { %23242 = vmatpush3.bf16.msra.mxu0 %v25371_v61  ;;  %v25410_v61 = vld [vmem:[%s32109_s1 + $0x1d40] sm:$0xff]  }
 0x398   :  { %23243 = vmatprep.subr.bf16.mxu0 %v25374_v0  ;;  %v25414_v0 = vld [vmem:[%s32109_s1 + $0x1d80] sm:$0xff]  }
 0x399   :  { %23264 = vmatpush3.bf16.msra.mxu1 %v25373_v63  ;;  %v25412_v63 = vld [vmem:[%s32109_s1 + $0x1dc0] sm:$0xff]  }
 0x39a   :  { %23265 = vmatprep.subr.bf16.mxu1 %v25376_v2  ;;  %v25415_v2 = vld [vmem:[%s32109_s1 + $0x1e78] sm:$0xff]  }
 0x39b   :  { %23244 = vmatpush3.bf16.msra.mxu0 %v25375_v1  ;;  %v4323_v1 = vrot.slane %v29337_v14, %v26383_v41  ;;  %v25423_v14 = vld [vmem:[%s32109_s1 + $0x1e68] sm:$0xff]  }
 0x39c   :  { %23245 = vmatprep.subr.bf16.mxu0 %v25378_v4  ;;  %v25417_v4 = vld [vmem:[%s32109_s1 + $0x1ef8] sm:$0xff]  }
 0x39d   :  { %23266 = vmatpush3.bf16.msra.mxu1 %v25377_v3  ;;  %v25416_v3 = vld [vmem:[%s32109_s1 + $0x1e38] sm:$0xff]   ;;  %v4339_v6 = vcombine.high %v4323_v1, %v4323_v1 }
 0x39e   :  { %23267 = vmatprep.subr.bf16.mxu1 %v25380_v7  ;;  %v25419_v7 = vld [vmem:[%s32109_s1 + $0x1e70] sm:$0xff]  }
 0x39f   :  { %23246 = vmatpush3.bf16.msra.mxu0 %v25379_v5  ;;  %v25418_v5 = vld [vmem:[%s32109_s1 + $0x1eb8] sm:$0xff]  }
 0x3a0   :  { %23275 = vmatprep.subr.bf16.mxu0 %v25382_v13 }
 0x3a1   :  { %23268 = vmatpush3.bf16.msra.mxu1 %v25381_v10  ;;  %v25421_v10 = vld [vmem:[%s32109_s1 + $0x1ef0] sm:$0xff]  }
 0x3a2   :  { %v22983_v25 = vpop.f32.mrf.mxu0  ;;  %18050 = vmatmul.mubr.bf16.vlgmr.msra.gmra.mxu0 %v4316_v12  ;;  %23297 = vmatprep.subr.bf16.mxu1 %v25384_v17 }
 0x3a3   :  { %23276 = vmatpush3.bf16.msra.mxu0 %v25383_v15  ;;  %18129 = vmatprep.mubr.bf16.mxu0 %v4337_v23 }
 0x3a4   :  { %v22984_v29 = vpop.f32.mrf.mxu0  ;;  %v23005_v30 = vpop.f32.mrf.mxu1  ;;  %18090 = vmatmul.mubr.bf16.vlgmr.msra.gmra.mxu1 %v4338_v21  ;;  %23277 = vmatprep.subr.bf16.mxu0 %v25386_v22  ;;  %v25426_v22 = vld [vmem:[%s32109_s1 + $0x1ea8] sm:$0xff]  }
 0x3a5   :  { %v22985_v32 = vadd.f32 %v22984_v29, %v22983_v25  ;;  %23298 = vmatpush3.bf16.msra.mxu1 %v25385_v19  ;;  %18169 = vmatprep.mubr.bf16.mxu1 %v4341_v27  ;;  %v25425_v19 = vld [vmem:[%s32109_s1 + $0x1ee8] sm:$0xff]   ;;  %v25427_v25 = vld [vmem:[%s32109_s1 + $0x1e60] sm:$0xff]  }
 0x3a6   :  { %v22986_v34 = vpop.f32.mrf.mxu0  ;;  %v23006_v35 = vpop.f32.mrf.mxu1  ;;  %23299 = vmatprep.subr.bf16.mxu1 %v25388_v26  ;;  %v25428_v27 = vld [vmem:[%s32109_s1 + $0x1e20] sm:$0xff]  }
 0x3a7   :  { %v17572_v37 = vadd.f32 %v22985_v32, %v29269_v51  ;;  %v23007_v38 = vadd.f32 %v23006_v35, %v23005_v30  ;;  %23278 = vmatpush3.bf16.msra.mxu0 %v25387_v24  ;;  %v25400_v51 = vld [vmem:[%s32109_s1 + $0x1dd8] sm:$0xff]   ;;  %v25429_v29 = vld [vmem:[%s32109_s1 + $0x1ee0] sm:$0xff]   ;;  %v25435_v35 = vld [vmem:[%s32109_s1 + $0x1e50] sm:$0xff]  }
 0x3a8   :  { %v22987_v40 = vpop.f32.mrf.mxu0  ;;  %23279 = vmatprep.subr.bf16.mxu0 %v25390_v31  ;;  %v23008_v42 = vpop.f32.mrf.mxu1  ;;  %v25430_v30 = vld [vmem:[%s32109_s1 + $0x1ea0] sm:$0xff]   ;;  %v25431_v31 = vld [vmem:[%s32109_s1 + $0x1e58] sm:$0xff]  }
 0x3a9   :  { %v29380_v44 = vadd.f32 %v23007_v38, %v17572_v37  ;;  %23300 = vmatpush3.bf16.msra.mxu1 %v25389_v28  ;;  %v25432_v32 = vld [vmem:[%s32109_s1 + $0x1e18] sm:$0xff]   ;;  %v25437_v37 = vld [vmem:[%s32109_s1 + $0x1ed0] sm:$0xff]   ;;  %v25440_v40 = vld [vmem:[%s32109_s1 + $0x1e08] sm:$0xff]  }
 0x3aa   :  { %23301 = vmatprep.subr.bf16.mxu1 %v25392_v36  ;;  %v23009_v46 = vpop.f32.mrf.mxu1  ;;  %v25434_v34 = vld [vmem:[%s32109_s1 + $0x1e98] sm:$0xff]   ;;  %v25436_v36 = vld [vmem:[%s32109_s1 + $0x1e10] sm:$0xff]   ;;  %v25441_v42 = vld [vmem:[%s32109_s1 + $0x1ec8] sm:$0xff]  }
 0x3ab   :  { %23280 = vmatpush3.bf16.msra.mxu0 %v25391_v33  ;;  %v25433_v33 = vld [vmem:[%s32109_s1 + $0x1ed8] sm:$0xff]   ;;  %v25438_v38 = vld [vmem:[%s32109_s1 + $0x1e90] sm:$0xff]  }
 0x3ac   :  { %23281 = vmatprep.subr.bf16.mxu0 %v25394_v43  ;;  %v25442_v43 = vld [vmem:[%s32109_s1 + $0x1e88] sm:$0xff]   ;;  %v31_v46 = vld [vmem:[%s32108_s0 + $0x78] sm:$0xff] }
 0x3ad   :  { %23302 = vmatpush3.bf16.msra.mxu1 %v25393_v39  ;;  %v25439_v39 = vld [vmem:[%s32109_s1 + $0x1e48] sm:$0xff]  }
 0x3ae   :  { %23303 = vmatprep.subr.bf16.mxu1 %v25396_v47  ;;  %v25445_v47 = vld [vmem:[%s32109_s1 + $0x1ec0] sm:$0xff]  }
 0x3af   :  { %23282 = vmatpush3.bf16.msra.mxu0 %v25395_v45  ;;  %v25444_v45 = vld [vmem:[%s32109_s1 + $0x1e00] sm:$0xff]  }
 0x3b0   :  { %23283 = vmatprep.subr.bf16.mxu0 %v25398_v49  ;;  %v4342_v49 = vcombine.high %v31_v46, %v31_v46 }
 0x3b1   :  { %23304 = vmatpush3.bf16.msra.mxu1 %v25397_v48  ;;  %v4349_v48 = vrot.slane %v31_v46, %v26383_v41 }
 0x3b2   :  { %23305 = vmatprep.subr.bf16.mxu1 %v25400_v51 }
 0x3b3   :  { %23284 = vmatpush3.bf16.msra.mxu0 %v25399_v50  ;;  %v25446_v50 = vld [vmem:[%s32109_s1 + $0x1e80] sm:$0xff]   ;;  %v4357_v51 = vcombine.high %v4349_v48, %v4349_v48 }
 0x3b4   :  { %23285 = vmatprep.subr.bf16.mxu0 %v25402_v53  ;;  %v25447_v53 = vld [vmem:[%s32109_s1 + $0x1f78] sm:$0xff]  }
 0x3b5   :  { %23306 = vmatpush3.bf16.msra.mxu1 %v25401_v52  ;;  %v4365_v52 = vrot.slane %v4349_v48, %v26383_v41  ;;  %v25485_v48 = vld [vmem:[%s32109_s1 + $0x2030] sm:$0xff]  }
 0x3b6   :  { %23307 = vmatprep.subr.bf16.mxu1 %v25404_v55  ;;  %v25448_v55 = vld [vmem:[%s32109_s1 + $0x1f38] sm:$0xff]  }
 0x3b7   :  { %23286 = vmatpush3.bf16.msra.mxu0 %v25403_v54  ;;  %v29549_v54 = vrot.slane %v4342_v49, %v26383_v41 }
 0x3b8   :  { %23287 = vmatprep.subr.bf16.mxu0 %v25406_v57  ;;  %v25449_v57 = vld [vmem:[%s32109_s1 + $0x1ff8] sm:$0xff]  }
 0x3b9   :  { %23308 = vmatpush3.bf16.msra.mxu1 %v25405_v56  ;;  %v4379_v56 = vrot.slane %v4357_v51, %v26383_v41  ;;  %v25487_v51 = vld [vmem:[%s32109_s1 + $0x20b0] sm:$0xff]  }
 0x3ba   :  { %23309 = vmatprep.subr.bf16.mxu1 %v25408_v59  ;;  %v25450_v59 = vld [vmem:[%s32109_s1 + $0x1fb8] sm:$0xff]  }
 0x3bb   :  { %23288 = vmatpush3.bf16.msra.mxu0 %v25407_v58  ;;  %v4358_v58 = vcombine.high %v29549_v54, %v29549_v54 }
 0x3bc   :  { %23289 = vmatprep.subr.bf16.mxu0 %v25410_v61  ;;  %v4387_v61 = vcombine.high %v4365_v52, %v4365_v52 }
 0x3bd   :  { %23310 = vmatpush3.bf16.msra.mxu1 %v25409_v60  ;;  %v4389_v60 = vcombine.high %v4379_v56, %v4379_v56 }
 0x3be   :  { %23311 = vmatprep.subr.bf16.mxu1 %v25412_v63  ;;  %v4386_v63 = vrot.slane %v4358_v58, %v26383_v41 }
 0x3bf   :  { %23290 = vmatpush3.bf16.msra.mxu0 %v25411_v62  ;;  %v25451_v62 = vld [vmem:[%s32109_s1 + $0x1f70] sm:$0xff]  }
 0x3c0   :  { %23319 = vmatprep.subr.bf16.mxu0 %v25415_v2  ;;  %v25453_v2 = vld [vmem:[%s32109_s1 + $0x1ff0] sm:$0xff]  }
 0x3c1   :  { %23312 = vmatpush3.bf16.msra.mxu1 %v25414_v0  ;;  %v25452_v0 = vld [vmem:[%s32109_s1 + $0x1f30] sm:$0xff]  }
 0x3c2   :  { %v23027_v9 = vpop.f32.mrf.mxu0  ;;  %18130 = vmatmul.mubr.bf16.vlgmr.msra.gmra.mxu0 %v4323_v1  ;;  %23341 = vmatprep.subr.bf16.mxu1 %v25417_v4  ;;  %v25454_v4 = vld [vmem:[%s32109_s1 + $0x1fb0] sm:$0xff]  }
 0x3c3   :  { %23320 = vmatpush3.bf16.msra.mxu0 %v25416_v3  ;;  %18209 = vmatprep.mubr.bf16.mxu0 %v4379_v56  ;;  %v4390_v3 = vcombine.high %v4386_v63, %v4386_v63  ;;  %v25489_v56 = vld [vmem:[%s32109_s1 + $0x2028] sm:$0xff]  }
 0x3c4   :  { %v23028_v12 = vpop.f32.mrf.mxu0  ;;  %v23049_v13 = vpop.f32.mrf.mxu1  ;;  %18170 = vmatmul.mubr.bf16.vlgmr.msra.gmra.mxu1 %v4339_v6  ;;  %23321 = vmatprep.subr.bf16.mxu0 %v25419_v7  ;;  %v25455_v7 = vld [vmem:[%s32109_s1 + $0x1f68] sm:$0xff]  }
 0x3c5   :  { %v23029_v15 = vadd.f32 %v23028_v12, %v23027_v9  ;;  %23342 = vmatpush3.bf16.msra.mxu1 %v25418_v5  ;;  %18249 = vmatprep.mubr.bf16.mxu1 %v4389_v60  ;;  %v25456_v9 = vld [vmem:[%s32109_s1 + $0x1f28] sm:$0xff]  }
 0x3c6   :  { %v23030_v17 = vpop.f32.mrf.mxu0  ;;  %v23050_v18 = vpop.f32.mrf.mxu1  ;;  %23343 = vmatprep.subr.bf16.mxu1 %v25421_v10  ;;  %v25457_v12 = vld [vmem:[%s32109_s1 + $0x1fe8] sm:$0xff]  }
 0x3c7   :  { %v17652_v20 = vadd.f32 %v23029_v15, %v29380_v44  ;;  %v23051_v21 = vadd.f32 %v23050_v18, %v23049_v13  ;;  %23322 = vmatpush3.bf16.msra.mxu0 %v25420_v8  ;;  %v25443_v44 = vld [vmem:[%s32109_s1 + $0x1e40] sm:$0xff]   ;;  %v25458_v15 = vld [vmem:[%s32109_s1 + $0x1fa8] sm:$0xff]  }
 0x3c8   :  { %v23031_v23 = vpop.f32.mrf.mxu0  ;;  %23323 = vmatprep.subr.bf16.mxu0 %v25423_v14  ;;  %v23052_v24 = vpop.f32.mrf.mxu1  ;;  %v25459_v18 = vld [vmem:[%s32109_s1 + $0x1f60] sm:$0xff]  }
 0x3c9   :  { %v29481_v26 = vadd.f32 %v23051_v21, %v17652_v20  ;;  %23344 = vmatpush3.bf16.msra.mxu1 %v25422_v11  ;;  %v25460_v20 = vld [vmem:[%s32109_s1 + $0x1f20] sm:$0xff]   ;;  %v25463_v24 = vld [vmem:[%s32109_s1 + $0x1f58] sm:$0xff]  }
 0x3ca   :  { %23345 = vmatprep.subr.bf16.mxu1 %v25425_v19  ;;  %v23053_v28 = vpop.f32.mrf.mxu1  ;;  %v25462_v23 = vld [vmem:[%s32109_s1 + $0x1fa0] sm:$0xff]  }
 0x3cb   :  { %23324 = vmatpush3.bf16.msra.mxu0 %v25424_v16  ;;  %v25467_v28 = vld [vmem:[%s32109_s1 + $0x1f50] sm:$0xff]  }
 0x3cc   :  { %23325 = vmatprep.subr.bf16.mxu0 %v25427_v25  ;;  %v25464_v25 = vld [vmem:[%s32109_s1 + $0x1f18] sm:$0xff]  }
 0x3cd   :  { %23346 = vmatpush3.bf16.msra.mxu1 %v25426_v22  ;;  %v25461_v22 = vld [vmem:[%s32109_s1 + $0x1fe0] sm:$0xff]  }
 0x3ce   :  { %23347 = vmatprep.subr.bf16.mxu1 %v25429_v29  ;;  %v25468_v29 = vld [vmem:[%s32109_s1 + $0x1f10] sm:$0xff]  }
 0x3cf   :  { %23326 = vmatpush3.bf16.msra.mxu0 %v25428_v27  ;;  %v25466_v27 = vld [vmem:[%s32109_s1 + $0x1f98] sm:$0xff]  }
 0x3d0   :  { %23327 = vmatprep.subr.bf16.mxu0 %v25431_v31  ;;  %v25470_v31 = vld [vmem:[%s32109_s1 + $0x1f90] sm:$0xff]  }
 0x3d1   :  { %23348 = vmatpush3.bf16.msra.mxu1 %v25430_v30  ;;  %v25469_v30 = vld [vmem:[%s32109_s1 + $0x1fd0] sm:$0xff]  }
 0x3d2   :  { %23349 = vmatprep.subr.bf16.mxu1 %v25433_v33  ;;  %v25472_v33 = vld [vmem:[%s32109_s1 + $0x1f08] sm:$0xff]  }
 0x3d3   :  { %23328 = vmatpush3.bf16.msra.mxu0 %v25432_v32  ;;  %v25471_v32 = vld [vmem:[%s32109_s1 + $0x1f48] sm:$0xff]  }
 0x3d4   :  { %23329 = vmatprep.subr.bf16.mxu0 %v25435_v35  ;;  %v25474_v35 = vld [vmem:[%s32109_s1 + $0x1f88] sm:$0xff]  }
 0x3d5   :  { %23350 = vmatpush3.bf16.msra.mxu1 %v25434_v34  ;;  %v25473_v34 = vld [vmem:[%s32109_s1 + $0x1fc8] sm:$0xff]  }
 0x3d6   :  { %23351 = vmatprep.subr.bf16.mxu1 %v25437_v37  ;;  %v25476_v37 = vld [vmem:[%s32109_s1 + $0x1f00] sm:$0xff]  }
 0x3d7   :  { %23330 = vmatpush3.bf16.msra.mxu0 %v25436_v36  ;;  %v25475_v36 = vld [vmem:[%s32109_s1 + $0x1f40] sm:$0xff]  }
 0x3d8   :  { %23331 = vmatprep.subr.bf16.mxu0 %v25439_v39  ;;  %v25479_v39 = vld [vmem:[%s32109_s1 + $0x1f80] sm:$0xff]  }
 0x3d9   :  { %23352 = vmatpush3.bf16.msra.mxu1 %v25438_v38  ;;  %v25477_v38 = vld [vmem:[%s32109_s1 + $0x1fc0] sm:$0xff]  }
 0x3da   :  { %23353 = vmatprep.subr.bf16.mxu1 %v25441_v42  ;;  %v25480_v42 = vld [vmem:[%s32109_s1 + $0x2078] sm:$0xff]  }
 0x3db   :  { %23332 = vmatpush3.bf16.msra.mxu0 %v25440_v40  ;;  %v4372_v40 = vrot.slane %v29549_v54, %v26383_v41  ;;  %v25488_v54 = vld [vmem:[%s32109_s1 + $0x2068] sm:$0xff]  }
 0x3dc   :  { %23333 = vmatprep.subr.bf16.mxu0 %v25443_v44  ;;  %v25482_v44 = vld [vmem:[%s32109_s1 + $0x20f8] sm:$0xff]  }
 0x3dd   :  { %23354 = vmatpush3.bf16.msra.mxu1 %v25442_v43  ;;  %v25481_v43 = vld [vmem:[%s32109_s1 + $0x2038] sm:$0xff]   ;;  %v4388_v46 = vcombine.high %v4372_v40, %v4372_v40 }
 0x3de   :  { %23355 = vmatprep.subr.bf16.mxu1 %v25445_v47  ;;  %v25484_v47 = vld [vmem:[%s32109_s1 + $0x2070] sm:$0xff]  }
 0x3df   :  { %23334 = vmatpush3.bf16.msra.mxu0 %v25444_v45  ;;  %v25483_v45 = vld [vmem:[%s32109_s1 + $0x20b8] sm:$0xff]  }
 0x3e0   :  { %23363 = vmatprep.subr.bf16.mxu0 %v25447_v53 }
 0x3e1   :  { %23356 = vmatpush3.bf16.msra.mxu1 %v25446_v50  ;;  %v25486_v50 = vld [vmem:[%s32109_s1 + $0x20f0] sm:$0xff]  }
 0x3e2   :  { %v23071_v1 = vpop.f32.mrf.mxu0  ;;  %18210 = vmatmul.mubr.bf16.vlgmr.msra.gmra.mxu0 %v4365_v52  ;;  %23385 = vmatprep.subr.bf16.mxu1 %v25449_v57 }
 0x3e3   :  { %23364 = vmatpush3.bf16.msra.mxu0 %v25448_v55  ;;  %18289 = vmatprep.mubr.bf16.mxu0 %v4386_v63 }
 0x3e4   :  { %v23072_v5 = vpop.f32.mrf.mxu0  ;;  %v23093_v6 = vpop.f32.mrf.mxu1  ;;  %18250 = vmatmul.mubr.bf16.vlgmr.msra.gmra.mxu1 %v4387_v61  ;;  %23365 = vmatprep.subr.bf16.mxu0 %v25451_v62  ;;  %v25491_v62 = vld [vmem:[%s32109_s1 + $0x20a8] sm:$0xff]  }
 0x3e5   :  { %v23073_v8 = vadd.f32 %v23072_v5, %v23071_v1  ;;  %23386 = vmatpush3.bf16.msra.mxu1 %v25450_v59  ;;  %18329 = vmatprep.mubr.bf16.mxu1 %v4390_v3  ;;  %v25490_v59 = vld [vmem:[%s32109_s1 + $0x20e8] sm:$0xff]   ;;  %v25492_v1 = vld [vmem:[%s32109_s1 + $0x2060] sm:$0xff]  }
 0x3e6   :  { %v23074_v10 = vpop.f32.mrf.mxu0  ;;  %v23094_v11 = vpop.f32.mrf.mxu1  ;;  %23387 = vmatprep.subr.bf16.mxu1 %v25453_v2  ;;  %v25493_v3 = vld [vmem:[%s32109_s1 + $0x2020] sm:$0xff]  }
 0x3e7   :  { %v17732_v13 = vadd.f32 %v23073_v8, %v29481_v26  ;;  %v23095_v14 = vadd.f32 %v23094_v11, %v23093_v6  ;;  %23366 = vmatpush3.bf16.msra.mxu0 %v25452_v0  ;;  %v25465_v26 = vld [vmem:[%s32109_s1 + $0x1fd8] sm:$0xff]   ;;  %v25494_v5 = vld [vmem:[%s32109_s1 + $0x20e0] sm:$0xff]   ;;  %v25500_v11 = vld [vmem:[%s32109_s1 + $0x2050] sm:$0xff]  }
 0x3e8   :  { %v23075_v16 = vpop.f32.mrf.mxu0  ;;  %23367 = vmatprep.subr.bf16.mxu0 %v25455_v7  ;;  %v23096_v17 = vpop.f32.mrf.mxu1  ;;  %v25495_v6 = vld [vmem:[%s32109_s1 + $0x20a0] sm:$0xff]   ;;  %v25496_v7 = vld [vmem:[%s32109_s1 + $0x2058] sm:$0xff]  }
 0x3e9   :  { %v29592_v19 = vadd.f32 %v23095_v14, %v17732_v13  ;;  %23388 = vmatpush3.bf16.msra.mxu1 %v25454_v4  ;;  %v25497_v8 = vld [vmem:[%s32109_s1 + $0x2018] sm:$0xff]   ;;  %v25502_v13 = vld [vmem:[%s32109_s1 + $0x20d0] sm:$0xff]   ;;  %v25505_v16 = vld [vmem:[%s32109_s1 + $0x2008] sm:$0xff]  }
 0x3ea   :  { %23389 = vmatprep.subr.bf16.mxu1 %v25457_v12  ;;  %v23097_v21 = vpop.f32.mrf.mxu1  ;;  %v25499_v10 = vld [vmem:[%s32109_s1 + $0x2098] sm:$0xff]   ;;  %v25501_v12 = vld [vmem:[%s32109_s1 + $0x2010] sm:$0xff]   ;;  %v25506_v17 = vld [vmem:[%s32109_s1 + $0x20c8] sm:$0xff]  }
 0x3eb   :  { %23368 = vmatpush3.bf16.msra.mxu0 %v25456_v9  ;;  %v25498_v9 = vld [vmem:[%s32109_s1 + $0x20d8] sm:$0xff]   ;;  %v25503_v14 = vld [vmem:[%s32109_s1 + $0x2090] sm:$0xff]   ;;  %v32_v21 = vld [vmem:[%s32108_s0 + $0x80] sm:$0xff] }
 0x3ec   :  { %23369 = vmatprep.subr.bf16.mxu0 %v25459_v18  ;;  %v25507_v18 = vld [vmem:[%s32109_s1 + $0x2088] sm:$0xff]  }
 0x3ed   :  { %23390 = vmatpush3.bf16.msra.mxu1 %v25458_v15  ;;  %v25504_v15 = vld [vmem:[%s32109_s1 + $0x2048] sm:$0xff]  }
 0x3ee   :  { %23391 = vmatprep.subr.bf16.mxu1 %v25461_v22  ;;  %v25510_v22 = vld [vmem:[%s32109_s1 + $0x20c0] sm:$0xff]  }
 0x3ef   :  { %23370 = vmatpush3.bf16.msra.mxu0 %v25460_v20  ;;  %v25509_v20 = vld [vmem:[%s32109_s1 + $0x2000] sm:$0xff]  }
 0x3f0   :  { %23371 = vmatprep.subr.bf16.mxu0 %v25463_v24  ;;  %v4391_v24 = vcombine.high %v32_v21, %v32_v21 }
 0x3f1   :  { %23392 = vmatpush3.bf16.msra.mxu1 %v25462_v23  ;;  %v4398_v23 = vrot.slane %v32_v21, %v26383_v41 }
 0x3f2   :  { %23393 = vmatprep.subr.bf16.mxu1 %v25465_v26 }
 0x3f3   :  { %23372 = vmatpush3.bf16.msra.mxu0 %v25464_v25  ;;  %v25511_v25 = vld [vmem:[%s32109_s1 + $0x2080] sm:$0xff]   ;;  %v4406_v26 = vcombine.high %v4398_v23, %v4398_v23 }
 0x3f4   :  { %23373 = vmatprep.subr.bf16.mxu0 %v25467_v28  ;;  %v25512_v28 = vld [vmem:[%s32109_s1 + $0x2178] sm:$0xff]  }
 0x3f5   :  { %23394 = vmatpush3.bf16.msra.mxu1 %v25466_v27  ;;  %v4414_v27 = vrot.slane %v4398_v23, %v26383_v41  ;;  %v25550_v23 = vld [vmem:[%s32109_s1 + $0x2230] sm:$0xff]  }
 0x3f6   :  { %23395 = vmatprep.subr.bf16.mxu1 %v25469_v30  ;;  %v25513_v30 = vld [vmem:[%s32109_s1 + $0x2138] sm:$0xff]  }
 0x3f7   :  { %23374 = vmatpush3.bf16.msra.mxu0 %v25468_v29  ;;  %v29761_v29 = vrot.slane %v4391_v24, %v26383_v41 }
 0x3f8   :  { %23375 = vmatprep.subr.bf16.mxu0 %v25471_v32  ;;  %v25514_v32 = vld [vmem:[%s32109_s1 + $0x21f8] sm:$0xff]  }
 0x3f9   :  { %23396 = vmatpush3.bf16.msra.mxu1 %v25470_v31  ;;  %v4428_v31 = vrot.slane %v4406_v26, %v26383_v41  ;;  %v25552_v26 = vld [vmem:[%s32109_s1 + $0x22b0] sm:$0xff]  }
 0x3fa   :  { %23397 = vmatprep.subr.bf16.mxu1 %v25473_v34  ;;  %v25515_v34 = vld [vmem:[%s32109_s1 + $0x21b8] sm:$0xff]  }
 0x3fb   :  { %23376 = vmatpush3.bf16.msra.mxu0 %v25472_v33  ;;  %v4407_v33 = vcombine.high %v29761_v29, %v29761_v29 }
 0x3fc   :  { %23377 = vmatprep.subr.bf16.mxu0 %v25475_v36  ;;  %v4436_v36 = vcombine.high %v4414_v27, %v4414_v27 }
 0x3fd   :  { %23398 = vmatpush3.bf16.msra.mxu1 %v25474_v35  ;;  %v4438_v35 = vcombine.high %v4428_v31, %v4428_v31 }
 0x3fe   :  { %23399 = vmatprep.subr.bf16.mxu1 %v25477_v38  ;;  %v4435_v38 = vrot.slane %v4407_v33, %v26383_v41 }
 0x3ff   :  { %23378 = vmatpush3.bf16.msra.mxu0 %v25476_v37  ;;  %v25516_v37 = vld [vmem:[%s32109_s1 + $0x2170] sm:$0xff]  }
 0x400   :  { %23407 = vmatprep.subr.bf16.mxu0 %v25480_v42  ;;  %v25518_v42 = vld [vmem:[%s32109_s1 + $0x21f0] sm:$0xff]  }
 0x401   :  { %23400 = vmatpush3.bf16.msra.mxu1 %v25479_v39  ;;  %v25517_v39 = vld [vmem:[%s32109_s1 + $0x2130] sm:$0xff]  }
 0x402   :  { %v23115_v49 = vpop.f32.mrf.mxu0  ;;  %18290 = vmatmul.mubr.bf16.vlgmr.msra.gmra.mxu0 %v4372_v40  ;;  %23429 = vmatprep.subr.bf16.mxu1 %v25482_v44  ;;  %v25519_v44 = vld [vmem:[%s32109_s1 + $0x21b0] sm:$0xff]  }
 0x403   :  { %23408 = vmatpush3.bf16.msra.mxu0 %v25481_v43  ;;  %18369 = vmatprep.mubr.bf16.mxu0 %v4428_v31  ;;  %v4439_v43 = vcombine.high %v4435_v38, %v4435_v38  ;;  %v25554_v31 = vld [vmem:[%s32109_s1 + $0x2228] sm:$0xff]  }
 0x404   :  { %v23116_v52 = vpop.f32.mrf.mxu0  ;;  %v23137_v53 = vpop.f32.mrf.mxu1  ;;  %18330 = vmatmul.mubr.bf16.vlgmr.msra.gmra.mxu1 %v4388_v46  ;;  %23409 = vmatprep.subr.bf16.mxu0 %v25484_v47  ;;  %v25520_v47 = vld [vmem:[%s32109_s1 + $0x2168] sm:$0xff]  }
 0x405   :  { %v23117_v55 = vadd.f32 %v23116_v52, %v23115_v49  ;;  %23430 = vmatpush3.bf16.msra.mxu1 %v25483_v45  ;;  %18409 = vmatprep.mubr.bf16.mxu1 %v4438_v35  ;;  %v25521_v49 = vld [vmem:[%s32109_s1 + $0x2128] sm:$0xff]  }
 0x406   :  { %v23118_v57 = vpop.f32.mrf.mxu0  ;;  %v23138_v58 = vpop.f32.mrf.mxu1  ;;  %23431 = vmatprep.subr.bf16.mxu1 %v25486_v50  ;;  %v25522_v52 = vld [vmem:[%s32109_s1 + $0x21e8] sm:$0xff]  }
 0x407   :  { %v17812_v60 = vadd.f32 %v23117_v55, %v29592_v19  ;;  %v23139_v61 = vadd.f32 %v23138_v58, %v23137_v53  ;;  %23410 = vmatpush3.bf16.msra.mxu0 %v25485_v48  ;;  %v25508_v19 = vld [vmem:[%s32109_s1 + $0x2040] sm:$0xff]   ;;  %v25523_v55 = vld [vmem:[%s32109_s1 + $0x21a8] sm:$0xff]  }
 0x408   :  { %v23119_v63 = vpop.f32.mrf.mxu0  ;;  %23411 = vmatprep.subr.bf16.mxu0 %v25488_v54  ;;  %v23140_v0 = vpop.f32.mrf.mxu1  ;;  %v25524_v58 = vld [vmem:[%s32109_s1 + $0x2160] sm:$0xff]  }
 0x409   :  { %v29693_v2 = vadd.f32 %v23139_v61, %v17812_v60  ;;  %23432 = vmatpush3.bf16.msra.mxu1 %v25487_v51  ;;  %v25525_v60 = vld [vmem:[%s32109_s1 + $0x2120] sm:$0xff]   ;;  %v25528_v0 = vld [vmem:[%s32109_s1 + $0x2158] sm:$0xff]  }
 0x40a   :  { %23433 = vmatprep.subr.bf16.mxu1 %v25490_v59  ;;  %v23141_v4 = vpop.f32.mrf.mxu1  ;;  %v25527_v63 = vld [vmem:[%s32109_s1 + $0x21a0] sm:$0xff]  }
 0x40b   :  { %23412 = vmatpush3.bf16.msra.mxu0 %v25489_v56  ;;  %v25532_v4 = vld [vmem:[%s32109_s1 + $0x2150] sm:$0xff]  }
 0x40c   :  { %23413 = vmatprep.subr.bf16.mxu0 %v25492_v1  ;;  %v25529_v1 = vld [vmem:[%s32109_s1 + $0x2118] sm:$0xff]  }
 0x40d   :  { %23434 = vmatpush3.bf16.msra.mxu1 %v25491_v62  ;;  %v25526_v62 = vld [vmem:[%s32109_s1 + $0x21e0] sm:$0xff]  }
 0x40e   :  { %23435 = vmatprep.subr.bf16.mxu1 %v25494_v5  ;;  %v25533_v5 = vld [vmem:[%s32109_s1 + $0x2110] sm:$0xff]  }
 0x40f   :  { %23414 = vmatpush3.bf16.msra.mxu0 %v25493_v3  ;;  %v25531_v3 = vld [vmem:[%s32109_s1 + $0x2198] sm:$0xff]  }
 0x410   :  { %23415 = vmatprep.subr.bf16.mxu0 %v25496_v7  ;;  %v25535_v7 = vld [vmem:[%s32109_s1 + $0x2190] sm:$0xff]  }
 0x411   :  { %23436 = vmatpush3.bf16.msra.mxu1 %v25495_v6  ;;  %v25534_v6 = vld [vmem:[%s32109_s1 + $0x21d0] sm:$0xff]  }
 0x412   :  { %23437 = vmatprep.subr.bf16.mxu1 %v25498_v9  ;;  %v25537_v9 = vld [vmem:[%s32109_s1 + $0x2108] sm:$0xff]  }
 0x413   :  { %23416 = vmatpush3.bf16.msra.mxu0 %v25497_v8  ;;  %v25536_v8 = vld [vmem:[%s32109_s1 + $0x2148] sm:$0xff]  }
 0x414   :  { %23417 = vmatprep.subr.bf16.mxu0 %v25500_v11  ;;  %v25539_v11 = vld [vmem:[%s32109_s1 + $0x2188] sm:$0xff]  }
 0x415   :  { %23438 = vmatpush3.bf16.msra.mxu1 %v25499_v10  ;;  %v25538_v10 = vld [vmem:[%s32109_s1 + $0x21c8] sm:$0xff]  }
 0x416   :  { %23439 = vmatprep.subr.bf16.mxu1 %v25502_v13  ;;  %v25541_v13 = vld [vmem:[%s32109_s1 + $0x2100] sm:$0xff]  }
 0x417   :  { %23418 = vmatpush3.bf16.msra.mxu0 %v25501_v12  ;;  %v25540_v12 = vld [vmem:[%s32109_s1 + $0x2140] sm:$0xff]  }
 0x418   :  { %23419 = vmatprep.subr.bf16.mxu0 %v25504_v15  ;;  %v25544_v15 = vld [vmem:[%s32109_s1 + $0x2180] sm:$0xff]  }
 0x419   :  { %23440 = vmatpush3.bf16.msra.mxu1 %v25503_v14  ;;  %v25542_v14 = vld [vmem:[%s32109_s1 + $0x21c0] sm:$0xff]  }
 0x41a   :  { %23441 = vmatprep.subr.bf16.mxu1 %v25506_v17  ;;  %v25545_v17 = vld [vmem:[%s32109_s1 + $0x2278] sm:$0xff]  }
 0x41b   :  { %23420 = vmatpush3.bf16.msra.mxu0 %v25505_v16  ;;  %v4421_v16 = vrot.slane %v29761_v29, %v26383_v41  ;;  %v25553_v29 = vld [vmem:[%s32109_s1 + $0x2268] sm:$0xff]  }
 0x41c   :  { %23421 = vmatprep.subr.bf16.mxu0 %v25508_v19  ;;  %v25547_v19 = vld [vmem:[%s32109_s1 + $0x22f8] sm:$0xff]  }
 0x41d   :  { %23442 = vmatpush3.bf16.msra.mxu1 %v25507_v18  ;;  %v25546_v18 = vld [vmem:[%s32109_s1 + $0x2238] sm:$0xff]   ;;  %v4437_v21 = vcombine.high %v4421_v16, %v4421_v16 }
 0x41e   :  { %23443 = vmatprep.subr.bf16.mxu1 %v25510_v22  ;;  %v25549_v22 = vld [vmem:[%s32109_s1 + $0x2270] sm:$0xff]  }
 0x41f   :  { %23422 = vmatpush3.bf16.msra.mxu0 %v25509_v20  ;;  %v25548_v20 = vld [vmem:[%s32109_s1 + $0x22b8] sm:$0xff]  }
 0x420   :  { %23451 = vmatprep.subr.bf16.mxu0 %v25512_v28 }
 0x421   :  { %23444 = vmatpush3.bf16.msra.mxu1 %v25511_v25  ;;  %v25551_v25 = vld [vmem:[%s32109_s1 + $0x22f0] sm:$0xff]  }
 0x422   :  { %v23159_v40 = vpop.f32.mrf.mxu0  ;;  %18370 = vmatmul.mubr.bf16.vlgmr.msra.gmra.mxu0 %v4414_v27  ;;  %23473 = vmatprep.subr.bf16.mxu1 %v25514_v32 }
 0x423   :  { %23452 = vmatpush3.bf16.msra.mxu0 %v25513_v30  ;;  %18449 = vmatprep.mubr.bf16.mxu0 %v4435_v38 }
 0x424   :  { %v23160_v45 = vpop.f32.mrf.mxu0  ;;  %v23181_v46 = vpop.f32.mrf.mxu1  ;;  %18410 = vmatmul.mubr.bf16.vlgmr.msra.gmra.mxu1 %v4436_v36  ;;  %23453 = vmatprep.subr.bf16.mxu0 %v25516_v37  ;;  %v25556_v37 = vld [vmem:[%s32109_s1 + $0x22a8] sm:$0xff]  }
 0x425   :  { %v23161_v48 = vadd.f32 %v23160_v45, %v23159_v40  ;;  %23474 = vmatpush3.bf16.msra.mxu1 %v25515_v34  ;;  %18489 = vmatprep.mubr.bf16.mxu1 %v4439_v43  ;;  %v25555_v34 = vld [vmem:[%s32109_s1 + $0x22e8] sm:$0xff]   ;;  %v25557_v40 = vld [vmem:[%s32109_s1 + $0x2260] sm:$0xff]  }
 0x426   :  { %v23162_v50 = vpop.f32.mrf.mxu0  ;;  %v23182_v51 = vpop.f32.mrf.mxu1  ;;  %23475 = vmatprep.subr.bf16.mxu1 %v25518_v42  ;;  %v25558_v43 = vld [vmem:[%s32109_s1 + $0x2220] sm:$0xff]  }
 0x427   :  { %v17892_v53 = vadd.f32 %v23161_v48, %v29693_v2  ;;  %v23183_v54 = vadd.f32 %v23182_v51, %v23181_v46  ;;  %23454 = vmatpush3.bf16.msra.mxu0 %v25517_v39  ;;  %v25530_v2 = vld [vmem:[%s32109_s1 + $0x21d8] sm:$0xff]   ;;  %v25559_v45 = vld [vmem:[%s32109_s1 + $0x22e0] sm:$0xff]   ;;  %v25565_v51 = vld [vmem:[%s32109_s1 + $0x2250] sm:$0xff]  }
 0x428   :  { %v23163_v56 = vpop.f32.mrf.mxu0  ;;  %23455 = vmatprep.subr.bf16.mxu0 %v25520_v47  ;;  %v23184_v57 = vpop.f32.mrf.mxu1  ;;  %v25560_v46 = vld [vmem:[%s32109_s1 + $0x22a0] sm:$0xff]   ;;  %v25561_v47 = vld [vmem:[%s32109_s1 + $0x2258] sm:$0xff]  }
 0x429   :  { %v29804_v59 = vadd.f32 %v23183_v54, %v17892_v53  ;;  %23476 = vmatpush3.bf16.msra.mxu1 %v25519_v44  ;;  %v25562_v48 = vld [vmem:[%s32109_s1 + $0x2218] sm:$0xff]   ;;  %v25567_v53 = vld [vmem:[%s32109_s1 + $0x22d0] sm:$0xff]   ;;  %v25570_v56 = vld [vmem:[%s32109_s1 + $0x2208] sm:$0xff]  }
 0x42a   :  { %23477 = vmatprep.subr.bf16.mxu1 %v25522_v52  ;;  %v23185_v61 = vpop.f32.mrf.mxu1  ;;  %v25564_v50 = vld [vmem:[%s32109_s1 + $0x2298] sm:$0xff]   ;;  %v25566_v52 = vld [vmem:[%s32109_s1 + $0x2210] sm:$0xff]   ;;  %v25571_v57 = vld [vmem:[%s32109_s1 + $0x22c8] sm:$0xff]  }
 0x42b   :  { %23456 = vmatpush3.bf16.msra.mxu0 %v25521_v49  ;;  %v25563_v49 = vld [vmem:[%s32109_s1 + $0x22d8] sm:$0xff]   ;;  %v25568_v54 = vld [vmem:[%s32109_s1 + $0x2290] sm:$0xff]   ;;  %v25575_v61 = vld [vmem:[%s32109_s1 + $0x22c0] sm:$0xff]  }
 0x42c   :  { %23457 = vmatprep.subr.bf16.mxu0 %v25524_v58  ;;  %v25572_v58 = vld [vmem:[%s32109_s1 + $0x2288] sm:$0xff]  }
 0x42d   :  { %23478 = vmatpush3.bf16.msra.mxu1 %v25523_v55  ;;  %v25569_v55 = vld [vmem:[%s32109_s1 + $0x2248] sm:$0xff]  }
 0x42e   :  { %23479 = vmatprep.subr.bf16.mxu1 %v25526_v62  ;;  %v33_v62 = vld [vmem:[%s32108_s0 + $0x88] sm:$0xff] }
 0x42f   :  { %23458 = vmatpush3.bf16.msra.mxu0 %v25525_v60  ;;  %v25574_v60 = vld [vmem:[%s32109_s1 + $0x2200] sm:$0xff]  }
 0x430   :  { %23459 = vmatprep.subr.bf16.mxu0 %v25528_v0  ;;  %v25576_v0 = vld [vmem:[%s32109_s1 + $0x2280] sm:$0xff]  }
 0x431   :  { %23480 = vmatpush3.bf16.msra.mxu1 %v25527_v63  ;;  %v4447_v63 = vrot.slane %v33_v62, %v26383_v41 }
 0x432   :  { %23481 = vmatprep.subr.bf16.mxu1 %v25530_v2  ;;  %v25577_v2 = vld [vmem:[%s32109_s1 + $0x2378] sm:$0xff]  }
 0x433   :  { %23460 = vmatpush3.bf16.msra.mxu0 %v25529_v1  ;;  %v4440_v1 = vcombine.high %v33_v62, %v33_v62  ;;  %v25614_v62 = vld [vmem:[%s32109_s1 + $0x2470] sm:$0xff]  }
 0x434   :  { %23461 = vmatprep.subr.bf16.mxu0 %v25532_v4  ;;  %v4463_v4 = vrot.slane %v4447_v63, %v26383_v41 }
 0x435   :  { %23482 = vmatpush3.bf16.msra.mxu1 %v25531_v3  ;;  %v4455_v3 = vcombine.high %v4447_v63, %v4447_v63  ;;  %v25615_v63 = vld [vmem:[%s32109_s1 + $0x2430] sm:$0xff]  }
 0x436   :  { %23483 = vmatprep.subr.bf16.mxu1 %v25534_v6  ;;  %v29976_v6 = vrot.slane %v4440_v1, %v26383_v41  ;;  %v25616_v1 = vld [vmem:[%s32109_s1 + $0x24f0] sm:$0xff]  }
 0x437   :  { %23462 = vmatpush3.bf16.msra.mxu0 %v25533_v5  ;;  %v25578_v5 = vld [vmem:[%s32109_s1 + $0x2338] sm:$0xff]  }
 0x438   :  { %23463 = vmatprep.subr.bf16.mxu0 %v25536_v8  ;;  %v4477_v8 = vrot.slane %v4455_v3, %v26383_v41 }
 0x439   :  { %23484 = vmatpush3.bf16.msra.mxu1 %v25535_v7  ;;  %v25579_v7 = vld [vmem:[%s32109_s1 + $0x23f8] sm:$0xff]  }
 0x43a   :  { %23485 = vmatprep.subr.bf16.mxu1 %v25538_v10  ;;  %v4456_v10 = vcombine.high %v29976_v6, %v29976_v6 }
 0x43b   :  { %23464 = vmatpush3.bf16.msra.mxu0 %v25537_v9  ;;  %v25580_v9 = vld [vmem:[%s32109_s1 + $0x23b8] sm:$0xff]  }
 0x43c   :  { %23465 = vmatprep.subr.bf16.mxu0 %v25540_v12  ;;  %v25581_v12 = vld [vmem:[%s32109_s1 + $0x2370] sm:$0xff]  }
 0x43d   :  { %23486 = vmatpush3.bf16.msra.mxu1 %v25539_v11  ;;  %v4485_v11 = vcombine.high %v4463_v4, %v4463_v4 }
 0x43e   :  { %23487 = vmatprep.subr.bf16.mxu1 %v25542_v14  ;;  %v25582_v14 = vld [vmem:[%s32109_s1 + $0x2330] sm:$0xff]  }
 0x43f   :  { %23466 = vmatpush3.bf16.msra.mxu0 %v25541_v13  ;;  %v4487_v13 = vcombine.high %v4477_v8, %v4477_v8 }
 0x440   :  { %23495 = vmatprep.subr.bf16.mxu0 %v25545_v17  ;;  %v25583_v17 = vld [vmem:[%s32109_s1 + $0x23f0] sm:$0xff]  }
 0x441   :  { %23488 = vmatpush3.bf16.msra.mxu1 %v25544_v15  ;;  %v4484_v15 = vrot.slane %v4456_v10, %v26383_v41  ;;  %v25620_v10 = vld [vmem:[%s32109_s1 + $0x24e8] sm:$0xff]  }
 0x442   :  { %v23203_v24 = vpop.f32.mrf.mxu0  ;;  %18450 = vmatmul.mubr.bf16.vlgmr.msra.gmra.mxu0 %v4421_v16  ;;  %23517 = vmatprep.subr.bf16.mxu1 %v25547_v19 }
 0x443   :  { %23496 = vmatpush3.bf16.msra.mxu0 %v25546_v18  ;;  %18529 = vmatprep.mubr.bf16.mxu0 %v4477_v8  ;;  %v25584_v18 = vld [vmem:[%s32109_s1 + $0x23b0] sm:$0xff]   ;;  %v4488_v19 = vcombine.high %v4484_v15, %v4484_v15 }
 0x444   :  { %v23204_v27 = vpop.f32.mrf.mxu0  ;;  %v23225_v28 = vpop.f32.mrf.mxu1  ;;  %18490 = vmatmul.mubr.bf16.vlgmr.msra.gmra.mxu1 %v4437_v21  ;;  %23497 = vmatprep.subr.bf16.mxu0 %v25549_v22  ;;  %v25585_v22 = vld [vmem:[%s32109_s1 + $0x2368] sm:$0xff]  }
 0x445   :  { %v23205_v30 = vadd.f32 %v23204_v27, %v23203_v24  ;;  %23518 = vmatpush3.bf16.msra.mxu1 %v25548_v20  ;;  %18569 = vmatprep.mubr.bf16.mxu1 %v4487_v13  ;;  %v25586_v24 = vld [vmem:[%s32109_s1 + $0x2328] sm:$0xff]  }
 0x446   :  { %v23206_v32 = vpop.f32.mrf.mxu0  ;;  %v23226_v33 = vpop.f32.mrf.mxu1  ;;  %23519 = vmatprep.subr.bf16.mxu1 %v25551_v25  ;;  %v25587_v27 = vld [vmem:[%s32109_s1 + $0x23e8] sm:$0xff]  }
 0x447   :  { %v17972_v35 = vadd.f32 %v23205_v30, %v29804_v59  ;;  %v23227_v36 = vadd.f32 %v23226_v33, %v23225_v28  ;;  %23498 = vmatpush3.bf16.msra.mxu0 %v25550_v23  ;;  %v25573_v59 = vld [vmem:[%s32109_s1 + $0x2240] sm:$0xff]   ;;  %v25588_v30 = vld [vmem:[%s32109_s1 + $0x23a8] sm:$0xff]  }
 0x448   :  { %v23207_v38 = vpop.f32.mrf.mxu0  ;;  %23499 = vmatprep.subr.bf16.mxu0 %v25553_v29  ;;  %v23228_v39 = vpop.f32.mrf.mxu1  ;;  %v25589_v33 = vld [vmem:[%s32109_s1 + $0x2360] sm:$0xff]   ;;  %v25621_v13 = vld [vmem:[%s32109_s1 + $0x24a8] sm:$0xff]  }
 0x449   :  { %v29905_v42 = vadd.f32 %v23227_v36, %v17972_v35  ;;  %23520 = vmatpush3.bf16.msra.mxu1 %v25552_v26  ;;  %v25590_v35 = vld [vmem:[%s32109_s1 + $0x2320] sm:$0xff]   ;;  %v25593_v39 = vld [vmem:[%s32109_s1 + $0x2358] sm:$0xff]  }
 0x44a   :  { %23521 = vmatprep.subr.bf16.mxu1 %v25555_v34  ;;  %v23229_v44 = vpop.f32.mrf.mxu1  ;;  %v25592_v38 = vld [vmem:[%s32109_s1 + $0x23a0] sm:$0xff]  }
 0x44b   :  { %23500 = vmatpush3.bf16.msra.mxu0 %v25554_v31  ;;  %v25597_v44 = vld [vmem:[%s32109_s1 + $0x2350] sm:$0xff]  }
 0x44c   :  { %23501 = vmatprep.subr.bf16.mxu0 %v25557_v40  ;;  %v25594_v40 = vld [vmem:[%s32109_s1 + $0x2318] sm:$0xff]  }
 0x44d   :  { %23522 = vmatpush3.bf16.msra.mxu1 %v25556_v37  ;;  %v25591_v37 = vld [vmem:[%s32109_s1 + $0x23e0] sm:$0xff]  }
 0x44e   :  { %23523 = vmatprep.subr.bf16.mxu1 %v25559_v45  ;;  %v25598_v45 = vld [vmem:[%s32109_s1 + $0x2310] sm:$0xff]  }
 0x44f   :  { %23502 = vmatpush3.bf16.msra.mxu0 %v25558_v43  ;;  %v25596_v43 = vld [vmem:[%s32109_s1 + $0x2398] sm:$0xff]  }
 0x450   :  { %23503 = vmatprep.subr.bf16.mxu0 %v25561_v47  ;;  %v25600_v47 = vld [vmem:[%s32109_s1 + $0x2390] sm:$0xff]  }
 0x451   :  { %23524 = vmatpush3.bf16.msra.mxu1 %v25560_v46  ;;  %v25599_v46 = vld [vmem:[%s32109_s1 + $0x23d0] sm:$0xff]  }
 0x452   :  { %23525 = vmatprep.subr.bf16.mxu1 %v25563_v49  ;;  %v25602_v49 = vld [vmem:[%s32109_s1 + $0x2308] sm:$0xff]  }
 0x453   :  { %23504 = vmatpush3.bf16.msra.mxu0 %v25562_v48  ;;  %v25601_v48 = vld [vmem:[%s32109_s1 + $0x2348] sm:$0xff]  }
 0x454   :  { %23505 = vmatprep.subr.bf16.mxu0 %v25565_v51  ;;  %v25604_v51 = vld [vmem:[%s32109_s1 + $0x2388] sm:$0xff]  }
 0x455   :  { %23526 = vmatpush3.bf16.msra.mxu1 %v25564_v50  ;;  %v25603_v50 = vld [vmem:[%s32109_s1 + $0x23c8] sm:$0xff]  }
 0x456   :  { %23527 = vmatprep.subr.bf16.mxu1 %v25567_v53  ;;  %v25606_v53 = vld [vmem:[%s32109_s1 + $0x2300] sm:$0xff]  }
 0x457   :  { %23506 = vmatpush3.bf16.msra.mxu0 %v25566_v52  ;;  %v25605_v52 = vld [vmem:[%s32109_s1 + $0x2340] sm:$0xff]  }
 0x458   :  { %23507 = vmatprep.subr.bf16.mxu0 %v25569_v55  ;;  %v25609_v55 = vld [vmem:[%s32109_s1 + $0x2380] sm:$0xff]  }
 0x459   :  { %23528 = vmatpush3.bf16.msra.mxu1 %v25568_v54  ;;  %v25607_v54 = vld [vmem:[%s32109_s1 + $0x23c0] sm:$0xff]  }
 0x45a   :  { %23529 = vmatprep.subr.bf16.mxu1 %v25571_v57  ;;  %v25610_v57 = vld [vmem:[%s32109_s1 + $0x2478] sm:$0xff]  }
 0x45b   :  { %23508 = vmatpush3.bf16.msra.mxu0 %v25570_v56  ;;  %v4470_v56 = vrot.slane %v29976_v6, %v26383_v41 }
 0x45c   :  { %23509 = vmatprep.subr.bf16.mxu0 %v25573_v59  ;;  %v25612_v59 = vld [vmem:[%s32109_s1 + $0x24f8] sm:$0xff]  }
 0x45d   :  { %23530 = vmatpush3.bf16.msra.mxu1 %v25572_v58  ;;  %v25611_v58 = vld [vmem:[%s32109_s1 + $0x2438] sm:$0xff]  }
 0x45e   :  { %23531 = vmatprep.subr.bf16.mxu1 %v25575_v61  ;;  %v4486_v61 = vcombine.high %v4470_v56, %v4470_v56 }
 0x45f   :  { %23510 = vmatpush3.bf16.msra.mxu0 %v25574_v60  ;;  %v25613_v60 = vld [vmem:[%s32109_s1 + $0x24b8] sm:$0xff]  }
 0x460   :  { %23539 = vmatprep.subr.bf16.mxu0 %v25577_v2  ;;  %v25617_v2 = vld [vmem:[%s32109_s1 + $0x24b0] sm:$0xff]  }
 0x461   :  { %23532 = vmatpush3.bf16.msra.mxu1 %v25576_v0 }
 0x462   :  { %v23247_v16 = vpop.f32.mrf.mxu0  ;;  %18530 = vmatmul.mubr.bf16.vlgmr.msra.gmra.mxu0 %v4463_v4  ;;  %23561 = vmatprep.subr.bf16.mxu1 %v25579_v7  ;;  %v25619_v7 = vld [vmem:[%s32109_s1 + $0x2428] sm:$0xff]  }
 0x463   :  { %23540 = vmatpush3.bf16.msra.mxu0 %v25578_v5  ;;  %18609 = vmatprep.mubr.bf16.mxu0 %v4484_v15  ;;  %v25618_v5 = vld [vmem:[%s32109_s1 + $0x2468] sm:$0xff]  }
 0x464   :  { %v23248_v20 = vpop.f32.mrf.mxu0  ;;  %v23269_v21 = vpop.f32.mrf.mxu1  ;;  %18570 = vmatmul.mubr.bf16.vlgmr.msra.gmra.mxu1 %v4485_v11  ;;  %23541 = vmatprep.subr.bf16.mxu0 %v25581_v12 }
 0x465   :  { %v23249_v23 = vadd.f32 %v23248_v20, %v23247_v16  ;;  %23562 = vmatpush3.bf16.msra.mxu1 %v25580_v9  ;;  %18649 = vmatprep.mubr.bf16.mxu1 %v4488_v19  ;;  %v25622_v16 = vld [vmem:[%s32109_s1 + $0x2460] sm:$0xff]  }
 0x466   :  { %v23250_v25 = vpop.f32.mrf.mxu0  ;;  %v23270_v26 = vpop.f32.mrf.mxu1  ;;  %23563 = vmatprep.subr.bf16.mxu1 %v25583_v17  ;;  %v25624_v20 = vld [vmem:[%s32109_s1 + $0x24e0] sm:$0xff]  }
 0x467   :  { %v18052_v28 = vadd.f32 %v23249_v23, %v29905_v42  ;;  %v23271_v29 = vadd.f32 %v23270_v26, %v23269_v21  ;;  %23542 = vmatpush3.bf16.msra.mxu0 %v25582_v14  ;;  %v25595_v42 = vld [vmem:[%s32109_s1 + $0x23d8] sm:$0xff]   ;;  %v25625_v21 = vld [vmem:[%s32109_s1 + $0x24a0] sm:$0xff]   ;;  %v25630_v26 = vld [vmem:[%s32109_s1 + $0x2450] sm:$0xff]  }
 0x468   :  { %v23251_v31 = vpop.f32.mrf.mxu0  ;;  %23543 = vmatprep.subr.bf16.mxu0 %v25585_v22  ;;  %v23272_v32 = vpop.f32.mrf.mxu1  ;;  %v25626_v22 = vld [vmem:[%s32109_s1 + $0x2458] sm:$0xff]  }
 0x469   :  { %v30016_v34 = vadd.f32 %v23271_v29, %v18052_v28  ;;  %23564 = vmatpush3.bf16.msra.mxu1 %v25584_v18  ;;  %v25623_v18 = vld [vmem:[%s32109_s1 + $0x2420] sm:$0xff]   ;;  %v25627_v23 = vld [vmem:[%s32109_s1 + $0x2418] sm:$0xff]   ;;  %v25632_v28 = vld [vmem:[%s32109_s1 + $0x24d0] sm:$0xff]  }
 0x46a   :  { %23565 = vmatprep.subr.bf16.mxu1 %v25587_v27  ;;  %v23273_v36 = vpop.f32.mrf.mxu1  ;;  %v25629_v25 = vld [vmem:[%s32109_s1 + $0x2498] sm:$0xff]   ;;  %v25631_v27 = vld [vmem:[%s32109_s1 + $0x2410] sm:$0xff]   ;;  %v25635_v31 = vld [vmem:[%s32109_s1 + $0x2408] sm:$0xff]  }
 0x46b   :  { %23544 = vmatpush3.bf16.msra.mxu0 %v25586_v24  ;;  %v25628_v24 = vld [vmem:[%s32109_s1 + $0x24d8] sm:$0xff]   ;;  %v25633_v29 = vld [vmem:[%s32109_s1 + $0x2490] sm:$0xff]   ;;  %v25636_v32 = vld [vmem:[%s32109_s1 + $0x24c8] sm:$0xff]  }
 0x46c   :  { %23545 = vmatprep.subr.bf16.mxu0 %v25589_v33  ;;  %v25637_v33 = vld [vmem:[%s32109_s1 + $0x2488] sm:$0xff]   ;;  %v25640_v36 = vld [vmem:[%s32109_s1 + $0x24c0] sm:$0xff]  }
 0x46d   :  { %23566 = vmatpush3.bf16.msra.mxu1 %v25588_v30  ;;  %v25634_v30 = vld [vmem:[%s32109_s1 + $0x2448] sm:$0xff]  }
 0x46e   :  { %23567 = vmatprep.subr.bf16.mxu1 %v25591_v37  ;;  %v34_v37 = vld [vmem:[%s32108_s0 + $0x90] sm:$0xff] }
 0x46f   :  { %23546 = vmatpush3.bf16.msra.mxu0 %v25590_v35  ;;  %v25639_v35 = vld [vmem:[%s32109_s1 + $0x2400] sm:$0xff]  }
 0x470   :  { %23547 = vmatprep.subr.bf16.mxu0 %v25593_v39  ;;  %v25641_v39 = vld [vmem:[%s32109_s1 + $0x2480] sm:$0xff]  }
 0x471   :  { %23568 = vmatpush3.bf16.msra.mxu1 %v25592_v38  ;;  %v4496_v38 = vrot.slane %v34_v37, %v26383_v41 }
 0x472   :  { %23569 = vmatprep.subr.bf16.mxu1 %v25595_v42  ;;  %v25642_v42 = vld [vmem:[%s32109_s1 + $0x2578] sm:$0xff]  }
 0x473   :  { %23548 = vmatpush3.bf16.msra.mxu0 %v25594_v40  ;;  %v4489_v40 = vcombine.high %v34_v37, %v34_v37  ;;  %v25679_v37 = vld [vmem:[%s32109_s1 + $0x2670] sm:$0xff]  }
 0x474   :  { %23549 = vmatprep.subr.bf16.mxu0 %v25597_v44  ;;  %v4512_v44 = vrot.slane %v4496_v38, %v26383_v41 }
 0x475   :  { %23570 = vmatpush3.bf16.msra.mxu1 %v25596_v43  ;;  %v4504_v43 = vcombine.high %v4496_v38, %v4496_v38  ;;  %v25680_v38 = vld [vmem:[%s32109_s1 + $0x2630] sm:$0xff]  }
 0x476   :  { %23571 = vmatprep.subr.bf16.mxu1 %v25599_v46  ;;  %v30188_v46 = vrot.slane %v4489_v40, %v26383_v41  ;;  %v25681_v40 = vld [vmem:[%s32109_s1 + $0x26f0] sm:$0xff]  }
 0x477   :  { %23550 = vmatpush3.bf16.msra.mxu0 %v25598_v45  ;;  %v25643_v45 = vld [vmem:[%s32109_s1 + $0x2538] sm:$0xff]  }
 0x478   :  { %23551 = vmatprep.subr.bf16.mxu0 %v25601_v48  ;;  %v4526_v48 = vrot.slane %v4504_v43, %v26383_v41 }
 0x479   :  { %23572 = vmatpush3.bf16.msra.mxu1 %v25600_v47  ;;  %v25644_v47 = vld [vmem:[%s32109_s1 + $0x25f8] sm:$0xff]  }
 0x47a   :  { %23573 = vmatprep.subr.bf16.mxu1 %v25603_v50  ;;  %v4505_v50 = vcombine.high %v30188_v46, %v30188_v46 }
 0x47b   :  { %23552 = vmatpush3.bf16.msra.mxu0 %v25602_v49  ;;  %v25645_v49 = vld [vmem:[%s32109_s1 + $0x25b8] sm:$0xff]  }
 0x47c   :  { %23553 = vmatprep.subr.bf16.mxu0 %v25605_v52  ;;  %v25646_v52 = vld [vmem:[%s32109_s1 + $0x2570] sm:$0xff]  }
 0x47d   :  { %23574 = vmatpush3.bf16.msra.mxu1 %v25604_v51  ;;  %v4534_v51 = vcombine.high %v4512_v44, %v4512_v44 }
 0x47e   :  { %23575 = vmatprep.subr.bf16.mxu1 %v25607_v54  ;;  %v25647_v54 = vld [vmem:[%s32109_s1 + $0x2530] sm:$0xff]  }
 0x47f   :  { %23554 = vmatpush3.bf16.msra.mxu0 %v25606_v53  ;;  %v4536_v53 = vcombine.high %v4526_v48, %v4526_v48 }
 0x480   :  { %23583 = vmatprep.subr.bf16.mxu0 %v25610_v57  ;;  %v25648_v57 = vld [vmem:[%s32109_s1 + $0x25f0] sm:$0xff]  }
 0x481   :  { %23576 = vmatpush3.bf16.msra.mxu1 %v25609_v55  ;;  %v4533_v55 = vrot.slane %v4505_v50, %v26383_v41  ;;  %v25685_v50 = vld [vmem:[%s32109_s1 + $0x26e8] sm:$0xff]  }
 0x482   :  { %v23291_v0 = vpop.f32.mrf.mxu0  ;;  %18610 = vmatmul.mubr.bf16.vlgmr.msra.gmra.mxu0 %v4470_v56  ;;  %23605 = vmatprep.subr.bf16.mxu1 %v25612_v59 }
 0x483   :  { %23584 = vmatpush3.bf16.msra.mxu0 %v25611_v58  ;;  %18689 = vmatprep.mubr.bf16.mxu0 %v4526_v48  ;;  %v25649_v58 = vld [vmem:[%s32109_s1 + $0x25b0] sm:$0xff]   ;;  %v4537_v59 = vcombine.high %v4533_v55, %v4533_v55 }
 0x484   :  { %v23292_v3 = vpop.f32.mrf.mxu0  ;;  %v23313_v4 = vpop.f32.mrf.mxu1  ;;  %18650 = vmatmul.mubr.bf16.vlgmr.msra.gmra.mxu1 %v4486_v61  ;;  %23585 = vmatprep.subr.bf16.mxu0 %v25614_v62  ;;  %v25650_v62 = vld [vmem:[%s32109_s1 + $0x2568] sm:$0xff]  }
 0x485   :  { %v23293_v6 = vadd.f32 %v23292_v3, %v23291_v0  ;;  %23606 = vmatpush3.bf16.msra.mxu1 %v25613_v60  ;;  %18729 = vmatprep.mubr.bf16.mxu1 %v4536_v53  ;;  %v25651_v0 = vld [vmem:[%s32109_s1 + $0x2528] sm:$0xff]  }
 0x486   :  { %v23294_v8 = vpop.f32.mrf.mxu0  ;;  %v23314_v9 = vpop.f32.mrf.mxu1  ;;  %23607 = vmatprep.subr.bf16.mxu1 %v25616_v1  ;;  %v25652_v3 = vld [vmem:[%s32109_s1 + $0x25e8] sm:$0xff]  }
 0x487   :  { %v18132_v11 = vadd.f32 %v23293_v6, %v30016_v34  ;;  %v23315_v12 = vadd.f32 %v23314_v9, %v23313_v4  ;;  %23586 = vmatpush3.bf16.msra.mxu0 %v25615_v63  ;;  %v25638_v34 = vld [vmem:[%s32109_s1 + $0x2440] sm:$0xff]   ;;  %v25653_v6 = vld [vmem:[%s32109_s1 + $0x25a8] sm:$0xff]  }
 0x488   :  { %v23295_v14 = vpop.f32.mrf.mxu0  ;;  %23587 = vmatprep.subr.bf16.mxu0 %v25618_v5  ;;  %v23316_v15 = vpop.f32.mrf.mxu1  ;;  %v25654_v9 = vld [vmem:[%s32109_s1 + $0x2560] sm:$0xff]   ;;  %v25686_v53 = vld [vmem:[%s32109_s1 + $0x26a8] sm:$0xff]  }
 0x489   :  { %v30117_v17 = vadd.f32 %v23315_v12, %v18132_v11  ;;  %23608 = vmatpush3.bf16.msra.mxu1 %v25617_v2  ;;  %v25655_v11 = vld [vmem:[%s32109_s1 + $0x2520] sm:$0xff]   ;;  %v25658_v15 = vld [vmem:[%s32109_s1 + $0x2558] sm:$0xff]  }
 0x48a   :  { %23609 = vmatprep.subr.bf16.mxu1 %v25620_v10  ;;  %v23317_v19 = vpop.f32.mrf.mxu1  ;;  %v25657_v14 = vld [vmem:[%s32109_s1 + $0x25a0] sm:$0xff]  }
 0x48b   :  { %23588 = vmatpush3.bf16.msra.mxu0 %v25619_v7  ;;  %v25662_v19 = vld [vmem:[%s32109_s1 + $0x2550] sm:$0xff]  }
 0x48c   :  { %23589 = vmatprep.subr.bf16.mxu0 %v25622_v16  ;;  %v25659_v16 = vld [vmem:[%s32109_s1 + $0x2518] sm:$0xff]  }
 0x48d   :  { %23610 = vmatpush3.bf16.msra.mxu1 %v25621_v13  ;;  %v25656_v13 = vld [vmem:[%s32109_s1 + $0x25e0] sm:$0xff]  }
 0x48e   :  { %23611 = vmatprep.subr.bf16.mxu1 %v25624_v20  ;;  %v25663_v20 = vld [vmem:[%s32109_s1 + $0x2510] sm:$0xff]  }
 0x48f   :  { %23590 = vmatpush3.bf16.msra.mxu0 %v25623_v18  ;;  %v25661_v18 = vld [vmem:[%s32109_s1 + $0x2598] sm:$0xff]  }
 0x490   :  { %23591 = vmatprep.subr.bf16.mxu0 %v25626_v22  ;;  %v25665_v22 = vld [vmem:[%s32109_s1 + $0x2590] sm:$0xff]  }
 0x491   :  { %23612 = vmatpush3.bf16.msra.mxu1 %v25625_v21  ;;  %v25664_v21 = vld [vmem:[%s32109_s1 + $0x25d0] sm:$0xff]  }
 0x492   :  { %23613 = vmatprep.subr.bf16.mxu1 %v25628_v24  ;;  %v25667_v24 = vld [vmem:[%s32109_s1 + $0x2508] sm:$0xff]  }
 0x493   :  { %23592 = vmatpush3.bf16.msra.mxu0 %v25627_v23  ;;  %v25666_v23 = vld [vmem:[%s32109_s1 + $0x2548] sm:$0xff]  }
 0x494   :  { %23593 = vmatprep.subr.bf16.mxu0 %v25630_v26  ;;  %v25669_v26 = vld [vmem:[%s32109_s1 + $0x2588] sm:$0xff]  }
 0x495   :  { %23614 = vmatpush3.bf16.msra.mxu1 %v25629_v25  ;;  %v25668_v25 = vld [vmem:[%s32109_s1 + $0x25c8] sm:$0xff]  }
 0x496   :  { %23615 = vmatprep.subr.bf16.mxu1 %v25632_v28  ;;  %v25671_v28 = vld [vmem:[%s32109_s1 + $0x2500] sm:$0xff]  }
 0x497   :  { %23594 = vmatpush3.bf16.msra.mxu0 %v25631_v27  ;;  %v25670_v27 = vld [vmem:[%s32109_s1 + $0x2540] sm:$0xff]  }
 0x498   :  { %23595 = vmatprep.subr.bf16.mxu0 %v25634_v30  ;;  %v25674_v30 = vld [vmem:[%s32109_s1 + $0x2580] sm:$0xff]  }
 0x499   :  { %23616 = vmatpush3.bf16.msra.mxu1 %v25633_v29  ;;  %v25672_v29 = vld [vmem:[%s32109_s1 + $0x25c0] sm:$0xff]  }
 0x49a   :  { %23617 = vmatprep.subr.bf16.mxu1 %v25636_v32  ;;  %v25675_v32 = vld [vmem:[%s32109_s1 + $0x2678] sm:$0xff]  }
 0x49b   :  { %23596 = vmatpush3.bf16.msra.mxu0 %v25635_v31  ;;  %v4519_v31 = vrot.slane %v30188_v46, %v26383_v41 }
 0x49c   :  { %23597 = vmatprep.subr.bf16.mxu0 %v25638_v34  ;;  %v25677_v34 = vld [vmem:[%s32109_s1 + $0x26f8] sm:$0xff]  }
 0x49d   :  { %23618 = vmatpush3.bf16.msra.mxu1 %v25637_v33  ;;  %v25676_v33 = vld [vmem:[%s32109_s1 + $0x2638] sm:$0xff]  }
 0x49e   :  { %23619 = vmatprep.subr.bf16.mxu1 %v25640_v36  ;;  %v4535_v36 = vcombine.high %v4519_v31, %v4519_v31 }
 0x49f   :  { %23598 = vmatpush3.bf16.msra.mxu0 %v25639_v35  ;;  %v25678_v35 = vld [vmem:[%s32109_s1 + $0x26b8] sm:$0xff]  }
 0x4a0   :  { %23627 = vmatprep.subr.bf16.mxu0 %v25642_v42  ;;  %v25682_v42 = vld [vmem:[%s32109_s1 + $0x26b0] sm:$0xff]  }
 0x4a1   :  { %23620 = vmatpush3.bf16.msra.mxu1 %v25641_v39 }
 0x4a2   :  { %v23335_v56 = vpop.f32.mrf.mxu0  ;;  %18690 = vmatmul.mubr.bf16.vlgmr.msra.gmra.mxu0 %v4512_v44  ;;  %23649 = vmatprep.subr.bf16.mxu1 %v25644_v47  ;;  %v25684_v47 = vld [vmem:[%s32109_s1 + $0x2628] sm:$0xff]  }
 0x4a3   :  { %23628 = vmatpush3.bf16.msra.mxu0 %v25643_v45  ;;  %18769 = vmatprep.mubr.bf16.mxu0 %v4533_v55  ;;  %v25683_v45 = vld [vmem:[%s32109_s1 + $0x2668] sm:$0xff]  }
 0x4a4   :  { %v23336_v60 = vpop.f32.mrf.mxu0  ;;  %v23357_v61 = vpop.f32.mrf.mxu1  ;;  %18730 = vmatmul.mubr.bf16.vlgmr.msra.gmra.mxu1 %v4534_v51  ;;  %23629 = vmatprep.subr.bf16.mxu0 %v25646_v52 }
 0x4a5   :  { %v23337_v63 = vadd.f32 %v23336_v60, %v23335_v56  ;;  %23650 = vmatpush3.bf16.msra.mxu1 %v25645_v49  ;;  %18809 = vmatprep.mubr.bf16.mxu1 %v4537_v59  ;;  %v25687_v56 = vld [vmem:[%s32109_s1 + $0x2660] sm:$0xff]  }
 0x4a6   :  { %v23338_v1 = vpop.f32.mrf.mxu0  ;;  %v23358_v2 = vpop.f32.mrf.mxu1  ;;  %23651 = vmatprep.subr.bf16.mxu1 %v25648_v57  ;;  %v25689_v60 = vld [vmem:[%s32109_s1 + $0x26e0] sm:$0xff]  }
 0x4a7   :  { %v18212_v4 = vadd.f32 %v23337_v63, %v30117_v17  ;;  %v23359_v5 = vadd.f32 %v23358_v2, %v23357_v61  ;;  %23630 = vmatpush3.bf16.msra.mxu0 %v25647_v54  ;;  %v25660_v17 = vld [vmem:[%s32109_s1 + $0x25d8] sm:$0xff]   ;;  %v25690_v61 = vld [vmem:[%s32109_s1 + $0x26a0] sm:$0xff]   ;;  %v25695_v2 = vld [vmem:[%s32109_s1 + $0x2650] sm:$0xff]  }
 0x4a8   :  { %v23339_v7 = vpop.f32.mrf.mxu0  ;;  %23631 = vmatprep.subr.bf16.mxu0 %v25650_v62  ;;  %v23360_v8 = vpop.f32.mrf.mxu1  ;;  %v25691_v62 = vld [vmem:[%s32109_s1 + $0x2658] sm:$0xff]  }
 0x4a9   :  { %v30228_v10 = vadd.f32 %v23359_v5, %v18212_v4  ;;  %23652 = vmatpush3.bf16.msra.mxu1 %v25649_v58  ;;  %v25688_v58 = vld [vmem:[%s32109_s1 + $0x2620] sm:$0xff]   ;;  %v25692_v63 = vld [vmem:[%s32109_s1 + $0x2618] sm:$0xff]   ;;  %v25697_v4 = vld [vmem:[%s32109_s1 + $0x26d0] sm:$0xff]  }
 0x4aa   :  { %23653 = vmatprep.subr.bf16.mxu1 %v25652_v3  ;;  %v23361_v12 = vpop.f32.mrf.mxu1  ;;  %v25694_v1 = vld [vmem:[%s32109_s1 + $0x2698] sm:$0xff]   ;;  %v25696_v3 = vld [vmem:[%s32109_s1 + $0x2610] sm:$0xff]   ;;  %v25700_v7 = vld [vmem:[%s32109_s1 + $0x2608] sm:$0xff]  }
 0x4ab   :  { %23632 = vmatpush3.bf16.msra.mxu0 %v25651_v0  ;;  %v25693_v0 = vld [vmem:[%s32109_s1 + $0x26d8] sm:$0xff]   ;;  %v25698_v5 = vld [vmem:[%s32109_s1 + $0x2690] sm:$0xff]   ;;  %v25701_v8 = vld [vmem:[%s32109_s1 + $0x26c8] sm:$0xff]  }
 0x4ac   :  { %23633 = vmatprep.subr.bf16.mxu0 %v25654_v9  ;;  %v25702_v9 = vld [vmem:[%s32109_s1 + $0x2688] sm:$0xff]   ;;  %v25705_v12 = vld [vmem:[%s32109_s1 + $0x26c0] sm:$0xff]  }
 0x4ad   :  { %23654 = vmatpush3.bf16.msra.mxu1 %v25653_v6  ;;  %v25699_v6 = vld [vmem:[%s32109_s1 + $0x2648] sm:$0xff]  }
 0x4ae   :  { %23655 = vmatprep.subr.bf16.mxu1 %v25656_v13  ;;  %v35_v13 = vld [vmem:[%s32108_s0 + $0x98] sm:$0xff] }
 0x4af   :  { %23634 = vmatpush3.bf16.msra.mxu0 %v25655_v11  ;;  %v25704_v11 = vld [vmem:[%s32109_s1 + $0x2600] sm:$0xff]  }
 0x4b0   :  { %23635 = vmatprep.subr.bf16.mxu0 %v25658_v15  ;;  %v25706_v15 = vld [vmem:[%s32109_s1 + $0x2680] sm:$0xff]  }
 0x4b1   :  { %23656 = vmatpush3.bf16.msra.mxu1 %v25657_v14  ;;  %v4545_v14 = vrot.slane %v35_v13, %v26383_v41 }
 0x4b2   :  { %23657 = vmatprep.subr.bf16.mxu1 %v25660_v17  ;;  %v25707_v17 = vld [vmem:[%s32109_s1 + $0x2778] sm:$0xff]  }
 0x4b3   :  { %23636 = vmatpush3.bf16.msra.mxu0 %v25659_v16  ;;  %v4538_v16 = vcombine.high %v35_v13, %v35_v13  ;;  %v25744_v13 = vld [vmem:[%s32109_s1 + $0x2870] sm:$0xff]  }
 0x4b4   :  { %23637 = vmatprep.subr.bf16.mxu0 %v25662_v19  ;;  %v4561_v19 = vrot.slane %v4545_v14, %v26383_v41 }
 0x4b5   :  { %23658 = vmatpush3.bf16.msra.mxu1 %v25661_v18  ;;  %v4553_v18 = vcombine.high %v4545_v14, %v4545_v14  ;;  %v25745_v14 = vld [vmem:[%s32109_s1 + $0x2830] sm:$0xff]  }
 0x4b6   :  { %23659 = vmatprep.subr.bf16.mxu1 %v25664_v21  ;;  %v30400_v21 = vrot.slane %v4538_v16, %v26383_v41  ;;  %v25746_v16 = vld [vmem:[%s32109_s1 + $0x28f0] sm:$0xff]  }
 0x4b7   :  { %23638 = vmatpush3.bf16.msra.mxu0 %v25663_v20  ;;  %v25708_v20 = vld [vmem:[%s32109_s1 + $0x2738] sm:$0xff]  }
 0x4b8   :  { %23639 = vmatprep.subr.bf16.mxu0 %v25666_v23  ;;  %v4575_v23 = vrot.slane %v4553_v18, %v26383_v41 }
 0x4b9   :  { %23660 = vmatpush3.bf16.msra.mxu1 %v25665_v22  ;;  %v25709_v22 = vld [vmem:[%s32109_s1 + $0x27f8] sm:$0xff]  }
 0x4ba   :  { %23661 = vmatprep.subr.bf16.mxu1 %v25668_v25  ;;  %v4554_v25 = vcombine.high %v30400_v21, %v30400_v21 }
 0x4bb   :  { %23640 = vmatpush3.bf16.msra.mxu0 %v25667_v24  ;;  %v25710_v24 = vld [vmem:[%s32109_s1 + $0x27b8] sm:$0xff]  }
 0x4bc   :  { %23641 = vmatprep.subr.bf16.mxu0 %v25670_v27  ;;  %v25711_v27 = vld [vmem:[%s32109_s1 + $0x2770] sm:$0xff]  }
 0x4bd   :  { %23662 = vmatpush3.bf16.msra.mxu1 %v25669_v26  ;;  %v4583_v26 = vcombine.high %v4561_v19, %v4561_v19 }
 0x4be   :  { %23663 = vmatprep.subr.bf16.mxu1 %v25672_v29  ;;  %v25712_v29 = vld [vmem:[%s32109_s1 + $0x2730] sm:$0xff]  }
 0x4bf   :  { %23642 = vmatpush3.bf16.msra.mxu0 %v25671_v28  ;;  %v4585_v28 = vcombine.high %v4575_v23, %v4575_v23 }
 0x4c0   :  { %23671 = vmatprep.subr.bf16.mxu0 %v25675_v32  ;;  %v25713_v32 = vld [vmem:[%s32109_s1 + $0x27f0] sm:$0xff]  }
 0x4c1   :  { %23664 = vmatpush3.bf16.msra.mxu1 %v25674_v30  ;;  %v4582_v30 = vrot.slane %v4554_v25, %v26383_v41  ;;  %v25750_v25 = vld [vmem:[%s32109_s1 + $0x28e8] sm:$0xff]  }
 0x4c2   :  { %v23379_v39 = vpop.f32.mrf.mxu0  ;;  %18770 = vmatmul.mubr.bf16.vlgmr.msra.gmra.mxu0 %v4519_v31  ;;  %23693 = vmatprep.subr.bf16.mxu1 %v25677_v34 }
 0x4c3   :  { %23672 = vmatpush3.bf16.msra.mxu0 %v25676_v33  ;;  %18849 = vmatprep.mubr.bf16.mxu0 %v4575_v23  ;;  %v25714_v33 = vld [vmem:[%s32109_s1 + $0x27b0] sm:$0xff]   ;;  %v4586_v34 = vcombine.high %v4582_v30, %v4582_v30 }
 0x4c4   :  { %v23380_v43 = vpop.f32.mrf.mxu0  ;;  %v23401_v44 = vpop.f32.mrf.mxu1  ;;  %18810 = vmatmul.mubr.bf16.vlgmr.msra.gmra.mxu1 %v4535_v36  ;;  %23673 = vmatprep.subr.bf16.mxu0 %v25679_v37  ;;  %v25715_v37 = vld [vmem:[%s32109_s1 + $0x2768] sm:$0xff]  }
 0x4c5   :  { %v23381_v46 = vadd.f32 %v23380_v43, %v23379_v39  ;;  %23694 = vmatpush3.bf16.msra.mxu1 %v25678_v35  ;;  %18889 = vmatprep.mubr.bf16.mxu1 %v4585_v28  ;;  %v25716_v39 = vld [vmem:[%s32109_s1 + $0x2728] sm:$0xff]  }
 0x4c6   :  { %v23382_v48 = vpop.f32.mrf.mxu0  ;;  %v23402_v49 = vpop.f32.mrf.mxu1  ;;  %23695 = vmatprep.subr.bf16.mxu1 %v25681_v40  ;;  %v25717_v43 = vld [vmem:[%s32109_s1 + $0x27e8] sm:$0xff]  }
 0x4c7   :  { %v18292_v51 = vadd.f32 %v23381_v46, %v30228_v10  ;;  %v23403_v52 = vadd.f32 %v23402_v49, %v23401_v44  ;;  %23674 = vmatpush3.bf16.msra.mxu0 %v25680_v38  ;;  %v25703_v10 = vld [vmem:[%s32109_s1 + $0x2640] sm:$0xff]   ;;  %v25718_v46 = vld [vmem:[%s32109_s1 + $0x27a8] sm:$0xff]  }
 0x4c8   :  { %v23383_v54 = vpop.f32.mrf.mxu0  ;;  %23675 = vmatprep.subr.bf16.mxu0 %v25683_v45  ;;  %v23404_v55 = vpop.f32.mrf.mxu1  ;;  %v25719_v49 = vld [vmem:[%s32109_s1 + $0x2760] sm:$0xff]   ;;  %v25751_v28 = vld [vmem:[%s32109_s1 + $0x28a8] sm:$0xff]  }
 0x4c9   :  { %v30329_v57 = vadd.f32 %v23403_v52, %v18292_v51  ;;  %23696 = vmatpush3.bf16.msra.mxu1 %v25682_v42  ;;  %v25720_v51 = vld [vmem:[%s32109_s1 + $0x2720] sm:$0xff]   ;;  %v25723_v55 = vld [vmem:[%s32109_s1 + $0x2758] sm:$0xff]  }
 0x4ca   :  { %23697 = vmatprep.subr.bf16.mxu1 %v25685_v50  ;;  %v23405_v59 = vpop.f32.mrf.mxu1  ;;  %v25722_v54 = vld [vmem:[%s32109_s1 + $0x27a0] sm:$0xff]  }
 0x4cb   :  { %23676 = vmatpush3.bf16.msra.mxu0 %v25684_v47  ;;  %v25727_v59 = vld [vmem:[%s32109_s1 + $0x2750] sm:$0xff]  }
 0x4cc   :  { %23677 = vmatprep.subr.bf16.mxu0 %v25687_v56  ;;  %v25724_v56 = vld [vmem:[%s32109_s1 + $0x2718] sm:$0xff]  }
 0x4cd   :  { %23698 = vmatpush3.bf16.msra.mxu1 %v25686_v53  ;;  %v25721_v53 = vld [vmem:[%s32109_s1 + $0x27e0] sm:$0xff]  }
 0x4ce   :  { %23699 = vmatprep.subr.bf16.mxu1 %v25689_v60  ;;  %v25728_v60 = vld [vmem:[%s32109_s1 + $0x2710] sm:$0xff]  }
 0x4cf   :  { %23678 = vmatpush3.bf16.msra.mxu0 %v25688_v58  ;;  %v25726_v58 = vld [vmem:[%s32109_s1 + $0x2798] sm:$0xff]  }
 0x4d0   :  { %23679 = vmatprep.subr.bf16.mxu0 %v25691_v62  ;;  %v25730_v62 = vld [vmem:[%s32109_s1 + $0x2790] sm:$0xff]  }
 0x4d1   :  { %23700 = vmatpush3.bf16.msra.mxu1 %v25690_v61  ;;  %v25729_v61 = vld [vmem:[%s32109_s1 + $0x27d0] sm:$0xff]  }
 0x4d2   :  { %23701 = vmatprep.subr.bf16.mxu1 %v25693_v0  ;;  %v25732_v0 = vld [vmem:[%s32109_s1 + $0x2708] sm:$0xff]  }
 0x4d3   :  { %23680 = vmatpush3.bf16.msra.mxu0 %v25692_v63  ;;  %v25731_v63 = vld [vmem:[%s32109_s1 + $0x2748] sm:$0xff]  }
 0x4d4   :  { %23681 = vmatprep.subr.bf16.mxu0 %v25695_v2  ;;  %v25734_v2 = vld [vmem:[%s32109_s1 + $0x2788] sm:$0xff]  }
 0x4d5   :  { %23702 = vmatpush3.bf16.msra.mxu1 %v25694_v1  ;;  %v25733_v1 = vld [vmem:[%s32109_s1 + $0x27c8] sm:$0xff]  }
 0x4d6   :  { %23703 = vmatprep.subr.bf16.mxu1 %v25697_v4  ;;  %v25736_v4 = vld [vmem:[%s32109_s1 + $0x2700] sm:$0xff]  }
 0x4d7   :  { %23682 = vmatpush3.bf16.msra.mxu0 %v25696_v3  ;;  %v25735_v3 = vld [vmem:[%s32109_s1 + $0x2740] sm:$0xff]  }
 0x4d8   :  { %23683 = vmatprep.subr.bf16.mxu0 %v25699_v6  ;;  %v25739_v6 = vld [vmem:[%s32109_s1 + $0x2780] sm:$0xff]  }
 0x4d9   :  { %23704 = vmatpush3.bf16.msra.mxu1 %v25698_v5  ;;  %v25737_v5 = vld [vmem:[%s32109_s1 + $0x27c0] sm:$0xff]  }
 0x4da   :  { %23705 = vmatprep.subr.bf16.mxu1 %v25701_v8  ;;  %v25740_v8 = vld [vmem:[%s32109_s1 + $0x2878] sm:$0xff]  }
 0x4db   :  { %23684 = vmatpush3.bf16.msra.mxu0 %v25700_v7  ;;  %v4568_v7 = vrot.slane %v30400_v21, %v26383_v41 }
 0x4dc   :  { %23685 = vmatprep.subr.bf16.mxu0 %v25703_v10  ;;  %v25742_v10 = vld [vmem:[%s32109_s1 + $0x28f8] sm:$0xff]  }
 0x4dd   :  { %23706 = vmatpush3.bf16.msra.mxu1 %v25702_v9  ;;  %v25741_v9 = vld [vmem:[%s32109_s1 + $0x2838] sm:$0xff]  }
 0x4de   :  { %23707 = vmatprep.subr.bf16.mxu1 %v25705_v12  ;;  %v4584_v12 = vcombine.high %v4568_v7, %v4568_v7 }
 0x4df   :  { %23686 = vmatpush3.bf16.msra.mxu0 %v25704_v11  ;;  %v25743_v11 = vld [vmem:[%s32109_s1 + $0x28b8] sm:$0xff]  }
 0x4e0   :  { %23715 = vmatprep.subr.bf16.mxu0 %v25707_v17  ;;  %v25747_v17 = vld [vmem:[%s32109_s1 + $0x28b0] sm:$0xff]  }
 0x4e1   :  { %23708 = vmatpush3.bf16.msra.mxu1 %v25706_v15 }
 0x4e2   :  { %v23423_v31 = vpop.f32.mrf.mxu0  ;;  %18850 = vmatmul.mubr.bf16.vlgmr.msra.gmra.mxu0 %v4561_v19  ;;  %23737 = vmatprep.subr.bf16.mxu1 %v25709_v22  ;;  %v25749_v22 = vld [vmem:[%s32109_s1 + $0x2828] sm:$0xff]  }
 0x4e3   :  { %23716 = vmatpush3.bf16.msra.mxu0 %v25708_v20  ;;  %18929 = vmatprep.mubr.bf16.mxu0 %v4582_v30  ;;  %v25748_v20 = vld [vmem:[%s32109_s1 + $0x2868] sm:$0xff]  }
 0x4e4   :  { %v23424_v35 = vpop.f32.mrf.mxu0  ;;  %v23445_v36 = vpop.f32.mrf.mxu1  ;;  %18890 = vmatmul.mubr.bf16.vlgmr.msra.gmra.mxu1 %v4583_v26  ;;  %23717 = vmatprep.subr.bf16.mxu0 %v25711_v27 }
 0x4e5   :  { %v23425_v38 = vadd.f32 %v23424_v35, %v23423_v31  ;;  %23738 = vmatpush3.bf16.msra.mxu1 %v25710_v24  ;;  %18969 = vmatprep.mubr.bf16.mxu1 %v4586_v34  ;;  %v25752_v31 = vld [vmem:[%s32109_s1 + $0x2860] sm:$0xff]  }
 0x4e6   :  { %v23426_v40 = vpop.f32.mrf.mxu0  ;;  %v23446_v42 = vpop.f32.mrf.mxu1  ;;  %23739 = vmatprep.subr.bf16.mxu1 %v25713_v32  ;;  %v25754_v35 = vld [vmem:[%s32109_s1 + $0x28e0] sm:$0xff]  }
 0x4e7   :  { %v18372_v44 = vadd.f32 %v23425_v38, %v30329_v57  ;;  %v23447_v45 = vadd.f32 %v23446_v42, %v23445_v36  ;;  %23718 = vmatpush3.bf16.msra.mxu0 %v25712_v29  ;;  %v25725_v57 = vld [vmem:[%s32109_s1 + $0x27d8] sm:$0xff]   ;;  %v25755_v36 = vld [vmem:[%s32109_s1 + $0x28a0] sm:$0xff]   ;;  %v25760_v42 = vld [vmem:[%s32109_s1 + $0x2850] sm:$0xff]  }
 0x4e8   :  { %v23427_v47 = vpop.f32.mrf.mxu0  ;;  %23719 = vmatprep.subr.bf16.mxu0 %v25715_v37  ;;  %v23448_v48 = vpop.f32.mrf.mxu1  ;;  %v25756_v37 = vld [vmem:[%s32109_s1 + $0x2858] sm:$0xff]  }
 0x4e9   :  { %v30440_v50 = vadd.f32 %v23447_v45, %v18372_v44  ;;  %23740 = vmatpush3.bf16.msra.mxu1 %v25714_v33  ;;  %v25753_v33 = vld [vmem:[%s32109_s1 + $0x2820] sm:$0xff]   ;;  %v25757_v38 = vld [vmem:[%s32109_s1 + $0x2818] sm:$0xff]   ;;  %v25762_v44 = vld [vmem:[%s32109_s1 + $0x28d0] sm:$0xff]  }
 0x4ea   :  { %23741 = vmatprep.subr.bf16.mxu1 %v25717_v43  ;;  %v23449_v52 = vpop.f32.mrf.mxu1  ;;  %v25759_v40 = vld [vmem:[%s32109_s1 + $0x2898] sm:$0xff]   ;;  %v25761_v43 = vld [vmem:[%s32109_s1 + $0x2810] sm:$0xff]   ;;  %v25765_v47 = vld [vmem:[%s32109_s1 + $0x2808] sm:$0xff]  }
 0x4eb   :  { %23720 = vmatpush3.bf16.msra.mxu0 %v25716_v39  ;;  %v25758_v39 = vld [vmem:[%s32109_s1 + $0x28d8] sm:$0xff]   ;;  %v25763_v45 = vld [vmem:[%s32109_s1 + $0x2890] sm:$0xff]   ;;  %v25766_v48 = vld [vmem:[%s32109_s1 + $0x28c8] sm:$0xff]  }
 0x4ec   :  { %23721 = vmatprep.subr.bf16.mxu0 %v25719_v49  ;;  %v25767_v49 = vld [vmem:[%s32109_s1 + $0x2888] sm:$0xff]   ;;  %v25770_v52 = vld [vmem:[%s32109_s1 + $0x28c0] sm:$0xff]  }
 0x4ed   :  { %23742 = vmatpush3.bf16.msra.mxu1 %v25718_v46  ;;  %v25764_v46 = vld [vmem:[%s32109_s1 + $0x2848] sm:$0xff]  }
 0x4ee   :  { %23743 = vmatprep.subr.bf16.mxu1 %v25721_v53  ;;  %v36_v53 = vld [vmem:[%s32108_s0 + $0xa0] sm:$0xff] }
 0x4ef   :  { %23722 = vmatpush3.bf16.msra.mxu0 %v25720_v51  ;;  %v25769_v51 = vld [vmem:[%s32109_s1 + $0x2800] sm:$0xff]  }
 0x4f0   :  { %23723 = vmatprep.subr.bf16.mxu0 %v25723_v55  ;;  %v25771_v55 = vld [vmem:[%s32109_s1 + $0x2880] sm:$0xff]  }
 0x4f1   :  { %23744 = vmatpush3.bf16.msra.mxu1 %v25722_v54  ;;  %v4594_v54 = vrot.slane %v36_v53, %v26383_v41 }
 0x4f2   :  { %23745 = vmatprep.subr.bf16.mxu1 %v25725_v57  ;;  %v25772_v57 = vld [vmem:[%s32109_s1 + $0x2978] sm:$0xff]  }
 0x4f3   :  { %23724 = vmatpush3.bf16.msra.mxu0 %v25724_v56  ;;  %v4587_v56 = vcombine.high %v36_v53, %v36_v53  ;;  %v25809_v53 = vld [vmem:[%s32109_s1 + $0x2a70] sm:$0xff]  }
 0x4f4   :  { %23725 = vmatprep.subr.bf16.mxu0 %v25727_v59  ;;  %v4610_v59 = vrot.slane %v4594_v54, %v26383_v41 }
 0x4f5   :  { %23746 = vmatpush3.bf16.msra.mxu1 %v25726_v58  ;;  %v4602_v58 = vcombine.high %v4594_v54, %v4594_v54 }
 0x4f6   :  { %23747 = vmatprep.subr.bf16.mxu1 %v25729_v61  ;;  %v30612_v61 = vrot.slane %v4587_v56, %v26383_v41  ;;  %v25811_v56 = vld [vmem:[%s32109_s1 + $0x2af0] sm:$0xff]  }
 0x4f7   :  { %23726 = vmatpush3.bf16.msra.mxu0 %v25728_v60  ;;  %v25773_v60 = vld [vmem:[%s32109_s1 + $0x2938] sm:$0xff]  }
 0x4f8   :  { %23727 = vmatprep.subr.bf16.mxu0 %v25731_v63  ;;  %v4624_v63 = vrot.slane %v4602_v58, %v26383_v41 }
 0x4f9   :  { %23748 = vmatpush3.bf16.msra.mxu1 %v25730_v62  ;;  %v25774_v62 = vld [vmem:[%s32109_s1 + $0x29f8] sm:$0xff]  }
 0x4fa   :  { %23749 = vmatprep.subr.bf16.mxu1 %v25733_v1  ;;  %v4603_v1 = vcombine.high %v30612_v61, %v30612_v61 }
 0x4fb   :  { %23728 = vmatpush3.bf16.msra.mxu0 %v25732_v0  ;;  %v25775_v0 = vld [vmem:[%s32109_s1 + $0x29b8] sm:$0xff]  }
 0x4fc   :  { %23729 = vmatprep.subr.bf16.mxu0 %v25735_v3  ;;  %v25776_v3 = vld [vmem:[%s32109_s1 + $0x2970] sm:$0xff]  }
 0x4fd   :  { %23750 = vmatpush3.bf16.msra.mxu1 %v25734_v2  ;;  %v4632_v2 = vcombine.high %v4610_v59, %v4610_v59 }
 0x4fe   :  { %23751 = vmatprep.subr.bf16.mxu1 %v25737_v5  ;;  %v4634_v5 = vcombine.high %v4624_v63, %v4624_v63 }
 0x4ff   :  { %23730 = vmatpush3.bf16.msra.mxu0 %v25736_v4 }
 0x500   :  { %23759 = vmatprep.subr.bf16.mxu0 %v25740_v8  ;;  %v25778_v8 = vld [vmem:[%s32109_s1 + $0x29f0] sm:$0xff]  }
 0x501   :  { %23752 = vmatpush3.bf16.msra.mxu1 %v25739_v6  ;;  %v25777_v6 = vld [vmem:[%s32109_s1 + $0x2930] sm:$0xff]  }
 0x502   :  { %v23467_v15 = vpop.f32.mrf.mxu0  ;;  %18930 = vmatmul.mubr.bf16.vlgmr.msra.gmra.mxu0 %v4568_v7  ;;  %23781 = vmatprep.subr.bf16.mxu1 %v25742_v10  ;;  %v4631_v7 = vrot.slane %v4603_v1, %v26383_v41 }
 0x503   :  { %23760 = vmatpush3.bf16.msra.mxu0 %v25741_v9  ;;  %19009 = vmatprep.mubr.bf16.mxu0 %v4624_v63 }
 0x504   :  { %v23468_v18 = vpop.f32.mrf.mxu0  ;;  %v23489_v19 = vpop.f32.mrf.mxu1  ;;  %18970 = vmatmul.mubr.bf16.vlgmr.msra.gmra.mxu1 %v4584_v12  ;;  %23761 = vmatprep.subr.bf16.mxu0 %v25744_v13  ;;  %v4635_v12 = vcombine.high %v4631_v7, %v4631_v7 }
 0x505   :  { %v23469_v21 = vadd.f32 %v23468_v18, %v23467_v15  ;;  %23782 = vmatpush3.bf16.msra.mxu1 %v25743_v11  ;;  %19049 = vmatprep.mubr.bf16.mxu1 %v4634_v5  ;;  %v25779_v11 = vld [vmem:[%s32109_s1 + $0x29b0] sm:$0xff]  }
 0x506   :  { %v23470_v23 = vpop.f32.mrf.mxu0  ;;  %v23490_v24 = vpop.f32.mrf.mxu1  ;;  %23783 = vmatprep.subr.bf16.mxu1 %v25746_v16 }
 0x507   :  { %v18452_v26 = vadd.f32 %v23469_v21, %v30440_v50  ;;  %v23491_v27 = vadd.f32 %v23490_v24, %v23489_v19  ;;  %23762 = vmatpush3.bf16.msra.mxu0 %v25745_v14  ;;  %v25768_v50 = vld [vmem:[%s32109_s1 + $0x2840] sm:$0xff]   ;;  %v25780_v14 = vld [vmem:[%s32109_s1 + $0x2968] sm:$0xff]  }
 0x508   :  { %v23471_v29 = vpop.f32.mrf.mxu0  ;;  %23763 = vmatprep.subr.bf16.mxu0 %v25748_v20  ;;  %v23492_v30 = vpop.f32.mrf.mxu1  ;;  %v25782_v20 = vld [vmem:[%s32109_s1 + $0x29e8] sm:$0xff]  }
 0x509   :  { %v30541_v32 = vadd.f32 %v23491_v27, %v18452_v26  ;;  %23784 = vmatpush3.bf16.msra.mxu1 %v25747_v17  ;;  %v25781_v17 = vld [vmem:[%s32109_s1 + $0x2928] sm:$0xff]   ;;  %v25785_v27 = vld [vmem:[%s32109_s1 + $0x2920] sm:$0xff]   ;;  %v25788_v30 = vld [vmem:[%s32109_s1 + $0x2958] sm:$0xff]  }
 0x50a   :  { %23785 = vmatprep.subr.bf16.mxu1 %v25750_v25  ;;  %v23493_v34 = vpop.f32.mrf.mxu1  ;;  %v25783_v23 = vld [vmem:[%s32109_s1 + $0x29a8] sm:$0xff]   ;;  %v25784_v25 = vld [vmem:[%s32109_s1 + $0x2960] sm:$0xff]  }
 0x50b   :  { %23764 = vmatpush3.bf16.msra.mxu0 %v25749_v22  ;;  %v25787_v29 = vld [vmem:[%s32109_s1 + $0x29a0] sm:$0xff]   ;;  %v25792_v34 = vld [vmem:[%s32109_s1 + $0x2950] sm:$0xff]  }
 0x50c   :  { %23765 = vmatprep.subr.bf16.mxu0 %v25752_v31  ;;  %v25789_v31 = vld [vmem:[%s32109_s1 + $0x2918] sm:$0xff]  }
 0x50d   :  { %23786 = vmatpush3.bf16.msra.mxu1 %v25751_v28  ;;  %v25786_v28 = vld [vmem:[%s32109_s1 + $0x29e0] sm:$0xff]  }
 0x50e   :  { %23787 = vmatprep.subr.bf16.mxu1 %v25754_v35  ;;  %v25793_v35 = vld [vmem:[%s32109_s1 + $0x2910] sm:$0xff]  }
 0x50f   :  { %23766 = vmatpush3.bf16.msra.mxu0 %v25753_v33  ;;  %v25791_v33 = vld [vmem:[%s32109_s1 + $0x2998] sm:$0xff]  }
 0x510   :  { %23767 = vmatprep.subr.bf16.mxu0 %v25756_v37  ;;  %v25795_v37 = vld [vmem:[%s32109_s1 + $0x2990] sm:$0xff]  }
 0x511   :  { %23788 = vmatpush3.bf16.msra.mxu1 %v25755_v36  ;;  %v25794_v36 = vld [vmem:[%s32109_s1 + $0x29d0] sm:$0xff]  }
 0x512   :  { %23789 = vmatprep.subr.bf16.mxu1 %v25758_v39  ;;  %v25797_v39 = vld [vmem:[%s32109_s1 + $0x2908] sm:$0xff]  }
 0x513   :  { %23768 = vmatpush3.bf16.msra.mxu0 %v25757_v38  ;;  %v25796_v38 = vld [vmem:[%s32109_s1 + $0x2948] sm:$0xff]  }
 0x514   :  { %23769 = vmatprep.subr.bf16.mxu0 %v25760_v42  ;;  %v25799_v42 = vld [vmem:[%s32109_s1 + $0x2988] sm:$0xff]  }
 0x515   :  { %23790 = vmatpush3.bf16.msra.mxu1 %v25759_v40  ;;  %v25798_v40 = vld [vmem:[%s32109_s1 + $0x29c8] sm:$0xff]  }
 0x516   :  { %23791 = vmatprep.subr.bf16.mxu1 %v25762_v44  ;;  %v25801_v44 = vld [vmem:[%s32109_s1 + $0x2900] sm:$0xff]  }
 0x517   :  { %23770 = vmatpush3.bf16.msra.mxu0 %v25761_v43  ;;  %v25800_v43 = vld [vmem:[%s32109_s1 + $0x2940] sm:$0xff]  }
 0x518   :  { %23771 = vmatprep.subr.bf16.mxu0 %v25764_v46  ;;  %v25804_v46 = vld [vmem:[%s32109_s1 + $0x2980] sm:$0xff]  }
 0x519   :  { %23792 = vmatpush3.bf16.msra.mxu1 %v25763_v45  ;;  %v25802_v45 = vld [vmem:[%s32109_s1 + $0x29c0] sm:$0xff]  }
 0x51a   :  { %23793 = vmatprep.subr.bf16.mxu1 %v25766_v48  ;;  %v25805_v48 = vld [vmem:[%s32109_s1 + $0x2a78] sm:$0xff]  }
 0x51b   :  { %23772 = vmatpush3.bf16.msra.mxu0 %v25765_v47  ;;  %v4617_v47 = vrot.slane %v30612_v61, %v26383_v41  ;;  %v25813_v61 = vld [vmem:[%s32109_s1 + $0x2a68] sm:$0xff]  }
 0x51c   :  { %23773 = vmatprep.subr.bf16.mxu0 %v25768_v50  ;;  %v25807_v50 = vld [vmem:[%s32109_s1 + $0x2af8] sm:$0xff]  }
 0x51d   :  { %23794 = vmatpush3.bf16.msra.mxu1 %v25767_v49  ;;  %v25806_v49 = vld [vmem:[%s32109_s1 + $0x2a38] sm:$0xff]  }
 0x51e   :  { %23795 = vmatprep.subr.bf16.mxu1 %v25770_v52  ;;  %v4633_v52 = vcombine.high %v4617_v47, %v4617_v47 }
 0x51f   :  { %23774 = vmatpush3.bf16.msra.mxu0 %v25769_v51  ;;  %v25808_v51 = vld [vmem:[%s32109_s1 + $0x2ab8] sm:$0xff]  }
 0x520   :  { %23803 = vmatprep.subr.bf16.mxu0 %v25772_v57 }
 0x521   :  { %23796 = vmatpush3.bf16.msra.mxu1 %v25771_v55  ;;  %v25810_v55 = vld [vmem:[%s32109_s1 + $0x2a30] sm:$0xff]  }
 0x522   :  { %v23511_v4 = vpop.f32.mrf.mxu0  ;;  %23825 = vmatprep.subr.bf16.mxu1 %v25774_v62  ;;  %19010 = vmatmul.mubr.bf16.vlgmr.msra.gmra.mxu0 %v4610_v59  ;;  %v25812_v59 = vld [vmem:[%s32109_s1 + $0x2ab0] sm:$0xff]  }
 0x523   :  { %23804 = vmatpush3.bf16.msra.mxu0 %v25773_v60  ;;  %19089 = vmatprep.mubr.bf16.mxu0 %v4631_v7 }
 0x524   :  { %v23512_v9 = vpop.f32.mrf.mxu0  ;;  %v23533_v10 = vpop.f32.mrf.mxu1  ;;  %19050 = vmatmul.mubr.bf16.vlgmr.msra.gmra.mxu1 %v4632_v2  ;;  %23805 = vmatprep.subr.bf16.mxu0 %v25776_v3  ;;  %v25815_v3 = vld [vmem:[%s32109_s1 + $0x2ae8] sm:$0xff]  }
 0x525   :  { %v23513_v13 = vadd.f32 %v23512_v9, %v23511_v4  ;;  %23826 = vmatpush3.bf16.msra.mxu1 %v25775_v0  ;;  %19129 = vmatprep.mubr.bf16.mxu1 %v4635_v12  ;;  %v25814_v0 = vld [vmem:[%s32109_s1 + $0x2a28] sm:$0xff]   ;;  %v25820_v12 = vld [vmem:[%s32109_s1 + $0x2aa0] sm:$0xff]  }
 0x526   :  { %v23514_v15 = vpop.f32.mrf.mxu0  ;;  %v23534_v16 = vpop.f32.mrf.mxu1  ;;  %23827 = vmatprep.subr.bf16.mxu1 %v25778_v8  ;;  %v25817_v8 = vld [vmem:[%s32109_s1 + $0x2a60] sm:$0xff]  }
 0x527   :  { %v18532_v18 = vadd.f32 %v23513_v13, %v30541_v32  ;;  %v23535_v19 = vadd.f32 %v23534_v16, %v23533_v10  ;;  %23806 = vmatpush3.bf16.msra.mxu0 %v25777_v6  ;;  %v25790_v32 = vld [vmem:[%s32109_s1 + $0x29d8] sm:$0xff]   ;;  %v25816_v6 = vld [vmem:[%s32109_s1 + $0x2aa8] sm:$0xff]   ;;  %v25818_v10 = vld [vmem:[%s32109_s1 + $0x2a20] sm:$0xff]  }
 0x528   :  { %v23515_v21 = vpop.f32.mrf.mxu0  ;;  %v23536_v22 = vpop.f32.mrf.mxu1  ;;  %23807 = vmatprep.subr.bf16.mxu0 %v25780_v14  ;;  %v25821_v13 = vld [vmem:[%s32109_s1 + $0x2a58] sm:$0xff]  }
 0x529   :  { %v30649_v24 = vadd.f32 %v23535_v19, %v18532_v18  ;;  %23828 = vmatpush3.bf16.msra.mxu1 %v25779_v11  ;;  %v25819_v11 = vld [vmem:[%s32109_s1 + $0x2ae0] sm:$0xff]   ;;  %v25822_v14 = vld [vmem:[%s32109_s1 + $0x2a18] sm:$0xff]   ;;  %v25826_v18 = vld [vmem:[%s32109_s1 + $0x2a10] sm:$0xff]  }
 0x52a   :  { %v23537_v26 = vpop.f32.mrf.mxu1  ;;  %23829 = vmatprep.subr.bf16.mxu1 %v25782_v20  ;;  %v25823_v15 = vld [vmem:[%s32109_s1 + $0x2ad8] sm:$0xff]   ;;  %v25827_v19 = vld [vmem:[%s32109_s1 + $0x2ad0] sm:$0xff]   ;;  %v25829_v21 = vld [vmem:[%s32109_s1 + $0x2a48] sm:$0xff]  }
 0x52b   :  { %23808 = vmatpush3.bf16.msra.mxu0 %v25781_v17  ;;  %v25824_v16 = vld [vmem:[%s32109_s1 + $0x2a98] sm:$0xff]   ;;  %v25825_v17 = vld [vmem:[%s32109_s1 + $0x2a50] sm:$0xff]   ;;  %v25830_v22 = vld [vmem:[%s32109_s1 + $0x2a08] sm:$0xff]  }
 0x52c   :  { %23809 = vmatprep.subr.bf16.mxu0 %v25784_v25  ;;  %v25828_v20 = vld [vmem:[%s32109_s1 + $0x2a90] sm:$0xff]   ;;  %v25833_v25 = vld [vmem:[%s32109_s1 + $0x2a40] sm:$0xff]  }
 0x52d   :  { %23830 = vmatpush3.bf16.msra.mxu1 %v25783_v23  ;;  %v25831_v23 = vld [vmem:[%s32109_s1 + $0x2ac8] sm:$0xff]   ;;  %v25834_v26 = vld [vmem:[%s32109_s1 + $0x2a00] sm:$0xff]  }
 0x52e   :  { %23831 = vmatprep.subr.bf16.mxu1 %v25786_v28  ;;  %v37_v28 = vld [vmem:[%s32108_s0 + $0xa8] sm:$0xff] }
 0x52f   :  { %23810 = vmatpush3.bf16.msra.mxu0 %v25785_v27  ;;  %v25835_v27 = vld [vmem:[%s32109_s1 + $0x2ac0] sm:$0xff]  }
 0x530   :  { %23811 = vmatprep.subr.bf16.mxu0 %v25788_v30  ;;  %v25836_v30 = vld [vmem:[%s32109_s1 + $0x2a80] sm:$0xff]  }
 0x531   :  { %23832 = vmatpush3.bf16.msra.mxu1 %v25787_v29  ;;  %v4643_v29 = vrot.slane %v37_v28, %v26383_v41 }
 0x532   :  { %23833 = vmatprep.subr.bf16.mxu1 %v25790_v32  ;;  %v25837_v32 = vld [vmem:[%s32109_s1 + $0x2b78] sm:$0xff]  }
 0x533   :  { %23812 = vmatpush3.bf16.msra.mxu0 %v25789_v31  ;;  %v4636_v31 = vcombine.high %v37_v28, %v37_v28  ;;  %v25874_v28 = vld [vmem:[%s32109_s1 + $0x2c70] sm:$0xff]  }
 0x534   :  { %23813 = vmatprep.subr.bf16.mxu0 %v25792_v34  ;;  %v4659_v34 = vrot.slane %v4643_v29, %v26383_v41 }
 0x535   :  { %23834 = vmatpush3.bf16.msra.mxu1 %v25791_v33  ;;  %v4651_v33 = vcombine.high %v4643_v29, %v4643_v29 }
 0x536   :  { %23835 = vmatprep.subr.bf16.mxu1 %v25794_v36  ;;  %v30824_v36 = vrot.slane %v4636_v31, %v26383_v41  ;;  %v25876_v31 = vld [vmem:[%s32109_s1 + $0x2cf0] sm:$0xff]  }
 0x537   :  { %23814 = vmatpush3.bf16.msra.mxu0 %v25793_v35  ;;  %v25838_v35 = vld [vmem:[%s32109_s1 + $0x2b38] sm:$0xff]  }
 0x538   :  { %23815 = vmatprep.subr.bf16.mxu0 %v25796_v38  ;;  %v4673_v38 = vrot.slane %v4651_v33, %v26383_v41 }
 0x539   :  { %23836 = vmatpush3.bf16.msra.mxu1 %v25795_v37  ;;  %v25839_v37 = vld [vmem:[%s32109_s1 + $0x2bf8] sm:$0xff]  }
 0x53a   :  { %23837 = vmatprep.subr.bf16.mxu1 %v25798_v40  ;;  %v4652_v40 = vcombine.high %v30824_v36, %v30824_v36 }
 0x53b   :  { %23816 = vmatpush3.bf16.msra.mxu0 %v25797_v39  ;;  %v25840_v39 = vld [vmem:[%s32109_s1 + $0x2bb8] sm:$0xff]  }
 0x53c   :  { %23817 = vmatprep.subr.bf16.mxu0 %v25800_v43  ;;  %v25841_v43 = vld [vmem:[%s32109_s1 + $0x2b70] sm:$0xff]  }
 0x53d   :  { %23838 = vmatpush3.bf16.msra.mxu1 %v25799_v42  ;;  %v4681_v42 = vcombine.high %v4659_v34, %v4659_v34 }
 0x53e   :  { %23839 = vmatprep.subr.bf16.mxu1 %v25802_v45  ;;  %v4683_v45 = vcombine.high %v4673_v38, %v4673_v38 }
 0x53f   :  { %23818 = vmatpush3.bf16.msra.mxu0 %v25801_v44 }
 0x540   :  { %23847 = vmatprep.subr.bf16.mxu0 %v25805_v48  ;;  %v25843_v48 = vld [vmem:[%s32109_s1 + $0x2bf0] sm:$0xff]  }
 0x541   :  { %23840 = vmatpush3.bf16.msra.mxu1 %v25804_v46  ;;  %v25842_v46 = vld [vmem:[%s32109_s1 + $0x2b30] sm:$0xff]  }
 0x542   :  { %v23555_v54 = vpop.f32.mrf.mxu0  ;;  %19090 = vmatmul.mubr.bf16.vlgmr.msra.gmra.mxu0 %v4617_v47  ;;  %23869 = vmatprep.subr.bf16.mxu1 %v25807_v50  ;;  %v4680_v47 = vrot.slane %v4652_v40, %v26383_v41 }
 0x543   :  { %23848 = vmatpush3.bf16.msra.mxu0 %v25806_v49  ;;  %19169 = vmatprep.mubr.bf16.mxu0 %v4673_v38 }
 0x544   :  { %v23556_v57 = vpop.f32.mrf.mxu0  ;;  %v23577_v58 = vpop.f32.mrf.mxu1  ;;  %19130 = vmatmul.mubr.bf16.vlgmr.msra.gmra.mxu1 %v4633_v52  ;;  %23849 = vmatprep.subr.bf16.mxu0 %v25809_v53  ;;  %v4684_v52 = vcombine.high %v4680_v47, %v4680_v47 }
 0x545   :  { %v23557_v60 = vadd.f32 %v23556_v57, %v23555_v54  ;;  %23870 = vmatpush3.bf16.msra.mxu1 %v25808_v51  ;;  %19209 = vmatprep.mubr.bf16.mxu1 %v4683_v45  ;;  %v25844_v51 = vld [vmem:[%s32109_s1 + $0x2bb0] sm:$0xff]   ;;  %v25845_v54 = vld [vmem:[%s32109_s1 + $0x2b68] sm:$0xff]  }
 0x546   :  { %v23558_v62 = vpop.f32.mrf.mxu0  ;;  %v23578_v63 = vpop.f32.mrf.mxu1  ;;  %23871 = vmatprep.subr.bf16.mxu1 %v25811_v56  ;;  %v25846_v57 = vld [vmem:[%s32109_s1 + $0x2b28] sm:$0xff]  }
 0x547   :  { %v18612_v1 = vadd.f32 %v23557_v60, %v30649_v24  ;;  %v23579_v2 = vadd.f32 %v23578_v63, %v23577_v58  ;;  %23850 = vmatpush3.bf16.msra.mxu0 %v25810_v55  ;;  %v25832_v24 = vld [vmem:[%s32109_s1 + $0x2a88] sm:$0xff]  }
 0x548   :  { %v23559_v4 = vpop.f32.mrf.mxu0  ;;  %v23580_v5 = vpop.f32.mrf.mxu1  ;;  %23851 = vmatprep.subr.bf16.mxu0 %v25813_v61  ;;  %v25847_v60 = vld [vmem:[%s32109_s1 + $0x2be8] sm:$0xff]  }
 0x549   :  { %v30750_v7 = vadd.f32 %v23579_v2, %v18612_v1  ;;  %23872 = vmatpush3.bf16.msra.mxu1 %v25812_v59  ;;  %v25848_v63 = vld [vmem:[%s32109_s1 + $0x2ba8] sm:$0xff]   ;;  %v25849_v1 = vld [vmem:[%s32109_s1 + $0x2b60] sm:$0xff]  }
 0x54a   :  { %v23581_v9 = vpop.f32.mrf.mxu1  ;;  %23873 = vmatprep.subr.bf16.mxu1 %v25815_v3  ;;  %v25850_v3 = vld [vmem:[%s32109_s1 + $0x2b20] sm:$0xff]  }
 0x54b   :  { %23852 = vmatpush3.bf16.msra.mxu0 %v25814_v0  ;;  %v25851_v4 = vld [vmem:[%s32109_s1 + $0x2be0] sm:$0xff]   ;;  %v25856_v9 = vld [vmem:[%s32109_s1 + $0x2b98] sm:$0xff]  }
 0x54c   :  { %23853 = vmatprep.subr.bf16.mxu0 %v25817_v8  ;;  %v25852_v5 = vld [vmem:[%s32109_s1 + $0x2ba0] sm:$0xff]   ;;  %v25855_v8 = vld [vmem:[%s32109_s1 + $0x2bd8] sm:$0xff]  }
 0x54d   :  { %23874 = vmatpush3.bf16.msra.mxu1 %v25816_v6  ;;  %v25853_v6 = vld [vmem:[%s32109_s1 + $0x2b58] sm:$0xff]  }
 0x54e   :  { %23875 = vmatprep.subr.bf16.mxu1 %v25819_v11  ;;  %v25858_v11 = vld [vmem:[%s32109_s1 + $0x2b10] sm:$0xff]  }
 0x54f   :  { %23854 = vmatpush3.bf16.msra.mxu0 %v25818_v10  ;;  %v25857_v10 = vld [vmem:[%s32109_s1 + $0x2b50] sm:$0xff]  }
 0x550   :  { %23855 = vmatprep.subr.bf16.mxu0 %v25821_v13  ;;  %v25860_v13 = vld [vmem:[%s32109_s1 + $0x2b90] sm:$0xff]  }
 0x551   :  { %23876 = vmatpush3.bf16.msra.mxu1 %v25820_v12  ;;  %v25859_v12 = vld [vmem:[%s32109_s1 + $0x2bd0] sm:$0xff]  }
 0x552   :  { %23877 = vmatprep.subr.bf16.mxu1 %v25823_v15  ;;  %v25862_v15 = vld [vmem:[%s32109_s1 + $0x2b08] sm:$0xff]  }
 0x553   :  { %23856 = vmatpush3.bf16.msra.mxu0 %v25822_v14  ;;  %v25861_v14 = vld [vmem:[%s32109_s1 + $0x2b48] sm:$0xff]  }
 0x554   :  { %23857 = vmatprep.subr.bf16.mxu0 %v25825_v17  ;;  %v25864_v17 = vld [vmem:[%s32109_s1 + $0x2b88] sm:$0xff]  }
 0x555   :  { %23878 = vmatpush3.bf16.msra.mxu1 %v25824_v16  ;;  %v25863_v16 = vld [vmem:[%s32109_s1 + $0x2bc8] sm:$0xff]  }
 0x556   :  { %23879 = vmatprep.subr.bf16.mxu1 %v25827_v19  ;;  %v25866_v19 = vld [vmem:[%s32109_s1 + $0x2b00] sm:$0xff]  }
 0x557   :  { %23858 = vmatpush3.bf16.msra.mxu0 %v25826_v18  ;;  %v25865_v18 = vld [vmem:[%s32109_s1 + $0x2b40] sm:$0xff]  }
 0x558   :  { %23859 = vmatprep.subr.bf16.mxu0 %v25829_v21  ;;  %v25869_v21 = vld [vmem:[%s32109_s1 + $0x2b80] sm:$0xff]  }
 0x559   :  { %23880 = vmatpush3.bf16.msra.mxu1 %v25828_v20  ;;  %v25867_v20 = vld [vmem:[%s32109_s1 + $0x2bc0] sm:$0xff]  }
 0x55a   :  { %23881 = vmatprep.subr.bf16.mxu1 %v25831_v23  ;;  %v25870_v23 = vld [vmem:[%s32109_s1 + $0x2c78] sm:$0xff]  }
 0x55b   :  { %23860 = vmatpush3.bf16.msra.mxu0 %v25830_v22  ;;  %v4666_v22 = vrot.slane %v30824_v36, %v26383_v41  ;;  %v25878_v36 = vld [vmem:[%s32109_s1 + $0x2c68] sm:$0xff]  }
 0x55c   :  { %23861 = vmatprep.subr.bf16.mxu0 %v25833_v25  ;;  %v25872_v25 = vld [vmem:[%s32109_s1 + $0x2cf8] sm:$0xff]  }
 0x55d   :  { %23882 = vmatpush3.bf16.msra.mxu1 %v25832_v24  ;;  %v25871_v24 = vld [vmem:[%s32109_s1 + $0x2c38] sm:$0xff]  }
 0x55e   :  { %23883 = vmatprep.subr.bf16.mxu1 %v25835_v27  ;;  %v4682_v27 = vcombine.high %v4666_v22, %v4666_v22 }
 0x55f   :  { %23862 = vmatpush3.bf16.msra.mxu0 %v25834_v26  ;;  %v25873_v26 = vld [vmem:[%s32109_s1 + $0x2cb8] sm:$0xff]  }
 0x560   :  { %23891 = vmatprep.subr.bf16.mxu0 %v25837_v32 }
 0x561   :  { %23884 = vmatpush3.bf16.msra.mxu1 %v25836_v30  ;;  %v25875_v30 = vld [vmem:[%s32109_s1 + $0x2c30] sm:$0xff]  }
 0x562   :  { %v23599_v44 = vpop.f32.mrf.mxu0  ;;  %19170 = vmatmul.mubr.bf16.vlgmr.msra.gmra.mxu0 %v4659_v34  ;;  %23913 = vmatprep.subr.bf16.mxu1 %v25839_v37  ;;  %v25877_v34 = vld [vmem:[%s32109_s1 + $0x2cb0] sm:$0xff]  }
 0x563   :  { %23892 = vmatpush3.bf16.msra.mxu0 %v25838_v35  ;;  %19249 = vmatprep.mubr.bf16.mxu0 %v4680_v47 }
 0x564   :  { %v23600_v49 = vpop.f32.mrf.mxu0  ;;  %v23621_v50 = vpop.f32.mrf.mxu1  ;;  %19210 = vmatmul.mubr.bf16.vlgmr.msra.gmra.mxu1 %v4681_v42  ;;  %23893 = vmatprep.subr.bf16.mxu0 %v25841_v43  ;;  %v25880_v43 = vld [vmem:[%s32109_s1 + $0x2ce8] sm:$0xff]  }
 0x565   :  { %v23601_v53 = vadd.f32 %v23600_v49, %v23599_v44  ;;  %23914 = vmatpush3.bf16.msra.mxu1 %v25840_v39  ;;  %19289 = vmatprep.mubr.bf16.mxu1 %v4684_v52  ;;  %v25879_v39 = vld [vmem:[%s32109_s1 + $0x2c28] sm:$0xff]   ;;  %v25885_v52 = vld [vmem:[%s32109_s1 + $0x2ca0] sm:$0xff]  }
 0x566   :  { %v23602_v55 = vpop.f32.mrf.mxu0  ;;  %v23622_v56 = vpop.f32.mrf.mxu1  ;;  %23915 = vmatprep.subr.bf16.mxu1 %v25843_v48  ;;  %v25882_v48 = vld [vmem:[%s32109_s1 + $0x2c60] sm:$0xff]  }
 0x567   :  { %v18692_v58 = vadd.f32 %v23601_v53, %v30750_v7  ;;  %v23623_v59 = vadd.f32 %v23622_v56, %v23621_v50  ;;  %23894 = vmatpush3.bf16.msra.mxu0 %v25842_v46  ;;  %v25854_v7 = vld [vmem:[%s32109_s1 + $0x2b18] sm:$0xff]   ;;  %v25881_v46 = vld [vmem:[%s32109_s1 + $0x2ca8] sm:$0xff]   ;;  %v25883_v50 = vld [vmem:[%s32109_s1 + $0x2c20] sm:$0xff]  }
 0x568   :  { %v23603_v61 = vpop.f32.mrf.mxu0  ;;  %v23624_v62 = vpop.f32.mrf.mxu1  ;;  %23895 = vmatprep.subr.bf16.mxu0 %v25845_v54  ;;  %v25886_v53 = vld [vmem:[%s32109_s1 + $0x2c58] sm:$0xff]  }
 0x569   :  { %v30861_v0 = vadd.f32 %v23623_v59, %v18692_v58  ;;  %23916 = vmatpush3.bf16.msra.mxu1 %v25844_v51  ;;  %v25884_v51 = vld [vmem:[%s32109_s1 + $0x2ce0] sm:$0xff]   ;;  %v25887_v54 = vld [vmem:[%s32109_s1 + $0x2c18] sm:$0xff]   ;;  %v25891_v58 = vld [vmem:[%s32109_s1 + $0x2c10] sm:$0xff]  }
 0x56a   :  { %v23625_v2 = vpop.f32.mrf.mxu1  ;;  %23917 = vmatprep.subr.bf16.mxu1 %v25847_v60  ;;  %v25888_v55 = vld [vmem:[%s32109_s1 + $0x2cd8] sm:$0xff]   ;;  %v25892_v59 = vld [vmem:[%s32109_s1 + $0x2cd0] sm:$0xff]   ;;  %v25894_v61 = vld [vmem:[%s32109_s1 + $0x2c48] sm:$0xff]  }
 0x56b   :  { %23896 = vmatpush3.bf16.msra.mxu0 %v25846_v57  ;;  %v25889_v56 = vld [vmem:[%s32109_s1 + $0x2c98] sm:$0xff]   ;;  %v25890_v57 = vld [vmem:[%s32109_s1 + $0x2c50] sm:$0xff]   ;;  %v25895_v62 = vld [vmem:[%s32109_s1 + $0x2c08] sm:$0xff]  }
 0x56c   :  { %23897 = vmatprep.subr.bf16.mxu0 %v25849_v1  ;;  %v25893_v60 = vld [vmem:[%s32109_s1 + $0x2c90] sm:$0xff]   ;;  %v25898_v1 = vld [vmem:[%s32109_s1 + $0x2c40] sm:$0xff]  }
 0x56d   :  { %23918 = vmatpush3.bf16.msra.mxu1 %v25848_v63  ;;  %v25896_v63 = vld [vmem:[%s32109_s1 + $0x2cc8] sm:$0xff]   ;;  %v25899_v2 = vld [vmem:[%s32109_s1 + $0x2c00] sm:$0xff]  }
 0x56e   :  { %23919 = vmatprep.subr.bf16.mxu1 %v25851_v4  ;;  %v38_v4 = vld [vmem:[%s32108_s0 + $0xb0] sm:$0xff] }
 0x56f   :  { %23898 = vmatpush3.bf16.msra.mxu0 %v25850_v3  ;;  %v25900_v3 = vld [vmem:[%s32109_s1 + $0x2cc0] sm:$0xff]  }
 0x570   :  { %23899 = vmatprep.subr.bf16.mxu0 %v25853_v6  ;;  %v25901_v6 = vld [vmem:[%s32109_s1 + $0x2c80] sm:$0xff]  }
 0x571   :  { %23920 = vmatpush3.bf16.msra.mxu1 %v25852_v5  ;;  %v4692_v5 = vrot.slane %v38_v4, %v26383_v41 }
 0x572   :  { %23921 = vmatprep.subr.bf16.mxu1 %v25855_v8  ;;  %v25902_v8 = vld [vmem:[%s32109_s1 + $0x2d78] sm:$0xff]  }
 0x573   :  { %23900 = vmatpush3.bf16.msra.mxu0 %v25854_v7  ;;  %v4685_v7 = vcombine.high %v38_v4, %v38_v4  ;;  %v25939_v4 = vld [vmem:[%s32109_s1 + $0x2e70] sm:$0xff]  }
 0x574   :  { %23901 = vmatprep.subr.bf16.mxu0 %v25857_v10  ;;  %v4708_v10 = vrot.slane %v4692_v5, %v26383_v41 }
 0x575   :  { %23922 = vmatpush3.bf16.msra.mxu1 %v25856_v9  ;;  %v4700_v9 = vcombine.high %v4692_v5, %v4692_v5 }
 0x576   :  { %23923 = vmatprep.subr.bf16.mxu1 %v25859_v12  ;;  %v31036_v12 = vrot.slane %v4685_v7, %v26383_v41  ;;  %v25941_v7 = vld [vmem:[%s32109_s1 + $0x2ef0] sm:$0xff]  }
 0x577   :  { %23902 = vmatpush3.bf16.msra.mxu0 %v25858_v11  ;;  %v25903_v11 = vld [vmem:[%s32109_s1 + $0x2d38] sm:$0xff]  }
 0x578   :  { %23903 = vmatprep.subr.bf16.mxu0 %v25861_v14  ;;  %v4722_v14 = vrot.slane %v4700_v9, %v26383_v41 }
 0x579   :  { %23924 = vmatpush3.bf16.msra.mxu1 %v25860_v13  ;;  %v25904_v13 = vld [vmem:[%s32109_s1 + $0x2df8] sm:$0xff]  }
 0x57a   :  { %23925 = vmatprep.subr.bf16.mxu1 %v25863_v16  ;;  %v4701_v16 = vcombine.high %v31036_v12, %v31036_v12 }
 0x57b   :  { %23904 = vmatpush3.bf16.msra.mxu0 %v25862_v15  ;;  %v25905_v15 = vld [vmem:[%s32109_s1 + $0x2db8] sm:$0xff]  }
 0x57c   :  { %23905 = vmatprep.subr.bf16.mxu0 %v25865_v18  ;;  %v25906_v18 = vld [vmem:[%s32109_s1 + $0x2d70] sm:$0xff]  }
 0x57d   :  { %23926 = vmatpush3.bf16.msra.mxu1 %v25864_v17  ;;  %v4730_v17 = vcombine.high %v4708_v10, %v4708_v10 }
 0x57e   :  { %23927 = vmatprep.subr.bf16.mxu1 %v25867_v20  ;;  %v4732_v20 = vcombine.high %v4722_v14, %v4722_v14 }
 0x57f   :  { %23906 = vmatpush3.bf16.msra.mxu0 %v25866_v19 }
 0x580   :  { %23935 = vmatprep.subr.bf16.mxu0 %v25870_v23  ;;  %v25908_v23 = vld [vmem:[%s32109_s1 + $0x2df0] sm:$0xff]  }
 0x581   :  { %23928 = vmatpush3.bf16.msra.mxu1 %v25869_v21  ;;  %v25907_v21 = vld [vmem:[%s32109_s1 + $0x2d30] sm:$0xff]  }
 0x582   :  { %v23643_v29 = vpop.f32.mrf.mxu0  ;;  %19250 = vmatmul.mubr.bf16.vlgmr.msra.gmra.mxu0 %v4666_v22  ;;  %23957 = vmatprep.subr.bf16.mxu1 %v25872_v25  ;;  %v4729_v22 = vrot.slane %v4701_v16, %v26383_v41 }
 0x583   :  { %23936 = vmatpush3.bf16.msra.mxu0 %v25871_v24  ;;  %19329 = vmatprep.mubr.bf16.mxu0 %v4722_v14 }
 0x584   :  { %v23644_v32 = vpop.f32.mrf.mxu0  ;;  %v23665_v33 = vpop.f32.mrf.mxu1  ;;  %19290 = vmatmul.mubr.bf16.vlgmr.msra.gmra.mxu1 %v4682_v27  ;;  %23937 = vmatprep.subr.bf16.mxu0 %v25874_v28  ;;  %v4733_v27 = vcombine.high %v4729_v22, %v4729_v22 }
 0x585   :  { %v23645_v35 = vadd.f32 %v23644_v32, %v23643_v29  ;;  %23958 = vmatpush3.bf16.msra.mxu1 %v25873_v26  ;;  %19369 = vmatprep.mubr.bf16.mxu1 %v4732_v20  ;;  %v25909_v26 = vld [vmem:[%s32109_s1 + $0x2db0] sm:$0xff]   ;;  %v25910_v29 = vld [vmem:[%s32109_s1 + $0x2d68] sm:$0xff]  }
 0x586   :  { %v23646_v37 = vpop.f32.mrf.mxu0  ;;  %v23666_v38 = vpop.f32.mrf.mxu1  ;;  %23959 = vmatprep.subr.bf16.mxu1 %v25876_v31  ;;  %v25911_v32 = vld [vmem:[%s32109_s1 + $0x2d28] sm:$0xff]  }
 0x587   :  { %v18772_v40 = vadd.f32 %v23645_v35, %v30861_v0  ;;  %v23667_v42 = vadd.f32 %v23666_v38, %v23665_v33  ;;  %23938 = vmatpush3.bf16.msra.mxu0 %v25875_v30  ;;  %v25897_v0 = vld [vmem:[%s32109_s1 + $0x2c88] sm:$0xff]  }
 0x588   :  { %v23647_v44 = vpop.f32.mrf.mxu0  ;;  %v23668_v45 = vpop.f32.mrf.mxu1  ;;  %23939 = vmatprep.subr.bf16.mxu0 %v25878_v36  ;;  %v25912_v35 = vld [vmem:[%s32109_s1 + $0x2de8] sm:$0xff]  }
 0x589   :  { %v30962_v47 = vadd.f32 %v23667_v42, %v18772_v40  ;;  %23960 = vmatpush3.bf16.msra.mxu1 %v25877_v34  ;;  %v25913_v38 = vld [vmem:[%s32109_s1 + $0x2da8] sm:$0xff]   ;;  %v25914_v40 = vld [vmem:[%s32109_s1 + $0x2d60] sm:$0xff]  }
 0x58a   :  { %v23669_v49 = vpop.f32.mrf.mxu1  ;;  %23961 = vmatprep.subr.bf16.mxu1 %v25880_v43  ;;  %v25915_v43 = vld [vmem:[%s32109_s1 + $0x2d20] sm:$0xff]  }
 0x58b   :  { %23940 = vmatpush3.bf16.msra.mxu0 %v25879_v39  ;;  %v25916_v44 = vld [vmem:[%s32109_s1 + $0x2de0] sm:$0xff]   ;;  %v25921_v49 = vld [vmem:[%s32109_s1 + $0x2d98] sm:$0xff]  }
 0x58c   :  { %23941 = vmatprep.subr.bf16.mxu0 %v25882_v48  ;;  %v25917_v45 = vld [vmem:[%s32109_s1 + $0x2da0] sm:$0xff]   ;;  %v25920_v48 = vld [vmem:[%s32109_s1 + $0x2dd8] sm:$0xff]  }
 0x58d   :  { %23962 = vmatpush3.bf16.msra.mxu1 %v25881_v46  ;;  %v25918_v46 = vld [vmem:[%s32109_s1 + $0x2d58] sm:$0xff]  }
 0x58e   :  { %23963 = vmatprep.subr.bf16.mxu1 %v25884_v51  ;;  %v25923_v51 = vld [vmem:[%s32109_s1 + $0x2d10] sm:$0xff]  }
 0x58f   :  { %23942 = vmatpush3.bf16.msra.mxu0 %v25883_v50  ;;  %v25922_v50 = vld [vmem:[%s32109_s1 + $0x2d50] sm:$0xff]  }
 0x590   :  { %23943 = vmatprep.subr.bf16.mxu0 %v25886_v53  ;;  %v25925_v53 = vld [vmem:[%s32109_s1 + $0x2d90] sm:$0xff]  }
 0x591   :  { %23964 = vmatpush3.bf16.msra.mxu1 %v25885_v52  ;;  %v25924_v52 = vld [vmem:[%s32109_s1 + $0x2dd0] sm:$0xff]  }
 0x592   :  { %23965 = vmatprep.subr.bf16.mxu1 %v25888_v55  ;;  %v25927_v55 = vld [vmem:[%s32109_s1 + $0x2d08] sm:$0xff]  }
 0x593   :  { %23944 = vmatpush3.bf16.msra.mxu0 %v25887_v54  ;;  %v25926_v54 = vld [vmem:[%s32109_s1 + $0x2d48] sm:$0xff]  }
 0x594   :  { %23945 = vmatprep.subr.bf16.mxu0 %v25890_v57  ;;  %v25929_v57 = vld [vmem:[%s32109_s1 + $0x2d88] sm:$0xff]  }
 0x595   :  { %23966 = vmatpush3.bf16.msra.mxu1 %v25889_v56  ;;  %v25928_v56 = vld [vmem:[%s32109_s1 + $0x2dc8] sm:$0xff]  }
 0x596   :  { %23967 = vmatprep.subr.bf16.mxu1 %v25892_v59  ;;  %v25931_v59 = vld [vmem:[%s32109_s1 + $0x2d00] sm:$0xff]  }
 0x597   :  { %23946 = vmatpush3.bf16.msra.mxu0 %v25891_v58  ;;  %v25930_v58 = vld [vmem:[%s32109_s1 + $0x2d40] sm:$0xff]  }
 0x598   :  { %23947 = vmatprep.subr.bf16.mxu0 %v25894_v61  ;;  %v25934_v61 = vld [vmem:[%s32109_s1 + $0x2d80] sm:$0xff]  }
 0x599   :  { %23968 = vmatpush3.bf16.msra.mxu1 %v25893_v60  ;;  %v25932_v60 = vld [vmem:[%s32109_s1 + $0x2dc0] sm:$0xff]  }
 0x59a   :  { %23969 = vmatprep.subr.bf16.mxu1 %v25896_v63  ;;  %v25935_v63 = vld [vmem:[%s32109_s1 + $0x2e78] sm:$0xff]  }
 0x59b   :  { %23948 = vmatpush3.bf16.msra.mxu0 %v25895_v62  ;;  %v4715_v62 = vrot.slane %v31036_v12, %v26383_v41  ;;  %v25943_v12 = vld [vmem:[%s32109_s1 + $0x2e68] sm:$0xff]  }
 0x59c   :  { %23949 = vmatprep.subr.bf16.mxu0 %v25898_v1  ;;  %v25937_v1 = vld [vmem:[%s32109_s1 + $0x2ef8] sm:$0xff]  }
 0x59d   :  { %23970 = vmatpush3.bf16.msra.mxu1 %v25897_v0  ;;  %v25936_v0 = vld [vmem:[%s32109_s1 + $0x2e38] sm:$0xff]  }
 0x59e   :  { %23971 = vmatprep.subr.bf16.mxu1 %v25900_v3  ;;  %v4731_v3 = vcombine.high %v4715_v62, %v4715_v62 }
 0x59f   :  { %23950 = vmatpush3.bf16.msra.mxu0 %v25899_v2  ;;  %v25938_v2 = vld [vmem:[%s32109_s1 + $0x2eb8] sm:$0xff]  }
 0x5a0   :  { %23979 = vmatprep.subr.bf16.mxu0 %v25902_v8 }
 0x5a1   :  { %23972 = vmatpush3.bf16.msra.mxu1 %v25901_v6  ;;  %v25940_v6 = vld [vmem:[%s32109_s1 + $0x2e30] sm:$0xff]  }
 0x5a2   :  { %v23687_v19 = vpop.f32.mrf.mxu0  ;;  %19330 = vmatmul.mubr.bf16.vlgmr.msra.gmra.mxu0 %v4708_v10  ;;  %24001 = vmatprep.subr.bf16.mxu1 %v25904_v13  ;;  %v25942_v10 = vld [vmem:[%s32109_s1 + $0x2eb0] sm:$0xff]  }
 0x5a3   :  { %23980 = vmatpush3.bf16.msra.mxu0 %v25903_v11  ;;  %19409 = vmatprep.mubr.bf16.mxu0 %v4729_v22 }
 0x5a4   :  { %v23688_v24 = vpop.f32.mrf.mxu0  ;;  %v23709_v25 = vpop.f32.mrf.mxu1  ;;  %19370 = vmatmul.mubr.bf16.vlgmr.msra.gmra.mxu1 %v4730_v17  ;;  %23981 = vmatprep.subr.bf16.mxu0 %v25906_v18  ;;  %v25945_v18 = vld [vmem:[%s32109_s1 + $0x2ee8] sm:$0xff]  }
 0x5a5   :  { %v23689_v28 = vadd.f32 %v23688_v24, %v23687_v19  ;;  %24002 = vmatpush3.bf16.msra.mxu1 %v25905_v15  ;;  %19449 = vmatprep.mubr.bf16.mxu1 %v4733_v27  ;;  %v25944_v15 = vld [vmem:[%s32109_s1 + $0x2e28] sm:$0xff]   ;;  %v25950_v27 = vld [vmem:[%s32109_s1 + $0x2ea0] sm:$0xff]  }
 0x5a6   :  { %v23690_v30 = vpop.f32.mrf.mxu0  ;;  %v23710_v31 = vpop.f32.mrf.mxu1  ;;  %24003 = vmatprep.subr.bf16.mxu1 %v25908_v23  ;;  %v25947_v23 = vld [vmem:[%s32109_s1 + $0x2e60] sm:$0xff]  }
 0x5a7   :  { %v18852_v33 = vadd.f32 %v23689_v28, %v30962_v47  ;;  %v23711_v34 = vadd.f32 %v23710_v31, %v23709_v25  ;;  %23982 = vmatpush3.bf16.msra.mxu0 %v25907_v21  ;;  %v25919_v47 = vld [vmem:[%s32109_s1 + $0x2d18] sm:$0xff]   ;;  %v25946_v21 = vld [vmem:[%s32109_s1 + $0x2ea8] sm:$0xff]   ;;  %v25948_v25 = vld [vmem:[%s32109_s1 + $0x2e20] sm:$0xff]  }
 0x5a8   :  { %v23691_v36 = vpop.f32.mrf.mxu0  ;;  %v23712_v37 = vpop.f32.mrf.mxu1  ;;  %23983 = vmatprep.subr.bf16.mxu0 %v25910_v29  ;;  %v25951_v28 = vld [vmem:[%s32109_s1 + $0x2e58] sm:$0xff]  }
 0x5a9   :  { %v31073_v39 = vadd.f32 %v23711_v34, %v18852_v33  ;;  %24004 = vmatpush3.bf16.msra.mxu1 %v25909_v26  ;;  %v25949_v26 = vld [vmem:[%s32109_s1 + $0x2ee0] sm:$0xff]   ;;  %v25952_v29 = vld [vmem:[%s32109_s1 + $0x2e18] sm:$0xff]   ;;  %v25956_v33 = vld [vmem:[%s32109_s1 + $0x2e10] sm:$0xff]  }
 0x5aa   :  { %v23713_v42 = vpop.f32.mrf.mxu1  ;;  %24005 = vmatprep.subr.bf16.mxu1 %v25912_v35  ;;  %v25953_v30 = vld [vmem:[%s32109_s1 + $0x2ed8] sm:$0xff]   ;;  %v25957_v34 = vld [vmem:[%s32109_s1 + $0x2ed0] sm:$0xff]   ;;  %v25959_v36 = vld [vmem:[%s32109_s1 + $0x2e48] sm:$0xff]  }
 0x5ab   :  { %23984 = vmatpush3.bf16.msra.mxu0 %v25911_v32  ;;  %v25954_v31 = vld [vmem:[%s32109_s1 + $0x2e98] sm:$0xff]   ;;  %v25955_v32 = vld [vmem:[%s32109_s1 + $0x2e50] sm:$0xff]   ;;  %v25960_v37 = vld [vmem:[%s32109_s1 + $0x2e08] sm:$0xff]  }
 0x5ac   :  { %23985 = vmatprep.subr.bf16.mxu0 %v25914_v40  ;;  %v25958_v35 = vld [vmem:[%s32109_s1 + $0x2e90] sm:$0xff]   ;;  %v25963_v40 = vld [vmem:[%s32109_s1 + $0x2e40] sm:$0xff]  }
 0x5ad   :  { %24006 = vmatpush3.bf16.msra.mxu1 %v25913_v38  ;;  %v25961_v38 = vld [vmem:[%s32109_s1 + $0x2ec8] sm:$0xff]   ;;  %v25964_v42 = vld [vmem:[%s32109_s1 + $0x2e00] sm:$0xff]  }
 0x5ae   :  { %24007 = vmatprep.subr.bf16.mxu1 %v25916_v44  ;;  %v39_v44 = vld [vmem:[%s32108_s0 + $0xb8] sm:$0xff] }
 0x5af   :  { %23986 = vmatpush3.bf16.msra.mxu0 %v25915_v43  ;;  %v25965_v43 = vld [vmem:[%s32109_s1 + $0x2ec0] sm:$0xff]  }
 0x5b0   :  { %23987 = vmatprep.subr.bf16.mxu0 %v25918_v46  ;;  %v25966_v46 = vld [vmem:[%s32109_s1 + $0x2e80] sm:$0xff]  }
 0x5b1   :  { %24008 = vmatpush3.bf16.msra.mxu1 %v25917_v45  ;;  %v4741_v45 = vrot.slane %v39_v44, %v26383_v41 }
 0x5b2   :  { %24009 = vmatprep.subr.bf16.mxu1 %v25920_v48  ;;  %v25967_v48 = vld [vmem:[%s32109_s1 + $0x2f78] sm:$0xff]  }
 0x5b3   :  { %23988 = vmatpush3.bf16.msra.mxu0 %v25919_v47  ;;  %v4734_v47 = vcombine.high %v39_v44, %v39_v44  ;;  %v26004_v44 = vld [vmem:[%s32109_s1 + $0x3070] sm:$0xff]  }
 0x5b4   :  { %23989 = vmatprep.subr.bf16.mxu0 %v25922_v50  ;;  %v4757_v50 = vrot.slane %v4741_v45, %v26383_v41 }
 0x5b5   :  { %24010 = vmatpush3.bf16.msra.mxu1 %v25921_v49  ;;  %v4749_v49 = vcombine.high %v4741_v45, %v4741_v45 }
 0x5b6   :  { %24011 = vmatprep.subr.bf16.mxu1 %v25924_v52  ;;  %v31248_v52 = vrot.slane %v4734_v47, %v26383_v41  ;;  %v26006_v47 = vld [vmem:[%s32109_s1 + $0x30f0] sm:$0xff]  }
 0x5b7   :  { %23990 = vmatpush3.bf16.msra.mxu0 %v25923_v51  ;;  %v25968_v51 = vld [vmem:[%s32109_s1 + $0x2f38] sm:$0xff]  }
 0x5b8   :  { %23991 = vmatprep.subr.bf16.mxu0 %v25926_v54  ;;  %v4771_v54 = vrot.slane %v4749_v49, %v26383_v41 }
 0x5b9   :  { %24012 = vmatpush3.bf16.msra.mxu1 %v25925_v53  ;;  %v25969_v53 = vld [vmem:[%s32109_s1 + $0x2ff8] sm:$0xff]  }
 0x5ba   :  { %24013 = vmatprep.subr.bf16.mxu1 %v25928_v56  ;;  %v4750_v56 = vcombine.high %v31248_v52, %v31248_v52 }
 0x5bb   :  { %23992 = vmatpush3.bf16.msra.mxu0 %v25927_v55  ;;  %v25970_v55 = vld [vmem:[%s32109_s1 + $0x2fb8] sm:$0xff]  }
 0x5bc   :  { %23993 = vmatprep.subr.bf16.mxu0 %v25930_v58  ;;  %v25971_v58 = vld [vmem:[%s32109_s1 + $0x2f70] sm:$0xff]  }
 0x5bd   :  { %24014 = vmatpush3.bf16.msra.mxu1 %v25929_v57  ;;  %v4779_v57 = vcombine.high %v4757_v50, %v4757_v50 }
 0x5be   :  { %24015 = vmatprep.subr.bf16.mxu1 %v25932_v60  ;;  %v4781_v60 = vcombine.high %v4771_v54, %v4771_v54 }
 0x5bf   :  { %23994 = vmatpush3.bf16.msra.mxu0 %v25931_v59 }
 0x5c0   :  { %24023 = vmatprep.subr.bf16.mxu0 %v25935_v63  ;;  %v25973_v63 = vld [vmem:[%s32109_s1 + $0x2ff0] sm:$0xff]  }
 0x5c1   :  { %24016 = vmatpush3.bf16.msra.mxu1 %v25934_v61  ;;  %v25972_v61 = vld [vmem:[%s32109_s1 + $0x2f30] sm:$0xff]  }
 0x5c2   :  { %v23731_v5 = vpop.f32.mrf.mxu0  ;;  %19410 = vmatmul.mubr.bf16.vlgmr.msra.gmra.mxu0 %v4715_v62  ;;  %24045 = vmatprep.subr.bf16.mxu1 %v25937_v1  ;;  %v4778_v62 = vrot.slane %v4750_v56, %v26383_v41 }
 0x5c3   :  { %24024 = vmatpush3.bf16.msra.mxu0 %v25936_v0  ;;  %19489 = vmatprep.mubr.bf16.mxu0 %v4771_v54 }
 0x5c4   :  { %v23732_v8 = vpop.f32.mrf.mxu0  ;;  %v23753_v9 = vpop.f32.mrf.mxu1  ;;  %19450 = vmatmul.mubr.bf16.vlgmr.msra.gmra.mxu1 %v4731_v3  ;;  %24025 = vmatprep.subr.bf16.mxu0 %v25939_v4  ;;  %v4782_v3 = vcombine.high %v4778_v62, %v4778_v62 }
 0x5c5   :  { %v23733_v11 = vadd.f32 %v23732_v8, %v23731_v5  ;;  %24046 = vmatpush3.bf16.msra.mxu1 %v25938_v2  ;;  %19529 = vmatprep.mubr.bf16.mxu1 %v4781_v60  ;;  %v25974_v2 = vld [vmem:[%s32109_s1 + $0x2fb0] sm:$0xff]   ;;  %v25975_v5 = vld [vmem:[%s32109_s1 + $0x2f68] sm:$0xff]  }
 0x5c6   :  { %v23734_v13 = vpop.f32.mrf.mxu0  ;;  %v23754_v14 = vpop.f32.mrf.mxu1  ;;  %24047 = vmatprep.subr.bf16.mxu1 %v25941_v7  ;;  %v25976_v8 = vld [vmem:[%s32109_s1 + $0x2f28] sm:$0xff]  }
 0x5c7   :  { %v18932_v16 = vadd.f32 %v23733_v11, %v31073_v39  ;;  %v23755_v17 = vadd.f32 %v23754_v14, %v23753_v9  ;;  %24026 = vmatpush3.bf16.msra.mxu0 %v25940_v6  ;;  %v25962_v39 = vld [vmem:[%s32109_s1 + $0x2e88] sm:$0xff]  }
 0x5c8   :  { %v23735_v19 = vpop.f32.mrf.mxu0  ;;  %v23756_v20 = vpop.f32.mrf.mxu1  ;;  %24027 = vmatprep.subr.bf16.mxu0 %v25943_v12  ;;  %v25977_v11 = vld [vmem:[%s32109_s1 + $0x2fe8] sm:$0xff]  }
 0x5c9   :  { %v31174_v22 = vadd.f32 %v23755_v17, %v18932_v16  ;;  %24048 = vmatpush3.bf16.msra.mxu1 %v25942_v10  ;;  %v25978_v14 = vld [vmem:[%s32109_s1 + $0x2fa8] sm:$0xff]   ;;  %v25979_v16 = vld [vmem:[%s32109_s1 + $0x2f60] sm:$0xff]  }
 0x5ca   :  { %v23757_v24 = vpop.f32.mrf.mxu1  ;;  %24049 = vmatprep.subr.bf16.mxu1 %v25945_v18  ;;  %v25980_v18 = vld [vmem:[%s32109_s1 + $0x2f20] sm:$0xff]  }
 0x5cb   :  { %24028 = vmatpush3.bf16.msra.mxu0 %v25944_v15  ;;  %v25981_v19 = vld [vmem:[%s32109_s1 + $0x2fe0] sm:$0xff]   ;;  %v25986_v24 = vld [vmem:[%s32109_s1 + $0x2f98] sm:$0xff]  }
 0x5cc   :  { %24029 = vmatprep.subr.bf16.mxu0 %v25947_v23  ;;  %v25982_v20 = vld [vmem:[%s32109_s1 + $0x2fa0] sm:$0xff]   ;;  %v25985_v23 = vld [vmem:[%s32109_s1 + $0x2fd8] sm:$0xff]  }
 0x5cd   :  { %24050 = vmatpush3.bf16.msra.mxu1 %v25946_v21  ;;  %v25983_v21 = vld [vmem:[%s32109_s1 + $0x2f58] sm:$0xff]  }
 0x5ce   :  { %24051 = vmatprep.subr.bf16.mxu1 %v25949_v26  ;;  %v25988_v26 = vld [vmem:[%s32109_s1 + $0x2f10] sm:$0xff]  }
 0x5cf   :  { %24030 = vmatpush3.bf16.msra.mxu0 %v25948_v25  ;;  %v25987_v25 = vld [vmem:[%s32109_s1 + $0x2f50] sm:$0xff]  }
 0x5d0   :  { %24031 = vmatprep.subr.bf16.mxu0 %v25951_v28  ;;  %v25990_v28 = vld [vmem:[%s32109_s1 + $0x2f90] sm:$0xff]  }
 0x5d1   :  { %24052 = vmatpush3.bf16.msra.mxu1 %v25950_v27  ;;  %v25989_v27 = vld [vmem:[%s32109_s1 + $0x2fd0] sm:$0xff]  }
 0x5d2   :  { %24053 = vmatprep.subr.bf16.mxu1 %v25953_v30  ;;  %v25992_v30 = vld [vmem:[%s32109_s1 + $0x2f08] sm:$0xff]  }
 0x5d3   :  { %24032 = vmatpush3.bf16.msra.mxu0 %v25952_v29  ;;  %v25991_v29 = vld [vmem:[%s32109_s1 + $0x2f48] sm:$0xff]  }
 0x5d4   :  { %24033 = vmatprep.subr.bf16.mxu0 %v25955_v32  ;;  %v25994_v32 = vld [vmem:[%s32109_s1 + $0x2f88] sm:$0xff]  }
 0x5d5   :  { %24054 = vmatpush3.bf16.msra.mxu1 %v25954_v31  ;;  %v25993_v31 = vld [vmem:[%s32109_s1 + $0x2fc8] sm:$0xff]  }
 0x5d6   :  { %24055 = vmatprep.subr.bf16.mxu1 %v25957_v34  ;;  %v25996_v34 = vld [vmem:[%s32109_s1 + $0x2f00] sm:$0xff]  }
 0x5d7   :  { %24034 = vmatpush3.bf16.msra.mxu0 %v25956_v33  ;;  %v25995_v33 = vld [vmem:[%s32109_s1 + $0x2f40] sm:$0xff]  }
 0x5d8   :  { %24035 = vmatprep.subr.bf16.mxu0 %v25959_v36  ;;  %v25999_v36 = vld [vmem:[%s32109_s1 + $0x2f80] sm:$0xff]  }
 0x5d9   :  { %24056 = vmatpush3.bf16.msra.mxu1 %v25958_v35  ;;  %v25997_v35 = vld [vmem:[%s32109_s1 + $0x2fc0] sm:$0xff]  }
 0x5da   :  { %24057 = vmatprep.subr.bf16.mxu1 %v25961_v38  ;;  %v26000_v38 = vld [vmem:[%s32109_s1 + $0x3078] sm:$0xff]  }
 0x5db   :  { %24036 = vmatpush3.bf16.msra.mxu0 %v25960_v37  ;;  %v4764_v37 = vrot.slane %v31248_v52, %v26383_v41  ;;  %v26008_v52 = vld [vmem:[%s32109_s1 + $0x3068] sm:$0xff]  }
 0x5dc   :  { %24037 = vmatprep.subr.bf16.mxu0 %v25963_v40  ;;  %v26002_v40 = vld [vmem:[%s32109_s1 + $0x30f8] sm:$0xff]  }
 0x5dd   :  { %24058 = vmatpush3.bf16.msra.mxu1 %v25962_v39  ;;  %v26001_v39 = vld [vmem:[%s32109_s1 + $0x3038] sm:$0xff]  }
 0x5de   :  { %24059 = vmatprep.subr.bf16.mxu1 %v25965_v43  ;;  %v4780_v43 = vcombine.high %v4764_v37, %v4764_v37 }
 0x5df   :  { %24038 = vmatpush3.bf16.msra.mxu0 %v25964_v42  ;;  %v26003_v42 = vld [vmem:[%s32109_s1 + $0x30b8] sm:$0xff]  }
 0x5e0   :  { %24067 = vmatprep.subr.bf16.mxu0 %v25967_v48 }
 0x5e1   :  { %24060 = vmatpush3.bf16.msra.mxu1 %v25966_v46  ;;  %v26005_v46 = vld [vmem:[%s32109_s1 + $0x3030] sm:$0xff]  }
 0x5e2   :  { %v23775_v59 = vpop.f32.mrf.mxu0  ;;  %24089 = vmatprep.subr.bf16.mxu1 %v25969_v53  ;;  %19490 = vmatmul.mubr.bf16.vlgmr.msra.gmra.mxu0 %v4757_v50  ;;  %v26007_v50 = vld [vmem:[%s32109_s1 + $0x30b0] sm:$0xff]  }
 0x5e3   :  { %24068 = vmatpush3.bf16.msra.mxu0 %v25968_v51  ;;  %19569 = vmatprep.mubr.bf16.mxu0 %v4778_v62 }
 0x5e4   :  { %v23776_v0 = vpop.f32.mrf.mxu0  ;;  %v23797_v1 = vpop.f32.mrf.mxu1  ;;  %19530 = vmatmul.mubr.bf16.vlgmr.msra.gmra.mxu1 %v4779_v57  ;;  %24069 = vmatprep.subr.bf16.mxu0 %v25971_v58  ;;  %v26010_v58 = vld [vmem:[%s32109_s1 + $0x30e8] sm:$0xff]  }
 0x5e5   :  { %v23777_v4 = vadd.f32 %v23776_v0, %v23775_v59  ;;  %24090 = vmatpush3.bf16.msra.mxu1 %v25970_v55  ;;  %19609 = vmatprep.mubr.bf16.mxu1 %v4782_v3  ;;  %v26009_v55 = vld [vmem:[%s32109_s1 + $0x3028] sm:$0xff]   ;;  %v26015_v3 = vld [vmem:[%s32109_s1 + $0x30a0] sm:$0xff]  }
 0x5e6   :  { %v23778_v6 = vpop.f32.mrf.mxu0  ;;  %v23798_v7 = vpop.f32.mrf.mxu1  ;;  %24091 = vmatprep.subr.bf16.mxu1 %v25973_v63  ;;  %v26012_v63 = vld [vmem:[%s32109_s1 + $0x3060] sm:$0xff]  }
 0x5e7   :  { %v19012_v9 = vadd.f32 %v23777_v4, %v31174_v22  ;;  %v23799_v10 = vadd.f32 %v23798_v7, %v23797_v1  ;;  %24070 = vmatpush3.bf16.msra.mxu0 %v25972_v61  ;;  %v25984_v22 = vld [vmem:[%s32109_s1 + $0x2f18] sm:$0xff]   ;;  %v26011_v61 = vld [vmem:[%s32109_s1 + $0x30a8] sm:$0xff]   ;;  %v26013_v1 = vld [vmem:[%s32109_s1 + $0x3020] sm:$0xff]  }
 0x5e8   :  { %v23779_v12 = vpop.f32.mrf.mxu0  ;;  %v23800_v13 = vpop.f32.mrf.mxu1  ;;  %24071 = vmatprep.subr.bf16.mxu0 %v25975_v5  ;;  %v26016_v4 = vld [vmem:[%s32109_s1 + $0x3058] sm:$0xff]  }
 0x5e9   :  { %v31285_v15 = vadd.f32 %v23799_v10, %v19012_v9  ;;  %24092 = vmatpush3.bf16.msra.mxu1 %v25974_v2  ;;  %v26014_v2 = vld [vmem:[%s32109_s1 + $0x30e0] sm:$0xff]   ;;  %v26017_v5 = vld [vmem:[%s32109_s1 + $0x3018] sm:$0xff]   ;;  %v26021_v9 = vld [vmem:[%s32109_s1 + $0x3010] sm:$0xff]  }
 0x5ea   :  { %v23801_v17 = vpop.f32.mrf.mxu1  ;;  %24093 = vmatprep.subr.bf16.mxu1 %v25977_v11  ;;  %v26018_v6 = vld [vmem:[%s32109_s1 + $0x30d8] sm:$0xff]   ;;  %v26022_v10 = vld [vmem:[%s32109_s1 + $0x30d0] sm:$0xff]   ;;  %v26024_v12 = vld [vmem:[%s32109_s1 + $0x3048] sm:$0xff]  }
 0x5eb   :  { %24072 = vmatpush3.bf16.msra.mxu0 %v25976_v8  ;;  %v26019_v7 = vld [vmem:[%s32109_s1 + $0x3098] sm:$0xff]   ;;  %v26020_v8 = vld [vmem:[%s32109_s1 + $0x3050] sm:$0xff]   ;;  %v26025_v13 = vld [vmem:[%s32109_s1 + $0x3008] sm:$0xff]  }
 0x5ec   :  { %24073 = vmatprep.subr.bf16.mxu0 %v25979_v16  ;;  %v26023_v11 = vld [vmem:[%s32109_s1 + $0x3090] sm:$0xff]   ;;  %v26028_v16 = vld [vmem:[%s32109_s1 + $0x3040] sm:$0xff]  }
 0x5ed   :  { %24094 = vmatpush3.bf16.msra.mxu1 %v25978_v14  ;;  %v26026_v14 = vld [vmem:[%s32109_s1 + $0x30c8] sm:$0xff]   ;;  %v26029_v17 = vld [vmem:[%s32109_s1 + $0x3000] sm:$0xff]  }
 0x5ee   :  { %24095 = vmatprep.subr.bf16.mxu1 %v25981_v19  ;;  %v40_v19 = vld [vmem:[%s32108_s0 + $0xc0] sm:$0xff] }
 0x5ef   :  { %24074 = vmatpush3.bf16.msra.mxu0 %v25980_v18  ;;  %v26030_v18 = vld [vmem:[%s32109_s1 + $0x30c0] sm:$0xff]  }
 0x5f0   :  { %24075 = vmatprep.subr.bf16.mxu0 %v25983_v21  ;;  %v26031_v21 = vld [vmem:[%s32109_s1 + $0x3080] sm:$0xff]  }
 0x5f1   :  { %24096 = vmatpush3.bf16.msra.mxu1 %v25982_v20  ;;  %v4790_v20 = vrot.slane %v40_v19, %v26383_v41 }
 0x5f2   :  { %24097 = vmatprep.subr.bf16.mxu1 %v25985_v23  ;;  %v26032_v23 = vld [vmem:[%s32109_s1 + $0x3178] sm:$0xff]  }
 0x5f3   :  { %24076 = vmatpush3.bf16.msra.mxu0 %v25984_v22  ;;  %v4783_v22 = vcombine.high %v40_v19, %v40_v19  ;;  %v26069_v19 = vld [vmem:[%s32109_s1 + $0x3270] sm:$0xff]  }
 0x5f4   :  { %24077 = vmatprep.subr.bf16.mxu0 %v25987_v25  ;;  %v4806_v25 = vrot.slane %v4790_v20, %v26383_v41 }
 0x5f5   :  { %24098 = vmatpush3.bf16.msra.mxu1 %v25986_v24  ;;  %v4798_v24 = vcombine.high %v4790_v20, %v4790_v20 }
 0x5f6   :  { %24099 = vmatprep.subr.bf16.mxu1 %v25989_v27  ;;  %v31460_v27 = vrot.slane %v4783_v22, %v26383_v41  ;;  %v26071_v22 = vld [vmem:[%s32109_s1 + $0x32f0] sm:$0xff]  }
 0x5f7   :  { %24078 = vmatpush3.bf16.msra.mxu0 %v25988_v26  ;;  %v26033_v26 = vld [vmem:[%s32109_s1 + $0x3138] sm:$0xff]  }
 0x5f8   :  { %24079 = vmatprep.subr.bf16.mxu0 %v25991_v29  ;;  %v4820_v29 = vrot.slane %v4798_v24, %v26383_v41 }
 0x5f9   :  { %24100 = vmatpush3.bf16.msra.mxu1 %v25990_v28  ;;  %v26034_v28 = vld [vmem:[%s32109_s1 + $0x31f8] sm:$0xff]  }
 0x5fa   :  { %24101 = vmatprep.subr.bf16.mxu1 %v25993_v31  ;;  %v4799_v31 = vcombine.high %v31460_v27, %v31460_v27 }
 0x5fb   :  { %24080 = vmatpush3.bf16.msra.mxu0 %v25992_v30  ;;  %v26035_v30 = vld [vmem:[%s32109_s1 + $0x31b8] sm:$0xff]  }
 0x5fc   :  { %24081 = vmatprep.subr.bf16.mxu0 %v25995_v33  ;;  %v26036_v33 = vld [vmem:[%s32109_s1 + $0x3170] sm:$0xff]  }
 0x5fd   :  { %24102 = vmatpush3.bf16.msra.mxu1 %v25994_v32  ;;  %v4828_v32 = vcombine.high %v4806_v25, %v4806_v25 }
 0x5fe   :  { %24103 = vmatprep.subr.bf16.mxu1 %v25997_v35  ;;  %v4830_v35 = vcombine.high %v4820_v29, %v4820_v29 }
 0x5ff   :  { %24082 = vmatpush3.bf16.msra.mxu0 %v25996_v34 }
 0x600   :  { %24111 = vmatprep.subr.bf16.mxu0 %v26000_v38  ;;  %v26038_v38 = vld [vmem:[%s32109_s1 + $0x31f0] sm:$0xff]  }
 0x601   :  { %24104 = vmatpush3.bf16.msra.mxu1 %v25999_v36  ;;  %v26037_v36 = vld [vmem:[%s32109_s1 + $0x3130] sm:$0xff]  }
 0x602   :  { %v23819_v45 = vpop.f32.mrf.mxu0  ;;  %19570 = vmatmul.mubr.bf16.vlgmr.msra.gmra.mxu0 %v4764_v37  ;;  %24133 = vmatprep.subr.bf16.mxu1 %v26002_v40  ;;  %v4827_v37 = vrot.slane %v4799_v31, %v26383_v41 }
 0x603   :  { %24112 = vmatpush3.bf16.msra.mxu0 %v26001_v39  ;;  %19649 = vmatprep.mubr.bf16.mxu0 %v4820_v29 }
 0x604   :  { %v23820_v48 = vpop.f32.mrf.mxu0  ;;  %v23841_v49 = vpop.f32.mrf.mxu1  ;;  %19610 = vmatmul.mubr.bf16.vlgmr.msra.gmra.mxu1 %v4780_v43  ;;  %24113 = vmatprep.subr.bf16.mxu0 %v26004_v44  ;;  %v4831_v43 = vcombine.high %v4827_v37, %v4827_v37 }
 0x605   :  { %v23821_v51 = vadd.f32 %v23820_v48, %v23819_v45  ;;  %24134 = vmatpush3.bf16.msra.mxu1 %v26003_v42  ;;  %19689 = vmatprep.mubr.bf16.mxu1 %v4830_v35  ;;  %v26039_v42 = vld [vmem:[%s32109_s1 + $0x31b0] sm:$0xff]   ;;  %v26040_v45 = vld [vmem:[%s32109_s1 + $0x3168] sm:$0xff]  }
 0x606   :  { %v23822_v53 = vpop.f32.mrf.mxu0  ;;  %v23842_v54 = vpop.f32.mrf.mxu1  ;;  %24135 = vmatprep.subr.bf16.mxu1 %v26006_v47  ;;  %v26041_v48 = vld [vmem:[%s32109_s1 + $0x3128] sm:$0xff]  }
 0x607   :  { %v19092_v56 = vadd.f32 %v23821_v51, %v31285_v15  ;;  %v23843_v57 = vadd.f32 %v23842_v54, %v23841_v49  ;;  %24114 = vmatpush3.bf16.msra.mxu0 %v26005_v46  ;;  %v26027_v15 = vld [vmem:[%s32109_s1 + $0x3088] sm:$0xff]  }
 0x608   :  { %v23823_v59 = vpop.f32.mrf.mxu0  ;;  %v23844_v60 = vpop.f32.mrf.mxu1  ;;  %24115 = vmatprep.subr.bf16.mxu0 %v26008_v52  ;;  %v26042_v51 = vld [vmem:[%s32109_s1 + $0x31e8] sm:$0xff]  }
 0x609   :  { %v31386_v62 = vadd.f32 %v23843_v57, %v19092_v56  ;;  %24136 = vmatpush3.bf16.msra.mxu1 %v26007_v50  ;;  %v26043_v54 = vld [vmem:[%s32109_s1 + $0x31a8] sm:$0xff]   ;;  %v26044_v56 = vld [vmem:[%s32109_s1 + $0x3160] sm:$0xff]  }
 0x60a   :  { %v23845_v0 = vpop.f32.mrf.mxu1  ;;  %24137 = vmatprep.subr.bf16.mxu1 %v26010_v58  ;;  %v26045_v58 = vld [vmem:[%s32109_s1 + $0x3120] sm:$0xff]  }
 0x60b   :  { %24116 = vmatpush3.bf16.msra.mxu0 %v26009_v55  ;;  %v26046_v59 = vld [vmem:[%s32109_s1 + $0x31e0] sm:$0xff]   ;;  %v26051_v0 = vld [vmem:[%s32109_s1 + $0x3198] sm:$0xff]  }
 0x60c   :  { %24117 = vmatprep.subr.bf16.mxu0 %v26012_v63  ;;  %v26047_v60 = vld [vmem:[%s32109_s1 + $0x31a0] sm:$0xff]   ;;  %v26050_v63 = vld [vmem:[%s32109_s1 + $0x31d8] sm:$0xff]  }
 0x60d   :  { %24138 = vmatpush3.bf16.msra.mxu1 %v26011_v61  ;;  %v26048_v61 = vld [vmem:[%s32109_s1 + $0x3158] sm:$0xff]  }
 0x60e   :  { %24139 = vmatprep.subr.bf16.mxu1 %v26014_v2  ;;  %v26053_v2 = vld [vmem:[%s32109_s1 + $0x3110] sm:$0xff]  }
 0x60f   :  { %24118 = vmatpush3.bf16.msra.mxu0 %v26013_v1  ;;  %v26052_v1 = vld [vmem:[%s32109_s1 + $0x3150] sm:$0xff]  }
 0x610   :  { %24119 = vmatprep.subr.bf16.mxu0 %v26016_v4  ;;  %v26055_v4 = vld [vmem:[%s32109_s1 + $0x3190] sm:$0xff]  }
 0x611   :  { %24140 = vmatpush3.bf16.msra.mxu1 %v26015_v3  ;;  %v26054_v3 = vld [vmem:[%s32109_s1 + $0x31d0] sm:$0xff]  }
 0x612   :  { %24141 = vmatprep.subr.bf16.mxu1 %v26018_v6  ;;  %v26057_v6 = vld [vmem:[%s32109_s1 + $0x3108] sm:$0xff]  }
 0x613   :  { %24120 = vmatpush3.bf16.msra.mxu0 %v26017_v5  ;;  %v26056_v5 = vld [vmem:[%s32109_s1 + $0x3148] sm:$0xff]  }
 0x614   :  { %24121 = vmatprep.subr.bf16.mxu0 %v26020_v8  ;;  %v26059_v8 = vld [vmem:[%s32109_s1 + $0x3188] sm:$0xff]  }
 0x615   :  { %24142 = vmatpush3.bf16.msra.mxu1 %v26019_v7  ;;  %v26058_v7 = vld [vmem:[%s32109_s1 + $0x31c8] sm:$0xff]  }
 0x616   :  { %24143 = vmatprep.subr.bf16.mxu1 %v26022_v10  ;;  %v26061_v10 = vld [vmem:[%s32109_s1 + $0x3100] sm:$0xff]  }
 0x617   :  { %24122 = vmatpush3.bf16.msra.mxu0 %v26021_v9  ;;  %v26060_v9 = vld [vmem:[%s32109_s1 + $0x3140] sm:$0xff]  }
 0x618   :  { %24123 = vmatprep.subr.bf16.mxu0 %v26024_v12  ;;  %v26064_v12 = vld [vmem:[%s32109_s1 + $0x3180] sm:$0xff]  }
 0x619   :  { %24144 = vmatpush3.bf16.msra.mxu1 %v26023_v11  ;;  %v26062_v11 = vld [vmem:[%s32109_s1 + $0x31c0] sm:$0xff]  }
 0x61a   :  { %24145 = vmatprep.subr.bf16.mxu1 %v26026_v14  ;;  %v26065_v14 = vld [vmem:[%s32109_s1 + $0x3278] sm:$0xff]  }
 0x61b   :  { %24124 = vmatpush3.bf16.msra.mxu0 %v26025_v13  ;;  %v4813_v13 = vrot.slane %v31460_v27, %v26383_v41  ;;  %v26073_v27 = vld [vmem:[%s32109_s1 + $0x3268] sm:$0xff]  }
 0x61c   :  { %24125 = vmatprep.subr.bf16.mxu0 %v26028_v16  ;;  %v26067_v16 = vld [vmem:[%s32109_s1 + $0x32f8] sm:$0xff]  }
 0x61d   :  { %24146 = vmatpush3.bf16.msra.mxu1 %v26027_v15  ;;  %v26066_v15 = vld [vmem:[%s32109_s1 + $0x3238] sm:$0xff]  }
 0x61e   :  { %24147 = vmatprep.subr.bf16.mxu1 %v26030_v18  ;;  %v4829_v18 = vcombine.high %v4813_v13, %v4813_v13 }
 0x61f   :  { %24126 = vmatpush3.bf16.msra.mxu0 %v26029_v17  ;;  %v26068_v17 = vld [vmem:[%s32109_s1 + $0x32b8] sm:$0xff]  }
 0x620   :  { %24155 = vmatprep.subr.bf16.mxu0 %v26032_v23 }
 0x621   :  { %24148 = vmatpush3.bf16.msra.mxu1 %v26031_v21  ;;  %v26070_v21 = vld [vmem:[%s32109_s1 + $0x3230] sm:$0xff]  }
 0x622   :  { %v23863_v34 = vpop.f32.mrf.mxu0  ;;  %19650 = vmatmul.mubr.bf16.vlgmr.msra.gmra.mxu0 %v4806_v25  ;;  %24177 = vmatprep.subr.bf16.mxu1 %v26034_v28  ;;  %v26072_v25 = vld [vmem:[%s32109_s1 + $0x32b0] sm:$0xff]  }
 0x623   :  { %24156 = vmatpush3.bf16.msra.mxu0 %v26033_v26  ;;  %19729 = vmatprep.mubr.bf16.mxu0 %v4827_v37 }
 0x624   :  { %v23864_v39 = vpop.f32.mrf.mxu0  ;;  %v23885_v40 = vpop.f32.mrf.mxu1  ;;  %19690 = vmatmul.mubr.bf16.vlgmr.msra.gmra.mxu1 %v4828_v32  ;;  %24157 = vmatprep.subr.bf16.mxu0 %v26036_v33  ;;  %v26075_v33 = vld [vmem:[%s32109_s1 + $0x32e8] sm:$0xff]  }
 0x625   :  { %v23865_v44 = vadd.f32 %v23864_v39, %v23863_v34  ;;  %24178 = vmatpush3.bf16.msra.mxu1 %v26035_v30  ;;  %19769 = vmatprep.mubr.bf16.mxu1 %v4831_v43  ;;  %v26074_v30 = vld [vmem:[%s32109_s1 + $0x3228] sm:$0xff]   ;;  %v26080_v43 = vld [vmem:[%s32109_s1 + $0x32a0] sm:$0xff]  }
 0x626   :  { %v23866_v46 = vpop.f32.mrf.mxu0  ;;  %v23886_v47 = vpop.f32.mrf.mxu1  ;;  %24179 = vmatprep.subr.bf16.mxu1 %v26038_v38  ;;  %v26077_v38 = vld [vmem:[%s32109_s1 + $0x3260] sm:$0xff]  }
 0x627   :  { %v19172_v49 = vadd.f32 %v23865_v44, %v31386_v62  ;;  %v23887_v50 = vadd.f32 %v23886_v47, %v23885_v40  ;;  %24158 = vmatpush3.bf16.msra.mxu0 %v26037_v36  ;;  %v26049_v62 = vld [vmem:[%s32109_s1 + $0x3118] sm:$0xff]   ;;  %v26076_v36 = vld [vmem:[%s32109_s1 + $0x32a8] sm:$0xff]   ;;  %v26078_v40 = vld [vmem:[%s32109_s1 + $0x3220] sm:$0xff]  }
 0x628   :  { %v23867_v52 = vpop.f32.mrf.mxu0  ;;  %v23888_v53 = vpop.f32.mrf.mxu1  ;;  %24159 = vmatprep.subr.bf16.mxu0 %v26040_v45  ;;  %v26081_v44 = vld [vmem:[%s32109_s1 + $0x3258] sm:$0xff]  }
 0x629   :  { %v31497_v55 = vadd.f32 %v23887_v50, %v19172_v49  ;;  %24180 = vmatpush3.bf16.msra.mxu1 %v26039_v42  ;;  %v26079_v42 = vld [vmem:[%s32109_s1 + $0x32e0] sm:$0xff]   ;;  %v26082_v45 = vld [vmem:[%s32109_s1 + $0x3218] sm:$0xff]   ;;  %v26086_v49 = vld [vmem:[%s32109_s1 + $0x3210] sm:$0xff]  }
 0x62a   :  { %v23889_v57 = vpop.f32.mrf.mxu1  ;;  %24181 = vmatprep.subr.bf16.mxu1 %v26042_v51  ;;  %v26083_v46 = vld [vmem:[%s32109_s1 + $0x32d8] sm:$0xff]   ;;  %v26087_v50 = vld [vmem:[%s32109_s1 + $0x32d0] sm:$0xff]   ;;  %v26089_v52 = vld [vmem:[%s32109_s1 + $0x3248] sm:$0xff]  }
 0x62b   :  { %24160 = vmatpush3.bf16.msra.mxu0 %v26041_v48  ;;  %v26084_v47 = vld [vmem:[%s32109_s1 + $0x3298] sm:$0xff]   ;;  %v26085_v48 = vld [vmem:[%s32109_s1 + $0x3250] sm:$0xff]   ;;  %v26090_v53 = vld [vmem:[%s32109_s1 + $0x3208] sm:$0xff]  }
 0x62c   :  { %24161 = vmatprep.subr.bf16.mxu0 %v26044_v56  ;;  %v26088_v51 = vld [vmem:[%s32109_s1 + $0x3290] sm:$0xff]   ;;  %v26093_v56 = vld [vmem:[%s32109_s1 + $0x3240] sm:$0xff]  }
 0x62d   :  { %24182 = vmatpush3.bf16.msra.mxu1 %v26043_v54  ;;  %v26091_v54 = vld [vmem:[%s32109_s1 + $0x32c8] sm:$0xff]   ;;  %v26094_v57 = vld [vmem:[%s32109_s1 + $0x3200] sm:$0xff]  }
 0x62e   :  { %24183 = vmatprep.subr.bf16.mxu1 %v26046_v59  ;;  %v41_v59 = vld [vmem:[%s32108_s0 + $0xc8] sm:$0xff] }
 0x62f   :  { %24162 = vmatpush3.bf16.msra.mxu0 %v26045_v58  ;;  %v26095_v58 = vld [vmem:[%s32109_s1 + $0x32c0] sm:$0xff]  }
 0x630   :  { %24163 = vmatprep.subr.bf16.mxu0 %v26048_v61  ;;  %v26096_v61 = vld [vmem:[%s32109_s1 + $0x3280] sm:$0xff]  }
 0x631   :  { %24184 = vmatpush3.bf16.msra.mxu1 %v26047_v60  ;;  %v4839_v60 = vrot.slane %v41_v59, %v26383_v41 }
 0x632   :  { %24185 = vmatprep.subr.bf16.mxu1 %v26050_v63  ;;  %v26097_v63 = vld [vmem:[%s32109_s1 + $0x3378] sm:$0xff]  }
 0x633   :  { %24164 = vmatpush3.bf16.msra.mxu0 %v26049_v62  ;;  %v4832_v62 = vcombine.high %v41_v59, %v41_v59  ;;  %v26134_v59 = vld [vmem:[%s32109_s1 + $0x3470] sm:$0xff]  }
 0x634   :  { %24165 = vmatprep.subr.bf16.mxu0 %v26052_v1  ;;  %v4855_v1 = vrot.slane %v4839_v60, %v26383_v41 }
 0x635   :  { %24186 = vmatpush3.bf16.msra.mxu1 %v26051_v0  ;;  %v4847_v0 = vcombine.high %v4839_v60, %v4839_v60 }
 0x636   :  { %24187 = vmatprep.subr.bf16.mxu1 %v26054_v3  ;;  %v31672_v3 = vrot.slane %v4832_v62, %v26383_v41  ;;  %v26136_v62 = vld [vmem:[%s32109_s1 + $0x34f0] sm:$0xff]  }
 0x637   :  { %24166 = vmatpush3.bf16.msra.mxu0 %v26053_v2  ;;  %v26098_v2 = vld [vmem:[%s32109_s1 + $0x3338] sm:$0xff]  }
 0x638   :  { %24167 = vmatprep.subr.bf16.mxu0 %v26056_v5  ;;  %v4869_v5 = vrot.slane %v4847_v0, %v26383_v41 }
 0x639   :  { %24188 = vmatpush3.bf16.msra.mxu1 %v26055_v4  ;;  %v26099_v4 = vld [vmem:[%s32109_s1 + $0x33f8] sm:$0xff]  }
 0x63a   :  { %24189 = vmatprep.subr.bf16.mxu1 %v26058_v7  ;;  %v4848_v7 = vcombine.high %v31672_v3, %v31672_v3 }
 0x63b   :  { %24168 = vmatpush3.bf16.msra.mxu0 %v26057_v6  ;;  %v26100_v6 = vld [vmem:[%s32109_s1 + $0x33b8] sm:$0xff]  }
 0x63c   :  { %24169 = vmatprep.subr.bf16.mxu0 %v26060_v9  ;;  %v26101_v9 = vld [vmem:[%s32109_s1 + $0x3370] sm:$0xff]  }
 0x63d   :  { %24190 = vmatpush3.bf16.msra.mxu1 %v26059_v8  ;;  %v4877_v8 = vcombine.high %v4855_v1, %v4855_v1 }
 0x63e   :  { %24191 = vmatprep.subr.bf16.mxu1 %v26062_v11  ;;  %v4879_v11 = vcombine.high %v4869_v5, %v4869_v5 }
 0x63f   :  { %24170 = vmatpush3.bf16.msra.mxu0 %v26061_v10 }
 0x640   :  { %24199 = vmatprep.subr.bf16.mxu0 %v26065_v14  ;;  %v26103_v14 = vld [vmem:[%s32109_s1 + $0x33f0] sm:$0xff]  }
 0x641   :  { %24192 = vmatpush3.bf16.msra.mxu1 %v26064_v12  ;;  %v26102_v12 = vld [vmem:[%s32109_s1 + $0x3330] sm:$0xff]  }
 0x642   :  { %v23907_v20 = vpop.f32.mrf.mxu0  ;;  %19730 = vmatmul.mubr.bf16.vlgmr.msra.gmra.mxu0 %v4813_v13  ;;  %24221 = vmatprep.subr.bf16.mxu1 %v26067_v16  ;;  %v4876_v13 = vrot.slane %v4848_v7, %v26383_v41 }
 0x643   :  { %24200 = vmatpush3.bf16.msra.mxu0 %v26066_v15  ;;  %19809 = vmatprep.mubr.bf16.mxu0 %v4869_v5 }
 0x644   :  { %v23908_v23 = vpop.f32.mrf.mxu0  ;;  %v23929_v24 = vpop.f32.mrf.mxu1  ;;  %19770 = vmatmul.mubr.bf16.vlgmr.msra.gmra.mxu1 %v4829_v18  ;;  %24201 = vmatprep.subr.bf16.mxu0 %v26069_v19  ;;  %v4880_v18 = vcombine.high %v4876_v13, %v4876_v13 }
 0x645   :  { %v23909_v26 = vadd.f32 %v23908_v23, %v23907_v20  ;;  %24222 = vmatpush3.bf16.msra.mxu1 %v26068_v17  ;;  %19849 = vmatprep.mubr.bf16.mxu1 %v4879_v11  ;;  %v26104_v17 = vld [vmem:[%s32109_s1 + $0x33b0] sm:$0xff]   ;;  %v26105_v20 = vld [vmem:[%s32109_s1 + $0x3368] sm:$0xff]  }
 0x646   :  { %v23910_v28 = vpop.f32.mrf.mxu0  ;;  %v23930_v29 = vpop.f32.mrf.mxu1  ;;  %24223 = vmatprep.subr.bf16.mxu1 %v26071_v22  ;;  %v26106_v23 = vld [vmem:[%s32109_s1 + $0x3328] sm:$0xff]  }
 0x647   :  { %v19252_v31 = vadd.f32 %v23909_v26, %v31497_v55  ;;  %v23931_v32 = vadd.f32 %v23930_v29, %v23929_v24  ;;  %24202 = vmatpush3.bf16.msra.mxu0 %v26070_v21  ;;  %v26092_v55 = vld [vmem:[%s32109_s1 + $0x3288] sm:$0xff]  }
 0x648   :  { %v23911_v34 = vpop.f32.mrf.mxu0  ;;  %v23932_v35 = vpop.f32.mrf.mxu1  ;;  %24203 = vmatprep.subr.bf16.mxu0 %v26073_v27  ;;  %v26107_v26 = vld [vmem:[%s32109_s1 + $0x33e8] sm:$0xff]  }
 0x649   :  { %v31598_v37 = vadd.f32 %v23931_v32, %v19252_v31  ;;  %24224 = vmatpush3.bf16.msra.mxu1 %v26072_v25  ;;  %v26108_v29 = vld [vmem:[%s32109_s1 + $0x33a8] sm:$0xff]   ;;  %v26109_v31 = vld [vmem:[%s32109_s1 + $0x3360] sm:$0xff]  }
 0x64a   :  { %v23933_v39 = vpop.f32.mrf.mxu1  ;;  %24225 = vmatprep.subr.bf16.mxu1 %v26075_v33  ;;  %v26110_v33 = vld [vmem:[%s32109_s1 + $0x3320] sm:$0xff]  }
 0x64b   :  { %24204 = vmatpush3.bf16.msra.mxu0 %v26074_v30  ;;  %v26111_v34 = vld [vmem:[%s32109_s1 + $0x33e0] sm:$0xff]   ;;  %v26116_v39 = vld [vmem:[%s32109_s1 + $0x3398] sm:$0xff]  }
 0x64c   :  { %24205 = vmatprep.subr.bf16.mxu0 %v26077_v38  ;;  %v26112_v35 = vld [vmem:[%s32109_s1 + $0x33a0] sm:$0xff]   ;;  %v26115_v38 = vld [vmem:[%s32109_s1 + $0x33d8] sm:$0xff]  }
 0x64d   :  { %24226 = vmatpush3.bf16.msra.mxu1 %v26076_v36  ;;  %v26113_v36 = vld [vmem:[%s32109_s1 + $0x3358] sm:$0xff]  }
 0x64e   :  { %24227 = vmatprep.subr.bf16.mxu1 %v26079_v42  ;;  %v26118_v42 = vld [vmem:[%s32109_s1 + $0x3310] sm:$0xff]  }
 0x64f   :  { %24206 = vmatpush3.bf16.msra.mxu0 %v26078_v40  ;;  %v26117_v40 = vld [vmem:[%s32109_s1 + $0x3350] sm:$0xff]  }
 0x650   :  { %24207 = vmatprep.subr.bf16.mxu0 %v26081_v44  ;;  %v26120_v44 = vld [vmem:[%s32109_s1 + $0x3390] sm:$0xff]  }
 0x651   :  { %24228 = vmatpush3.bf16.msra.mxu1 %v26080_v43  ;;  %v26119_v43 = vld [vmem:[%s32109_s1 + $0x33d0] sm:$0xff]  }
 0x652   :  { %24229 = vmatprep.subr.bf16.mxu1 %v26083_v46  ;;  %v26122_v46 = vld [vmem:[%s32109_s1 + $0x3308] sm:$0xff]  }
 0x653   :  { %24208 = vmatpush3.bf16.msra.mxu0 %v26082_v45  ;;  %v26121_v45 = vld [vmem:[%s32109_s1 + $0x3348] sm:$0xff]  }
 0x654   :  { %24209 = vmatprep.subr.bf16.mxu0 %v26085_v48  ;;  %v26124_v48 = vld [vmem:[%s32109_s1 + $0x3388] sm:$0xff]  }
 0x655   :  { %24230 = vmatpush3.bf16.msra.mxu1 %v26084_v47  ;;  %v26123_v47 = vld [vmem:[%s32109_s1 + $0x33c8] sm:$0xff]  }
 0x656   :  { %24231 = vmatprep.subr.bf16.mxu1 %v26087_v50  ;;  %v26126_v50 = vld [vmem:[%s32109_s1 + $0x3300] sm:$0xff]  }
 0x657   :  { %24210 = vmatpush3.bf16.msra.mxu0 %v26086_v49  ;;  %v26125_v49 = vld [vmem:[%s32109_s1 + $0x3340] sm:$0xff]  }
 0x658   :  { %24211 = vmatprep.subr.bf16.mxu0 %v26089_v52  ;;  %v26129_v52 = vld [vmem:[%s32109_s1 + $0x3380] sm:$0xff]  }
 0x659   :  { %24232 = vmatpush3.bf16.msra.mxu1 %v26088_v51  ;;  %v26127_v51 = vld [vmem:[%s32109_s1 + $0x33c0] sm:$0xff]  }
 0x65a   :  { %24233 = vmatprep.subr.bf16.mxu1 %v26091_v54  ;;  %v26130_v54 = vld [vmem:[%s32109_s1 + $0x3478] sm:$0xff]  }
 0x65b   :  { %24212 = vmatpush3.bf16.msra.mxu0 %v26090_v53  ;;  %v4862_v53 = vrot.slane %v31672_v3, %v26383_v41  ;;  %v26138_v3 = vld [vmem:[%s32109_s1 + $0x3468] sm:$0xff]  }
 0x65c   :  { %24213 = vmatprep.subr.bf16.mxu0 %v26093_v56  ;;  %v26132_v56 = vld [vmem:[%s32109_s1 + $0x34f8] sm:$0xff]  }
 0x65d   :  { %24234 = vmatpush3.bf16.msra.mxu1 %v26092_v55  ;;  %v26131_v55 = vld [vmem:[%s32109_s1 + $0x3438] sm:$0xff]  }
 0x65e   :  { %24235 = vmatprep.subr.bf16.mxu1 %v26095_v58  ;;  %v4878_v58 = vcombine.high %v4862_v53, %v4862_v53 }
 0x65f   :  { %24214 = vmatpush3.bf16.msra.mxu0 %v26094_v57  ;;  %v26133_v57 = vld [vmem:[%s32109_s1 + $0x34b8] sm:$0xff]  }
 0x660   :  { %24243 = vmatprep.subr.bf16.mxu0 %v26097_v63 }
 0x661   :  { %24236 = vmatpush3.bf16.msra.mxu1 %v26096_v61  ;;  %v26135_v61 = vld [vmem:[%s32109_s1 + $0x3430] sm:$0xff]  }
 0x662   :  { %v23951_v10 = vpop.f32.mrf.mxu0  ;;  %19810 = vmatmul.mubr.bf16.vlgmr.msra.gmra.mxu0 %v4855_v1  ;;  %24265 = vmatprep.subr.bf16.mxu1 %v26099_v4  ;;  %v26137_v1 = vld [vmem:[%s32109_s1 + $0x34b0] sm:$0xff]  }
 0x663   :  { %24244 = vmatpush3.bf16.msra.mxu0 %v26098_v2  ;;  %19889 = vmatprep.mubr.bf16.mxu0 %v4876_v13 }
 0x664   :  { %v23952_v15 = vpop.f32.mrf.mxu0  ;;  %v23973_v16 = vpop.f32.mrf.mxu1  ;;  %19850 = vmatmul.mubr.bf16.vlgmr.msra.gmra.mxu1 %v4877_v8  ;;  %24245 = vmatprep.subr.bf16.mxu0 %v26101_v9  ;;  %v26140_v9 = vld [vmem:[%s32109_s1 + $0x34e8] sm:$0xff]  }
 0x665   :  { %v23953_v19 = vadd.f32 %v23952_v15, %v23951_v10  ;;  %24266 = vmatpush3.bf16.msra.mxu1 %v26100_v6  ;;  %19929 = vmatprep.mubr.bf16.mxu1 %v4880_v18  ;;  %v26139_v6 = vld [vmem:[%s32109_s1 + $0x3428] sm:$0xff]   ;;  %v26145_v18 = vld [vmem:[%s32109_s1 + $0x34a0] sm:$0xff]  }
 0x666   :  { %v23954_v21 = vpop.f32.mrf.mxu0  ;;  %v23974_v22 = vpop.f32.mrf.mxu1  ;;  %24267 = vmatprep.subr.bf16.mxu1 %v26103_v14  ;;  %v26142_v14 = vld [vmem:[%s32109_s1 + $0x3460] sm:$0xff]  }
 0x667   :  { %v19332_v24 = vadd.f32 %v23953_v19, %v31598_v37  ;;  %v23975_v25 = vadd.f32 %v23974_v22, %v23973_v16  ;;  %24246 = vmatpush3.bf16.msra.mxu0 %v26102_v12  ;;  %v26114_v37 = vld [vmem:[%s32109_s1 + $0x3318] sm:$0xff]   ;;  %v26141_v12 = vld [vmem:[%s32109_s1 + $0x34a8] sm:$0xff]   ;;  %v26143_v16 = vld [vmem:[%s32109_s1 + $0x3420] sm:$0xff]  }
 0x668   :  { %v23955_v27 = vpop.f32.mrf.mxu0  ;;  %v23976_v28 = vpop.f32.mrf.mxu1  ;;  %24247 = vmatprep.subr.bf16.mxu0 %v26105_v20  ;;  %v26146_v19 = vld [vmem:[%s32109_s1 + $0x3458] sm:$0xff]  }
 0x669   :  { %v31709_v30 = vadd.f32 %v23975_v25, %v19332_v24  ;;  %24268 = vmatpush3.bf16.msra.mxu1 %v26104_v17  ;;  %v26144_v17 = vld [vmem:[%s32109_s1 + $0x34e0] sm:$0xff]   ;;  %v26147_v20 = vld [vmem:[%s32109_s1 + $0x3418] sm:$0xff]   ;;  %v26151_v24 = vld [vmem:[%s32109_s1 + $0x3410] sm:$0xff]  }
 0x66a   :  { %v23977_v32 = vpop.f32.mrf.mxu1  ;;  %24269 = vmatprep.subr.bf16.mxu1 %v26107_v26  ;;  %v26148_v21 = vld [vmem:[%s32109_s1 + $0x34d8] sm:$0xff]   ;;  %v26152_v25 = vld [vmem:[%s32109_s1 + $0x34d0] sm:$0xff]   ;;  %v26154_v27 = vld [vmem:[%s32109_s1 + $0x3448] sm:$0xff]  }
 0x66b   :  { %24248 = vmatpush3.bf16.msra.mxu0 %v26106_v23  ;;  %v26149_v22 = vld [vmem:[%s32109_s1 + $0x3498] sm:$0xff]   ;;  %v26150_v23 = vld [vmem:[%s32109_s1 + $0x3450] sm:$0xff]   ;;  %v26155_v28 = vld [vmem:[%s32109_s1 + $0x3408] sm:$0xff]  }
 0x66c   :  { %24249 = vmatprep.subr.bf16.mxu0 %v26109_v31  ;;  %v26153_v26 = vld [vmem:[%s32109_s1 + $0x3490] sm:$0xff]   ;;  %v26158_v31 = vld [vmem:[%s32109_s1 + $0x3440] sm:$0xff]  }
 0x66d   :  { %24270 = vmatpush3.bf16.msra.mxu1 %v26108_v29  ;;  %v26156_v29 = vld [vmem:[%s32109_s1 + $0x34c8] sm:$0xff]   ;;  %v26159_v32 = vld [vmem:[%s32109_s1 + $0x3400] sm:$0xff]  }
 0x66e   :  { %24271 = vmatprep.subr.bf16.mxu1 %v26111_v34  ;;  %v42_v34 = vld [vmem:[%s32108_s0 + $0xd0] sm:$0xff] }
 0x66f   :  { %24250 = vmatpush3.bf16.msra.mxu0 %v26110_v33  ;;  %v26160_v33 = vld [vmem:[%s32109_s1 + $0x34c0] sm:$0xff]  }
 0x670   :  { %24251 = vmatprep.subr.bf16.mxu0 %v26113_v36  ;;  %v26161_v36 = vld [vmem:[%s32109_s1 + $0x3480] sm:$0xff]  }
 0x671   :  { %24272 = vmatpush3.bf16.msra.mxu1 %v26112_v35  ;;  %v4888_v35 = vrot.slane %v42_v34, %v26383_v41 }
 0x672   :  { %24273 = vmatprep.subr.bf16.mxu1 %v26115_v38  ;;  %v26162_v38 = vld [vmem:[%s32109_s1 + $0x3578] sm:$0xff]  }
 0x673   :  { %24252 = vmatpush3.bf16.msra.mxu0 %v26114_v37  ;;  %v4881_v37 = vcombine.high %v42_v34, %v42_v34 }
 0x674   :  { %24253 = vmatprep.subr.bf16.mxu0 %v26117_v40  ;;  %v4904_v40 = vrot.slane %v4888_v35, %v26383_v41 }
 0x675   :  { %24274 = vmatpush3.bf16.msra.mxu1 %v26116_v39  ;;  %v4896_v39 = vcombine.high %v4888_v35, %v4888_v35  ;;  %v26198_v35 = vld [vmem:[%s32109_s1 + $0x36b8] sm:$0xff]  }
 0x676   :  { %24275 = vmatprep.subr.bf16.mxu1 %v26119_v43  ;;  %v26164_v43 = vld [vmem:[%s32109_s1 + $0x35f8] sm:$0xff]  }
 0x677   :  { %24254 = vmatpush3.bf16.msra.mxu0 %v26118_v42  ;;  %v31881_v42 = vrot.slane %v4881_v37, %v26383_v41 }
 0x678   :  { %24255 = vmatprep.subr.bf16.mxu0 %v26121_v45  ;;  %v26163_v45 = vld [vmem:[%s32109_s1 + $0x3538] sm:$0xff]  }
 0x679   :  { %24276 = vmatpush3.bf16.msra.mxu1 %v26120_v44  ;;  %v4918_v44 = vrot.slane %v4896_v39, %v26383_v41  ;;  %v26200_v39 = vld [vmem:[%s32109_s1 + $0x3630] sm:$0xff]  }
 0x67a   :  { %24277 = vmatprep.subr.bf16.mxu1 %v26123_v47  ;;  %v4926_v47 = vcombine.high %v4904_v40, %v4904_v40 }
 0x67b   :  { %24256 = vmatpush3.bf16.msra.mxu0 %v26122_v46  ;;  %v4897_v46 = vcombine.high %v31881_v42, %v31881_v42 }
 0x67c   :  { %24257 = vmatprep.subr.bf16.mxu0 %v26125_v49 }
 0x67d   :  { %24278 = vmatpush3.bf16.msra.mxu1 %v26124_v48  ;;  %v26166_v48 = vld [vmem:[%s32109_s1 + $0x3570] sm:$0xff]  }
 0x67e   :  { %24279 = vmatprep.subr.bf16.mxu1 %v26127_v51  ;;  %v26165_v51 = vld [vmem:[%s32109_s1 + $0x35b8] sm:$0xff]  }
 0x67f   :  { %24258 = vmatpush3.bf16.msra.mxu0 %v26126_v50  ;;  %v4928_v50 = vcombine.high %v4918_v44, %v4918_v44 }
 0x680   :  { %24287 = vmatprep.subr.bf16.mxu0 %v26130_v54 }
 0x681   :  { %24280 = vmatpush3.bf16.msra.mxu1 %v26129_v52  ;;  %v4925_v52 = vrot.slane %v4897_v46, %v26383_v41 }
 0x682   :  { %v23995_v60 = vpop.f32.mrf.mxu0  ;;  %19890 = vmatmul.mubr.bf16.vlgmr.msra.gmra.mxu0 %v4862_v53  ;;  %24309 = vmatprep.subr.bf16.mxu1 %v26132_v56  ;;  %v26168_v53 = vld [vmem:[%s32109_s1 + $0x35f0] sm:$0xff]  }
 0x683   :  { %24288 = vmatpush3.bf16.msra.mxu0 %v26131_v55  ;;  %19969 = vmatprep.mubr.bf16.mxu0 %v4918_v44  ;;  %v26167_v56 = vld [vmem:[%s32109_s1 + $0x3530] sm:$0xff]  }
 0x684   :  { %v23996_v63 = vpop.f32.mrf.mxu0  ;;  %v24017_v0 = vpop.f32.mrf.mxu1  ;;  %19930 = vmatmul.mubr.bf16.vlgmr.msra.gmra.mxu1 %v4878_v58  ;;  %24289 = vmatprep.subr.bf16.mxu0 %v26134_v59  ;;  %v26170_v59 = vld [vmem:[%s32109_s1 + $0x3568] sm:$0xff]  }
 0x685   :  { %v23997_v2 = vadd.f32 %v23996_v63, %v23995_v60  ;;  %24310 = vmatpush3.bf16.msra.mxu1 %v26133_v57  ;;  %20009 = vmatprep.mubr.bf16.mxu1 %v4928_v50  ;;  %v4929_v57 = vcombine.high %v4925_v52, %v4925_v52  ;;  %v26204_v50 = vld [vmem:[%s32109_s1 + $0x3628] sm:$0xff]  }
 0x686   :  { %v23998_v4 = vpop.f32.mrf.mxu0  ;;  %v24018_v5 = vpop.f32.mrf.mxu1  ;;  %24311 = vmatprep.subr.bf16.mxu1 %v26136_v62  ;;  %v26169_v62 = vld [vmem:[%s32109_s1 + $0x35b0] sm:$0xff]  }
 0x687   :  { %v19412_v7 = vadd.f32 %v23997_v2, %v31709_v30  ;;  %v24019_v8 = vadd.f32 %v24018_v5, %v24017_v0  ;;  %24290 = vmatpush3.bf16.msra.mxu0 %v26135_v61  ;;  %v26157_v30 = vld [vmem:[%s32109_s1 + $0x3488] sm:$0xff]  }
 0x688   :  { %v23999_v10 = vpop.f32.mrf.mxu0  ;;  %v24020_v11 = vpop.f32.mrf.mxu1  ;;  %24291 = vmatprep.subr.bf16.mxu0 %v26138_v3  ;;  %v26171_v3 = vld [vmem:[%s32109_s1 + $0x3528] sm:$0xff]  }
 0x689   :  { %v31810_v13 = vadd.f32 %v24019_v8, %v19412_v7  ;;  %24312 = vmatpush3.bf16.msra.mxu1 %v26137_v1  ;;  %v26172_v1 = vld [vmem:[%s32109_s1 + $0x35e8] sm:$0xff]   ;;  %v26175_v10 = vld [vmem:[%s32109_s1 + $0x3520] sm:$0xff]   ;;  %v26178_v11 = vld [vmem:[%s32109_s1 + $0x3558] sm:$0xff]  }
 0x68a   :  { %v24021_v15 = vpop.f32.mrf.mxu1  ;;  %24313 = vmatprep.subr.bf16.mxu1 %v26140_v9  ;;  %v26173_v7 = vld [vmem:[%s32109_s1 + $0x35a8] sm:$0xff]   ;;  %v26176_v9 = vld [vmem:[%s32109_s1 + $0x35e0] sm:$0xff]  }
 0x68b   :  { %24292 = vmatpush3.bf16.msra.mxu0 %v26139_v6  ;;  %v26174_v6 = vld [vmem:[%s32109_s1 + $0x3560] sm:$0xff]   ;;  %v26182_v15 = vld [vmem:[%s32109_s1 + $0x3550] sm:$0xff]  }
 0x68c   :  { %24293 = vmatprep.subr.bf16.mxu0 %v26142_v14  ;;  %v26179_v14 = vld [vmem:[%s32109_s1 + $0x3518] sm:$0xff]  }
 0x68d   :  { %24314 = vmatpush3.bf16.msra.mxu1 %v26141_v12  ;;  %v26177_v12 = vld [vmem:[%s32109_s1 + $0x35a0] sm:$0xff]  }
 0x68e   :  { %24315 = vmatprep.subr.bf16.mxu1 %v26144_v17  ;;  %v26184_v17 = vld [vmem:[%s32109_s1 + $0x35d0] sm:$0xff]  }
 0x68f   :  { %24294 = vmatpush3.bf16.msra.mxu0 %v26143_v16  ;;  %v26181_v16 = vld [vmem:[%s32109_s1 + $0x3598] sm:$0xff]  }
 0x690   :  { %24295 = vmatprep.subr.bf16.mxu0 %v26146_v19  ;;  %v26186_v19 = vld [vmem:[%s32109_s1 + $0x3548] sm:$0xff]  }
 0x691   :  { %24316 = vmatpush3.bf16.msra.mxu1 %v26145_v18  ;;  %v26183_v18 = vld [vmem:[%s32109_s1 + $0x3510] sm:$0xff]  }
 0x692   :  { %24317 = vmatprep.subr.bf16.mxu1 %v26148_v21  ;;  %v26188_v21 = vld [vmem:[%s32109_s1 + $0x35c8] sm:$0xff]  }
 0x693   :  { %24296 = vmatpush3.bf16.msra.mxu0 %v26147_v20  ;;  %v26185_v20 = vld [vmem:[%s32109_s1 + $0x3590] sm:$0xff]  }
 0x694   :  { %24297 = vmatprep.subr.bf16.mxu0 %v26150_v23  ;;  %v26190_v23 = vld [vmem:[%s32109_s1 + $0x3540] sm:$0xff]  }
 0x695   :  { %24318 = vmatpush3.bf16.msra.mxu1 %v26149_v22  ;;  %v26187_v22 = vld [vmem:[%s32109_s1 + $0x3508] sm:$0xff]  }
 0x696   :  { %24319 = vmatprep.subr.bf16.mxu1 %v26152_v25  ;;  %v26192_v25 = vld [vmem:[%s32109_s1 + $0x35c0] sm:$0xff]  }
 0x697   :  { %24298 = vmatpush3.bf16.msra.mxu0 %v26151_v24  ;;  %v26189_v24 = vld [vmem:[%s32109_s1 + $0x3588] sm:$0xff]  }
 0x698   :  { %24299 = vmatprep.subr.bf16.mxu0 %v26154_v27  ;;  %v4911_v27 = vrot.slane %v31881_v42, %v26383_v41  ;;  %v26203_v42 = vld [vmem:[%s32109_s1 + $0x3668] sm:$0xff]  }
 0x699   :  { %24320 = vmatpush3.bf16.msra.mxu1 %v26153_v26  ;;  %v26191_v26 = vld [vmem:[%s32109_s1 + $0x3500] sm:$0xff]  }
 0x69a   :  { %24321 = vmatprep.subr.bf16.mxu1 %v26156_v29  ;;  %v26194_v29 = vld [vmem:[%s32109_s1 + $0x3580] sm:$0xff]  }
 0x69b   :  { %24300 = vmatpush3.bf16.msra.mxu0 %v26155_v28  ;;  %v26195_v28 = vld [vmem:[%s32109_s1 + $0x3678] sm:$0xff]  }
 0x69c   :  { %24301 = vmatprep.subr.bf16.mxu0 %v26158_v31  ;;  %v26196_v31 = vld [vmem:[%s32109_s1 + $0x3638] sm:$0xff]  }
 0x69d   :  { %24322 = vmatpush3.bf16.msra.mxu1 %v26157_v30  ;;  %v26197_v30 = vld [vmem:[%s32109_s1 + $0x36f8] sm:$0xff]  }
 0x69e   :  { %24323 = vmatprep.subr.bf16.mxu1 %v26160_v33  ;;  %v26199_v33 = vld [vmem:[%s32109_s1 + $0x3670] sm:$0xff]  }
 0x69f   :  { %24302 = vmatpush3.bf16.msra.mxu0 %v26159_v32  ;;  %v4927_v32 = vcombine.high %v4911_v27, %v4911_v27 }
 0x6a0   :  { %24331 = vmatprep.subr.bf16.mxu0 %v26162_v38 }
 0x6a1   :  { %24324 = vmatpush3.bf16.msra.mxu1 %v26161_v36  ;;  %v26201_v36 = vld [vmem:[%s32109_s1 + $0x36f0] sm:$0xff]  }
 0x6a2   :  { %v24039_v49 = vpop.f32.mrf.mxu0  ;;  %24353 = vmatprep.subr.bf16.mxu1 %v26164_v43  ;;  %19970 = vmatmul.mubr.bf16.vlgmr.msra.gmra.mxu0 %v4904_v40 }
 0x6a3   :  { %24332 = vmatpush3.bf16.msra.mxu0 %v26163_v45  ;;  %20049 = vmatprep.mubr.bf16.mxu0 %v4925_v52  ;;  %v26202_v45 = vld [vmem:[%s32109_s1 + $0x36b0] sm:$0xff]  }
 0x6a4   :  { %v24040_v54 = vpop.f32.mrf.mxu0  ;;  %v24061_v55 = vpop.f32.mrf.mxu1  ;;  %20010 = vmatmul.mubr.bf16.vlgmr.msra.gmra.mxu1 %v4926_v47  ;;  %24333 = vmatprep.subr.bf16.mxu0 %v26166_v48  ;;  %v26205_v48 = vld [vmem:[%s32109_s1 + $0x36e8] sm:$0xff]  }
 0x6a5   :  { %v24041_v58 = vadd.f32 %v24040_v54, %v24039_v49  ;;  %24354 = vmatpush3.bf16.msra.mxu1 %v26165_v51  ;;  %20089 = vmatprep.mubr.bf16.mxu1 %v4929_v57  ;;  %v26206_v54 = vld [vmem:[%s32109_s1 + $0x36a8] sm:$0xff]   ;;  %v26208_v57 = vld [vmem:[%s32109_s1 + $0x3620] sm:$0xff]  }
 0x6a6   :  { %v24042_v60 = vpop.f32.mrf.mxu0  ;;  %v24062_v61 = vpop.f32.mrf.mxu1  ;;  %24355 = vmatprep.subr.bf16.mxu1 %v26168_v53  ;;  %v26207_v53 = vld [vmem:[%s32109_s1 + $0x3660] sm:$0xff]  }
 0x6a7   :  { %v19492_v63 = vadd.f32 %v24041_v58, %v31810_v13  ;;  %v24063_v0 = vadd.f32 %v24062_v61, %v24061_v55  ;;  %24334 = vmatpush3.bf16.msra.mxu0 %v26167_v56  ;;  %v26180_v13 = vld [vmem:[%s32109_s1 + $0x35d8] sm:$0xff]   ;;  %v26209_v56 = vld [vmem:[%s32109_s1 + $0x36e0] sm:$0xff]  }
 0x6a8   :  { %v24043_v2 = vpop.f32.mrf.mxu0  ;;  %v24064_v4 = vpop.f32.mrf.mxu1  ;;  %24335 = vmatprep.subr.bf16.mxu0 %v26170_v59  ;;  %v26211_v58 = vld [vmem:[%s32109_s1 + $0x3658] sm:$0xff]   ;;  %v26210_v59 = vld [vmem:[%s32109_s1 + $0x36a0] sm:$0xff]  }
 0x6a9   :  { %v31918_v5 = vadd.f32 %v24063_v0, %v19492_v63  ;;  %24356 = vmatpush3.bf16.msra.mxu1 %v26169_v62  ;;  %v26213_v60 = vld [vmem:[%s32109_s1 + $0x36d8] sm:$0xff]   ;;  %v26215_v62 = vld [vmem:[%s32109_s1 + $0x3650] sm:$0xff]   ;;  %v26219_v2 = vld [vmem:[%s32109_s1 + $0x3648] sm:$0xff]  }
 0x6aa   :  { %v24065_v8 = vpop.f32.mrf.mxu1  ;;  %24357 = vmatprep.subr.bf16.mxu1 %v26172_v1  ;;  %v26212_v61 = vld [vmem:[%s32109_s1 + $0x3618] sm:$0xff]   ;;  %v26217_v0 = vld [vmem:[%s32109_s1 + $0x36d0] sm:$0xff]   ;;  %v26221_v4 = vld [vmem:[%s32109_s1 + $0x36c8] sm:$0xff]  }
 0x6ab   :  { %24336 = vmatpush3.bf16.msra.mxu0 %v26171_v3  ;;  %v26214_v63 = vld [vmem:[%s32109_s1 + $0x3698] sm:$0xff]   ;;  %v26216_v1 = vld [vmem:[%s32109_s1 + $0x3610] sm:$0xff]   ;;  %v26225_v8 = vld [vmem:[%s32109_s1 + $0x36c0] sm:$0xff]  }
 0x6ac   :  { %24337 = vmatprep.subr.bf16.mxu0 %v26174_v6  ;;  %v26218_v3 = vld [vmem:[%s32109_s1 + $0x3690] sm:$0xff]   ;;  %v26223_v6 = vld [vmem:[%s32109_s1 + $0x3640] sm:$0xff]  }
 0x6ad   :  { %24358 = vmatpush3.bf16.msra.mxu1 %v26173_v7  ;;  %v26222_v7 = vld [vmem:[%s32109_s1 + $0x3688] sm:$0xff]  }
 0x6ae   :  { %24359 = vmatprep.subr.bf16.mxu1 %v26176_v9  ;;  %v43_v9 = vld [vmem:[%s32108_s0 + $0xd8] sm:$0x1f] }
 0x6af   :  { %24338 = vmatpush3.bf16.msra.mxu0 %v26175_v10  ;;  %v26224_v10 = vld [vmem:[%s32109_s1 + $0x3600] sm:$0xff]  }
 0x6b0   :  { %24339 = vmatprep.subr.bf16.mxu0 %v26178_v11  ;;  %v4937_v11 = vrot.slane %v43_v9, %v26383_v41 }
 0x6b1   :  { %24360 = vmatpush3.bf16.msra.mxu1 %v26177_v12 }
 0x6b2   :  { %24361 = vmatprep.subr.bf16.mxu1 %v26180_v13  ;;  %v4945_v12 = vcombine.high %v4937_v11, %v4937_v11  ;;  %v4952_v13 = vrot.slane %v4937_v11, %v26383_v41 }
 0x6b3   :  { %24340 = vmatpush3.bf16.msra.mxu0 %v26179_v14  ;;  %v26227_v14 = vld [vmem:[%s32109_s1 + $0x3680] sm:$0xff]  }
 0x6b4   :  { %24341 = vmatprep.subr.bf16.mxu0 %v26182_v15  ;;  %v4966_v15 = vrot.slane %v4945_v12, %v26383_v41 }
 0x6b5   :  { %24362 = vmatpush3.bf16.msra.mxu1 %v26181_v16  ;;  %v26228_v16 = vld [vmem:[%s32109_s1 + $0x3718] sm:$0xff]  }
 0x6b6   :  { %24363 = vmatprep.subr.bf16.mxu1 %v26184_v17 }
 0x6b7   :  { %24342 = vmatpush3.bf16.msra.mxu0 %v26183_v18 }
 0x6b8   :  { %24343 = vmatprep.subr.bf16.mxu0 %v26186_v19 }
 0x6b9   :  { %24364 = vmatpush3.bf16.msra.mxu1 %v26185_v20 }
 0x6ba   :  { %24365 = vmatprep.subr.bf16.mxu1 %v26188_v21 }
 0x6bb   :  { %24344 = vmatpush3.bf16.msra.mxu0 %v26187_v22 }
 0x6bc   :  { %24345 = vmatprep.subr.bf16.mxu0 %v26190_v23 }
 0x6bd   :  { %24366 = vmatpush3.bf16.msra.mxu1 %v26189_v24 }
 0x6be   :  { %24367 = vmatprep.subr.bf16.mxu1 %v26192_v25 }
 0x6bf   :  { %24346 = vmatpush3.bf16.msra.mxu0 %v26191_v26 }
 0x6c0   :  { %24375 = vmatprep.subr.bf16.mxu0 %v26195_v28 }
 0x6c1   :  { %24368 = vmatpush3.bf16.msra.mxu1 %v26194_v29 }
 0x6c2   :  { %v24083_v34 = vpop.f32.mrf.mxu0  ;;  %20050 = vmatmul.mubr.bf16.vlgmr.msra.gmra.mxu0 %v4911_v27  ;;  %24397 = vmatprep.subr.bf16.mxu1 %v26197_v30 }
 0x6c3   :  { %24376 = vmatpush3.bf16.msra.mxu0 %v26196_v31 }
 0x6c4   :  { %v24084_v37 = vpop.f32.mrf.mxu0  ;;  %v24105_v38 = vpop.f32.mrf.mxu1  ;;  %20090 = vmatmul.mubr.bf16.vlgmr.msra.gmra.mxu1 %v4927_v32  ;;  %24377 = vmatprep.subr.bf16.mxu0 %v26199_v33 }
 0x6c5   :  { %v24085_v40 = vadd.f32 %v24084_v37, %v24083_v34  ;;  %24398 = vmatpush3.bf16.msra.mxu1 %v26198_v35 }
 0x6c6   :  { %v24086_v43 = vpop.f32.mrf.mxu0  ;;  %v24106_v44 = vpop.f32.mrf.mxu1  ;;  %24399 = vmatprep.subr.bf16.mxu1 %v26201_v36 }
 0x6c7   :  { %v19572_v46 = vadd.f32 %v24085_v40, %v31918_v5  ;;  %v24107_v47 = vadd.f32 %v24106_v44, %v24105_v38  ;;  %24378 = vmatpush3.bf16.msra.mxu0 %v26200_v39  ;;  %v26220_v5 = vld [vmem:[%s32109_s1 + $0x3608] sm:$0xff]  }
 0x6c8   :  { %v24087_v49 = vpop.f32.mrf.mxu0  ;;  %v24108_v51 = vpop.f32.mrf.mxu1  ;;  %24379 = vmatprep.subr.bf16.mxu0 %v26203_v42 }
 0x6c9   :  { %v32019_v52 = vadd.f32 %v24107_v47, %v19572_v46  ;;  %24400 = vmatpush3.bf16.msra.mxu1 %v26202_v45 }
 0x6ca   :  { %v24109_v55 = vpop.f32.mrf.mxu1  ;;  %24401 = vmatprep.subr.bf16.mxu1 %v26205_v48 }
 0x6cb   :  { %24380 = vmatpush3.bf16.msra.mxu0 %v26204_v50 }
 0x6cc   :  { %24381 = vmatprep.subr.bf16.mxu0 %v26207_v53 }
 0x6cd   :  { %24402 = vmatpush3.bf16.msra.mxu1 %v26206_v54 }
 0x6ce   :  { %24403 = vmatprep.subr.bf16.mxu1 %v26209_v56 }
 0x6cf   :  { %24382 = vmatpush3.bf16.msra.mxu0 %v26208_v57 }
 0x6d0   :  { %24383 = vmatprep.subr.bf16.mxu0 %v26211_v58 }
 0x6d1   :  { %24404 = vmatpush3.bf16.msra.mxu1 %v26210_v59 }
 0x6d2   :  { %24405 = vmatprep.subr.bf16.mxu1 %v26213_v60 }
 0x6d3   :  { %24384 = vmatpush3.bf16.msra.mxu0 %v26212_v61 }
 0x6d4   :  { %24385 = vmatprep.subr.bf16.mxu0 %v26215_v62 }
 0x6d5   :  { %24406 = vmatpush3.bf16.msra.mxu1 %v26214_v63 }
 0x6d6   :  { %24407 = vmatprep.subr.bf16.mxu1 %v26217_v0 }
 0x6d7   :  { %24386 = vmatpush3.bf16.msra.mxu0 %v26216_v1 }
 0x6d8   :  { %24387 = vmatprep.subr.bf16.mxu0 %v26219_v2 }
 0x6d9   :  { %24408 = vmatpush3.bf16.msra.mxu1 %v26218_v3 }
 0x6da   :  { %24409 = vmatprep.subr.bf16.mxu1 %v26221_v4 }
 0x6db   :  { %24388 = vmatpush3.bf16.msra.mxu0 %v26220_v5 }
 0x6dc   :  { %24389 = vmatprep.subr.bf16.mxu0 %v26223_v6 }
 0x6dd   :  { %24410 = vmatpush3.bf16.msra.mxu1 %v26222_v7 }
 0x6de   :  { %24411 = vmatprep.subr.bf16.mxu1 %v26225_v8 }
 0x6df   :  { %24390 = vmatpush3.bf16.msra.mxu0 %v26224_v10 }
 0x6e0   :  { %8 = vsyncpa [#allocation3], 0  ;;  %v26255_v17 = vmov 0.0   ;;  %v4967_v18 = vcombine.high %v4952_v13, %v4952_v13  ;;  %20129 = vmatprep.mubr.bf16.mxu0 %v4966_v15  ;;  %v4968_v20 = vcombine.high %v4966_v15, %v4966_v15  ;;  %v26229_v23 = vld [vmem:[%s32109_s1 + $0x3710] sm:$0xff]   ;;  %vm26256_vm0 = vmmov 0   ;;  %v26230_v31 = vld [vmem:[%s32109_s1 + $0x3708] sm:$0xff]  }
 0x6e1   :  { %24424 = vmatprep.subr.bf16.mxu0 %v26255_v17  ;;  %24412 = vmatpush3.bf16.msra.mxu1 %v26227_v14  ;;  %v4930_v27 = vcombine.high %v43_v9, %v43_v9  ;;  %v26231_v36 = vld [vmem:[%s32109_s1 + $0x3700] sm:$0xff]   ;;  %vm15773_vm1 = vcmask 523264   ;;  %s26257_s1 = smov [#allocation2]   ;;  %vm20217_vm2 = vcmask 25600  }
 0x6e2   :  { %v24127_v19 = vpop.f32.mrf.mxu0  ;;  %20130 = vmatmul.mubr.bf16.vlgmr.msra.gmra.mxu0 %v4952_v13  ;;  %20169 = vmatprep.mubr.bf16.mxu1 %v4968_v20  ;;  %s20225_s29 = sshll.u32 %s26257_s1, 4  ;;  %s20226_s29 = int_to_ptr.vmem [resolvable:$true] %s20225_s29 }
 0x6e3   :  { %24425 = vmatpush3.bf16.msra.mxu0 %v26228_v16  ;;  %24432 = vmatprep.mubr.msk.bf16.mxu0 %vm26256_vm0, %v26255_v17  ;;  %v4944_v35 = vrot.slane %v4930_v27, %v26383_v41  ;;  %s26232_s30 = scalar_lea.vmem %s20226_s29, 32  ;;  %p26237_p1 = scmp.lt.s32.totalorder %s20226_s29, %s20226_s29 }
 0x6e4   :  { %v24128_v21 = vpop.f32.mrf.mxu0  ;;  %v24149_v22 = vpop.f32.mrf.mxu1  ;;  %20170 = vmatmul.mubr.bf16.vlgmr.msra.gmra.mxu1 %v4967_v18  ;;  %24426 = vmatprep.subr.bf16.mxu0 %v26255_v17  ;;  %p26233_p0 = scmp.ne.s32.totalorder %s20226_s29, %s26232_s30  ;;  %p26238_p2 = scmp.lt.s32.totalorder %s26232_s30, %s26232_s30 }
 0x6e5   :  { %v24129_v24 = vadd.f32 %v24128_v21, %v24127_v19  ;;  %v4959_v37 = vrot.slane %v4944_v35, %v26383_v41 }
 0x6e6   :  { %v24130_v25 = vpop.f32.mrf.mxu0  ;;  %v24150_v26 = vpop.f32.mrf.mxu1  ;;  %p26239_p3 = por %p26238_p2, %p26237_p1 }
 0x6e7   :  { %v19652_v28 = vadd.f32 %v24129_v24, %v32019_v52  ;;  %v24151_v29 = vadd.f32 %v24150_v26, %v24149_v22  ;;  %24427 = vmatpush3.bf16.msra.mxu0 %v26229_v23 }
 0x6e8   :  { %v24131_v30 = vpop.f32.mrf.mxu0  ;;  %v24152_v32 = vpop.f32.mrf.mxu1  ;;  %24428 = vmatprep.subr.bf16.mxu0 %v26255_v17  ;;  %p26240_p4 = pnand %p26239_p3, %p26233_p0 }
 0x6e9   :  { %v19692_v33 = vadd.f32 %v24151_v29, %v19652_v28 }
 0x6ea   :  { %v24153_v34 = vpop.f32.mrf.mxu1 }
 0x6eb   :  { %24429 = vmatpush3.bf16.msra.mxu0 %v26230_v31 }
 0x6ec   :  { %24430 = vmatprep.subr.bf16.mxu0 %v26255_v17 }
 0x6ef   :  { %24431 = vmatpush3.bf16.msra.mxu0 %v26231_v36 }
 0x6f2   :  { %24433 = vmatmul.mubr.msk.bf16.vlgmr.msra.gmra.mxu0 %vm15773_vm1, %v4959_v37 }
 0x702   :  { %v24171_v38 = vpop.f32.mrf.mxu0 }
 0x704   :  { %v24172_v39 = vpop.f32.mrf.mxu0  ;;  %v24193_v40 = vpop.f32.mrf.mxu1 }
 0x705   :  { %v24173_v42 = vadd.f32 %v24172_v39, %v24171_v38 }
 0x706   :  { %v24174_v43 = vpop.f32.mrf.mxu0  ;;  %v24194_v44 = vpop.f32.mrf.mxu1 }
 0x707   :  { %v19732_v45 = vadd.f32 %v24173_v42, %v19692_v33  ;;  %v24195_v46 = vadd.f32 %v24194_v44, %v24193_v40 }
 0x708   :  { %v24175_v47 = vpop.f32.mrf.mxu0  ;;  %v24196_v48 = vpop.f32.mrf.mxu1 }
 0x709   :  { %v19772_v49 = vadd.f32 %v24195_v46, %v19732_v45 }
 0x70a   :  { %v24197_v50 = vpop.f32.mrf.mxu1 }
 0x722   :  { %v24215_v51 = vpop.f32.mrf.mxu0 }
 0x724   :  { %v24216_v52 = vpop.f32.mrf.mxu0  ;;  %v24237_v53 = vpop.f32.mrf.mxu1 }
 0x725   :  { %v24217_v54 = vadd.f32 %v24216_v52, %v24215_v51 }
 0x726   :  { %v24218_v41 = vpop.f32.mrf.mxu0  ;;  %v24238_v55 = vpop.f32.mrf.mxu1 }
 0x727   :  { %v19812_v56 = vadd.f32 %v24217_v54, %v19772_v49  ;;  %v24239_v57 = vadd.f32 %v24238_v55, %v24237_v53 }
 0x728   :  { %v24219_v58 = vpop.f32.mrf.mxu0  ;;  %v24240_v59 = vpop.f32.mrf.mxu1 }
 0x729   :  { %v19852_v60 = vadd.f32 %v24239_v57, %v19812_v56 }
 0x72a   :  { %v24241_v61 = vpop.f32.mrf.mxu1 }
 0x742   :  { %v24259_v62 = vpop.f32.mrf.mxu0 }
 0x744   :  { %v24260_v63 = vpop.f32.mrf.mxu0  ;;  %v24281_v0 = vpop.f32.mrf.mxu1 }
 0x745   :  { %v24261_v1 = vadd.f32 %v24260_v63, %v24259_v62 }
 0x746   :  { %v24262_v2 = vpop.f32.mrf.mxu0  ;;  %v24282_v3 = vpop.f32.mrf.mxu1 }
 0x747   :  { %v19892_v4 = vadd.f32 %v24261_v1, %v19852_v60  ;;  %v24283_v5 = vadd.f32 %v24282_v3, %v24281_v0 }
 0x748   :  { %v24263_v6 = vpop.f32.mrf.mxu0  ;;  %v24284_v7 = vpop.f32.mrf.mxu1 }
 0x749   :  { %v19932_v8 = vadd.f32 %v24283_v5, %v19892_v4 }
 0x74a   :  { %v24285_v9 = vpop.f32.mrf.mxu1 }
 0x762   :  { %v24303_v10 = vpop.f32.mrf.mxu0 }
 0x764   :  { %v24304_v11 = vpop.f32.mrf.mxu0  ;;  %v24325_v12 = vpop.f32.mrf.mxu1 }
 0x765   :  { %v24305_v13 = vadd.f32 %v24304_v11, %v24303_v10 }
 0x766   :  { %v24306_v14 = vpop.f32.mrf.mxu0  ;;  %v24326_v15 = vpop.f32.mrf.mxu1 }
 0x767   :  { %v19972_v16 = vadd.f32 %v24305_v13, %v19932_v8  ;;  %v24327_v17 = vadd.f32 %v24326_v15, %v24325_v12 }
 0x768   :  { %v24307_v18 = vpop.f32.mrf.mxu0  ;;  %v24328_v19 = vpop.f32.mrf.mxu1 }
 0x769   :  { %v20012_v20 = vadd.f32 %v24327_v17, %v19972_v16 }
 0x76a   :  { %v24329_v21 = vpop.f32.mrf.mxu1 }
 0x782   :  { %v24347_v22 = vpop.f32.mrf.mxu0 }
 0x784   :  { %v24348_v23 = vpop.f32.mrf.mxu0  ;;  %v24369_v24 = vpop.f32.mrf.mxu1 }
 0x785   :  { %v24349_v31 = vadd.f32 %v24348_v23, %v24347_v22 }
 0x786   :  { %v24350_v25 = vpop.f32.mrf.mxu0  ;;  %v24370_v26 = vpop.f32.mrf.mxu1 }
 0x787   :  { %v20052_v36 = vadd.f32 %v24349_v31, %v20012_v20  ;;  %v24371_v37 = vadd.f32 %v24370_v26, %v24369_v24 }
 0x788   :  { %v24351_v27 = vpop.f32.mrf.mxu0  ;;  %v24372_v28 = vpop.f32.mrf.mxu1 }
 0x789   :  { %v20092_v43 = vadd.f32 %v24371_v37, %v20052_v36 }
 0x78a   :  { %v24373_v29 = vpop.f32.mrf.mxu1 }
 0x7a2   :  { %v24391_v30 = vpop.f32.mrf.mxu0 }
 0x7a4   :  { %v24392_v32 = vpop.f32.mrf.mxu0  ;;  %v24413_v33 = vpop.f32.mrf.mxu1 }
 0x7a5   :  { %v24393_v40 = vadd.f32 %v24392_v32, %v24391_v30 }
 0x7a6   :  { %v24394_v34 = vpop.f32.mrf.mxu0  ;;  %v24414_v35 = vpop.f32.mrf.mxu1 }
 0x7a7   :  { %v20132_v44 = vadd.f32 %v24393_v40, %v20092_v43  ;;  %v24415_v45 = vadd.f32 %v24414_v35, %v24413_v33 }
 0x7a8   :  { %v24395_v38 = vpop.f32.mrf.mxu0  ;;  %v24416_v39 = vpop.f32.mrf.mxu1 }
 0x7a9   :  { %v20172_v46 = vadd.f32 %v24415_v45, %v20132_v44 }
 0x7aa   :  { %v24417_v42 = vpop.f32.mrf.mxu1 }
 0x7b2   :  { %v20211_v47 = vpop.f32.mrf.mxu0 }
 0x7b3   :  { %v20212_v48 = vadd.f32 %v20211_v47, %v20172_v46 }
 0x7b4   :  { %v24434_v49 = vpop.f32.mrf.mxu0 }
 0x7b5   :  { %20218 = vst.msk [vmem:[#allocation2] sm:$0x3] %vm20217_vm2, %v20212_v48 }
 0x7b6   :  { %v20214_v50 = vpop.f32.mrf.mxu0 }
 0x7b7   :  { %26243 = shalt.err (!%p26240_p4)
}
 0x7b8   :  { %20228 = dma.vmem_to_hbm [thread:$0]  %s20226_s29, 32, %s32111_s3, [#allocation3]   ;;  %v24435_v51 = vpop.f32.mrf.mxu0 }
 0x7b9   :  { %26252 = dma.done.wait [#allocation3], 32  }
 0x7ba   :  { %26253 = vsyncadd [#allocation3], 4294967264 }
 0x7bb   :  { %20232 = vsyncpa [#allocation3], 1 }

</bundles_post_ra>
